<compile_context>
chip_gen: v7x
topology: tpu7x:2x2x1
jax: 0.10.0
libtpu: 0.0.40
codegen_flags: <defaults>
</compile_context>

<pallas_src>
import math

import jax
import jax.numpy as jnp
from jax.experimental import pallas as pl
from jax.experimental.pallas import tpu as pltpu

F_IN = 14            # phyre.FeaturizedObjects._NUM_FEATURES
F_PAD = 16           # feature dim padded to a sublane multiple (zeros)
D_MODEL = 128        # self.embedding_size
N_HEAD = 8
HEAD_DIM = D_MODEL // N_HEAD
D_FF = 2048          # TransformerEncoderLayer default dim_feedforward
N_LAYERS = 6
HIDDEN_AGG = 100     # self.aggregate_hidden_size (zero-padded to 128 for the kernel)
OUT_STATES = 3       # self.output_size
LN_EPS = 1e-5
NEG_INF = -1e30      # stands in for the -inf key-padding mask additive bias


# ----------------------------------------------------------------------------
# in-kernel helpers
# ----------------------------------------------------------------------------
def _layernorm(x, w, b):
    mu = jnp.mean(x, axis=-1, keepdims=True)
    xc = x - mu
    var = jnp.mean(xc * xc, axis=-1, keepdims=True)
    return xc * jax.lax.rsqrt(var + LN_EPS) * w + b


# ----------------------------------------------------------------------------
# the single fused kernel: encoder -> 6 transformer layers -> predict_states
# ----------------------------------------------------------------------------
def _fused_forward_kernel(
        x_ref, kb_ref, pe_ref,
        ew1_ref, eb1_ref, ew2_ref, eb2_ref,
        wqkv_ref, bqkv_ref, wo_ref, w1_ref, b1_ref, w2_ref, vecs_ref,
        hw1_ref, hb1_ref, hw2_ref, hb2_ref, hw3_ref, hb3_ref,
        o_ref,
        h_scr):
    layer = pl.program_id(1)
    Bb, S, _ = x_ref.shape
    O = o_ref.shape[1]
    M = Bb * S

    # ---------------- prologue: encoder MLP + pos-enc + * sqrt(d) -------------
    @pl.when(layer == 0)
    def _():
        xf = x_ref[...].reshape(M, F_PAD)
        e = jnp.maximum(
            jnp.dot(xf, ew1_ref[...], preferred_element_type=jnp.float32)
            + eb1_ref[...], 0.0)
        e = jnp.dot(e, ew2_ref[...], preferred_element_type=jnp.float32) + eb2_ref[...]
        e = e.reshape(Bb, S, D_MODEL) + pe_ref[...][None, :, :]
        h_scr[...] = e * jnp.float32(math.sqrt(D_MODEL))

    bias = kb_ref[...]                                   # (Bb, 1, S) key-pad bias

    hf = h_scr[...].reshape(M, D_MODEL)                  # (M, 128) f32
    vecs = vecs_ref[layer]                               # (6,128): bo,ln1w,ln1b,b2,ln2w,ln2b

    # ---------------- multi-head self-attention (fused QKV, bf16 weights) -----
    qkv = (jnp.dot(hf.astype(jnp.bfloat16), wqkv_ref[layer],
                   preferred_element_type=jnp.float32) + bqkv_ref[layer])
    scale = jnp.float32(1.0 / math.sqrt(HEAD_DIM))

    ctx_heads = []
    for hd in range(N_HEAD):
        lo = hd * HEAD_DIM
        qh = qkv[:, lo:lo + HEAD_DIM].reshape(Bb, S, HEAD_DIM)
        kh = qkv[:, D_MODEL + lo:D_MODEL + lo + HEAD_DIM].reshape(Bb, S, HEAD_DIM)
        vh = qkv[:, 2 * D_MODEL + lo:2 * D_MODEL + lo + HEAD_DIM].reshape(
            Bb, S, HEAD_DIM)

        logits = jnp.einsum("bqd,bkd->bqk", qh, kh,
                            preferred_element_type=jnp.float32) * scale + bias
        logits = logits - jnp.max(logits, axis=-1, keepdims=True)
        p = jnp.exp(logits)
        p = p * pl.reciprocal(jnp.sum(p, axis=-1, keepdims=True), approx=True)
        ctx_heads.append(jnp.einsum("bqk,bkd->bqd", p, vh,
                                    preferred_element_type=jnp.float32))

    # single full-width output projection: one (M,128)@(128,128) MXU op instead of
    # eight K=16 per-head dots (the lane concat goes through the XLU, which has slack)
    ctx = jnp.concatenate(ctx_heads, axis=-1).reshape(M, D_MODEL)
    attn = jnp.dot(ctx.astype(jnp.bfloat16), wo_ref[layer],
                   preferred_element_type=jnp.float32) + vecs[0:1, :]

    h1 = _layernorm(hf + attn, vecs[1:2, :], vecs[2:3, :])

    # ---------------- feed-forward block --------------------------------------
    ffn = jnp.maximum(
        jnp.dot(h1.astype(jnp.bfloat16), w1_ref[layer],
                preferred_element_type=jnp.float32) + b1_ref[layer], 0.0)
    ffn = jnp.dot(ffn.astype(jnp.bfloat16), w2_ref[layer],
                  preferred_element_type=jnp.float32) + vecs[3:4, :]
    h2 = _layernorm(h1 + ffn, vecs[4:5, :], vecs[5:6, :])

    h_scr[...] = h2.reshape(Bb, S, D_MODEL)

    # ---------------- epilogue: predict_states MLP on last-frame tokens -------
    @pl.when(layer == N_LAYERS - 1)
    def _():
        hl = h2.reshape(Bb, S, D_MODEL)[:, S - O:, :].reshape(Bb * O, D_MODEL)
        z = jnp.maximum(
            jnp.dot(hl, hw1_ref[...], preferred_element_type=jnp.float32)
            + hb1_ref[...], 0.0)
        z = jnp.maximum(
            jnp.dot(z, hw2_ref[...], preferred_element_type=jnp.float32)
            + hb2_ref[...], 0.0)
        z = jnp.dot(z, hw3_ref[...], preferred_element_type=jnp.float32) + hb3_ref[...]
        o_ref[...] = z.reshape(Bb, O, D_MODEL)


def _pick_batch_block(B, max_bb=16):
    # M = Bb * S >= ~256 when B allows, while staying comfortably inside v7x VMEM
    for bb in range(min(B, max_bb), 0, -1):
        if B % bb == 0:
            return bb
    return 1


# ----------------------------------------------------------------------------
# full forward pass (single pallas_call; tiny glue in plain JAX)
# ----------------------------------------------------------------------------
def forward(x, params):
    B, T, O, F = x.shape
    S = T * O
    Bb = _pick_batch_block(B)
    nb = B // Bb
    st = params["stacked"]

    fixed_feats = x[:, 0, :, 3:]                                   # (B, O, 11)
    x_seq = jnp.pad(x.reshape(B, S, F), ((0, 0), (0, 0), (0, F_PAD - F)))
    # key-padding additive bias computed once on the host (matches torch row_sum==0)
    key_bias = jnp.where(jnp.sum(x_seq, axis=-1) == 0.0,
                         jnp.float32(NEG_INF), jnp.float32(0.0)).reshape(B, 1, S)
    pe_tok = jnp.repeat(params["pe"], O, axis=0)                   # (S, 128)

    def batch_spec(shape):
        nz = len(shape) - 1
        return pl.BlockSpec(shape, lambda b, l: (b,) + (0,) * nz)

    def const_spec(arr):
        n = arr.ndim
        return pl.BlockSpec(arr.shape, lambda b, l: (0,) * n)

    in_specs = [
        batch_spec((Bb, S, F_PAD)),                                # x
        batch_spec((Bb, 1, S)),                                    # key-pad bias
        const_spec(pe_tok),                                        # pe tokens
        const_spec(params["enc_w1t_pad"]), const_spec(params["enc_b1"]),
        const_spec(params["enc_w2t"]), const_spec(params["enc_b2"]),
        # VMEM-resident stacked per-layer weights (constant index_map -> one DMA)
        const_spec(st["wqkv"]), const_spec(st["bqkv"]), const_spec(st["wo"]),
        const_spec(st["w1"]), const_spec(st["b1"]), const_spec(st["w2"]),
        const_spec(st["vecs"]),
        const_spec(params["hd_w1t_pad"]), const_spec(params["hd_b1_pad"]),
        const_spec(params["hd_w2t_pad"]), const_spec(params["hd_b2_pad"]),
        const_spec(params["hd_w3t_pad"]), const_spec(params["hd_b3_pad"]),
    ]

    out = pl.pallas_call(
        _fused_forward_kernel,
        out_shape=jax.ShapeDtypeStruct((B, O, D_MODEL), jnp.float32),
        grid=(nb, N_LAYERS),
        in_specs=in_specs,
        out_specs=pl.BlockSpec((Bb, O, D_MODEL), lambda b, l: (b, 0, 0)),
        scratch_shapes=[pltpu.VMEM((Bb, S, D_MODEL), jnp.float32)],
        compiler_params=pltpu.CompilerParams(
            dimension_semantics=("parallel", "arbitrary"),
            vmem_limit_bytes=48 * 1024 * 1024),
    )(x_seq, key_bias, pe_tok,
      params["enc_w1t_pad"], params["enc_b1"], params["enc_w2t"], params["enc_b2"],
      st["wqkv"], st["bqkv"], st["wo"], st["w1"], st["b1"], st["w2"], st["vecs"],
      params["hd_w1t_pad"], params["hd_b1_pad"], params["hd_w2t_pad"],
      params["hd_b2_pad"], params["hd_w3t_pad"], params["hd_b3_pad"])

    states = out[:, :, :OUT_STATES]                                # (B, O, 3)
    return jnp.concatenate([states, fixed_feats], axis=2)          # (B, O, 14)


# ----------------------------------------------------------------------------
# pure-JAX reference (mirrors the PyTorch forward), for a correctness check
# ----------------------------------------------------------------------------
def _ref_layer(h, bias, lp):
    (wq, wk, wv, bq, bk, bv, wo, bo, ln1w, ln1b, w1, b1, w2, b2, ln2w, ln2b) = lp
    B, S, D = h.shape

    def ln(z, w, b):
        mu = jnp.mean(z, -1, keepdims=True)
        zc = z - mu
        var = jnp.mean(zc * zc, -1, keepdims=True)
        return zc * jax.lax.rsqrt(var + LN_EPS) * w + b

    q = (h @ wq + bq).reshape(B, S, N_HEAD, HEAD_DIM).transpose(0, 2, 1, 3)
    k = (h @ wk + bk).reshape(B, S, N_HEAD, HEAD_DIM).transpose(0, 2, 1, 3)
    v = (h @ wv + bv).reshape(B, S, N_HEAD, HEAD_DIM).transpose(0, 2, 1, 3)
    logits = jnp.einsum("bhqd,bhkd->bhqk", q, k) / math.sqrt(HEAD_DIM)
    logits = logits + bias[:, None, None, :]
    p = jax.nn.softmax(logits, axis=-1)
    ctx = jnp.einsum("bhqk,bhkd->bhqd", p, v).transpose(0, 2, 1, 3).reshape(B, S, D)
    h = ln(h + ctx @ wo + bo, ln1w, ln1b)
    f = jnp.maximum(h @ w1 + b1, 0.0) @ w2 + b2
    return ln(h + f, ln2w, ln2b)


def reference_forward(x, params):
    B, T, O, F = x.shape
    S = T * O
    is_pad = jnp.sum(x, -1) == 0
    fixed_feats = x[:, 0, :, 3:]

    h = x.reshape(B, S, F)
    h = jnp.maximum(h @ params["enc_w1t"] + params["enc_b1"], 0.0)
    h = h @ params["enc_w2t"] + params["enc_b2"]
    h = h.reshape(B, T, O, D_MODEL) + params["pe"][:, None, :]
    h = (h * math.sqrt(D_MODEL)).reshape(B, S, D_MODEL)

    bias = jnp.where(is_pad.reshape(B, S), NEG_INF, 0.0).astype(jnp.float32)
    for lp in params["layers"]:
        h = _ref_layer(h, bias, lp)

    h = h[:, -O:, :]
    h = jnp.maximum(h @ params["hd_w1t"] + params["hd_b1"], 0.0)
    h = jnp.maximum(h @ params["hd_w2t"] + params["hd_b2"], 0.0)
    states = h @ params["hd_w3t"] + params["hd_b3"]
    return jnp.concatenate([states, fixed_feats], axis=2)


# ----------------------------------------------------------------------------
# deterministic synthetic parameters (same shapes as the torch module)
# ----------------------------------------------------------------------------
def init_params(key, hist_frames):
    keys = iter(jax.random.split(key, 160))

    def w(shape, fan_in, scale=1.0):
        return scale * jax.random.normal(next(keys), shape, jnp.float32) / math.sqrt(fan_in)

    def bvec(n):
        return 0.02 * jax.random.normal(next(keys), (1, n), jnp.float32)

    def bf16_rt(a):
        # round-trip through bf16: this IS the storage precision the kernel uses,
        # so the reference sees exactly the same weight values
        return a.astype(jnp.bfloat16).astype(jnp.float32)

    # sinusoidal positional encoding, exactly as FwdPositionalEncoding builds it
    position = jnp.arange(hist_frames, dtype=jnp.float32)[:, None]
    div_term = jnp.exp(jnp.arange(0, D_MODEL, 2, dtype=jnp.float32)
                       * (-math.log(10000.0) / D_MODEL))
    ang = position * div_term
    pe = jnp.zeros((hist_frames, D_MODEL), jnp.float32)
    pe = pe.at[:, 0::2].set(jnp.sin(ang)).at[:, 1::2].set(jnp.cos(ang))

    # encoder: Linear(14,128) -> ReLU -> Linear(128,128)   (weights stored transposed)
    enc_w1t = w((F_IN, D_MODEL), F_IN)
    enc_w1t_pad = jnp.zeros((F_PAD, D_MODEL), jnp.float32).at[:F_IN].set(enc_w1t)
    enc_b1 = bvec(D_MODEL)
    enc_w2t = w((D_MODEL, D_MODEL), D_MODEL)
    enc_b2 = bvec(D_MODEL)

    layers = []
    for _ in range(N_LAYERS):
        # attention projections scaled down so synthetic logits stay O(1)
        wq = bf16_rt(w((D_MODEL, D_MODEL), D_MODEL, scale=0.125))
        wk = bf16_rt(w((D_MODEL, D_MODEL), D_MODEL, scale=0.125))
        wv = bf16_rt(w((D_MODEL, D_MODEL), D_MODEL))
        bq, bk, bv = bvec(D_MODEL), bvec(D_MODEL), bvec(D_MODEL)
        wo = bf16_rt(w((D_MODEL, D_MODEL), D_MODEL))
        bo = bvec(D_MODEL)
        ln1w = jnp.ones((1, D_MODEL), jnp.float32)
        ln1b = jnp.zeros((1, D_MODEL), jnp.float32)
        w1 = bf16_rt(w((D_MODEL, D_FF), D_MODEL))
        b1 = bvec(D_FF)
        w2 = bf16_rt(w((D_FF, D_MODEL), D_FF))
        b2 = bvec(D_MODEL)
        ln2w = jnp.ones((1, D_MODEL), jnp.float32)
        ln2b = jnp.zeros((1, D_MODEL), jnp.float32)
        layers.append((wq, wk, wv, bq, bk, bv, wo, bo,
                       ln1w, ln1b, w1, b1, w2, b2, ln2w, ln2b))

    # stacked / fused per-layer weights for the kernel (leading layer axis);
    # matmul weights stored in bf16, small vectors packed and kept in f32
    stacked = dict(
        wqkv=jnp.stack([jnp.concatenate([l[0], l[1], l[2]], axis=1)
                        for l in layers]).astype(jnp.bfloat16),
        bqkv=jnp.stack([jnp.concatenate([l[3], l[4], l[5]], axis=1) for l in layers]),
        wo=jnp.stack([l[6] for l in layers]).astype(jnp.bfloat16),
        w1=jnp.stack([l[10] for l in layers]).astype(jnp.bfloat16),
        b1=jnp.stack([l[11] for l in layers]),
        w2=jnp.stack([l[12] for l in layers]).astype(jnp.bfloat16),
        vecs=jnp.stack([jnp.concatenate(
            [l[7], l[8], l[9], l[13], l[14], l[15]], axis=0) for l in layers]),
    )

    # predict_states: Linear(128,100) -> ReLU -> Linear(100,100) -> ReLU -> Linear(100,3)
    hd_w1t = w((D_MODEL, HIDDEN_AGG), D_MODEL)
    hd_b1 = bvec(HIDDEN_AGG)
    hd_w2t = w((HIDDEN_AGG, HIDDEN_AGG), HIDDEN_AGG)
    hd_b2 = bvec(HIDDEN_AGG)
    hd_w3t = w((HIDDEN_AGG, OUT_STATES), HIDDEN_AGG)
    hd_b3 = bvec(OUT_STATES)

    # zero-padded (to 128 lanes) versions for the kernel -- mathematically identical
    hd_w1t_pad = jnp.zeros((D_MODEL, D_MODEL), jnp.float32).at[:, :HIDDEN_AGG].set(hd_w1t)
    hd_b1_pad = jnp.zeros((1, D_MODEL), jnp.float32).at[:, :HIDDEN_AGG].set(hd_b1)
    hd_w2t_pad = jnp.zeros((D_MODEL, D_MODEL), jnp.float32).at[:HIDDEN_AGG, :HIDDEN_AGG].set(hd_w2t)
    hd_b2_pad = jnp.zeros((1, D_MODEL), jnp.float32).at[:, :HIDDEN_AGG].set(hd_b2)
    hd_w3t_pad = jnp.zeros((D_MODEL, D_MODEL), jnp.float32).at[:HIDDEN_AGG, :OUT_STATES].set(hd_w3t)
    hd_b3_pad = jnp.zeros((1, D_MODEL), jnp.float32).at[:, :OUT_STATES].set(hd_b3)

    return dict(
        pe=pe,
        enc_w1t=enc_w1t, enc_w1t_pad=enc_w1t_pad, enc_b1=enc_b1,
        enc_w2t=enc_w2t, enc_b2=enc_b2,
        layers=layers, stacked=stacked,
        hd_w1t=hd_w1t, hd_b1=hd_b1, hd_w2t=hd_w2t, hd_b2=hd_b2,
        hd_w3t=hd_w3t, hd_b3=hd_b3,
        hd_w1t_pad=hd_w1t_pad, hd_b1_pad=hd_b1_pad,
        hd_w2t_pad=hd_w2t_pad, hd_b2_pad=hd_b2_pad,
        hd_w3t_pad=hd_w3t_pad, hd_b3_pad=hd_b3_pad,
    )


# ----------------------------------------------------------------------------
if __name__ == "__main__":
    B, T, O = 2, 3, 8            # batch, hist_frames, objects  -> seq len S = 24
    key = jax.random.PRNGKey(0)
    kx, kp = jax.random.split(key)

    x = jax.random.uniform(kx, (B, T, O, F_IN), dtype=jnp.float32)
    # make the last object of batch 1 an all-zero (padding) row at every frame,
    # so the key-padding mask path is actually exercised
    x = x.at[1, :, O - 1, :].set(0.0)

    params = init_params(kp, T)

    out = jax.block_until_ready(forward(x, params))
    ref = jax.block_until_ready(reference_forward(x, params))

    assert out.shape == (B, O, F_IN), out.shape
    assert bool(jnp.all(jnp.isfinite(out)))
    max_err = float(jnp.max(jnp.abs(out - ref)))
    # kernel runs the transformer matmuls with bf16 inputs (f32 accumulation);
    # the f32 reference shares the identical (bf16-stored) weights
    assert max_err < 5e-2, f"kernel/reference mismatch: {max_err}"

    print("KERNEL_OK")
</pallas_src>

<mosaic_0001>
module attributes {stable_mosaic.version = 11 : i64} {
  func.func @_fused_forward_kernel(%arg0: i32, %arg1: i32, %arg2: memref<2x24x16xf32, #tpu.memory_space<vmem>>, %arg3: memref<2x1x24xf32, #tpu.memory_space<vmem>>, %arg4: memref<24x128xf32, #tpu.memory_space<vmem>>, %arg5: memref<16x128xf32, #tpu.memory_space<vmem>>, %arg6: memref<1x128xf32, #tpu.memory_space<vmem>>, %arg7: memref<128x128xf32, #tpu.memory_space<vmem>>, %arg8: memref<1x128xf32, #tpu.memory_space<vmem>>, %arg9: memref<6x128x384xbf16, #tpu.memory_space<vmem>>, %arg10: memref<6x1x384xf32, #tpu.memory_space<vmem>>, %arg11: memref<6x128x128xbf16, #tpu.memory_space<vmem>>, %arg12: memref<6x128x2048xbf16, #tpu.memory_space<vmem>>, %arg13: memref<6x1x2048xf32, #tpu.memory_space<vmem>>, %arg14: memref<6x2048x128xbf16, #tpu.memory_space<vmem>>, %arg15: memref<6x6x128xf32, #tpu.memory_space<vmem>>, %arg16: memref<128x128xf32, #tpu.memory_space<vmem>>, %arg17: memref<1x128xf32, #tpu.memory_space<vmem>>, %arg18: memref<128x128xf32, #tpu.memory_space<vmem>>, %arg19: memref<1x128xf32, #tpu.memory_space<vmem>>, %arg20: memref<128x128xf32, #tpu.memory_space<vmem>>, %arg21: memref<1x128xf32, #tpu.memory_space<vmem>>, %arg22: memref<2x8x128xf32, #tpu.memory_space<vmem>>, %arg23: memref<2x24x128xf32, #tpu.memory_space<vmem>>) attributes {dimension_semantics = [#tpu.dimension_semantics<parallel>, #tpu.dimension_semantics<arbitrary>], iteration_bounds = array<i64: 1, 6>, scalar_prefetch = 0 : i64, scratch_operands = 1 : i64, tpu.core_type = #tpu.core_type<tc>, window_params = [{transform_indices = @transform_0, window_bounds = array<i64: 2, 24, 16>}, {transform_indices = @transform_1, window_bounds = array<i64: 2, 1, 24>}, {pipeline_mode = #tpu.pipeline_mode<synchronous>, transform_indices = @transform_2, window_bounds = array<i64: 24, 128>}, {pipeline_mode = #tpu.pipeline_mode<synchronous>, transform_indices = @transform_3, window_bounds = array<i64: 16, 128>}, {pipeline_mode = #tpu.pipeline_mode<synchronous>, transform_indices = @transform_4, window_bounds = array<i64: 1, 128>}, {pipeline_mode = #tpu.pipeline_mode<synchronous>, transform_indices = @transform_5, window_bounds = array<i64: 128, 128>}, {pipeline_mode = #tpu.pipeline_mode<synchronous>, transform_indices = @transform_6, window_bounds = array<i64: 1, 128>}, {pipeline_mode = #tpu.pipeline_mode<synchronous>, transform_indices = @transform_7, window_bounds = array<i64: 6, 128, 384>}, {pipeline_mode = #tpu.pipeline_mode<synchronous>, transform_indices = @transform_8, window_bounds = array<i64: 6, 1, 384>}, {pipeline_mode = #tpu.pipeline_mode<synchronous>, transform_indices = @transform_9, window_bounds = array<i64: 6, 128, 128>}, {pipeline_mode = #tpu.pipeline_mode<synchronous>, transform_indices = @transform_10, window_bounds = array<i64: 6, 128, 2048>}, {pipeline_mode = #tpu.pipeline_mode<synchronous>, transform_indices = @transform_11, window_bounds = array<i64: 6, 1, 2048>}, {pipeline_mode = #tpu.pipeline_mode<synchronous>, transform_indices = @transform_12, window_bounds = array<i64: 6, 2048, 128>}, {pipeline_mode = #tpu.pipeline_mode<synchronous>, transform_indices = @transform_13, window_bounds = array<i64: 6, 6, 128>}, {pipeline_mode = #tpu.pipeline_mode<synchronous>, transform_indices = @transform_14, window_bounds = array<i64: 128, 128>}, {pipeline_mode = #tpu.pipeline_mode<synchronous>, transform_indices = @transform_15, window_bounds = array<i64: 1, 128>}, {pipeline_mode = #tpu.pipeline_mode<synchronous>, transform_indices = @transform_16, window_bounds = array<i64: 128, 128>}, {pipeline_mode = #tpu.pipeline_mode<synchronous>, transform_indices = @transform_17, window_bounds = array<i64: 1, 128>}, {pipeline_mode = #tpu.pipeline_mode<synchronous>, transform_indices = @transform_18, window_bounds = array<i64: 128, 128>}, {pipeline_mode = #tpu.pipeline_mode<synchronous>, transform_indices = @transform_19, window_bounds = array<i64: 1, 128>}, {transform_indices = @transform_20, window_bounds = array<i64: 2, 8, 128>}]} {
    %c0_i32 = arith.constant 0 : i32
    %0 = arith.cmpi eq, %arg1, %c0_i32 : i32
    %1 = arith.extui %0 : i1 to i32
    %c0_i32_0 = arith.constant 0 : i32
    %2 = arith.cmpi ne, %1, %c0_i32_0 : i32
    scf.if %2 {
      %c0_78 = arith.constant 0 : index
      %c0_79 = arith.constant 0 : index
      %c0_80 = arith.constant 0 : index
      %276 = vector.load %arg2[%c0_78, %c0_79, %c0_80] : memref<2x24x16xf32, #tpu.memory_space<vmem>>, vector<2x24x16xf32>
      %277 = vector.shape_cast %276 : vector<2x24x16xf32> to vector<48x16xf32>
      %c0_81 = arith.constant 0 : index
      %c0_82 = arith.constant 0 : index
      %278 = vector.load %arg5[%c0_81, %c0_82] : memref<16x128xf32, #tpu.memory_space<vmem>>, vector<16x128xf32>
      %cst_83 = arith.constant dense<0.000000e+00> : vector<48x128xf32>
      %279 = tpu.matmul %277, %278, %cst_83 {dimension_numbers = #tpu.dot_dimension_numbers<[1], [0], [0], [1], [0, 0, 1, 1], [], []>} : vector<48x16xf32>, vector<16x128xf32>, vector<48x128xf32> -> vector<48x128xf32>
      %c0_84 = arith.constant 0 : index
      %c0_85 = arith.constant 0 : index
      %280 = vector.load %arg6[%c0_84, %c0_85] : memref<1x128xf32, #tpu.memory_space<vmem>>, vector<1x128xf32>
      %281 = vector.broadcast %280 : vector<1x128xf32> to vector<48x128xf32>
      %282 = arith.addf %279, %281 : vector<48x128xf32>
      %cst_86 = arith.constant 0.000000e+00 : f32
      %283 = vector.broadcast %cst_86 : f32 to vector<48x128xf32>
      %284 = arith.maximumf %282, %283 : vector<48x128xf32>
      %c0_87 = arith.constant 0 : index
      %c0_88 = arith.constant 0 : index
      %285 = vector.load %arg7[%c0_87, %c0_88] : memref<128x128xf32, #tpu.memory_space<vmem>>, vector<128x128xf32>
      %cst_89 = arith.constant dense<0.000000e+00> : vector<48x128xf32>
      %286 = tpu.matmul %284, %285, %cst_89 {dimension_numbers = #tpu.dot_dimension_numbers<[1], [0], [0], [1], [0, 0, 1, 1], [], []>} : vector<48x128xf32>, vector<128x128xf32>, vector<48x128xf32> -> vector<48x128xf32>
      %c0_90 = arith.constant 0 : index
      %c0_91 = arith.constant 0 : index
      %287 = vector.load %arg8[%c0_90, %c0_91] : memref<1x128xf32, #tpu.memory_space<vmem>>, vector<1x128xf32>
      %288 = vector.broadcast %287 : vector<1x128xf32> to vector<48x128xf32>
      %289 = arith.addf %286, %288 : vector<48x128xf32>
      %290 = vector.shape_cast %289 : vector<48x128xf32> to vector<2x24x128xf32>
      %c0_92 = arith.constant 0 : index
      %c0_93 = arith.constant 0 : index
      %291 = vector.load %arg4[%c0_92, %c0_93] : memref<24x128xf32, #tpu.memory_space<vmem>>, vector<24x128xf32>
      %292 = vector.shape_cast %291 : vector<24x128xf32> to vector<1x24x128xf32>
      %293 = vector.broadcast %292 : vector<1x24x128xf32> to vector<2x24x128xf32>
      %294 = arith.addf %290, %293 : vector<2x24x128xf32>
      %cst_94 = arith.constant 11.3137083 : f32
      %295 = vector.broadcast %cst_94 : f32 to vector<2x24x128xf32>
      %296 = arith.mulf %294, %295 : vector<2x24x128xf32>
      %c0_95 = arith.constant 0 : index
      %c0_96 = arith.constant 0 : index
      %c0_97 = arith.constant 0 : index
      %297 = vector.load %arg23[%c0_95, %c0_96, %c0_97] : memref<2x24x128xf32, #tpu.memory_space<vmem>>, vector<2x24x128xf32>
      tpu.vector_store %arg23[%c0_95, %c0_96, %c0_97], %296 {strides = array<i32>} : memref<2x24x128xf32, #tpu.memory_space<vmem>>, vector<2x24x128xf32>,
    } else {
    }
    %c0 = arith.constant 0 : index
    %c0_1 = arith.constant 0 : index
    %c0_2 = arith.constant 0 : index
    %3 = vector.load %arg3[%c0, %c0_1, %c0_2] : memref<2x1x24xf32, #tpu.memory_space<vmem>>, vector<2x1x24xf32>
    %c0_3 = arith.constant 0 : index
    %c0_4 = arith.constant 0 : index
    %c0_5 = arith.constant 0 : index
    %4 = vector.load %arg23[%c0_3, %c0_4, %c0_5] : memref<2x24x128xf32, #tpu.memory_space<vmem>>, vector<2x24x128xf32>
    %5 = vector.shape_cast %4 : vector<2x24x128xf32> to vector<48x128xf32>
    %6 = arith.index_cast %arg1 : i32 to index
    %c0_6 = arith.constant 0 : index
    %c0_7 = arith.constant 0 : index
    %7 = vector.load %arg15[%6, %c0_6, %c0_7] : memref<6x6x128xf32, #tpu.memory_space<vmem>>, vector<1x6x128xf32>
    %8 = vector.shape_cast %7 : vector<1x6x128xf32> to vector<6x128xf32>
    %9 = arith.truncf %5 : vector<48x128xf32> to vector<48x128xbf16>
    %10 = arith.index_cast %arg1 : i32 to index
    %c0_8 = arith.constant 0 : index
    %c0_9 = arith.constant 0 : index
    %11 = vector.load %arg9[%10, %c0_8, %c0_9] : memref<6x128x384xbf16, #tpu.memory_space<vmem>>, vector<1x128x384xbf16>
    %12 = vector.shape_cast %11 : vector<1x128x384xbf16> to vector<128x384xbf16>
    %cst = arith.constant dense<0.000000e+00> : vector<48x384xf32>
    %13 = tpu.matmul %9, %12, %cst {dimension_numbers = #tpu.dot_dimension_numbers<[1], [0], [0], [1], [0, 0, 1, 1], [], []>} : vector<48x128xbf16>, vector<128x384xbf16>, vector<48x384xf32> -> vector<48x384xf32>
    %14 = arith.index_cast %arg1 : i32 to index
    %c0_10 = arith.constant 0 : index
    %c0_11 = arith.constant 0 : index
    %15 = vector.load %arg10[%14, %c0_10, %c0_11] : memref<6x1x384xf32, #tpu.memory_space<vmem>>, vector<1x1x384xf32>
    %16 = vector.shape_cast %15 : vector<1x1x384xf32> to vector<1x384xf32>
    %17 = vector.broadcast %16 : vector<1x384xf32> to vector<48x384xf32>
    %18 = arith.addf %13, %17 : vector<48x384xf32>
    %19 = vector.extract_strided_slice %18 {offsets = [0, 0], sizes = [48, 16], strides = [1, 1]} : vector<48x384xf32> to vector<48x16xf32>
    %20 = vector.shape_cast %19 : vector<48x16xf32> to vector<2x24x16xf32>
    %21 = vector.extract_strided_slice %18 {offsets = [0, 128], sizes = [48, 16], strides = [1, 1]} : vector<48x384xf32> to vector<48x16xf32>
    %22 = vector.shape_cast %21 : vector<48x16xf32> to vector<2x24x16xf32>
    %23 = vector.extract_strided_slice %18 {offsets = [0, 256], sizes = [48, 16], strides = [1, 1]} : vector<48x384xf32> to vector<48x16xf32>
    %24 = vector.shape_cast %23 : vector<48x16xf32> to vector<2x24x16xf32>
    "tpu.trace_start"() <{level = 10 : i32, message = "bqd,bkd->bqk"}> : () -> ()
    %cst_12 = arith.constant dense<0.000000e+00> : vector<2x24x24xf32>
    %25 = tpu.matmul %20, %22, %cst_12 {dimension_numbers = #tpu.dot_dimension_numbers<[2], [2], [1], [1], [0, 0, 0, 1, 1, 1], [0], [0]>} : vector<2x24x16xf32>, vector<2x24x16xf32>, vector<2x24x24xf32> -> vector<2x24x24xf32>
    "tpu.trace_stop"() : () -> ()
    %cst_13 = arith.constant 2.500000e-01 : f32
    %26 = vector.broadcast %cst_13 : f32 to vector<2x24x24xf32>
    %27 = arith.mulf %25, %26 : vector<2x24x24xf32>
    %28 = vector.broadcast %3 : vector<2x1x24xf32> to vector<2x24x24xf32>
    %29 = arith.addf %27, %28 : vector<2x24x24xf32>
    %cst_14 = arith.constant dense<0xFF800000> : vector<2x24xf32>
    %30 = vector.multi_reduction <maximumf>, %29, %cst_14 [2] : vector<2x24x24xf32> to vector<2x24xf32>
    %31 = vector.shape_cast %30 : vector<2x24xf32> to vector<2x24x1xf32>
    %32 = vector.broadcast %31 : vector<2x24x1xf32> to vector<2x24x24xf32>
    %33 = arith.subf %29, %32 : vector<2x24x24xf32>
    %34 = math.exp %33 : vector<2x24x24xf32>
    %cst_15 = arith.constant dense<0.000000e+00> : vector<2x24xf32>
    %35 = vector.multi_reduction <add>, %34, %cst_15 [2] : vector<2x24x24xf32> to vector<2x24xf32>
    %36 = vector.shape_cast %35 : vector<2x24xf32> to vector<2x24x1xf32>
    %37 = tpu.reciprocal %36 {approx = true} : vector<2x24x1xf32> -> vector<2x24x1xf32>
    %38 = vector.broadcast %37 : vector<2x24x1xf32> to vector<2x24x24xf32>
    %39 = arith.mulf %34, %38 : vector<2x24x24xf32>
    "tpu.trace_start"() <{level = 10 : i32, message = "bqk,bkd->bqd"}> : () -> ()
    %cst_16 = arith.constant dense<0.000000e+00> : vector<2x24x16xf32>
    %40 = tpu.matmul %39, %24, %cst_16 {dimension_numbers = #tpu.dot_dimension_numbers<[2], [1], [1], [2], [0, 0, 0, 1, 1, 2], [0], [0]>} : vector<2x24x24xf32>, vector<2x24x16xf32>, vector<2x24x16xf32> -> vector<2x24x16xf32>
    "tpu.trace_stop"() : () -> ()
    %41 = vector.extract_strided_slice %18 {offsets = [0, 16], sizes = [48, 16], strides = [1, 1]} : vector<48x384xf32> to vector<48x16xf32>
    %42 = vector.shape_cast %41 : vector<48x16xf32> to vector<2x24x16xf32>
    %43 = vector.extract_strided_slice %18 {offsets = [0, 144], sizes = [48, 16], strides = [1, 1]} : vector<48x384xf32> to vector<48x16xf32>
    %44 = vector.shape_cast %43 : vector<48x16xf32> to vector<2x24x16xf32>
    %45 = vector.extract_strided_slice %18 {offsets = [0, 272], sizes = [48, 16], strides = [1, 1]} : vector<48x384xf32> to vector<48x16xf32>
    %46 = vector.shape_cast %45 : vector<48x16xf32> to vector<2x24x16xf32>
    "tpu.trace_start"() <{level = 10 : i32, message = "bqd,bkd->bqk"}> : () -> ()
    %cst_17 = arith.constant dense<0.000000e+00> : vector<2x24x24xf32>
    %47 = tpu.matmul %42, %44, %cst_17 {dimension_numbers = #tpu.dot_dimension_numbers<[2], [2], [1], [1], [0, 0, 0, 1, 1, 1], [0], [0]>} : vector<2x24x16xf32>, vector<2x24x16xf32>, vector<2x24x24xf32> -> vector<2x24x24xf32>
    "tpu.trace_stop"() : () -> ()
    %cst_18 = arith.constant 2.500000e-01 : f32
    %48 = vector.broadcast %cst_18 : f32 to vector<2x24x24xf32>
    %49 = arith.mulf %47, %48 : vector<2x24x24xf32>
    %50 = vector.broadcast %3 : vector<2x1x24xf32> to vector<2x24x24xf32>
    %51 = arith.addf %49, %50 : vector<2x24x24xf32>
    %cst_19 = arith.constant dense<0xFF800000> : vector<2x24xf32>
    %52 = vector.multi_reduction <maximumf>, %51, %cst_19 [2] : vector<2x24x24xf32> to vector<2x24xf32>
    %53 = vector.shape_cast %52 : vector<2x24xf32> to vector<2x24x1xf32>
    %54 = vector.broadcast %53 : vector<2x24x1xf32> to vector<2x24x24xf32>
    %55 = arith.subf %51, %54 : vector<2x24x24xf32>
    %56 = math.exp %55 : vector<2x24x24xf32>
    %cst_20 = arith.constant dense<0.000000e+00> : vector<2x24xf32>
    %57 = vector.multi_reduction <add>, %56, %cst_20 [2] : vector<2x24x24xf32> to vector<2x24xf32>
    %58 = vector.shape_cast %57 : vector<2x24xf32> to vector<2x24x1xf32>
    %59 = tpu.reciprocal %58 {approx = true} : vector<2x24x1xf32> -> vector<2x24x1xf32>
    %60 = vector.broadcast %59 : vector<2x24x1xf32> to vector<2x24x24xf32>
    %61 = arith.mulf %56, %60 : vector<2x24x24xf32>
    "tpu.trace_start"() <{level = 10 : i32, message = "bqk,bkd->bqd"}> : () -> ()
    %cst_21 = arith.constant dense<0.000000e+00> : vector<2x24x16xf32>
    %62 = tpu.matmul %61, %46, %cst_21 {dimension_numbers = #tpu.dot_dimension_numbers<[2], [1], [1], [2], [0, 0, 0, 1, 1, 2], [0], [0]>} : vector<2x24x24xf32>, vector<2x24x16xf32>, vector<2x24x16xf32> -> vector<2x24x16xf32>
    "tpu.trace_stop"() : () -> ()
    %63 = vector.extract_strided_slice %18 {offsets = [0, 32], sizes = [48, 16], strides = [1, 1]} : vector<48x384xf32> to vector<48x16xf32>
    %64 = vector.shape_cast %63 : vector<48x16xf32> to vector<2x24x16xf32>
    %65 = vector.extract_strided_slice %18 {offsets = [0, 160], sizes = [48, 16], strides = [1, 1]} : vector<48x384xf32> to vector<48x16xf32>
    %66 = vector.shape_cast %65 : vector<48x16xf32> to vector<2x24x16xf32>
    %67 = vector.extract_strided_slice %18 {offsets = [0, 288], sizes = [48, 16], strides = [1, 1]} : vector<48x384xf32> to vector<48x16xf32>
    %68 = vector.shape_cast %67 : vector<48x16xf32> to vector<2x24x16xf32>
    "tpu.trace_start"() <{level = 10 : i32, message = "bqd,bkd->bqk"}> : () -> ()
    %cst_22 = arith.constant dense<0.000000e+00> : vector<2x24x24xf32>
    %69 = tpu.matmul %64, %66, %cst_22 {dimension_numbers = #tpu.dot_dimension_numbers<[2], [2], [1], [1], [0, 0, 0, 1, 1, 1], [0], [0]>} : vector<2x24x16xf32>, vector<2x24x16xf32>, vector<2x24x24xf32> -> vector<2x24x24xf32>
    "tpu.trace_stop"() : () -> ()
    %cst_23 = arith.constant 2.500000e-01 : f32
    %70 = vector.broadcast %cst_23 : f32 to vector<2x24x24xf32>
    %71 = arith.mulf %69, %70 : vector<2x24x24xf32>
    %72 = vector.broadcast %3 : vector<2x1x24xf32> to vector<2x24x24xf32>
    %73 = arith.addf %71, %72 : vector<2x24x24xf32>
    %cst_24 = arith.constant dense<0xFF800000> : vector<2x24xf32>
    %74 = vector.multi_reduction <maximumf>, %73, %cst_24 [2] : vector<2x24x24xf32> to vector<2x24xf32>
    %75 = vector.shape_cast %74 : vector<2x24xf32> to vector<2x24x1xf32>
    %76 = vector.broadcast %75 : vector<2x24x1xf32> to vector<2x24x24xf32>
    %77 = arith.subf %73, %76 : vector<2x24x24xf32>
    %78 = math.exp %77 : vector<2x24x24xf32>
    %cst_25 = arith.constant dense<0.000000e+00> : vector<2x24xf32>
    %79 = vector.multi_reduction <add>, %78, %cst_25 [2] : vector<2x24x24xf32> to vector<2x24xf32>
    %80 = vector.shape_cast %79 : vector<2x24xf32> to vector<2x24x1xf32>
    %81 = tpu.reciprocal %80 {approx = true} : vector<2x24x1xf32> -> vector<2x24x1xf32>
    %82 = vector.broadcast %81 : vector<2x24x1xf32> to vector<2x24x24xf32>
    %83 = arith.mulf %78, %82 : vector<2x24x24xf32>
    "tpu.trace_start"() <{level = 10 : i32, message = "bqk,bkd->bqd"}> : () -> ()
    %cst_26 = arith.constant dense<0.000000e+00> : vector<2x24x16xf32>
    %84 = tpu.matmul %83, %68, %cst_26 {dimension_numbers = #tpu.dot_dimension_numbers<[2], [1], [1], [2], [0, 0, 0, 1, 1, 2], [0], [0]>} : vector<2x24x24xf32>, vector<2x24x16xf32>, vector<2x24x16xf32> -> vector<2x24x16xf32>
    "tpu.trace_stop"() : () -> ()
    %85 = vector.extract_strided_slice %18 {offsets = [0, 48], sizes = [48, 16], strides = [1, 1]} : vector<48x384xf32> to vector<48x16xf32>
    %86 = vector.shape_cast %85 : vector<48x16xf32> to vector<2x24x16xf32>
    %87 = vector.extract_strided_slice %18 {offsets = [0, 176], sizes = [48, 16], strides = [1, 1]} : vector<48x384xf32> to vector<48x16xf32>
    %88 = vector.shape_cast %87 : vector<48x16xf32> to vector<2x24x16xf32>
    %89 = vector.extract_strided_slice %18 {offsets = [0, 304], sizes = [48, 16], strides = [1, 1]} : vector<48x384xf32> to vector<48x16xf32>
    %90 = vector.shape_cast %89 : vector<48x16xf32> to vector<2x24x16xf32>
    "tpu.trace_start"() <{level = 10 : i32, message = "bqd,bkd->bqk"}> : () -> ()
    %cst_27 = arith.constant dense<0.000000e+00> : vector<2x24x24xf32>
    %91 = tpu.matmul %86, %88, %cst_27 {dimension_numbers = #tpu.dot_dimension_numbers<[2], [2], [1], [1], [0, 0, 0, 1, 1, 1], [0], [0]>} : vector<2x24x16xf32>, vector<2x24x16xf32>, vector<2x24x24xf32> -> vector<2x24x24xf32>
    "tpu.trace_stop"() : () -> ()
    %cst_28 = arith.constant 2.500000e-01 : f32
    %92 = vector.broadcast %cst_28 : f32 to vector<2x24x24xf32>
    %93 = arith.mulf %91, %92 : vector<2x24x24xf32>
    %94 = vector.broadcast %3 : vector<2x1x24xf32> to vector<2x24x24xf32>
    %95 = arith.addf %93, %94 : vector<2x24x24xf32>
    %cst_29 = arith.constant dense<0xFF800000> : vector<2x24xf32>
    %96 = vector.multi_reduction <maximumf>, %95, %cst_29 [2] : vector<2x24x24xf32> to vector<2x24xf32>
    %97 = vector.shape_cast %96 : vector<2x24xf32> to vector<2x24x1xf32>
    %98 = vector.broadcast %97 : vector<2x24x1xf32> to vector<2x24x24xf32>
    %99 = arith.subf %95, %98 : vector<2x24x24xf32>
    %100 = math.exp %99 : vector<2x24x24xf32>
    %cst_30 = arith.constant dense<0.000000e+00> : vector<2x24xf32>
    %101 = vector.multi_reduction <add>, %100, %cst_30 [2] : vector<2x24x24xf32> to vector<2x24xf32>
    %102 = vector.shape_cast %101 : vector<2x24xf32> to vector<2x24x1xf32>
    %103 = tpu.reciprocal %102 {approx = true} : vector<2x24x1xf32> -> vector<2x24x1xf32>
    %104 = vector.broadcast %103 : vector<2x24x1xf32> to vector<2x24x24xf32>
    %105 = arith.mulf %100, %104 : vector<2x24x24xf32>
    "tpu.trace_start"() <{level = 10 : i32, message = "bqk,bkd->bqd"}> : () -> ()
    %cst_31 = arith.constant dense<0.000000e+00> : vector<2x24x16xf32>
    %106 = tpu.matmul %105, %90, %cst_31 {dimension_numbers = #tpu.dot_dimension_numbers<[2], [1], [1], [2], [0, 0, 0, 1, 1, 2], [0], [0]>} : vector<2x24x24xf32>, vector<2x24x16xf32>, vector<2x24x16xf32> -> vector<2x24x16xf32>
    "tpu.trace_stop"() : () -> ()
    %107 = vector.extract_strided_slice %18 {offsets = [0, 64], sizes = [48, 16], strides = [1, 1]} : vector<48x384xf32> to vector<48x16xf32>
    %108 = vector.shape_cast %107 : vector<48x16xf32> to vector<2x24x16xf32>
    %109 = vector.extract_strided_slice %18 {offsets = [0, 192], sizes = [48, 16], strides = [1, 1]} : vector<48x384xf32> to vector<48x16xf32>
    %110 = vector.shape_cast %109 : vector<48x16xf32> to vector<2x24x16xf32>
    %111 = vector.extract_strided_slice %18 {offsets = [0, 320], sizes = [48, 16], strides = [1, 1]} : vector<48x384xf32> to vector<48x16xf32>
    %112 = vector.shape_cast %111 : vector<48x16xf32> to vector<2x24x16xf32>
    "tpu.trace_start"() <{level = 10 : i32, message = "bqd,bkd->bqk"}> : () -> ()
    %cst_32 = arith.constant dense<0.000000e+00> : vector<2x24x24xf32>
    %113 = tpu.matmul %108, %110, %cst_32 {dimension_numbers = #tpu.dot_dimension_numbers<[2], [2], [1], [1], [0, 0, 0, 1, 1, 1], [0], [0]>} : vector<2x24x16xf32>, vector<2x24x16xf32>, vector<2x24x24xf32> -> vector<2x24x24xf32>
    "tpu.trace_stop"() : () -> ()
    %cst_33 = arith.constant 2.500000e-01 : f32
    %114 = vector.broadcast %cst_33 : f32 to vector<2x24x24xf32>
    %115 = arith.mulf %113, %114 : vector<2x24x24xf32>
    %116 = vector.broadcast %3 : vector<2x1x24xf32> to vector<2x24x24xf32>
    %117 = arith.addf %115, %116 : vector<2x24x24xf32>
    %cst_34 = arith.constant dense<0xFF800000> : vector<2x24xf32>
    %118 = vector.multi_reduction <maximumf>, %117, %cst_34 [2] : vector<2x24x24xf32> to vector<2x24xf32>
    %119 = vector.shape_cast %118 : vector<2x24xf32> to vector<2x24x1xf32>
    %120 = vector.broadcast %119 : vector<2x24x1xf32> to vector<2x24x24xf32>
    %121 = arith.subf %117, %120 : vector<2x24x24xf32>
    %122 = math.exp %121 : vector<2x24x24xf32>
    %cst_35 = arith.constant dense<0.000000e+00> : vector<2x24xf32>
    %123 = vector.multi_reduction <add>, %122, %cst_35 [2] : vector<2x24x24xf32> to vector<2x24xf32>
    %124 = vector.shape_cast %123 : vector<2x24xf32> to vector<2x24x1xf32>
    %125 = tpu.reciprocal %124 {approx = true} : vector<2x24x1xf32> -> vector<2x24x1xf32>
    %126 = vector.broadcast %125 : vector<2x24x1xf32> to vector<2x24x24xf32>
    %127 = arith.mulf %122, %126 : vector<2x24x24xf32>
    "tpu.trace_start"() <{level = 10 : i32, message = "bqk,bkd->bqd"}> : () -> ()
    %cst_36 = arith.constant dense<0.000000e+00> : vector<2x24x16xf32>
    %128 = tpu.matmul %127, %112, %cst_36 {dimension_numbers = #tpu.dot_dimension_numbers<[2], [1], [1], [2], [0, 0, 0, 1, 1, 2], [0], [0]>} : vector<2x24x24xf32>, vector<2x24x16xf32>, vector<2x24x16xf32> -> vector<2x24x16xf32>
    "tpu.trace_stop"() : () -> ()
    %129 = vector.extract_strided_slice %18 {offsets = [0, 80], sizes = [48, 16], strides = [1, 1]} : vector<48x384xf32> to vector<48x16xf32>
    %130 = vector.shape_cast %129 : vector<48x16xf32> to vector<2x24x16xf32>
    %131 = vector.extract_strided_slice %18 {offsets = [0, 208], sizes = [48, 16], strides = [1, 1]} : vector<48x384xf32> to vector<48x16xf32>
    %132 = vector.shape_cast %131 : vector<48x16xf32> to vector<2x24x16xf32>
    %133 = vector.extract_strided_slice %18 {offsets = [0, 336], sizes = [48, 16], strides = [1, 1]} : vector<48x384xf32> to vector<48x16xf32>
    %134 = vector.shape_cast %133 : vector<48x16xf32> to vector<2x24x16xf32>
    "tpu.trace_start"() <{level = 10 : i32, message = "bqd,bkd->bqk"}> : () -> ()
    %cst_37 = arith.constant dense<0.000000e+00> : vector<2x24x24xf32>
    %135 = tpu.matmul %130, %132, %cst_37 {dimension_numbers = #tpu.dot_dimension_numbers<[2], [2], [1], [1], [0, 0, 0, 1, 1, 1], [0], [0]>} : vector<2x24x16xf32>, vector<2x24x16xf32>, vector<2x24x24xf32> -> vector<2x24x24xf32>
    "tpu.trace_stop"() : () -> ()
    %cst_38 = arith.constant 2.500000e-01 : f32
    %136 = vector.broadcast %cst_38 : f32 to vector<2x24x24xf32>
    %137 = arith.mulf %135, %136 : vector<2x24x24xf32>
    %138 = vector.broadcast %3 : vector<2x1x24xf32> to vector<2x24x24xf32>
    %139 = arith.addf %137, %138 : vector<2x24x24xf32>
    %cst_39 = arith.constant dense<0xFF800000> : vector<2x24xf32>
    %140 = vector.multi_reduction <maximumf>, %139, %cst_39 [2] : vector<2x24x24xf32> to vector<2x24xf32>
    %141 = vector.shape_cast %140 : vector<2x24xf32> to vector<2x24x1xf32>
    %142 = vector.broadcast %141 : vector<2x24x1xf32> to vector<2x24x24xf32>
    %143 = arith.subf %139, %142 : vector<2x24x24xf32>
    %144 = math.exp %143 : vector<2x24x24xf32>
    %cst_40 = arith.constant dense<0.000000e+00> : vector<2x24xf32>
    %145 = vector.multi_reduction <add>, %144, %cst_40 [2] : vector<2x24x24xf32> to vector<2x24xf32>
    %146 = vector.shape_cast %145 : vector<2x24xf32> to vector<2x24x1xf32>
    %147 = tpu.reciprocal %146 {approx = true} : vector<2x24x1xf32> -> vector<2x24x1xf32>
    %148 = vector.broadcast %147 : vector<2x24x1xf32> to vector<2x24x24xf32>
    %149 = arith.mulf %144, %148 : vector<2x24x24xf32>
    "tpu.trace_start"() <{level = 10 : i32, message = "bqk,bkd->bqd"}> : () -> ()
    %cst_41 = arith.constant dense<0.000000e+00> : vector<2x24x16xf32>
    %150 = tpu.matmul %149, %134, %cst_41 {dimension_numbers = #tpu.dot_dimension_numbers<[2], [1], [1], [2], [0, 0, 0, 1, 1, 2], [0], [0]>} : vector<2x24x24xf32>, vector<2x24x16xf32>, vector<2x24x16xf32> -> vector<2x24x16xf32>
    "tpu.trace_stop"() : () -> ()
    %151 = vector.extract_strided_slice %18 {offsets = [0, 96], sizes = [48, 16], strides = [1, 1]} : vector<48x384xf32> to vector<48x16xf32>
    %152 = vector.shape_cast %151 : vector<48x16xf32> to vector<2x24x16xf32>
    %153 = vector.extract_strided_slice %18 {offsets = [0, 224], sizes = [48, 16], strides = [1, 1]} : vector<48x384xf32> to vector<48x16xf32>
    %154 = vector.shape_cast %153 : vector<48x16xf32> to vector<2x24x16xf32>
    %155 = vector.extract_strided_slice %18 {offsets = [0, 352], sizes = [48, 16], strides = [1, 1]} : vector<48x384xf32> to vector<48x16xf32>
    %156 = vector.shape_cast %155 : vector<48x16xf32> to vector<2x24x16xf32>
    "tpu.trace_start"() <{level = 10 : i32, message = "bqd,bkd->bqk"}> : () -> ()
    %cst_42 = arith.constant dense<0.000000e+00> : vector<2x24x24xf32>
    %157 = tpu.matmul %152, %154, %cst_42 {dimension_numbers = #tpu.dot_dimension_numbers<[2], [2], [1], [1], [0, 0, 0, 1, 1, 1], [0], [0]>} : vector<2x24x16xf32>, vector<2x24x16xf32>, vector<2x24x24xf32> -> vector<2x24x24xf32>
    "tpu.trace_stop"() : () -> ()
    %cst_43 = arith.constant 2.500000e-01 : f32
    %158 = vector.broadcast %cst_43 : f32 to vector<2x24x24xf32>
    %159 = arith.mulf %157, %158 : vector<2x24x24xf32>
    %160 = vector.broadcast %3 : vector<2x1x24xf32> to vector<2x24x24xf32>
    %161 = arith.addf %159, %160 : vector<2x24x24xf32>
    %cst_44 = arith.constant dense<0xFF800000> : vector<2x24xf32>
    %162 = vector.multi_reduction <maximumf>, %161, %cst_44 [2] : vector<2x24x24xf32> to vector<2x24xf32>
    %163 = vector.shape_cast %162 : vector<2x24xf32> to vector<2x24x1xf32>
    %164 = vector.broadcast %163 : vector<2x24x1xf32> to vector<2x24x24xf32>
    %165 = arith.subf %161, %164 : vector<2x24x24xf32>
    %166 = math.exp %165 : vector<2x24x24xf32>
    %cst_45 = arith.constant dense<0.000000e+00> : vector<2x24xf32>
    %167 = vector.multi_reduction <add>, %166, %cst_45 [2] : vector<2x24x24xf32> to vector<2x24xf32>
    %168 = vector.shape_cast %167 : vector<2x24xf32> to vector<2x24x1xf32>
    %169 = tpu.reciprocal %168 {approx = true} : vector<2x24x1xf32> -> vector<2x24x1xf32>
    %170 = vector.broadcast %169 : vector<2x24x1xf32> to vector<2x24x24xf32>
    %171 = arith.mulf %166, %170 : vector<2x24x24xf32>
    "tpu.trace_start"() <{level = 10 : i32, message = "bqk,bkd->bqd"}> : () -> ()
    %cst_46 = arith.constant dense<0.000000e+00> : vector<2x24x16xf32>
    %172 = tpu.matmul %171, %156, %cst_46 {dimension_numbers = #tpu.dot_dimension_numbers<[2], [1], [1], [2], [0, 0, 0, 1, 1, 2], [0], [0]>} : vector<2x24x24xf32>, vector<2x24x16xf32>, vector<2x24x16xf32> -> vector<2x24x16xf32>
    "tpu.trace_stop"() : () -> ()
    %173 = vector.extract_strided_slice %18 {offsets = [0, 112], sizes = [48, 16], strides = [1, 1]} : vector<48x384xf32> to vector<48x16xf32>
    %174 = vector.shape_cast %173 : vector<48x16xf32> to vector<2x24x16xf32>
    %175 = vector.extract_strided_slice %18 {offsets = [0, 240], sizes = [48, 16], strides = [1, 1]} : vector<48x384xf32> to vector<48x16xf32>
    %176 = vector.shape_cast %175 : vector<48x16xf32> to vector<2x24x16xf32>
    %177 = vector.extract_strided_slice %18 {offsets = [0, 368], sizes = [48, 16], strides = [1, 1]} : vector<48x384xf32> to vector<48x16xf32>
    %178 = vector.shape_cast %177 : vector<48x16xf32> to vector<2x24x16xf32>
    "tpu.trace_start"() <{level = 10 : i32, message = "bqd,bkd->bqk"}> : () -> ()
    %cst_47 = arith.constant dense<0.000000e+00> : vector<2x24x24xf32>
    %179 = tpu.matmul %174, %176, %cst_47 {dimension_numbers = #tpu.dot_dimension_numbers<[2], [2], [1], [1], [0, 0, 0, 1, 1, 1], [0], [0]>} : vector<2x24x16xf32>, vector<2x24x16xf32>, vector<2x24x24xf32> -> vector<2x24x24xf32>
    "tpu.trace_stop"() : () -> ()
    %cst_48 = arith.constant 2.500000e-01 : f32
    %180 = vector.broadcast %cst_48 : f32 to vector<2x24x24xf32>
    %181 = arith.mulf %179, %180 : vector<2x24x24xf32>
    %182 = vector.broadcast %3 : vector<2x1x24xf32> to vector<2x24x24xf32>
    %183 = arith.addf %181, %182 : vector<2x24x24xf32>
    %cst_49 = arith.constant dense<0xFF800000> : vector<2x24xf32>
    %184 = vector.multi_reduction <maximumf>, %183, %cst_49 [2] : vector<2x24x24xf32> to vector<2x24xf32>
    %185 = vector.shape_cast %184 : vector<2x24xf32> to vector<2x24x1xf32>
    %186 = vector.broadcast %185 : vector<2x24x1xf32> to vector<2x24x24xf32>
    %187 = arith.subf %183, %186 : vector<2x24x24xf32>
    %188 = math.exp %187 : vector<2x24x24xf32>
    %cst_50 = arith.constant dense<0.000000e+00> : vector<2x24xf32>
    %189 = vector.multi_reduction <add>, %188, %cst_50 [2] : vector<2x24x24xf32> to vector<2x24xf32>
    %190 = vector.shape_cast %189 : vector<2x24xf32> to vector<2x24x1xf32>
    %191 = tpu.reciprocal %190 {approx = true} : vector<2x24x1xf32> -> vector<2x24x1xf32>
    %192 = vector.broadcast %191 : vector<2x24x1xf32> to vector<2x24x24xf32>
    %193 = arith.mulf %188, %192 : vector<2x24x24xf32>
    "tpu.trace_start"() <{level = 10 : i32, message = "bqk,bkd->bqd"}> : () -> ()
    %cst_51 = arith.constant dense<0.000000e+00> : vector<2x24x16xf32>
    %194 = tpu.matmul %193, %178, %cst_51 {dimension_numbers = #tpu.dot_dimension_numbers<[2], [1], [1], [2], [0, 0, 0, 1, 1, 2], [0], [0]>} : vector<2x24x24xf32>, vector<2x24x16xf32>, vector<2x24x16xf32> -> vector<2x24x16xf32>
    "tpu.trace_stop"() : () -> ()
    %195 = tpu.concatenate %40, %62, %84, %106, %128, %150, %172, %194 in 2 : vector<2x24x16xf32>, vector<2x24x16xf32>, vector<2x24x16xf32>, vector<2x24x16xf32>, vector<2x24x16xf32>, vector<2x24x16xf32>, vector<2x24x16xf32>, vector<2x24x16xf32> -> vector<2x24x128xf32>
    %196 = vector.shape_cast %195 : vector<2x24x128xf32> to vector<48x128xf32>
    %197 = arith.truncf %196 : vector<48x128xf32> to vector<48x128xbf16>
    %198 = arith.index_cast %arg1 : i32 to index
    %c0_52 = arith.constant 0 : index
    %c0_53 = arith.constant 0 : index
    %199 = vector.load %arg11[%198, %c0_52, %c0_53] : memref<6x128x128xbf16, #tpu.memory_space<vmem>>, vector<1x128x128xbf16>
    %200 = vector.shape_cast %199 : vector<1x128x128xbf16> to vector<128x128xbf16>
    %cst_54 = arith.constant dense<0.000000e+00> : vector<48x128xf32>
    %201 = tpu.matmul %197, %200, %cst_54 {dimension_numbers = #tpu.dot_dimension_numbers<[1], [0], [0], [1], [0, 0, 1, 1], [], []>} : vector<48x128xbf16>, vector<128x128xbf16>, vector<48x128xf32> -> vector<48x128xf32>
    %202 = vector.extract_strided_slice %8 {offsets = [0, 0], sizes = [1, 128], strides = [1, 1]} : vector<6x128xf32> to vector<1x128xf32>
    %203 = vector.broadcast %202 : vector<1x128xf32> to vector<48x128xf32>
    %204 = arith.addf %201, %203 : vector<48x128xf32>
    %205 = arith.addf %5, %204 : vector<48x128xf32>
    %206 = vector.extract_strided_slice %8 {offsets = [1, 0], sizes = [1, 128], strides = [1, 1]} : vector<6x128xf32> to vector<1x128xf32>
    %207 = vector.extract_strided_slice %8 {offsets = [2, 0], sizes = [1, 128], strides = [1, 1]} : vector<6x128xf32> to vector<1x128xf32>
    %cst_55 = arith.constant dense<0.000000e+00> : vector<48xf32>
    %208 = vector.multi_reduction <add>, %205, %cst_55 [1] : vector<48x128xf32> to vector<48xf32>
    %209 = vector.shape_cast %208 : vector<48xf32> to vector<48x1xf32>
    %cst_56 = arith.constant 1.280000e+02 : f32
    %210 = vector.broadcast %cst_56 : f32 to vector<48x1xf32>
    %211 = arith.divf %209, %210 : vector<48x1xf32>
    %212 = vector.broadcast %211 : vector<48x1xf32> to vector<48x128xf32>
    %213 = arith.subf %205, %212 : vector<48x128xf32>
    %214 = arith.mulf %213, %213 : vector<48x128xf32>
    %cst_57 = arith.constant dense<0.000000e+00> : vector<48xf32>
    %215 = vector.multi_reduction <add>, %214, %cst_57 [1] : vector<48x128xf32> to vector<48xf32>
    %216 = vector.shape_cast %215 : vector<48xf32> to vector<48x1xf32>
    %cst_58 = arith.constant 1.280000e+02 : f32
    %217 = vector.broadcast %cst_58 : f32 to vector<48x1xf32>
    %218 = arith.divf %216, %217 : vector<48x1xf32>
    %cst_59 = arith.constant 9.99999974E-6 : f32
    %219 = vector.broadcast %cst_59 : f32 to vector<48x1xf32>
    %220 = arith.addf %218, %219 : vector<48x1xf32>
    %221 = math.rsqrt %220 : vector<48x1xf32>
    %222 = vector.broadcast %221 : vector<48x1xf32> to vector<48x128xf32>
    %223 = arith.mulf %213, %222 : vector<48x128xf32>
    %224 = vector.broadcast %206 : vector<1x128xf32> to vector<48x128xf32>
    %225 = arith.mulf %223, %224 : vector<48x128xf32>
    %226 = vector.broadcast %207 : vector<1x128xf32> to vector<48x128xf32>
    %227 = arith.addf %225, %226 : vector<48x128xf32>
    %228 = arith.truncf %227 : vector<48x128xf32> to vector<48x128xbf16>
    %229 = arith.index_cast %arg1 : i32 to index
    %c0_60 = arith.constant 0 : index
    %c0_61 = arith.constant 0 : index
    %230 = vector.load %arg12[%229, %c0_60, %c0_61] : memref<6x128x2048xbf16, #tpu.memory_space<vmem>>, vector<1x128x2048xbf16>
    %231 = vector.shape_cast %230 : vector<1x128x2048xbf16> to vector<128x2048xbf16>
    %cst_62 = arith.constant dense<0.000000e+00> : vector<48x2048xf32>
    %232 = tpu.matmul %228, %231, %cst_62 {dimension_numbers = #tpu.dot_dimension_numbers<[1], [0], [0], [1], [0, 0, 1, 1], [], []>} : vector<48x128xbf16>, vector<128x2048xbf16>, vector<48x2048xf32> -> vector<48x2048xf32>
    %233 = arith.index_cast %arg1 : i32 to index
    %c0_63 = arith.constant 0 : index
    %c0_64 = arith.constant 0 : index
    %234 = vector.load %arg13[%233, %c0_63, %c0_64] : memref<6x1x2048xf32, #tpu.memory_space<vmem>>, vector<1x1x2048xf32>
    %235 = vector.shape_cast %234 : vector<1x1x2048xf32> to vector<1x2048xf32>
    %236 = vector.broadcast %235 : vector<1x2048xf32> to vector<48x2048xf32>
    %237 = arith.addf %232, %236 : vector<48x2048xf32>
    %cst_65 = arith.constant 0.000000e+00 : f32
    %238 = vector.broadcast %cst_65 : f32 to vector<48x2048xf32>
    %239 = arith.maximumf %237, %238 : vector<48x2048xf32>
    %240 = arith.truncf %239 : vector<48x2048xf32> to vector<48x2048xbf16>
    %241 = arith.index_cast %arg1 : i32 to index
    %c0_66 = arith.constant 0 : index
    %c0_67 = arith.constant 0 : index
    %242 = vector.load %arg14[%241, %c0_66, %c0_67] : memref<6x2048x128xbf16, #tpu.memory_space<vmem>>, vector<1x2048x128xbf16>
    %243 = vector.shape_cast %242 : vector<1x2048x128xbf16> to vector<2048x128xbf16>
    %cst_68 = arith.constant dense<0.000000e+00> : vector<48x128xf32>
    %244 = tpu.matmul %240, %243, %cst_68 {dimension_numbers = #tpu.dot_dimension_numbers<[1], [0], [0], [1], [0, 0, 1, 1], [], []>} : vector<48x2048xbf16>, vector<2048x128xbf16>, vector<48x128xf32> -> vector<48x128xf32>
    %245 = vector.extract_strided_slice %8 {offsets = [3, 0], sizes = [1, 128], strides = [1, 1]} : vector<6x128xf32> to vector<1x128xf32>
    %246 = vector.broadcast %245 : vector<1x128xf32> to vector<48x128xf32>
    %247 = arith.addf %244, %246 : vector<48x128xf32>
    %248 = arith.addf %227, %247 : vector<48x128xf32>
    %249 = vector.extract_strided_slice %8 {offsets = [4, 0], sizes = [1, 128], strides = [1, 1]} : vector<6x128xf32> to vector<1x128xf32>
    %250 = vector.extract_strided_slice %8 {offsets = [5, 0], sizes = [1, 128], strides = [1, 1]} : vector<6x128xf32> to vector<1x128xf32>
    %cst_69 = arith.constant dense<0.000000e+00> : vector<48xf32>
    %251 = vector.multi_reduction <add>, %248, %cst_69 [1] : vector<48x128xf32> to vector<48xf32>
    %252 = vector.shape_cast %251 : vector<48xf32> to vector<48x1xf32>
    %cst_70 = arith.constant 1.280000e+02 : f32
    %253 = vector.broadcast %cst_70 : f32 to vector<48x1xf32>
    %254 = arith.divf %252, %253 : vector<48x1xf32>
    %255 = vector.broadcast %254 : vector<48x1xf32> to vector<48x128xf32>
    %256 = arith.subf %248, %255 : vector<48x128xf32>
    %257 = arith.mulf %256, %256 : vector<48x128xf32>
    %cst_71 = arith.constant dense<0.000000e+00> : vector<48xf32>
    %258 = vector.multi_reduction <add>, %257, %cst_71 [1] : vector<48x128xf32> to vector<48xf32>
    %259 = vector.shape_cast %258 : vector<48xf32> to vector<48x1xf32>
    %cst_72 = arith.constant 1.280000e+02 : f32
    %260 = vector.broadcast %cst_72 : f32 to vector<48x1xf32>
    %261 = arith.divf %259, %260 : vector<48x1xf32>
    %cst_73 = arith.constant 9.99999974E-6 : f32
    %262 = vector.broadcast %cst_73 : f32 to vector<48x1xf32>
    %263 = arith.addf %261, %262 : vector<48x1xf32>
    %264 = math.rsqrt %263 : vector<48x1xf32>
    %265 = vector.broadcast %264 : vector<48x1xf32> to vector<48x128xf32>
    %266 = arith.mulf %256, %265 : vector<48x128xf32>
    %267 = vector.broadcast %249 : vector<1x128xf32> to vector<48x128xf32>
    %268 = arith.mulf %266, %267 : vector<48x128xf32>
    %269 = vector.broadcast %250 : vector<1x128xf32> to vector<48x128xf32>
    %270 = arith.addf %268, %269 : vector<48x128xf32>
    %271 = vector.shape_cast %270 : vector<48x128xf32> to vector<2x24x128xf32>
    %c0_74 = arith.constant 0 : index
    %c0_75 = arith.constant 0 : index
    %c0_76 = arith.constant 0 : index
    %272 = vector.load %arg23[%c0_74, %c0_75, %c0_76] : memref<2x24x128xf32, #tpu.memory_space<vmem>>, vector<2x24x128xf32>
    tpu.vector_store %arg23[%c0_74, %c0_75, %c0_76], %271 {strides = array<i32>} : memref<2x24x128xf32, #tpu.memory_space<vmem>>, vector<2x24x128xf32>,
    %c5_i32 = arith.constant 5 : i32
    %273 = arith.cmpi eq, %arg1, %c5_i32 : i32
    %274 = arith.extui %273 : i1 to i32
    %c0_i32_77 = arith.constant 0 : i32
    %275 = arith.cmpi ne, %274, %c0_i32_77 : i32
    scf.if %275 {
      %276 = vector.shape_cast %270 : vector<48x128xf32> to vector<2x24x128xf32>
      %277 = vector.extract_strided_slice %276 {offsets = [0, 16, 0], sizes = [2, 8, 128], strides = [1, 1, 1]} : vector<2x24x128xf32> to vector<2x8x128xf32>
      %278 = vector.shape_cast %277 : vector<2x8x128xf32> to vector<16x128xf32>
      %c0_78 = arith.constant 0 : index
      %c0_79 = arith.constant 0 : index
      %279 = vector.load %arg16[%c0_78, %c0_79] : memref<128x128xf32, #tpu.memory_space<vmem>>, vector<128x128xf32>
      %cst_80 = arith.constant dense<0.000000e+00> : vector<16x128xf32>
      %280 = tpu.matmul %278, %279, %cst_80 {dimension_numbers = #tpu.dot_dimension_numbers<[1], [0], [0], [1], [0, 0, 1, 1], [], []>} : vector<16x128xf32>, vector<128x128xf32>, vector<16x128xf32> -> vector<16x128xf32>
      %c0_81 = arith.constant 0 : index
      %c0_82 = arith.constant 0 : index
      %281 = vector.load %arg17[%c0_81, %c0_82] : memref<1x128xf32, #tpu.memory_space<vmem>>, vector<1x128xf32>
      %282 = vector.broadcast %281 : vector<1x128xf32> to vector<16x128xf32>
      %283 = arith.addf %280, %282 : vector<16x128xf32>
      %cst_83 = arith.constant 0.000000e+00 : f32
      %284 = vector.broadcast %cst_83 : f32 to vector<16x128xf32>
      %285 = arith.maximumf %283, %284 : vector<16x128xf32>
      %c0_84 = arith.constant 0 : index
      %c0_85 = arith.constant 0 : index
      %286 = vector.load %arg18[%c0_84, %c0_85] : memref<128x128xf32, #tpu.memory_space<vmem>>, vector<128x128xf32>
      %cst_86 = arith.constant dense<0.000000e+00> : vector<16x128xf32>
      %287 = tpu.matmul %285, %286, %cst_86 {dimension_numbers = #tpu.dot_dimension_numbers<[1], [0], [0], [1], [0, 0, 1, 1], [], []>} : vector<16x128xf32>, vector<128x128xf32>, vector<16x128xf32> -> vector<16x128xf32>
      %c0_87 = arith.constant 0 : index
      %c0_88 = arith.constant 0 : index
      %288 = vector.load %arg19[%c0_87, %c0_88] : memref<1x128xf32, #tpu.memory_space<vmem>>, vector<1x128xf32>
      %289 = vector.broadcast %288 : vector<1x128xf32> to vector<16x128xf32>
      %290 = arith.addf %287, %289 : vector<16x128xf32>
      %cst_89 = arith.constant 0.000000e+00 : f32
      %291 = vector.broadcast %cst_89 : f32 to vector<16x128xf32>
      %292 = arith.maximumf %290, %291 : vector<16x128xf32>
      %c0_90 = arith.constant 0 : index
      %c0_91 = arith.constant 0 : index
      %293 = vector.load %arg20[%c0_90, %c0_91] : memref<128x128xf32, #tpu.memory_space<vmem>>, vector<128x128xf32>
      %cst_92 = arith.constant dense<0.000000e+00> : vector<16x128xf32>
      %294 = tpu.matmul %292, %293, %cst_92 {dimension_numbers = #tpu.dot_dimension_numbers<[1], [0], [0], [1], [0, 0, 1, 1], [], []>} : vector<16x128xf32>, vector<128x128xf32>, vector<16x128xf32> -> vector<16x128xf32>
      %c0_93 = arith.constant 0 : index
      %c0_94 = arith.constant 0 : index
      %295 = vector.load %arg21[%c0_93, %c0_94] : memref<1x128xf32, #tpu.memory_space<vmem>>, vector<1x128xf32>
      %296 = vector.broadcast %295 : vector<1x128xf32> to vector<16x128xf32>
      %297 = arith.addf %294, %296 : vector<16x128xf32>
      %298 = vector.shape_cast %297 : vector<16x128xf32> to vector<2x8x128xf32>
      %c0_95 = arith.constant 0 : index
      %c0_96 = arith.constant 0 : index
      %c0_97 = arith.constant 0 : index
      %299 = vector.load %arg22[%c0_95, %c0_96, %c0_97] : memref<2x8x128xf32, #tpu.memory_space<vmem>>, vector<2x8x128xf32>
      tpu.vector_store %arg22[%c0_95, %c0_96, %c0_97], %298 {strides = array<i32>} : memref<2x8x128xf32, #tpu.memory_space<vmem>>, vector<2x8x128xf32>,
    } else {
    }
    return
  }
  func.func @transform_0(%arg0: i32, %arg1: i32) -> (i32, i32, i32) {
    %c0_i32 = arith.constant 0 : i32
    %c0_i32_0 = arith.constant 0 : i32
    %c0_i32_1 = arith.constant 0 : i32
    return %arg0, %c0_i32, %c0_i32_0 : i32, i32, i32
  }
  func.func @transform_1(%arg0: i32, %arg1: i32) -> (i32, i32, i32) {
    %c0_i32 = arith.constant 0 : i32
    %c0_i32_0 = arith.constant 0 : i32
    %c0_i32_1 = arith.constant 0 : i32
    return %arg0, %c0_i32, %c0_i32_0 : i32, i32, i32
  }
  func.func @transform_2(%arg0: i32, %arg1: i32) -> (i32, i32) {
    %c0_i32 = arith.constant 0 : i32
    %c0_i32_0 = arith.constant 0 : i32
    %c0_i32_1 = arith.constant 0 : i32
    return %c0_i32, %c0_i32_0 : i32, i32
  }
  func.func @transform_3(%arg0: i32, %arg1: i32) -> (i32, i32) {
    %c0_i32 = arith.constant 0 : i32
    %c0_i32_0 = arith.constant 0 : i32
    %c0_i32_1 = arith.constant 0 : i32
    return %c0_i32, %c0_i32_0 : i32, i32
  }
  func.func @transform_4(%arg0: i32, %arg1: i32) -> (i32, i32) {
    %c0_i32 = arith.constant 0 : i32
    %c0_i32_0 = arith.constant 0 : i32
    %c0_i32_1 = arith.constant 0 : i32
    return %c0_i32, %c0_i32_0 : i32, i32
  }
  func.func @transform_5(%arg0: i32, %arg1: i32) -> (i32, i32) {
    %c0_i32 = arith.constant 0 : i32
    %c0_i32_0 = arith.constant 0 : i32
    %c0_i32_1 = arith.constant 0 : i32
    return %c0_i32, %c0_i32_0 : i32, i32
  }
  func.func @transform_6(%arg0: i32, %arg1: i32) -> (i32, i32) {
    %c0_i32 = arith.constant 0 : i32
    %c0_i32_0 = arith.constant 0 : i32
    %c0_i32_1 = arith.constant 0 : i32
    return %c0_i32, %c0_i32_0 : i32, i32
  }
  func.func @transform_7(%arg0: i32, %arg1: i32) -> (i32, i32, i32) {
    %c0_i32 = arith.constant 0 : i32
    %c0_i32_0 = arith.constant 0 : i32
    %c0_i32_1 = arith.constant 0 : i32
    %c0_i32_2 = arith.constant 0 : i32
    return %c0_i32, %c0_i32_0, %c0_i32_1 : i32, i32, i32
  }
  func.func @transform_8(%arg0: i32, %arg1: i32) -> (i32, i32, i32) {
    %c0_i32 = arith.constant 0 : i32
    %c0_i32_0 = arith.constant 0 : i32
    %c0_i32_1 = arith.constant 0 : i32
    %c0_i32_2 = arith.constant 0 : i32
    return %c0_i32, %c0_i32_0, %c0_i32_1 : i32, i32, i32
  }
  func.func @transform_9(%arg0: i32, %arg1: i32) -> (i32, i32, i32) {
    %c0_i32 = arith.constant 0 : i32
    %c0_i32_0 = arith.constant 0 : i32
    %c0_i32_1 = arith.constant 0 : i32
    %c0_i32_2 = arith.constant 0 : i32
    return %c0_i32, %c0_i32_0, %c0_i32_1 : i32, i32, i32
  }
  func.func @transform_10(%arg0: i32, %arg1: i32) -> (i32, i32, i32) {
    %c0_i32 = arith.constant 0 : i32
    %c0_i32_0 = arith.constant 0 : i32
    %c0_i32_1 = arith.constant 0 : i32
    %c0_i32_2 = arith.constant 0 : i32
    return %c0_i32, %c0_i32_0, %c0_i32_1 : i32, i32, i32
  }
  func.func @transform_11(%arg0: i32, %arg1: i32) -> (i32, i32, i32) {
    %c0_i32 = arith.constant 0 : i32
    %c0_i32_0 = arith.constant 0 : i32
    %c0_i32_1 = arith.constant 0 : i32
    %c0_i32_2 = arith.constant 0 : i32
    return %c0_i32, %c0_i32_0, %c0_i32_1 : i32, i32, i32
  }
  func.func @transform_12(%arg0: i32, %arg1: i32) -> (i32, i32, i32) {
    %c0_i32 = arith.constant 0 : i32
    %c0_i32_0 = arith.constant 0 : i32
    %c0_i32_1 = arith.constant 0 : i32
    %c0_i32_2 = arith.constant 0 : i32
    return %c0_i32, %c0_i32_0, %c0_i32_1 : i32, i32, i32
  }
  func.func @transform_13(%arg0: i32, %arg1: i32) -> (i32, i32, i32) {
    %c0_i32 = arith.constant 0 : i32
    %c0_i32_0 = arith.constant 0 : i32
    %c0_i32_1 = arith.constant 0 : i32
    %c0_i32_2 = arith.constant 0 : i32
    return %c0_i32, %c0_i32_0, %c0_i32_1 : i32, i32, i32
  }
  func.func @transform_14(%arg0: i32, %arg1: i32) -> (i32, i32) {
    %c0_i32 = arith.constant 0 : i32
    %c0_i32_0 = arith.constant 0 : i32
    %c0_i32_1 = arith.constant 0 : i32
    return %c0_i32, %c0_i32_0 : i32, i32
  }
  func.func @transform_15(%arg0: i32, %arg1: i32) -> (i32, i32) {
    %c0_i32 = arith.constant 0 : i32
    %c0_i32_0 = arith.constant 0 : i32
    %c0_i32_1 = arith.constant 0 : i32
    return %c0_i32, %c0_i32_0 : i32, i32
  }
  func.func @transform_16(%arg0: i32, %arg1: i32) -> (i32, i32) {
    %c0_i32 = arith.constant 0 : i32
    %c0_i32_0 = arith.constant 0 : i32
    %c0_i32_1 = arith.constant 0 : i32
    return %c0_i32, %c0_i32_0 : i32, i32
  }
  func.func @transform_17(%arg0: i32, %arg1: i32) -> (i32, i32) {
    %c0_i32 = arith.constant 0 : i32
    %c0_i32_0 = arith.constant 0 : i32
    %c0_i32_1 = arith.constant 0 : i32
    return %c0_i32, %c0_i32_0 : i32, i32
  }
  func.func @transform_18(%arg0: i32, %arg1: i32) -> (i32, i32) {
    %c0_i32 = arith.constant 0 : i32
    %c0_i32_0 = arith.constant 0 : i32
    %c0_i32_1 = arith.constant 0 : i32
    return %c0_i32, %c0_i32_0 : i32, i32
  }
  func.func @transform_19(%arg0: i32, %arg1: i32) -> (i32, i32) {
    %c0_i32 = arith.constant 0 : i32
    %c0_i32_0 = arith.constant 0 : i32
    %c0_i32_1 = arith.constant 0 : i32
    return %c0_i32, %c0_i32_0 : i32, i32
  }
  func.func @transform_20(%arg0: i32, %arg1: i32) -> (i32, i32, i32) {
    %c0_i32 = arith.constant 0 : i32
    %c0_i32_0 = arith.constant 0 : i32
    %c0_i32_1 = arith.constant 0 : i32
    return %arg0, %c0_i32, %c0_i32_0 : i32, i32, i32
  }
}

</mosaic_0001>

<bundles_post_ra>
// kernel: tpu_custom_call.1
= control target key start
LH: loop header
LB: loop body
LE: loop exit
PB: predicated region body
PF: predicated region fallthrough
CT: control target
= control target key end

     0   :  { %s15643_s0 = inlined_call_operand.vmem [shape: f32[2,24,16], index: 0, kind: input, shape index: {}]   ;;  %s15644_s1 = inlined_call_operand.hbm [shape: f32[2,1,24], index: 1, kind: input, shape index: {}]   ;;  %s15645_s2 = inlined_call_operand.hbm [shape: f32[24,128], index: 2, kind: input, shape index: {}]   ;;  %s15646_s3 = inlined_call_operand.hbm [shape: f32[16,128], index: 3, kind: input, shape index: {}]   ;;  %s15647_s4 = inlined_call_operand.hbm [shape: f32[1,128], index: 4, kind: input, shape index: {}]   ;;  %s15648_s5 = inlined_call_operand.hbm [shape: f32[128,128], index: 5, kind: input, shape index: {}]   ;;  %s15649_s6 = inlined_call_operand.hbm [shape: f32[1,128], index: 6, kind: input, shape index: {}]   ;;  %s15650_s7 = inlined_call_operand.hbm [shape: bf16[6,128,384], index: 7, kind: input, shape index: {}]   ;;  %s15651_s8 = inlined_call_operand.hbm [shape: f32[6,1,384], index: 8, kind: input, shape index: {}]   ;;  %s15652_s9 = inlined_call_operand.hbm [shape: bf16[6,128,128], index: 9, kind: input, shape index: {}]   ;;  %s15653_s10 = inlined_call_operand.hbm [shape: bf16[6,128,2048], index: 10, kind: input, shape index: {}]   ;;  %s15654_s11 = inlined_call_operand.hbm [shape: f32[6,1,2048], index: 11, kind: input, shape index: {}]   ;;  %s15655_s12 = inlined_call_operand.hbm [shape: bf16[6,2048,128], index: 12, kind: input, shape index: {}]   ;;  %s15656_s13 = inlined_call_operand.hbm [shape: f32[6,6,128], index: 13, kind: input, shape index: {}]   ;;  %s15657_s14 = inlined_call_operand.hbm [shape: f32[128,128], index: 14, kind: input, shape index: {}]   ;;  %s15658_s15 = inlined_call_operand.hbm [shape: f32[1,128], index: 15, kind: input, shape index: {}]   ;;  %s15659_s16 = inlined_call_operand.hbm [shape: f32[128,128], index: 16, kind: input, shape index: {}]   ;;  %s15660_s17 = inlined_call_operand.hbm [shape: f32[1,128], index: 17, kind: input, shape index: {}]   ;;  %s15661_s18 = inlined_call_operand.hbm [shape: f32[128,128], index: 18, kind: input, shape index: {}]   ;;  %s15662_s19 = inlined_call_operand.hbm [shape: f32[1,128], index: 19, kind: input, shape index: {}]   ;;  %s15663_s20 = inlined_call_operand.hbm [shape: f32[2,8,128], index: 20, kind: output, shape index: {}]  }
   0x1   :  { %15710 = sst [smem:[#allocation62_spill]] %s15643_s0 }
   0x2   :  { %15711 = sst [smem:[#allocation63_spill]] %s15644_s1 }
   0x3   :  { %15712 = sst [smem:[#allocation64_spill]] %s15645_s2 }
   0x4   :  { %15713 = sst [smem:[#allocation65_spill]] %s15646_s3 }
   0x5   :  { %15714 = sst [smem:[#allocation66_spill]] %s15647_s4 }
   0x6   :  { %15715 = sst [smem:[#allocation67_spill]] %s15648_s5 }
   0x7   :  { %15716 = sst [smem:[#allocation68_spill]] %s15649_s6 }
   0x8   :  { %15717 = sst [smem:[#allocation69_spill]] %s15651_s8 }
   0x9   :  { %15718 = sst [smem:[#allocation70_spill]] %s15653_s10 }
   0xa   :  { %15719 = sst [smem:[#allocation71_spill]] %s15655_s12 }
   0xb   :  { %15720 = sst [smem:[#allocation72_spill]] %s15656_s13 }
   0xc   :  { %15721 = sst [smem:[#allocation73_spill]] %s15658_s15 }
   0xd   :  { %15722 = sst [smem:[#allocation74_spill]] %s15660_s17 }
   0xe   :  { %15723 = sst [smem:[#allocation75_spill]] %s15662_s19 }
   0xf   :  { %15724 = sst [smem:[#allocation76_spill]] %s15663_s20 }
  0x10   :  { %25 = vsyncpa [#allocation4], 0 }
  0x11   :  { %26 = vsyncpa [#allocation7], 0 }
  0x12   :  { %27 = vsyncpa [#allocation10], 0 }
  0x13   :  { %28 = vsyncpa [#allocation13], 0 }
  0x14   :  { %29 = vsyncpa [#allocation16], 0 }
  0x15   :  { %30 = vsyncpa [#allocation19], 0 }
  0x16   :  { %31 = vsyncpa [#allocation22], 0 }
  0x17   :  { %32 = vsyncpa [#allocation25], 0 }
  0x18   :  { %33 = vsyncpa [#allocation28], 0 }
  0x19   :  { %34 = vsyncpa [#allocation31], 0 }
  0x1a   :  { %35 = vsyncpa [#allocation5], 0  ;;  %s13146_s1 = smov 0   ;;  %s13148_s22 = smov 0  }
  0x1b   :  { %s13150_s23 = smov 0  }
  0x1c LB: > { %15725 = sst [smem:[#allocation45_spill]] %s12986_s1  ;;  %s12996_s24 = smov [#allocation6]   ;;  %s12994_s23 = sphi %s13150_s23, %s41_s23   ;;  %s12990_s22 = sphi %s13148_s22, %s15810_s22   ;;  %s12986_s1 = sphi %s13146_s1, %s15809_s1  }
  0x1d   : > { %15726 = sst [smem:[#allocation46_spill]] %s12994_s23  ;;  %s552_s2 = sshll.u32 %s12996_s24, 4  ;;  %s13170_s2 = int_to_ptr.vmem [resolvable:$true] %s552_s2 }
  0x1e   : > { %s15669_s25 = sadd.s32 4294967295, %s12994_s23   ;;  %p9455_p0 = scmp.ge.s32.totalorder %s12994_s23, 1 }
  0x1f   : > { %p514_p1 = scmp.lt.s32.totalorder %s12994_s23, 7  ;;  %p13166_p2 = scmp.eq.s32.totalorder %s15669_s25, 0 }
  0x20   : > { %s12997_s27 = smov [#allocation9]   ;;  %s12998_s29 = smov [#allocation12]  }
  0x21   : > { %s15727_s3 = scalar_select %p13166_p2, 1, 0 }
  0x22   : > { %p13172_p3 = pnand %p9455_p0, %p514_p1  ;;  %s579_s28 = sshll.u32 %s12997_s27, 4  ;;  %s13178_s28 = int_to_ptr.vmem [resolvable:$true] %s579_s28 }
  0x23   : > { %15728 = sst [smem:[#allocation47_spill]] %s15727_s3  ;;  %s603_s30 = sshll.u32 %s12998_s29, 4  ;;  %s13186_s30 = int_to_ptr.vmem [resolvable:$true] %s603_s30 }
  0x24   : > { %s15729_s26 = scalar_select %p13172_p3, 1, 0 }
  0x25   : > { %p11563_p4 = pneg %p13172_p3  ;;  %s12999_s0 = smov [#allocation15]  }
  0x26   : > { %15730 = sst [smem:[#allocation48_spill]] %s15729_s26  ;;  %s13188_s21 = sshll.u32 %s12999_s0, 4  ;;  %s627_s21 = int_to_ptr.vmem [resolvable:$true] %s13188_s21 }
  0x27   : > { %p13182_p5 = pnand %p13166_p2, %p11563_p4  ;;  %s15732_s20 = sld [smem:[#allocation64_spill]] }
  0x29   : > { %p13198_p7 = pneg %p13182_p5 }
  0x2d   : > { %s12370_s23 = scalar_lea.hbm %s15732_s20, 384 }
  0x2e   : > { %p12371_p6 = scmp.ne.s32.totalorder %s15732_s20, %s12370_s23  ;;  %p12377_p10 = scmp.lt.u32.totalorder %s12370_s23, %s15732_s20 }
  0x30   : > { %p12373_p8 = pnand %p13198_p7, %p12371_p6 }
  0x32   : > { %p12374_p9 = pneg %p12373_p8 }
  0x34   : > { %p12379_p11 = pnand %p12377_p10, %p12374_p9 }
  0x36   : > { %12382 = shalt.err (!%p12379_p11)
}
  0x37   : > { %s12383_s1 = scalar_lea.vmem %s13170_s2, 384  ;;  %p12391_p1 = scmp.lt.s32.totalorder %s13170_s2, %s13170_s2 }
  0x38   : > { %p12384_p12 = scmp.ne.s32.totalorder %s13170_s2, %s12383_s1  ;;  %p12392_p4 = scmp.lt.s32.totalorder %s12383_s1, %s12383_s1 }
  0x3a   : > { %p12386_p13 = pnand %p12384_p12, %p13198_p7  ;;  %p12393_p6 = por %p12392_p4, %p12391_p1 }
  0x3c   : > { %p12387_p0 = pneg %p12386_p13 }
  0x3e   : > { %p12394_p8 = pnand %p12393_p6, %p12387_p0 }
  0x40   : > { %12397 = shalt.err (!%p12394_p8)
}
  0x41   : > { %s15683_s25 = smov 128   ;;  %s15685_s23 = smov 8  }
  0x42   : > { %11569 = dma.hbm_to_vmem [thread:$0]  (!%p13182_p5), %s15732_s20, 384, %s13170_s2, [#allocation7], %s15683_s25, %s15683_s25, %s15685_s23  }
  0x43   : > { %s15734_s26 = sld [smem:[#allocation66_spill]] }
  0x49   : > { %s12398_s1 = scalar_lea.hbm %s15734_s26, 16 }
  0x4a   : > { %p12399_p9 = scmp.ne.s32.totalorder %s15734_s26, %s12398_s1  ;;  %p12405_p12 = scmp.lt.u32.totalorder %s12398_s1, %s15734_s26 }
  0x4c   : > { %p12401_p10 = pnand %p12399_p9, %p13198_p7 }
  0x4e   : > { %p12402_p11 = pneg %p12401_p10 }
  0x50   : > { %p12407_p13 = pnand %p12405_p12, %p12402_p11 }
  0x52   : > { %12410 = shalt.err (!%p12407_p13)
}
  0x53   : > { %s12411_s2 = scalar_lea.vmem %s13178_s28, 16  ;;  %s12418_s17 = scalar_lea.vmem %s13178_s28, 32 }
  0x54   : > { %p12412_p0 = scmp.ne.s32.totalorder %s13178_s28, %s12411_s2  ;;  %p12419_p6 = scmp.lt.s32.totalorder %s13178_s28, %s13178_s28 }
  0x55   : > { %p12420_p8 = scmp.lt.s32.totalorder %s12418_s17, %s12411_s2 }
  0x56   : > { %p12414_p1 = pnand %p12412_p0, %p13198_p7 }
  0x57   : > { %p12421_p9 = por %p12420_p8, %p12419_p6 }
  0x58   : > { %p12415_p4 = pneg %p12414_p1 }
  0x5a   : > { %p12422_p10 = pnand %p12421_p9, %p12415_p4 }
  0x5c   : > { %12425 = shalt.err (!%p12422_p10)
}
  0x5d   : > { %11575 = dma.hbm_to_vmem [thread:$0]  (!%p13182_p5), %s15734_s26, 16, %s13178_s28, [#allocation10]  }
  0x5e   : > { %s15735_s6 = sld [smem:[#allocation68_spill]] }
  0x64   : > { %s12426_s27 = scalar_lea.hbm %s15735_s6, 16 }
  0x65   : > { %p12427_p11 = scmp.ne.s32.totalorder %s15735_s6, %s12426_s27  ;;  %p12433_p0 = scmp.lt.u32.totalorder %s12426_s27, %s15735_s6 }
  0x67   : > { %p12429_p12 = pnand %p12427_p11, %p13198_p7 }
  0x69   : > { %p12430_p13 = pneg %p12429_p12 }
  0x6b   : > { %p12435_p1 = pnand %p12433_p0, %p12430_p13 }
  0x6d   : > { %12438 = shalt.err (!%p12435_p1)
}
  0x6e   : > { %s12439_s28 = scalar_lea.vmem %s13186_s30, 16  ;;  %s12446_s17 = scalar_lea.vmem %s13186_s30, 32 }
  0x6f   : > { %p12440_p4 = scmp.ne.s32.totalorder %s13186_s30, %s12439_s28  ;;  %p12447_p9 = scmp.lt.s32.totalorder %s13186_s30, %s13186_s30 }
  0x70   : > { %p12448_p10 = scmp.lt.s32.totalorder %s12446_s17, %s12439_s28 }
  0x71   : > { %p12442_p6 = pnand %p12440_p4, %p13198_p7 }
  0x72   : > { %p12449_p11 = por %p12448_p10, %p12447_p9 }
  0x73   : > { %p12443_p8 = pneg %p12442_p6 }
  0x75   : > { %p12450_p12 = pnand %p12449_p11, %p12443_p8 }
  0x77   : > { %12453 = shalt.err (!%p12450_p12)
}
  0x78   : > { %11581 = dma.hbm_to_vmem [thread:$0]  (!%p13182_p5), %s15735_s6, 16, %s13186_s30, [#allocation13]  }
  0x79   : > { %s15736_s8 = sld [smem:[#allocation69_spill]] }
  0x7f   : > { %s12454_s27 = scalar_lea.hbm %s15736_s8, 288 }
  0x80   : > { %p12455_p13 = scmp.ne.s32.totalorder %s15736_s8, %s12454_s27  ;;  %p12461_p4 = scmp.lt.u32.totalorder %s12454_s27, %s15736_s8 }
  0x82   : > { %p12457_p0 = pnand %p12455_p13, %p13198_p7 }
  0x84   : > { %p12458_p1 = pneg %p12457_p0 }
  0x86   : > { %p12463_p6 = pnand %p12461_p4, %p12458_p1 }
  0x88   : > { %12466 = shalt.err (!%p12463_p6)
}
  0x89   : > { %s12467_s28 = scalar_lea.vmem %s627_s21, 288  ;;  %p12475_p11 = scmp.lt.s32.totalorder %s627_s21, %s627_s21 }
  0x8a   : > { %p12468_p8 = scmp.ne.s32.totalorder %s627_s21, %s12467_s28  ;;  %p12476_p12 = scmp.lt.s32.totalorder %s12467_s28, %s12467_s28 }
  0x8c   : > { %p12470_p9 = pnand %p12468_p8, %p13198_p7  ;;  %p12477_p2 = por %p12476_p12, %p12475_p11 }
  0x8e   : > { %p12471_p10 = pneg %p12470_p9 }
  0x90   : > { %p12478_p3 = pnand %p12477_p2, %p12471_p10 }
  0x92   : > { %12481 = shalt.err (!%p12478_p3)
}
  0x93   : > { %s13002_s30 = smov 48   ;;  %s13003_s17 = smov 3  }
  0x94   : > { %11587 = dma.hbm_to_vmem [thread:$0]  (!%p13182_p5), %s15736_s8, 288, %s627_s21, [#allocation16], %s13002_s30, %s13002_s30, %s13003_s17  }
  0x95   : > { %s13004_s19 = smov [#allocation18]   ;;  %s15737_s10 = sld [smem:[#allocation70_spill]] }
  0x96   : > { %s652_s24 = sshll.u32 %s13004_s19, 4  ;;  %s653_s24 = int_to_ptr.vmem [resolvable:$true] %s652_s24 }
  0x9b   : > { %s12482_s0 = scalar_lea.hbm %s15737_s10, 98304 }
  0x9c   : > { %p12483_p2 = scmp.ne.s32.totalorder %s15737_s10, %s12482_s0  ;;  %p12489_p0 = scmp.lt.u32.totalorder %s12482_s0, %s15737_s10 }
  0x9e   : > { %p12485_p3 = pnand %p12483_p2, %p13198_p7 }
  0xa0   : > { %p12486_p13 = pneg %p12485_p3 }
  0xa2   : > { %p12491_p1 = pnand %p12489_p0, %p12486_p13 }
  0xa4   : > { %12494 = shalt.err (!%p12491_p1)
}
  0xa5   : > { %s12495_s21 = scalar_lea.vmem %s653_s24, 98304  ;;  %p12503_p9 = scmp.lt.s32.totalorder %s653_s24, %s653_s24 }
  0xa6   : > { %p12496_p4 = scmp.ne.s32.totalorder %s653_s24, %s12495_s21  ;;  %p12504_p10 = scmp.lt.s32.totalorder %s12495_s21, %s12495_s21 }
  0xa8   : > { %p12498_p6 = pnand %p12496_p4, %p13198_p7  ;;  %p12505_p11 = por %p12504_p10, %p12503_p9 }
  0xaa   : > { %p12499_p8 = pneg %p12498_p6 }
  0xac   : > { %p12506_p12 = pnand %p12505_p11, %p12499_p8 }
  0xae   : > { %12509 = shalt.err (!%p12506_p12)
}
  0xaf   : > { %s13005_s30 = smov 1024   ;;  %s15687_s17 = smov 64  }
  0xb0   : > { %11593 = dma.hbm_to_vmem [thread:$0]  (!%p13182_p5), %s15737_s10, 98304, %s653_s24, [#allocation19], %s13005_s30, %s13005_s30, %s15687_s17  }
  0xb1   : > { %s13007_s15 = smov [#allocation21]   ;;  %s13008_s27 = smov [#allocation24]  }
  0xb2   : > { %s678_s19 = sshll.u32 %s13007_s15, 4  ;;  %s704_s29 = sshll.u32 %s13008_s27, 4  ;;  %s679_s19 = int_to_ptr.vmem [resolvable:$true] %s678_s19  ;;  %s705_s29 = int_to_ptr.vmem [resolvable:$true] %s704_s29 }
  0xb3   : > { %s15738_s12 = sld [smem:[#allocation71_spill]] }
  0xb9   : > { %s12510_s2 = scalar_lea.hbm %s15738_s12, 98304 }
  0xba   : > { %p12511_p2 = scmp.ne.s32.totalorder %s15738_s12, %s12510_s2  ;;  %p12517_p0 = scmp.lt.u32.totalorder %s12510_s2, %s15738_s12 }
  0xbc   : > { %p12513_p3 = pnand %p12511_p2, %p13198_p7 }
  0xbe   : > { %p12514_p13 = pneg %p12513_p3 }
  0xc0   : > { %p12519_p1 = pnand %p12517_p0, %p12514_p13 }
  0xc2   : > { %12522 = shalt.err (!%p12519_p1)
}
  0xc3   : > { %s12523_s24 = scalar_lea.vmem %s679_s19, 98304  ;;  %p12531_p9 = scmp.lt.s32.totalorder %s679_s19, %s679_s19 }
  0xc4   : > { %p12524_p4 = scmp.ne.s32.totalorder %s679_s19, %s12523_s24  ;;  %p12532_p10 = scmp.lt.s32.totalorder %s12523_s24, %s12523_s24 }
  0xc6   : > { %p12526_p6 = pnand %p12524_p4, %p13198_p7  ;;  %p12533_p11 = por %p12532_p10, %p12531_p9 }
  0xc8   : > { %p12527_p8 = pneg %p12526_p6 }
  0xca   : > { %p12534_p12 = pnand %p12533_p11, %p12527_p8 }
  0xcc   : > { %12537 = shalt.err (!%p12534_p12)
}
  0xcd   : > { %s15688_s30 = smov 4   ;;  %s12538_s15 = scalar_lea.hbm %s15657_s14, 2048 }
  0xce   : > { %11599 = dma.hbm_to_vmem [thread:$0]  (!%p13182_p5), %s15738_s12, 98304, %s679_s19, [#allocation22], %s15687_s17, %s15687_s17, %s15688_s30  }
  0xcf   : > { %p12539_p2 = scmp.ne.s32.totalorder %s15657_s14, %s12538_s15  ;;  %p12545_p0 = scmp.lt.u32.totalorder %s12538_s15, %s15657_s14 }
  0xd1   : > { %p12541_p3 = pnand %p12539_p2, %p13198_p7 }
  0xd3   : > { %p12542_p13 = pneg %p12541_p3 }
  0xd5   : > { %p12547_p1 = pnand %p12545_p0, %p12542_p13 }
  0xd7   : > { %12550 = shalt.err (!%p12547_p1)
}
  0xd8   : > { %s12551_s28 = scalar_lea.vmem %s705_s29, 2048  ;;  %p12559_p9 = scmp.lt.s32.totalorder %s705_s29, %s705_s29 }
  0xd9   : > { %p12552_p4 = scmp.ne.s32.totalorder %s705_s29, %s12551_s28  ;;  %p12560_p10 = scmp.lt.s32.totalorder %s12551_s28, %s12551_s28 }
  0xdb   : > { %p12554_p6 = pnand %p12552_p4, %p13198_p7  ;;  %p12561_p11 = por %p12560_p10, %p12559_p9 }
  0xdd   : > { %p12555_p8 = pneg %p12554_p6 }
  0xdf   : > { %p12562_p12 = pnand %p12561_p11, %p12555_p8 }
  0xe1   : > { %12565 = shalt.err (!%p12562_p12)
}
  0xe2   : > { %s15739_s19 = smov 8   ;;  %s15740_s21 = smov 128  }
  0xe3   : > { %11605 = dma.hbm_to_vmem [thread:$0]  (!%p13182_p5), %s15657_s14, 2048, %s705_s29, [#allocation25], %s15740_s21, %s15740_s21, %s15739_s19  }
  0xe4   : > { %s13010_s23 = smov [#allocation27]   ;;  %s13011_s13 = smov [#allocation30]  }
  0xe5   : > { %s728_s25 = sshll.u32 %s13010_s23, 4  ;;  %s752_s15 = sshll.u32 %s13011_s13, 4  ;;  %s729_s25 = int_to_ptr.vmem [resolvable:$true] %s728_s25  ;;  %s753_s15 = int_to_ptr.vmem [resolvable:$true] %s752_s15 }
  0xe6   : > { %s12566_s1 = scalar_lea.hbm %s15659_s16, 2048 }
  0xe7   : > { %p12567_p2 = scmp.ne.s32.totalorder %s15659_s16, %s12566_s1  ;;  %p12573_p0 = scmp.lt.u32.totalorder %s12566_s1, %s15659_s16 }
  0xe9   : > { %p12569_p3 = pnand %p12567_p2, %p13198_p7 }
  0xeb   : > { %p12570_p13 = pneg %p12569_p3 }
  0xed   : > { %p12575_p1 = pnand %p12573_p0, %p12570_p13 }
  0xef   : > { %12578 = shalt.err (!%p12575_p1)
}
  0xf0   : > { %s12579_s29 = scalar_lea.vmem %s729_s25, 2048  ;;  %p12587_p9 = scmp.lt.s32.totalorder %s729_s25, %s729_s25 }
  0xf1   : > { %p12580_p4 = scmp.ne.s32.totalorder %s729_s25, %s12579_s29  ;;  %p12588_p10 = scmp.lt.s32.totalorder %s12579_s29, %s12579_s29 }
  0xf3   : > { %p12582_p6 = pnand %p12580_p4, %p13198_p7  ;;  %p12589_p11 = por %p12588_p10, %p12587_p9 }
  0xf5   : > { %p12583_p8 = pneg %p12582_p6 }
  0xf7   : > { %p12590_p12 = pnand %p12589_p11, %p12583_p8 }
  0xf9   : > { %12593 = shalt.err (!%p12590_p12)
}
  0xfa   : > { %11611 = dma.hbm_to_vmem [thread:$0]  (!%p13182_p5), %s15659_s16, 2048, %s729_s25, [#allocation28], %s15740_s21, %s15740_s21, %s15739_s19  }
  0xfb   : > { %s12594_s27 = scalar_lea.hbm %s15661_s18, 2048 }
  0xfc   : > { %p12595_p2 = scmp.ne.s32.totalorder %s15661_s18, %s12594_s27  ;;  %p12601_p0 = scmp.lt.u32.totalorder %s12594_s27, %s15661_s18 }
  0xfe   : > { %p12597_p3 = pnand %p12595_p2, %p13198_p7 }
 0x100   : > { %p12598_p13 = pneg %p12597_p3 }
 0x102   : > { %p12603_p1 = pnand %p12601_p0, %p12598_p13 }
 0x104   : > { %12606 = shalt.err (!%p12603_p1)
}
 0x105   : > { %s12607_s24 = scalar_lea.vmem %s753_s15, 2048  ;;  %p12615_p9 = scmp.lt.s32.totalorder %s753_s15, %s753_s15 }
 0x106   : > { %p12608_p4 = scmp.ne.s32.totalorder %s753_s15, %s12607_s24  ;;  %p12616_p10 = scmp.lt.s32.totalorder %s12607_s24, %s12607_s24 }
 0x108   : > { %p12610_p6 = pnand %p12608_p4, %p13198_p7  ;;  %p12617_p11 = por %p12616_p10, %p12615_p9 }
 0x10a   : > { %p12611_p8 = pneg %p12610_p6 }
 0x10c   : > { %p12618_p12 = pnand %p12617_p11, %p12611_p8 }
 0x10e   : > { %12621 = shalt.err (!%p12618_p12)
}
 0x10f   : > { %11617 = dma.hbm_to_vmem [thread:$0]  (!%p13182_p5), %s15661_s18, 2048, %s753_s15, [#allocation31], %s15740_s21, %s15740_s21, %s15739_s19  }
 0x110   : > { %s50_s17 = sadd.s32 1, %s12990_s22  ;;  %s13012_s6 = smov [#allocation3]  }
 0x111   : > { %s539_s23 = sshll.u32 %s13012_s6, 4  ;;  %p51_p2 = scmp.ge.s32.totalorder %s50_s17, 6  ;;  %s540_s23 = int_to_ptr.vmem [resolvable:$true] %s539_s23 }
 0x112   : > { %s15741_s0 = sld [smem:[#allocation63_spill]] }
 0x113   : > { %s15812_s17 = smov (%p51_p2, %s50_s17), 0 }
 0x118   : > { %s12622_s1 = scalar_lea.hbm %s15741_s0, 32 }
 0x119   : > { %p12623_p3 = scmp.ne.s32.totalorder %s15741_s0, %s12622_s1  ;;  %p12629_p1 = scmp.lt.u32.totalorder %s12622_s1, %s15741_s0 }
 0x11b   : > { %p12625_p13 = pnand %p12623_p3, %p13198_p7 }
 0x11d   : > { %p12626_p0 = pneg %p12625_p13 }
 0x11f   : > { %p12631_p4 = pnand %p12629_p1, %p12626_p0 }
 0x121   : > { %12634 = shalt.err (!%p12631_p4)
}
 0x122   : > { %s12635_s25 = scalar_lea.vmem %s540_s23, 32  ;;  %p12643_p10 = scmp.lt.s32.totalorder %s540_s23, %s540_s23 }
 0x123   : > { %p12636_p6 = scmp.ne.s32.totalorder %s540_s23, %s12635_s25  ;;  %p12644_p11 = scmp.lt.s32.totalorder %s12635_s25, %s12635_s25 }
 0x125   : > { %p12638_p8 = pnand %p12636_p6, %p13198_p7  ;;  %p12645_p12 = por %p12644_p11, %p12643_p10 }
 0x127   : > { %p12639_p9 = pneg %p12638_p8 }
 0x129   : > { %p12646_p2 = pnand %p12645_p12, %p12639_p9 }
 0x12b   : > { %12649 = shalt.err (!%p12646_p2)
}
 0x12c   : > { %s15689_s29 = smov 16   ;;  %s13014_s6 = smov 1  }
 0x12d   : > { %11566 = dma.hbm_to_vmem [thread:$0]  (!%p13182_p5), %s15741_s0, 32, %s540_s23, [#allocation4], %s15689_s29, %s15689_s29, %s13014_s6  }
 0x12e   : > { %s13015_s1 = smov [#allocation8]   ;;  %s13016_s28 = smov [#allocation11]  }
 0x12f   : > { %s565_s2 = sshll.u32 %s13015_s1, 4  ;;  %s589_s24 = sshll.u32 %s13016_s28, 4  ;;  %s566_s2 = int_to_ptr.vmem [resolvable:$true] %s565_s2  ;;  %s13415_s24 = int_to_ptr.vmem [resolvable:$true] %s589_s24 }
 0x130   : > { %s15742_s30 = sld [smem:[#allocation65_spill]] }
 0x136   : > { %s12650_s8 = scalar_lea.hbm %s15742_s30, 256 }
 0x137   : > { %p12651_p3 = scmp.ne.s32.totalorder %s15742_s30, %s12650_s8  ;;  %p12657_p1 = scmp.lt.u32.totalorder %s12650_s8, %s15742_s30 }
 0x139   : > { %p12653_p13 = pnand %p12651_p3, %p13198_p7 }
 0x13b   : > { %p12654_p0 = pneg %p12653_p13 }
 0x13d   : > { %p12659_p4 = pnand %p12657_p1, %p12654_p0 }
 0x13f   : > { %12662 = shalt.err (!%p12659_p4)
}
 0x140   : > { %s12663_s6 = scalar_lea.vmem %s566_s2, 256  ;;  %p12671_p10 = scmp.lt.s32.totalorder %s566_s2, %s566_s2 }
 0x141   : > { %p12664_p6 = scmp.ne.s32.totalorder %s566_s2, %s12663_s6  ;;  %p12672_p11 = scmp.lt.s32.totalorder %s12663_s6, %s12663_s6 }
 0x143   : > { %p12666_p8 = pnand %p12664_p6, %p13198_p7  ;;  %p12673_p12 = por %p12672_p11, %p12671_p10 }
 0x145   : > { %p12667_p9 = pneg %p12666_p8 }
 0x147   : > { %p12674_p2 = pnand %p12673_p12, %p12667_p9 }
 0x149   : > { %12677 = shalt.err (!%p12674_p2)
}
 0x14a   : > { %11572 = dma.hbm_to_vmem [thread:$0]  (!%p13182_p5), %s15742_s30, 256, %s566_s2, [#allocation7], %s15740_s21, %s15740_s21, %s15739_s19  }
 0x14b   : > { %s15743_s5 = sld [smem:[#allocation67_spill]] }
 0x151   : > { %s12678_s1 = scalar_lea.hbm %s15743_s5, 2048 }
 0x152   : > { %p12679_p3 = scmp.ne.s32.totalorder %s15743_s5, %s12678_s1  ;;  %p12685_p1 = scmp.lt.u32.totalorder %s12678_s1, %s15743_s5 }
 0x154   : > { %p12681_p13 = pnand %p12679_p3, %p13198_p7 }
 0x156   : > { %p12682_p0 = pneg %p12681_p13 }
 0x158   : > { %p12687_p4 = pnand %p12685_p1, %p12682_p0 }
 0x15a   : > { %12690 = shalt.err (!%p12687_p4)
}
 0x15b   : > { %s12691_s2 = scalar_lea.vmem %s13415_s24, 2048  ;;  %p12699_p10 = scmp.lt.s32.totalorder %s13415_s24, %s13415_s24 }
 0x15c   : > { %p12692_p6 = scmp.ne.s32.totalorder %s13415_s24, %s12691_s2  ;;  %p12700_p11 = scmp.lt.s32.totalorder %s12691_s2, %s12691_s2 }
 0x15e   : > { %p12694_p8 = pnand %p12692_p6, %p13198_p7  ;;  %p12701_p12 = por %p12700_p11, %p12699_p10 }
 0x160   : > { %p12695_p9 = pneg %p12694_p8 }
 0x162   : > { %p12702_p2 = pnand %p12701_p12, %p12695_p9 }
 0x164   : > { %12705 = shalt.err (!%p12702_p2)
}
 0x165   : > { %11578 = dma.hbm_to_vmem [thread:$0]  (!%p13182_p5), %s15743_s5, 2048, %s13415_s24, [#allocation10], %s15740_s21, %s15740_s21, %s15739_s19  }
 0x166   : > { %s13017_s10 = smov [#allocation14]   ;;  %s12706_s1 = scalar_lea.hbm %s15650_s7, 18432 }
 0x167   : > { %s613_s8 = sshll.u32 %s13017_s10, 4  ;;  %p12707_p3 = scmp.ne.s32.totalorder %s15650_s7, %s12706_s1  ;;  %s614_s8 = int_to_ptr.vmem [resolvable:$true] %s613_s8 }
 0x168   : > { %p12713_p1 = scmp.lt.u32.totalorder %s12706_s1, %s15650_s7 }
 0x169   : > { %p12709_p13 = pnand %p12707_p3, %p13198_p7 }
 0x16b   : > { %p12710_p0 = pneg %p12709_p13 }
 0x16d   : > { %p12715_p4 = pnand %p12713_p1, %p12710_p0 }
 0x16f   : > { %12718 = shalt.err (!%p12715_p4)
}
 0x170   : > { %s12719_s24 = scalar_lea.vmem %s614_s8, 18432  ;;  %p12727_p10 = scmp.lt.s32.totalorder %s614_s8, %s614_s8 }
 0x171   : > { %p12720_p6 = scmp.ne.s32.totalorder %s614_s8, %s12719_s24  ;;  %p12728_p11 = scmp.lt.s32.totalorder %s12719_s24, %s12719_s24 }
 0x173   : > { %p12722_p8 = pnand %p12720_p6, %p13198_p7  ;;  %p12729_p12 = por %p12728_p11, %p12727_p10 }
 0x175   : > { %p12723_p9 = pneg %p12722_p8 }
 0x177   : > { %p12730_p2 = pnand %p12729_p12, %p12723_p9 }
 0x179   : > { %12733 = shalt.err (!%p12730_p2)
}
 0x17a   : > { %s13018_s2 = smov 192   ;;  %s13019_s23 = smov 12  }
 0x17b   : > { %11584 = dma.hbm_to_vmem [thread:$0]  (!%p13182_p5), %s15650_s7, 18432, %s614_s8, [#allocation13], %s13018_s2, %s13018_s2, %s13019_s23  }
 0x17c   : > { %s13020_s12 = smov [#allocation17]   ;;  %s13021_s1 = smov [#allocation20]  }
 0x17d   : > { %s639_s27 = sshll.u32 %s13020_s12, 4  ;;  %s665_s28 = sshll.u32 %s13021_s1, 4  ;;  %s640_s27 = int_to_ptr.vmem [resolvable:$true] %s639_s27  ;;  %s666_s28 = int_to_ptr.vmem [resolvable:$true] %s665_s28 }
 0x17e   : > { %s12734_s13 = scalar_lea.hbm %s15652_s9, 6144 }
 0x17f   : > { %p12735_p3 = scmp.ne.s32.totalorder %s15652_s9, %s12734_s13  ;;  %p12741_p1 = scmp.lt.u32.totalorder %s12734_s13, %s15652_s9 }
 0x181   : > { %p12737_p13 = pnand %p12735_p3, %p13198_p7 }
 0x183   : > { %p12738_p0 = pneg %p12737_p13 }
 0x185   : > { %p12743_p4 = pnand %p12741_p1, %p12738_p0 }
 0x187   : > { %12746 = shalt.err (!%p12743_p4)
}
 0x188   : > { %s12747_s8 = scalar_lea.vmem %s640_s27, 6144  ;;  %p12755_p10 = scmp.lt.s32.totalorder %s640_s27, %s640_s27 }
 0x189   : > { %p12748_p6 = scmp.ne.s32.totalorder %s640_s27, %s12747_s8  ;;  %p12756_p11 = scmp.lt.s32.totalorder %s12747_s8, %s12747_s8 }
 0x18b   : > { %p12750_p8 = pnand %p12748_p6, %p13198_p7  ;;  %p12757_p12 = por %p12756_p11, %p12755_p10 }
 0x18d   : > { %p12751_p9 = pneg %p12750_p8 }
 0x18f   : > { %p12758_p2 = pnand %p12757_p12, %p12751_p9 }
 0x191   : > { %12761 = shalt.err (!%p12758_p2)
}
 0x192   : > { %s15744_s29 = smov 4   ;;  %s15745_s2 = smov 64  }
 0x193   : > { %11590 = dma.hbm_to_vmem [thread:$0]  (!%p13182_p5), %s15652_s9, 6144, %s640_s27, [#allocation16], %s15745_s2, %s15745_s2, %s15744_s29  }
 0x194   : > { %s12762_s10 = scalar_lea.hbm %s15654_s11, 1536 }
 0x195   : > { %p12763_p3 = scmp.ne.s32.totalorder %s15654_s11, %s12762_s10  ;;  %p12769_p1 = scmp.lt.u32.totalorder %s12762_s10, %s15654_s11 }
 0x197   : > { %p12765_p13 = pnand %p12763_p3, %p13198_p7 }
 0x199   : > { %p12766_p0 = pneg %p12765_p13 }
 0x19b   : > { %p12771_p4 = pnand %p12769_p1, %p12766_p0 }
 0x19d   : > { %12774 = shalt.err (!%p12771_p4)
}
 0x19e   : > { %s12775_s13 = scalar_lea.vmem %s666_s28, 1536  ;;  %p12783_p10 = scmp.lt.s32.totalorder %s666_s28, %s666_s28 }
 0x19f   : > { %p12776_p6 = scmp.ne.s32.totalorder %s666_s28, %s12775_s13  ;;  %p12784_p11 = scmp.lt.s32.totalorder %s12775_s13, %s12775_s13 }
 0x1a1   : > { %p12778_p8 = pnand %p12776_p6, %p13198_p7  ;;  %p12785_p12 = por %p12784_p11, %p12783_p10 }
 0x1a3   : > { %p12779_p9 = pneg %p12778_p8 }
 0x1a5   : > { %p12786_p2 = pnand %p12785_p12, %p12779_p9 }
 0x1a7   : > { %12789 = shalt.err (!%p12786_p2)
}
 0x1a8   : > { %s13022_s27 = smov 256   ;;  %s15746_s24 = smov 16  }
 0x1a9   : > { %11596 = dma.hbm_to_vmem [thread:$0]  (!%p13182_p5), %s15654_s11, 1536, %s666_s28, [#allocation19], %s13022_s27, %s13022_s27, %s15746_s24  }
 0x1aa   : > { %s13023_s2 = smov [#allocation23]   ;;  %s13024_s0 = smov [#allocation26]  }
 0x1ab   : > { %s691_s5 = sshll.u32 %s13023_s2, 4  ;;  %s718_s23 = sshll.u32 %s13024_s0, 4  ;;  %s692_s5 = int_to_ptr.vmem [resolvable:$true] %s691_s5  ;;  %s13522_s23 = int_to_ptr.vmem [resolvable:$true] %s718_s23 }
 0x1ac   : > { %s15747_s12 = sld [smem:[#allocation72_spill]] }
 0x1b2   : > { %s12790_s1 = scalar_lea.hbm %s15747_s12, 768 }
 0x1b3   : > { %p12791_p3 = scmp.ne.s32.totalorder %s15747_s12, %s12790_s1  ;;  %p12797_p1 = scmp.lt.u32.totalorder %s12790_s1, %s15747_s12 }
 0x1b5   : > { %p12793_p13 = pnand %p12791_p3, %p13198_p7 }
 0x1b7   : > { %p12794_p0 = pneg %p12793_p13 }
 0x1b9   : > { %p12799_p4 = pnand %p12797_p1, %p12794_p0 }
 0x1bb   : > { %12802 = shalt.err (!%p12799_p4)
}
 0x1bc   : > { %s12803_s27 = scalar_lea.vmem %s692_s5, 768  ;;  %p12811_p10 = scmp.lt.s32.totalorder %s692_s5, %s692_s5 }
 0x1bd   : > { %p12804_p6 = scmp.ne.s32.totalorder %s692_s5, %s12803_s27  ;;  %p12812_p11 = scmp.lt.s32.totalorder %s12803_s27, %s12803_s27 }
 0x1bf   : > { %p12806_p8 = pnand %p12804_p6, %p13198_p7  ;;  %p12813_p12 = por %p12812_p11, %p12811_p10 }
 0x1c1   : > { %p12807_p9 = pneg %p12806_p8 }
 0x1c3   : > { %p12814_p2 = pnand %p12813_p12, %p12807_p9 }
 0x1c5   : > { %12817 = shalt.err (!%p12814_p2)
}
 0x1c6   : > { %11602 = dma.hbm_to_vmem [thread:$0]  (!%p13182_p5), %s15747_s12, 768, %s692_s5, [#allocation22], %s15740_s21, %s15740_s21, %s15739_s19  }
 0x1c7   : > { %s15748_s0 = sld [smem:[#allocation73_spill]] }
 0x1cd   : > { %s12818_s6 = scalar_lea.hbm %s15748_s0, 16 }
 0x1ce   : > { %p12819_p3 = scmp.ne.s32.totalorder %s15748_s0, %s12818_s6  ;;  %p12825_p1 = scmp.lt.u32.totalorder %s12818_s6, %s15748_s0 }
 0x1d0   : > { %p12821_p13 = pnand %p12819_p3, %p13198_p7 }
 0x1d2   : > { %p12822_p0 = pneg %p12821_p13 }
 0x1d4   : > { %p12827_p4 = pnand %p12825_p1, %p12822_p0 }
 0x1d6   : > { %12830 = shalt.err (!%p12827_p4)
}
 0x1d7   : > { %s12831_s19 = scalar_lea.vmem %s13522_s23, 16  ;;  %s12838_s21 = scalar_lea.vmem %s13522_s23, 32 }
 0x1d8   : > { %p12832_p6 = scmp.ne.s32.totalorder %s13522_s23, %s12831_s19  ;;  %p12839_p10 = scmp.lt.s32.totalorder %s13522_s23, %s13522_s23 }
 0x1d9   : > { %p12840_p11 = scmp.lt.s32.totalorder %s12838_s21, %s12831_s19 }
 0x1da   : > { %p12834_p8 = pnand %p12832_p6, %p13198_p7 }
 0x1db   : > { %p12841_p12 = por %p12840_p11, %p12839_p10 }
 0x1dc   : > { %p12835_p9 = pneg %p12834_p8 }
 0x1de   : > { %p12842_p2 = pnand %p12841_p12, %p12835_p9 }
 0x1e0   : > { %12845 = shalt.err (!%p12842_p2)
}
 0x1e1   : > { %11608 = dma.hbm_to_vmem [thread:$0]  (!%p13182_p5), %s15748_s0, 16, %s13522_s23, [#allocation25]  }
 0x1e2   : > { %s13025_s28 = smov [#allocation29]   ;;  %s13026_s24 = smov [#allocation32]  }
 0x1e3   : > { %s742_s27 = sshll.u32 %s13025_s28, 4  ;;  %s766_s8 = sshll.u32 %s13026_s24, 4  ;;  %s743_s27 = int_to_ptr.vmem [resolvable:$true] %s742_s27  ;;  %s13569_s8 = int_to_ptr.vmem [resolvable:$true] %s766_s8 }
 0x1e4   : > { %s15749_s6 = sld [smem:[#allocation74_spill]] }
 0x1ea   : > { %s12846_s10 = scalar_lea.hbm %s15749_s6, 16 }
 0x1eb   : > { %p12847_p3 = scmp.ne.s32.totalorder %s15749_s6, %s12846_s10  ;;  %p12853_p1 = scmp.lt.u32.totalorder %s12846_s10, %s15749_s6 }
 0x1ed   : > { %p12849_p13 = pnand %p12847_p3, %p13198_p7 }
 0x1ef   : > { %p12850_p0 = pneg %p12849_p13 }
 0x1f1   : > { %p12855_p4 = pnand %p12853_p1, %p12850_p0 }
 0x1f3   : > { %12858 = shalt.err (!%p12855_p4)
}
 0x1f4   : > { %s12859_s19 = scalar_lea.vmem %s743_s27, 16  ;;  %s12866_s21 = scalar_lea.vmem %s743_s27, 32 }
 0x1f5   : > { %p12860_p6 = scmp.ne.s32.totalorder %s743_s27, %s12859_s19  ;;  %p12867_p10 = scmp.lt.s32.totalorder %s743_s27, %s743_s27 }
 0x1f6   : > { %p12868_p11 = scmp.lt.s32.totalorder %s12866_s21, %s12859_s19 }
 0x1f7   : > { %p12862_p8 = pnand %p12860_p6, %p13198_p7 }
 0x1f8   : > { %p12869_p12 = por %p12868_p11, %p12867_p10 }
 0x1f9   : > { %p12863_p9 = pneg %p12862_p8 }
 0x1fb   : > { %p12870_p2 = pnand %p12869_p12, %p12863_p9 }
 0x1fd   : > { %12873 = shalt.err (!%p12870_p2)
}
 0x1fe   : > { %11614 = dma.hbm_to_vmem [thread:$0]  (!%p13182_p5), %s15749_s6, 16, %s743_s27, [#allocation28]  }
 0x1ff   : > { %s15750_s29 = sld [smem:[#allocation75_spill]] }
 0x205   : > { %s12874_s2 = scalar_lea.hbm %s15750_s29, 16 }
 0x206   : > { %p12875_p3 = scmp.ne.s32.totalorder %s15750_s29, %s12874_s2  ;;  %p12881_p1 = scmp.lt.u32.totalorder %s12874_s2, %s15750_s29 }
 0x208   : > { %p12877_p13 = pnand %p12875_p3, %p13198_p7 }
 0x20a   : > { %p12878_p0 = pneg %p12877_p13 }
 0x20c   : > { %p12883_p4 = pnand %p12881_p1, %p12878_p0 }
 0x20e   : > { %12886 = shalt.err (!%p12883_p4)
}
 0x20f   : > { %s12887_s27 = scalar_lea.vmem %s13569_s8, 16  ;;  %s12894_s23 = scalar_lea.vmem %s13569_s8, 32 }
 0x210   : > { %p12888_p6 = scmp.ne.s32.totalorder %s13569_s8, %s12887_s27  ;;  %p12895_p10 = scmp.lt.s32.totalorder %s13569_s8, %s13569_s8 }
 0x211   : > { %p12896_p11 = scmp.lt.s32.totalorder %s12894_s23, %s12887_s27 }
 0x212   : > { %p12890_p8 = pnand %p12888_p6, %p13198_p7 }
 0x213   : > { %p12897_p12 = por %p12896_p11, %p12895_p10 }
 0x214   : > { %p12891_p9 = pneg %p12890_p8 }
 0x216   : > { %p12898_p2 = pnand %p12897_p12, %p12891_p9 }
 0x218   : > { %12901 = shalt.err (!%p12898_p2)
}
 0x219   : > { %11620 = dma.hbm_to_vmem [thread:$0]  (!%p13182_p5), %s15750_s29, 16, %s13569_s8, [#allocation31]  }
 0x21a   : > { %s15751_s5 = sld [smem:[#allocation48_spill]] }
 0x220   : > { %p15752_p3 = scmp.ne.s32.totalorder %s15751_s5, 0 }
 0x222   : > { %779 = sbr.rel (%p15752_p3) target bundleno = 8391 (0x20c7), region = 100 }
 0x229   : > { %s15753_s3 = sld [smem:[#allocation47_spill]] }
 0x22f   : > { %p15754_p7 = scmp.ne.s32.totalorder %s15753_s3, 0 }
 0x231   : > { %12941 = dma.done.wait (%p15754_p7), [#allocation4], 32  }
 0x232   : > { %12943 = vsyncadd (%p15754_p7), [#allocation4], 4294967264 }
 0x233   : > { %12945 = dma.done.wait (%p15754_p7), [#allocation7], 640  }
 0x234   : > { %12947 = vsyncadd (%p15754_p7), [#allocation7], 4294966656 }
 0x235   : > { %12949 = dma.done.wait (%p15754_p7), [#allocation10], 2064  }
 0x236   : > { %12951 = vsyncadd (%p15754_p7), [#allocation10], 4294965232 }
 0x237   : > { %12953 = dma.done.wait (%p15754_p7), [#allocation13], 18448  }
 0x238   : > { %12955 = vsyncadd (%p15754_p7), [#allocation13], 4294948848 }
 0x239   : > { %12957 = dma.done.wait (%p15754_p7), [#allocation16], 6432  }
 0x23a   : > { %12959 = vsyncadd (%p15754_p7), [#allocation16], 4294960864 }
 0x23b   : > { %12961 = dma.done.wait (%p15754_p7), [#allocation19], 99840  }
 0x23c   : > { %12963 = vsyncadd (%p15754_p7), [#allocation19], 4294867456 }
 0x23d   : > { %12965 = dma.done.wait (%p15754_p7), [#allocation22], 99072  }
 0x23e   : > { %12967 = vsyncadd (%p15754_p7), [#allocation22], 4294868224 }
 0x23f   : > { %12969 = dma.done.wait (%p15754_p7), [#allocation25], 2064  }
 0x240   : > { %12971 = vsyncadd (%p15754_p7), [#allocation25], 4294965232 }
 0x241   : > { %12973 = dma.done.wait (%p15754_p7), [#allocation28], 2064  }
 0x242   : > { %12975 = vsyncadd (%p15754_p7), [#allocation28], 4294965232 }
 0x243   : > { %12977 = dma.done.wait (%p15754_p7), [#allocation31], 2064  }
 0x244   : > { %12979 = vsyncadd (%p15754_p7), [#allocation31], 4294965232  ;;  %s15755_s4 = sld [smem:[#allocation45_spill]] }
 0x24a   : > { %p9496_p5 = scmp.ne.s32.totalorder %s15755_s4, 0 }
 0x24b   : > { %v925_v0 = vld [vmem:[#allocation8] sm:$0xff] (!%p9496_p5)  ;;  %v926_v1 = vld [vmem:[#allocation8 + $0x8] sm:$0xff] (!%p9496_p5)  ;;  %s15756_s28 = sld [smem:[#allocation62_spill]] (!%p9496_p5)  ;;  %vm934_vm0 = vcmask (!%p9496_p5), 130048   ;;  %v1054_v4 = vld [vmem:[#allocation11] sm:$0xff] (!%p9496_p5) }
 0x24c   : > { %918 = sbr.rel (%p9496_p5) target bundleno = 1041 (0x411), region = 180  ;;  %v11223_v3 = vpack.c.bf16 (!%p9496_p5), %v926_v1, %v925_v0  ;;  %v1055_v5 = vld [vmem:[#allocation11 + $0x8] sm:$0xff] (!%p9496_p5)  ;;  %v1056_v6 = vld [vmem:[#allocation11 + $0x10] sm:$0xff] (!%p9496_p5)  ;;  %v1057_v7 = vld [vmem:[#allocation11 + $0x18] sm:$0xff] (!%p9496_p5) }
 0x24d   : > { %v11227_v9 = vpack.c.bf16 (!%p9496_p5), %v1055_v5, %v1054_v4  ;;  %v11231_v11 = vpack.c.bf16 (!%p9496_p5), %v1057_v7, %v1056_v6  ;;  %v1058_v12 = vld [vmem:[#allocation11 + $0x20] sm:$0xff] (!%p9496_p5)  ;;  %v1059_v13 = vld [vmem:[#allocation11 + $0x28] sm:$0xff] (!%p9496_p5)  ;;  %v1060_v17 = vld [vmem:[#allocation11 + $0x30] sm:$0xff] (!%p9496_p5) }
 0x24e   : > { %11224 = vmatprep.subr.bf16.mxu0 (!%p9496_p5), %v11223_v3  ;;  %v11235_v16 = vpack.c.bf16 (!%p9496_p5), %v1059_v13, %v1058_v12  ;;  %v1061_v18 = vld [vmem:[#allocation11 + $0x38] sm:$0xff] (!%p9496_p5)  ;;  %v1062_v21 = vld [vmem:[#allocation11 + $0x40] sm:$0xff] (!%p9496_p5)  ;;  %v1063_v22 = vld [vmem:[#allocation11 + $0x48] sm:$0xff] (!%p9496_p5) }
 0x24f   : > { %11226 = vmatpush3.bf16.msra.mxu0 (!%p9496_p5), %v11223_v3  ;;  %11467 = vmatprep.subr.bf16.mxu1 (!%p9496_p5), %v11227_v9  ;;  %v11239_v20 = vpack.c.bf16 (!%p9496_p5), %v1061_v18, %v1060_v17  ;;  %v11243_v23 = vpack.c.bf16 (!%p9496_p5), %v1063_v22, %v1062_v21  ;;  %v1064_v24 = vld [vmem:[#allocation11 + $0x50] sm:$0xff] (!%p9496_p5)  ;;  %v1065_v25 = vld [vmem:[#allocation11 + $0x58] sm:$0xff] (!%p9496_p5)  ;;  %v1066_v27 = vld [vmem:[#allocation11 + $0x60] sm:$0xff] (!%p9496_p5) }
 0x250   : > { %11228 = vmatprep.subr.bf16.mxu0 (!%p9496_p5), %v11227_v9  ;;  %11475 = vmatpush3.bf16.msra.mxu1 (!%p9496_p5), %v11227_v9  ;;  %v11247_v26 = vpack.c.bf16 (!%p9496_p5), %v1065_v25, %v1064_v24  ;;  %v1067_v28 = vld [vmem:[#allocation11 + $0x68] sm:$0xff] (!%p9496_p5)  ;;  %v1068_v30 = vld [vmem:[#allocation11 + $0x70] sm:$0xff] (!%p9496_p5)  ;;  %v1069_v31 = vld [vmem:[#allocation11 + $0x78] sm:$0xff] (!%p9496_p5) }
 0x251   : > { %v919_v2 = vld [vmem:[%s15756_s28] sm:$0xff] (!%p9496_p5)  ;;  %v920_v8 = vld [vmem:[%s15756_s28 + $0x8] sm:$0xff] (!%p9496_p5)  ;;  %v921_v10 = vld [vmem:[%s15756_s28 + $0x10] sm:$0xff] (!%p9496_p5)  ;;  %11468 = vmatprep.subr.bf16.mxu1 (!%p9496_p5), %v11231_v11  ;;  %v11251_v29 = vpack.c.bf16 (!%p9496_p5), %v1067_v28, %v1066_v27  ;;  %v11255_v32 = vpack.c.bf16 (!%p9496_p5), %v1069_v31, %v1068_v30 }
 0x252   : > { %10532 = vmatprep.mubr.msk.f32.mxu0 (!%p9496_p5), %vm934_vm0, %v919_v2  ;;  %v922_v14 = vld [vmem:[%s15756_s28 + $0x18] sm:$0xff] (!%p9496_p5)  ;;  %v923_v15 = vld [vmem:[%s15756_s28 + $0x20] sm:$0xff] (!%p9496_p5)  ;;  %v924_v19 = vld [vmem:[%s15756_s28 + $0x28] sm:$0xff] (!%p9496_p5) }
 0x253   : > { %10533 = vmatmul.mubr.msk.f32.vlgmr.msra.gmra.mrb[0].mxu0 %vm934_vm0, %v920_v8  ;;  %v9497_v33 = vld [vmem:[#allocation9] ss:$0 sm:$0xff]  ;;  %v9504_v52 = vld [vmem:[#allocation12] ss:$0 sm:$0xff]  ;;  %v1172_v57 = vld [vmem:[#allocation6] sm:$0xff] }
 0x254   : > { %10535 = vmatprep.mubr.msk.f32.mxu0 %vm934_vm0, %v921_v10  ;;  %11230 = vmatpush3.bf16.msra.mxu0 %v11227_v9  ;;  %v1173_v54 = vld [vmem:[#allocation6 + $0x8] sm:$0xff]  ;;  %v1174_v1 = vld [vmem:[#allocation6 + $0x10] sm:$0xff] }
 0x255   : > { %11232 = vmatprep.subr.bf16.mxu0 %v11231_v11  ;;  %11476 = vmatpush3.bf16.msra.mxu1 %v11231_v11 }
 0x256   : > { %11469 = vmatprep.subr.bf16.mxu1 %v11235_v16 }
 0x257   : > { %10536 = vmatmul.mubr.msk.f32.gmra.mrb[2].mxu0 %vm934_vm0, %v922_v14 }
 0x258   : > { %10538 = vmatprep.mubr.msk.f32.mxu0 %vm934_vm0, %v923_v15  ;;  %11234 = vmatpush3.bf16.msra.mxu0 %v11231_v11 }
 0x259   : > { %11236 = vmatprep.subr.bf16.mxu0 %v11235_v16  ;;  %11477 = vmatpush3.bf16.msra.mxu1 %v11235_v16 }
 0x25a   : > { %11470 = vmatprep.subr.bf16.mxu1 %v11239_v20 }
 0x25b   : > { %10539 = vmatmul.mubr.msk.f32.gmra.mrb[4].mxu0 %vm934_vm0, %v924_v19 }
 0x25c   : > { %11238 = vmatpush3.bf16.msra.mxu0 %v11235_v16 }
 0x25d   : > { %11240 = vmatprep.subr.bf16.mxu0 %v11239_v20  ;;  %11478 = vmatpush3.bf16.msra.mxu1 %v11239_v20 }
 0x25e   : > { %11471 = vmatprep.subr.bf16.mxu1 %v11243_v23 }
 0x260   : > { %11242 = vmatpush3.bf16.msra.mxu0 %v11239_v20 }
 0x261   : > { %11244 = vmatprep.subr.bf16.mxu0 %v11243_v23  ;;  %11479 = vmatpush3.bf16.msra.mxu1 %v11243_v23 }
 0x262   : > { %11472 = vmatprep.subr.bf16.mxu1 %v11247_v26 }
 0x264   : > { %11246 = vmatpush3.bf16.msra.mxu0 %v11243_v23 }
 0x265   : > { %11248 = vmatprep.subr.bf16.mxu0 %v11247_v26  ;;  %11480 = vmatpush3.bf16.msra.mxu1 %v11247_v26 }
 0x266   : > { %11473 = vmatprep.subr.bf16.mxu1 %v11251_v29 }
 0x268   : > { %11250 = vmatpush3.bf16.msra.mxu0 %v11247_v26 }
 0x269   : > { %11252 = vmatprep.subr.bf16.mxu0 %v11251_v29  ;;  %11481 = vmatpush3.bf16.msra.mxu1 %v11251_v29 }
 0x26a   : > { %11474 = vmatprep.subr.bf16.mxu1 %v11255_v32 }
 0x26c   : > { %11254 = vmatpush3.bf16.msra.mxu0 %v11251_v29 }
 0x26d   : > { %11256 = vmatprep.subr.bf16.mxu0 %v11255_v32  ;;  %11482 = vmatpush3.bf16.msra.mxu1 %v11255_v32 }
 0x270   : > { %11258 = vmatpush3.bf16.msra.mxu0 %v11255_v32 }
 0x326   : > { %v10534_v34 = vpop.f32.mrb[0].mxu0 }
 0x327   : > { %v1025_v35 = vadd.f32 %v10534_v34, %v9497_v33  ;;  %v1019_v36 = vpop.f32.mrb[1].mxu0 }
 0x328   : > { %v1020_v37 = vadd.f32 %v9497_v33, %v1019_v36 }
 0x329   : > { %v1049_v40 = vmax.f32 %v1025_v35, 0.0 }
 0x32a   : > { %v1048_v38 = vmax.f32 %v1020_v37, 0.0  ;;  %v10537_v39 = vpop.f32.mrb[2].mxu0 }
 0x32b   : > { %v1035_v41 = vadd.f32 %v10537_v39, %v9497_v33  ;;  %v1029_v42 = vpop.f32.mrb[3].mxu0 }
 0x32c   : > { %10573 = vmatprep.mubr.f32.mxu0 %v1048_v38  ;;  %v1030_v43 = vadd.f32 %v9497_v33, %v1029_v42 }
 0x32d   : > { %10574 = vmatmul.mubr.f32.vlgmr.msra.gmra.mrb[6].mxu0 %v1049_v40  ;;  %v1051_v46 = vmax.f32 %v1035_v41, 0.0 }
 0x32e   : > { %v10540_v44 = vpop.f32.mrb[4].mxu0  ;;  %v1050_v45 = vmax.f32 %v1030_v43, 0.0 }
 0x32f   : > { %v1045_v47 = vadd.f32 %v10540_v44, %v9497_v33  ;;  %v1039_v48 = vpop.f32.mrb[5].mxu0 }
 0x330   : > { %v1040_v49 = vadd.f32 %v9497_v33, %v1039_v48  ;;  %10576 = vmatprep.mubr.f32.mxu1 %v1050_v45 }
 0x331   : > { %10577 = vmatmul.mubr.f32.vlgmr.msra.gmra.mrb[0].mxu1 %v1051_v46  ;;  %v1053_v51 = vmax.f32 %v1045_v47, 0.0 }
 0x332   : > { %v1052_v50 = vmax.f32 %v1040_v49, 0.0 }
 0x334   : > { %10579 = vmatprep.mubr.f32.mxu1 %v1052_v50 }
 0x335   : > { %10580 = vmatmul.mubr.f32.gmra.mrb[2].mxu1 %v1053_v51 }
 0x400   : > { %v10575_v53 = vpop.f32.mrb[6].mxu0 }
 0x401   : > { %v1149_v55 = vadd.f32 %v10575_v53, %v9504_v52  ;;  %v1143_v56 = vpop.f32.mrb[7].mxu0 }
 0x402   : > { %v1144_v58 = vadd.f32 %v9504_v52, %v1143_v56 }
 0x403   : > { %v1176_v59 = vadd.f32 %v1173_v54, %v1149_v55 }
 0x404   : > { %v1175_v60 = vadd.f32 %v1172_v57, %v1144_v58  ;;  %v10578_v61 = vpop.f32.mrb[0].mxu1 }
 0x405   : > { %v1182_v62 = vmul.f32 11.313708, %v1176_v59  ;;  %v1159_v63 = vadd.f32 %v10578_v61, %v9504_v52  ;;  %v1153_v0 = vpop.f32.mrb[1].mxu1 }
 0x406   : > { %v1181_v2 = vmul.f32 11.313708, %v1175_v60  ;;  %v1154_v3 = vadd.f32 %v9504_v52, %v1153_v0 }
 0x407   : > { %1188 = vst [vmem:[#allocation2 + $0x8] sm:$0xff] %v1182_v62  ;;  %v1178_v4 = vadd.f32 %v1172_v57, %v1159_v63 }
 0x408   : > { %1187 = vst [vmem:[#allocation2] sm:$0xff] %v1181_v2  ;;  %v1177_v5 = vadd.f32 %v1174_v1, %v1154_v3  ;;  %v10581_v6 = vpop.f32.mrb[2].mxu1 }
 0x409   : > { %v1184_v7 = vmul.f32 11.313708, %v1178_v4  ;;  %v1169_v8 = vadd.f32 %v10581_v6, %v9504_v52  ;;  %v1163_v9 = vpop.f32.mrb[3].mxu1 }
 0x40a   : > { %v1183_v10 = vmul.f32 11.313708, %v1177_v5  ;;  %v1164_v11 = vadd.f32 %v9504_v52, %v1163_v9 }
 0x40b   : > { %1190 = vst [vmem:[#allocation2 + $0x18] sm:$0xff] %v1184_v7  ;;  %v1180_v12 = vadd.f32 %v1174_v1, %v1169_v8 }
 0x40c   : > { %1189 = vst [vmem:[#allocation2 + $0x10] sm:$0xff] %v1183_v10  ;;  %v1179_v13 = vadd.f32 %v1173_v54, %v1164_v11 }
 0x40d   : > { %v1186_v14 = vmul.f32 11.313708, %v1180_v12 }
 0x40e   : > { %v1185_v15 = vmul.f32 11.313708, %v1179_v13 }
 0x40f   : > { %1192 = vst [vmem:[#allocation2 + $0x28] sm:$0xff] %v1186_v14 }
 0x410   : > { %1191 = vst [vmem:[#allocation2 + $0x20] sm:$0xff] %v1185_v15 }
 0x411 PF: > { %s15757_s5 = sld [smem:[#allocation45_spill]]  ;;  %v15691_v16 = vmov 0   ;;  %v15695_v17 = vmov 0.0   ;;  %vm13029_vm1 = vmmov 0   ;;  %v1195_v39 = vld [vmem:[#allocation2] sm:$0xff]  ;;  %v1196_v40 = vld [vmem:[#allocation2 + $0x8] sm:$0xff]  ;;  %v1246_v52 = vlaneseq }
 0x412   : > { %1421 = vmatprep.mubr.bf16.mxu0 %v15691_v16  ;;  %10582 = vmatprep.subr.bf16.mxu1 %v15695_v17  ;;  %v1204_v42 = vpack.c.bf16 %v1196_v40, %v1195_v39  ;;  %v1198_v45 = vld [vmem:[#allocation2 + $0x18] sm:$0xff]  ;;  %v15693_v51 = vmov 0.0|0.0   ;;  %vm1509_vm2 = vcmask 130048   ;;  %vm1730_vm4 = vcmask 195584   ;;  %s13031_s24 = smov 112   ;;  %s13032_s2 = smov 96  }
 0x413   : > { %10598 = vmatprep.mubr.msk.bf16.mxu1 %vm13029_vm1, %v15695_v17  ;;  %v1197_v44 = vld [vmem:[#allocation2 + $0x10] sm:$0xff]  ;;  %v13731_v53 = vshrl.u32 %v1246_v52, 7  ;;  %vm13742_vm3 = vmpackc.low %vm1509_vm2, %vm1509_vm2  ;;  %s13033_s10 = smov 80   ;;  %s13034_s1 = smov 64   ;;  %vm5529_vm5 = vcmask 261120   ;;  %vm5536_vm6 = vcmask 392192  }
 0x414   : > { %v1205_v47 = vpack.c.bf16 %v1198_v45, %v1197_v44  ;;  %s13035_s15 = smov 48   ;;  %s13036_s25 = smov 32   ;;  %vm5543_vm7 = vcmask 523264   ;;  %vm5550_vm8 = vcmask 654336   ;;  %vm5557_vm9 = vcmask 785408  }
 0x415   : > { %15758 = vst [vmem:[#allocation49_spill] sm:$0xff] %v13731_v53  ;;  %v13734_v54 = vsub.s32 1, %v13731_v53  ;;  %v13738_v59 = vsub.s32 2, %v13731_v53  ;;  %v13752_v5 = vsub.s32 0, %v13731_v53  ;;  %v15770_v53 = vmov 0.0   ;;  %s13037_s27 = smov 16  }
 0x416   : > { %v1200_v49 = vld [vmem:[#allocation2 + $0x28] sm:$0xff]  ;;  %vm5564_vm10 = vcmask 916480  }
 0x417   : > { %s9954_s3 = smul.u32 192, %s15757_s5  ;;  %v1199_v48 = vld [vmem:[#allocation2 + $0x20] sm:$0xff]  ;;  %15759 = vst [vmem:[#allocation50_spill] sm:$0xff] %v13734_v54  ;;  %15760 = vst [vmem:[#allocation51_spill] sm:$0xff] %v13738_v59  ;;  %s9955_s23 = sshll.u32 %s15757_s5, 6 }
 0x418   : > { %v1206_v50 = vpack.c.bf16 %v1200_v49, %v1199_v48  ;;  %s1242_s8 = smul.u32 3, %s15757_s5  ;;  %15763 = vst [vmem:[#allocation52_spill] sm:$0xff] %v13752_v5  ;;  %s5576_s19 = scalar_lea.vmem [#allocation17], %s9955_s23 }
 0x419   : > { %s13685_s4 = scalar_lea.vmem [#allocation14], %s9954_s3  ;;  %s9505_s21 = sshll.u32 %s15757_s5, 3 }
 0x41a   : > { %v11975_v18 = vld [vmem:[%s13685_s4 + $0x4] ss:$12 sps:$4 sm:$0xff]   ;;  %v11977_v19 = vld [vmem:[%s13685_s4] ss:$12 sps:$4 sm:$0xff]   ;;  %v11978_v20 = vld [vmem:[%s13685_s4 + $0x1c] ss:$12 sps:$4 sm:$0xff]  }
 0x41b   : > { %1389 = vmatprep.subr.bf16.mxu0 %v11975_v18  ;;  %v11980_v21 = vld [vmem:[%s13685_s4 + $0x18] ss:$12 sps:$4 sm:$0xff]   ;;  %v11981_v22 = vld [vmem:[%s13685_s4 + $0x34] ss:$12 sps:$4 sm:$0xff]   ;;  %v11983_v23 = vld [vmem:[%s13685_s4 + $0x30] ss:$12 sps:$4 sm:$0xff]  }
 0x41c   : > { %1390 = vmatpush1.bf16.msra.mxu0 %v11977_v19  ;;  %v11984_v24 = vld [vmem:[%s13685_s4 + $0x4c] ss:$12 sps:$4 sm:$0xff]   ;;  %v11986_v25 = vld [vmem:[%s13685_s4 + $0x48] ss:$12 sps:$4 sm:$0xff]   ;;  %v11987_v27 = vld [vmem:[%s13685_s4 + $0x64] ss:$12 sps:$4 sm:$0xff]  }
 0x41d   : > { %1391 = vmatprep.subr.bf16.mxu0 %v11978_v20  ;;  %v11999_v26 = vld [vmem:[%s13685_s4 + $0x8] ss:$12 sps:$4 sm:$0xff]   ;;  %v12000_v28 = vld [vmem:[%s13685_s4 + $0x20] ss:$12 sps:$4 sm:$0xff]   ;;  %v12001_v31 = vld [vmem:[%s13685_s4 + $0x38] ss:$12 sps:$4 sm:$0xff]  }
 0x41e   : > { %10583 = vmatpush3.bf16.msra.mxu1 %v11999_v26  ;;  %v11989_v29 = vld [vmem:[%s13685_s4 + $0x60] ss:$12 sps:$4 sm:$0xff]   ;;  %v11990_v30 = vld [vmem:[%s13685_s4 + $0x7c] ss:$12 sps:$4 sm:$0xff]   ;;  %v11992_v32 = vld [vmem:[%s13685_s4 + $0x78] ss:$12 sps:$4 sm:$0xff]  }
 0x41f   : > { %10584 = vmatprep.subr.bf16.mxu1 %v15695_v17  ;;  %v11993_v33 = vld [vmem:[%s13685_s4 + $0x94] ss:$12 sps:$4 sm:$0xff]   ;;  %v12002_v34 = vld [vmem:[%s13685_s4 + $0x50] ss:$12 sps:$4 sm:$0xff]   ;;  %v11996_v36 = vld [vmem:[%s13685_s4 + $0xac] ss:$12 sps:$4 sm:$0xff]  }
 0x420   : > { %1392 = vmatpush1.bf16.msra.mxu0 %v11980_v21  ;;  %v11995_v35 = vld [vmem:[%s13685_s4 + $0x90] ss:$12 sps:$4 sm:$0xff]   ;;  %v12003_v37 = vld [vmem:[%s13685_s4 + $0x68] ss:$12 sps:$4 sm:$0xff]   ;;  %v12004_v41 = vld [vmem:[%s13685_s4 + $0x80] ss:$12 sps:$4 sm:$0xff]  }
 0x421   : > { %1393 = vmatprep.subr.bf16.mxu0 %v11981_v22  ;;  %v11998_v38 = vld [vmem:[%s13685_s4 + $0xa8] ss:$12 sps:$4 sm:$0xff]   ;;  %v12005_v43 = vld [vmem:[%s13685_s4 + $0x98] ss:$12 sps:$4 sm:$0xff]   ;;  %v12006_v46 = vld [vmem:[%s13685_s4 + $0xb0] ss:$12 sps:$4 sm:$0xff]  }
 0x422   : > { %10585 = vmatpush3.bf16.msra.mxu1 %v12000_v28  ;;  %s1243_s13 = scalar_lea.vmem [#allocation15], %s1242_s8  ;;  %s14982_s3 = scalar_lea.vmem [#allocation23], %s9505_s21 }
 0x423   : > { %10586 = vmatprep.subr.bf16.mxu1 %v15695_v17  ;;  %v1244_v55 = vld [vmem:[%s1243_s13] sm:$0x7]  ;;  %s9956_s4 = sshll.u32 %s15757_s5, 10  ;;  %p9946_p13 = scmp.ne.s32.totalorder %s15757_s5, 5 }
 0x424   : > { %1394 = vmatpush1.bf16.msra.mxu0 %v11983_v23  ;;  %v1253_v57 = vrot.slane %v1244_v55, %v13734_v54  ;;  %v1257_v1 = vrot.slane %v1244_v55, %v13738_v59  ;;  %v1249_v14 = vrot.slane %v1244_v55, %v13752_v5  ;;  %s15002_s8 = scalar_lea.vmem [#allocation18], %s9956_s4  ;;  %s15012_s13 = scalar_lea.vmem [#allocation21], %s9956_s4 }
 0x425   : > { %1395 = vmatprep.subr.bf16.mxu0 %v11984_v24 }
 0x426   : > { %10587 = vmatpush3.bf16.msra.mxu1 %v12001_v31 }
 0x427   : > { %10588 = vmatprep.subr.bf16.mxu1 %v15695_v17 }
 0x428   : > { %1396 = vmatpush1.bf16.msra.mxu0 %v11986_v25 }
 0x429   : > { %1397 = vmatprep.subr.bf16.mxu0 %v11987_v27 }
 0x42a   : > { %10589 = vmatpush3.bf16.msra.mxu1 %v12002_v34 }
 0x42b   : > { %10590 = vmatprep.subr.bf16.mxu1 %v15695_v17 }
 0x42c   : > { %1398 = vmatpush1.bf16.msra.mxu0 %v11989_v29 }
 0x42d   : > { %1399 = vmatprep.subr.bf16.mxu0 %v11990_v30 }
 0x42e   : > { %10591 = vmatpush3.bf16.msra.mxu1 %v12003_v37 }
 0x42f   : > { %10592 = vmatprep.subr.bf16.mxu1 %v15695_v17 }
 0x430   : > { %1400 = vmatpush1.bf16.msra.mxu0 %v11992_v32 }
 0x431   : > { %1401 = vmatprep.subr.bf16.mxu0 %v11993_v33 }
 0x432   : > { %10593 = vmatpush3.bf16.msra.mxu1 %v12004_v41 }
 0x433   : > { %10594 = vmatprep.subr.bf16.mxu1 %v15695_v17 }
 0x434   : > { %1402 = vmatpush1.bf16.msra.mxu0 %v11995_v35 }
 0x435   : > { %1403 = vmatprep.subr.bf16.mxu0 %v11996_v36 }
 0x436   : > { %10595 = vmatpush3.bf16.msra.mxu1 %v12005_v43 }
 0x437   : > { %10596 = vmatprep.subr.bf16.mxu1 %v15695_v17 }
 0x438   : > { %1404 = vmatpush1.bf16.msra.mxu0 %v11998_v38 }
 0x439   : > { %11267 = vmatprep.subr.bf16.mxu0 %v15693_v51 }
 0x43a   : > { %10597 = vmatpush3.bf16.msra.mxu1 %v12006_v46 }
 0x43b   : > { %1422 = vmatmul.mubr.bf16.vlgmr.msra.gmra.mrb[0].mxu0 %v1204_v42  ;;  %11259 = vmatprep.subr.bf16.mxu1 %v15693_v51 }
 0x43c   : > { %1431 = vmatprep.mubr.bf16.mxu0 %v15691_v16 }
 0x43d   : > { %10599 = vmatmul.mubr.bf16.vlgmr.msra.gmra.mrb[0].mxu1 %v1204_v42 }
 0x43e   : > { %10602 = vmatprep.mubr.msk.bf16.mxu1 %vm13029_vm1, %v15695_v17 }
 0x443   : > { %1432 = vmatmul.mubr.bf16.gmra.mrb[4].mxu0 %v1205_v47 }
 0x444   : > { %1441 = vmatprep.mubr.bf16.mxu0 %v15691_v16 }
 0x445   : > { %10603 = vmatmul.mubr.bf16.gmra.mrb[4].mxu1 %v1205_v47 }
 0x446   : > { %10606 = vmatprep.mubr.msk.bf16.mxu1 %vm13029_vm1, %v15695_v17 }
 0x44b   : > { %1442 = vmatmul.mubr.bf16.gmra.mrb[8].mxu0 %v1206_v50 }
 0x44c   : > { %10646 = vmatprep.mubr.msk.f32.mxu0 %vm13029_vm1, %v15695_v17 }
 0x44d   : > { %10607 = vmatmul.mubr.bf16.gmra.mrb[8].mxu1 %v1206_v50  ;;  %v13825_v50 = vld [vmem:[#allocation3] ss:$0 sm:$0xff] }
 0x44e   : > { %10616 = vmatprep.mubr.msk.f32.mxu1 %vm13029_vm1, %v15695_v17 }
 0x50e   : > { %v1423_v56 = vpop.f32.mrb[0].mxu0 }
 0x50f   : > { %v1425_v58 = vpop.f32.mrb[1].mxu0  ;;  %v13766_v21 = vadd.f32 %v1423_v56, %v1249_v14 }
 0x510   : > { %v1427_v60 = vpop.f32.mrb[2].mxu0  ;;  %v1426_v62 = vadd.f32 %v1425_v58, %v1253_v57  ;;  %v1486_v8 = vpop.f32.mrb[0].mxu1 }
 0x511   : > { %v1429_v61 = vpop.f32.mrb[3].mxu0  ;;  %v13755_v10 = vadd.f32 %v1486_v8, %v1257_v1  ;;  %v10600_v11 = vpop.f32.mrb[1].mxu1  ;;  %v13774_v30 = vadd.f32 %v1427_v60, %v1249_v14 }
 0x512   : > { %v1430_v63 = vadd.f32 %v1429_v61, %v1253_v57  ;;  %v1489_v13 = vpop.f32.mrb[2].mxu1 }
 0x513   : > { %v13760_v15 = vadd.f32 %v1489_v13, %v1257_v1  ;;  %v10601_v18 = vpop.f32.mrb[3].mxu1 }
 0x514   : > { %v11260_v2 = vpack.c.bf16 %v1430_v63, %v1426_v62  ;;  %v13747_v3 = vpack.i.bf16 %v1430_v63, %v1426_v62 }
 0x515   : > { %v11268_v19 = vpack.c.bf16 %v13760_v15, %v13755_v10 }
 0x516   : > { %11262 = vmatpush3.bf16.xpose.msk.msra.mxu1 %vm13742_vm3, %v11260_v2  ;;  %v1433_v4 = vpop.f32.mrb[4].mxu0 }
 0x517   : > { %v1435_v6 = vpop.f32.mrb[5].mxu0  ;;  %10614 = vmatprep.subr.mxu1 %v15695_v17  ;;  %11269 = vmatpush3.bf16.msra.mxu0 %v11268_v19  ;;  %v13789_v36 = vadd.f32 %v1433_v4, %v1249_v14 }
 0x518   : > { %v1437_v7 = vpop.f32.mrb[6].mxu0  ;;  %v13757_v12 = vadd.f32 %v1435_v6, %v1253_v57  ;;  %v1494_v26 = vpop.f32.mrb[4].mxu1  ;;  %10644 = vmatprep.subr.mxu0 %v15695_v17 }
 0x519   : > { %v1439_v9 = vpop.f32.mrb[7].mxu0  ;;  %v13772_v28 = vadd.f32 %v1494_v26, %v1257_v1  ;;  %v10604_v29 = vpop.f32.mrb[5].mxu1  ;;  %v13801_v44 = vadd.f32 %v1437_v7, %v1249_v14 }
 0x51a   : > { %v1440_v23 = vadd.f32 %v1439_v9, %v1253_v57  ;;  %v1497_v32 = vpop.f32.mrb[6].mxu1  ;;  %v13833_v9 = vld [vmem:[#allocation3 + $0x1] ss:$0 sm:$0xff] }
 0x51b   : > { %v1498_v34 = vadd.f32 %v1497_v32, %v1257_v1  ;;  %v10605_v35 = vpop.f32.mrb[7].mxu1  ;;  %10645 = vmatpush3.msra.mxu0 %v13772_v28 }
 0x51c   : > { %11273 = vmatprep.subr.bf16.mxu0 %v15693_v51 }
 0x51e   : > { %v1443_v20 = vpop.f32.mrb[8].mxu0  ;;  %10615 = vmatpush3.xpose.msk.msra.mxu1 %vm1509_vm2, %v13757_v12 }
 0x51f   : > { %v1445_v22 = vpop.f32.mrb[9].mxu0  ;;  %11263 = vmatprep.subr.bf16.mxu1 %v15693_v51  ;;  %v13804_v45 = vadd.f32 %v1443_v20, %v1249_v14 }
 0x520   : > { %v1446_v24 = vadd.f32 %v1445_v22, %v1253_v57  ;;  %v1447_v25 = vpop.f32.mrb[10].mxu0  ;;  %v1502_v38 = vpop.f32.mrb[8].mxu1 }
 0x521   : > { %10617 = vmatmul.mubr.msk.f32.vlgmr.msra.gmra.mrb[12].mxu1 %vm1509_vm2, %v13766_v21  ;;  %v1449_v27 = vpop.f32.mrb[11].mxu0  ;;  %v1503_v39 = vadd.f32 %v1502_v38, %v1257_v1  ;;  %v10608_v40 = vpop.f32.mrb[9].mxu1  ;;  %v13810_v46 = vadd.f32 %v1447_v25, %v1249_v14 }
 0x522   : > { %10619 = vmatprep.mubr.msk.f32.mxu1 %vm13029_vm1, %v15695_v17  ;;  %v11264_v31 = vpack.c.bf16 %v1446_v24, %v1440_v23  ;;  %v13778_v33 = vpack.i.bf16 %v1446_v24, %v1440_v23  ;;  %v13791_v37 = vadd.f32 %v1449_v27, %v1253_v57  ;;  %v1505_v41 = vpop.f32.mrb[10].mxu1 }
 0x523   : > { %v13797_v42 = vadd.f32 %v1505_v41, %v1257_v1  ;;  %v10609_v43 = vpop.f32.mrb[11].mxu1  ;;  %v11271_v47 = vpack.c.bf16 %v1503_v39, %v1498_v34  ;;  %v13820_v48 = vpack.i.bf16 %v1503_v39, %v1498_v34 }
 0x524   : > { %11266 = vmatpush3.bf16.xpose.msk.msra.mxu1 %vm13742_vm3, %v11264_v31 }
 0x525   : > { %10620 = vmatmul.mubr.msk.f32.gmra.mrb[14].mxu1 %vm1509_vm2, %v13774_v30  ;;  %10629 = vmatprep.subr.mxu1 %v15695_v17 }
 0x526   : > { %10622 = vmatprep.mubr.msk.f32.mxu1 %vm13029_vm1, %v15695_v17 }
 0x529   : > { %10623 = vmatmul.mubr.msk.f32.gmra.mrb[16].mxu1 %vm1509_vm2, %v13789_v36 }
 0x52a   : > { %10631 = vmatprep.mubr.msk.f32.mxu1 %vm13029_vm1, %v15695_v17 }
 0x52c   : > { %10630 = vmatpush3.xpose.msk.msra.mxu1 %vm1509_vm2, %v13791_v37 }
 0x52d   : > { %11270 = vmatprep.subr.bf16.mxu1 %v15693_v51 }
 0x52f   : > { %10632 = vmatmul.mubr.msk.f32.vlgmr.msra.gmra.mrb[18].mxu1 %vm1509_vm2, %v13801_v44 }
 0x530   : > { %10634 = vmatprep.mubr.msk.f32.mxu1 %vm13029_vm1, %v15695_v17  ;;  %11272 = vmatpush3.bf16.msra.mxu1 %v11271_v47 }
 0x531   : > { %10659 = vmatprep.subr.mxu1 %v15695_v17 }
 0x533   : > { %10635 = vmatmul.mubr.msk.f32.gmra.mrb[20].mxu1 %vm1509_vm2, %v13804_v45 }
 0x534   : > { %10637 = vmatprep.mubr.msk.f32.mxu1 %vm13029_vm1, %v15695_v17  ;;  %10660 = vmatpush3.msra.mxu1 %v13797_v42 }
 0x535   : > { %11277 = vmatprep.subr.bf16.mxu1 %v15693_v51 }
 0x537   : > { %10638 = vmatmul.mubr.msk.f32.gmra.mrb[22].mxu1 %vm1509_vm2, %v13810_v46 }
 0x538   : > { %10661 = vmatprep.mubr.msk.f32.mxu1 %vm13029_vm1, %v15695_v17 }
 0x5f4   : > { %v1594_v49 = vpop.f32.mrb[12].mxu1 }
 0x5f5   : > { %v1706_v52 = vmul.f32 0.25, %v1594_v49  ;;  %v10618_v55 = vpop.f32.mrb[13].mxu1 }
 0x5f7   : > { %v1724_v56 = vadd.f32 %v13825_v50, %v1706_v52 }
 0x5f8   : > { %v1599_v57 = vpop.f32.mrb[14].mxu1 }
 0x5f9   : > { %v1707_v58 = vmul.f32 0.25, %v1599_v57  ;;  %v10621_v60 = vpop.f32.mrb[15].mxu1  ;;  %v1731_v61 = vsel %vm1730_vm4, %v1724_v56, -inf }
 0x5fa   : > { %1732 = vmax.xlane.f32.xlu0 %v1731_v61 }
 0x5fb   : > { %v1725_v62 = vadd.f32 %v13825_v50, %v1707_v58 }
 0x5fc   : > { %v1604_v63 = vpop.f32.mrb[16].mxu1 }
 0x5fd   : > { %v1708_v1 = vmul.f32 0.25, %v1604_v63  ;;  %v10624_v2 = vpop.f32.mrb[17].mxu1  ;;  %v1734_v4 = vsel %vm1730_vm4, %v1725_v62, -inf }
 0x5fe   : > { %1735 = vmax.xlane.f32.xlu0 %v1734_v4 }
 0x5ff   : > { %v1726_v6 = vadd.f32 %v13825_v50, %v1708_v1 }
 0x601   : > { %v1737_v7 = vsel %vm1730_vm4, %v1726_v6, -inf }
 0x602   : > { %v1692_v8 = vpop.f32.mrb[18].mxu1  ;;  %1738 = vmax.xlane.f32.xlu1 %v1737_v7 }
 0x603   : > { %v1709_v11 = vmul.f32 0.25, %v1692_v8  ;;  %v10633_v13 = vpop.f32.mrb[19].mxu1 }
 0x605   : > { %v1727_v14 = vadd.f32 %v13833_v9, %v1709_v11 }
 0x606   : > { %v1697_v18 = vpop.f32.mrb[20].mxu1 }
 0x607   : > { %v1710_v19 = vmul.f32 0.25, %v1697_v18  ;;  %v1740_v20 = vsel %vm1730_vm4, %v1727_v14, -inf  ;;  %v10636_v22 = vpop.f32.mrb[21].mxu1 }
 0x608   : > { %1741 = vmax.xlane.f32.xlu1 %v1740_v20  ;;  %v13878_v20 = vpack.i.bf16 %v13760_v15, %v13755_v10 }
 0x609   : > { %v1728_v23 = vadd.f32 %v13833_v9, %v1710_v19 }
 0x60a   : > { %v1702_v24 = vpop.f32.mrb[22].mxu1 }
 0x60b   : > { %v1711_v25 = vmul.f32 0.25, %v1702_v24  ;;  %v1743_v26 = vsel %vm1730_vm4, %v1728_v23, -inf  ;;  %v10639_v27 = vpop.f32.mrb[23].mxu1 }
 0x60c   : > { %1744 = vmax.xlane.f32.xlu0 %v1743_v26 }
 0x60d   : > { %v1729_v29 = vadd.f32 %v13833_v9, %v1711_v25 }
 0x60f   : > { %v1746_v31 = vsel %vm1730_vm4, %v1729_v29, -inf }
 0x610   : > { %1747 = vmax.xlane.f32.xlu1 %v1746_v31 }
 0x621   : > { %11731 = vrot.lane.b32.xlu1 %v13747_v3, %s13031_s24 }
 0x687   : > { %v1733_v32 = vpop.xlane.xlu0 %1732 }
 0x688   : > { %v1749_v34 = vsub.f32 %v1724_v56, %v1733_v32 }
 0x68a   : > { %v1755_v35 = vmul.f32 1.442695, %v1749_v34 }
 0x68b   : > { %v1736_v38 = vpop.xlane.xlu0 %1735 }
 0x68c   : > { %12143 = vpow2.f32 %v1755_v35  ;;  %v1750_v39 = vsub.f32 %v1725_v62, %v1736_v38 }
 0x68e   : > { %v1757_v40 = vmul.f32 1.442695, %v1750_v39 }
 0x68f   : > { %v1739_v41 = vpop.xlane.xlu1 %1738 }
 0x690   : > { %12145 = vpow2.f32 %v1757_v40  ;;  %v1751_v43 = vsub.f32 %v1726_v6, %v1739_v41 }
 0x692   : > { %v1759_v47 = vmul.f32 1.442695, %v1751_v43 }
 0x694   : > { %12147 = vpow2.f32 %v1759_v47 }
 0x695   : > { %v1742_v60 = vpop.xlane.xlu1 %1741 }
 0x696   : > { %v12144_v49 = vpop.eup %12143  ;;  %v1752_v1 = vsub.f32 %v1727_v14, %v1742_v60 }
 0x697   : > { %v1767_v52 = vsel %vm1730_vm4, %v12144_v49, 0.0 }
 0x698   : > { %1768 = vadd.xlane.f32.xlu0 %v1767_v52  ;;  %v1761_v6 = vmul.f32 1.442695, %v1752_v1 }
 0x699   : > { %v1745_v61 = vpop.xlane.xlu0 %1744 }
 0x69a   : > { %v12146_v55 = vpop.eup %12145  ;;  %v1753_v62 = vsub.f32 %v1728_v23, %v1745_v61 }
 0x69b   : > { %v1770_v57 = vsel %vm1730_vm4, %v12146_v55, 0.0 }
 0x69c   : > { %1771 = vadd.xlane.f32.xlu1 %v1770_v57  ;;  %v1763_v2 = vmul.f32 1.442695, %v1753_v62 }
 0x69d   : > { %v1748_v63 = vpop.xlane.xlu1 %1747 }
 0x69e   : > { %v12148_v58 = vpop.eup %12147  ;;  %v1754_v4 = vsub.f32 %v1729_v29, %v1748_v63  ;;  %12149 = vpow2.f32 %v1763_v2 }
 0x69f   : > { %v1773_v56 = vsel %vm1730_vm4, %v12148_v58, 0.0  ;;  %12151 = vpow2.f32 %v1761_v6 }
 0x6a0   : > { %1774 = vadd.xlane.f32.xlu0 %v1773_v56  ;;  %v1765_v7 = vmul.f32 1.442695, %v1754_v4 }
 0x6a1   : > { %v11732_v22 = vpop.permute.xlu1 %11731 }
 0x6a2   : > { %12153 = vpow2.f32 %v1765_v7  ;;  %v11734_v26 = vunpack.i.h.bf16 %v11732_v22  ;;  %v11733_v27 = vunpack.i.l.bf16 %v11732_v22 }
 0x6a4   : > { %v11274_v32 = vpack.c.bf16 %v11734_v26, %v11733_v27 }
 0x6a8   : > { %v13854_v8 = vpop.eup %12149 }
 0x6a9   : > { %v13856_v11 = vpop.eup %12151  ;;  %v1779_v13 = vsel %vm1730_vm4, %v13854_v8, 0.0 }
 0x6aa   : > { %v1776_v14 = vsel %vm1730_vm4, %v13856_v11, 0.0 }
 0x6ac   : > { %v13860_v18 = vpop.eup %12153 }
 0x6ad   : > { %1975 = vrot.lane.b32.xlu1 %v13766_v21, %s13031_s24  ;;  %v1782_v19 = vsel %vm1730_vm4, %v13860_v18, 0.0 }
 0x6b1   : > { %1977 = vrot.lane.b32.xlu1 %v13774_v30, %s13031_s24 }
 0x6b5   : > { %11736 = vrot.lane.b32.xlu1 %v13778_v33, %s13031_s24 }
 0x6b6   : > { %1985 = vrot.lane.b32.xlu0 %v13757_v12, %s13031_s24 }
 0x6d5   : > { %1780 = vadd.xlane.f32.xlu0 %v1779_v13 }
 0x6d9   : > { %1777 = vadd.xlane.f32.xlu1 %v1776_v14  ;;  %1783 = vadd.xlane.f32.xlu0 %v1782_v19 }
 0x6ea   : > { %1979 = vrot.lane.b32.xlu1 %v13789_v36, %s13031_s24 }
 0x6ee   : > { %2079 = vrot.lane.b32.xlu1 %v13801_v44, %s13031_s24 }
 0x6ef   : > { %2089 = vrot.lane.b32.xlu0 %v13791_v37, %s13031_s24 }
 0x6f2   : > { %2083 = vrot.lane.b32.xlu1 %v13810_v46, %s13031_s24 }
 0x6f3   : > { %2081 = vrot.lane.b32.xlu0 %v13804_v45, %s13031_s24 }
 0x6f6   : > { %11741 = vrot.lane.b32.xlu1 %v13878_v20, %s13031_s24 }
 0x6f7   : > { %2268 = vrot.lane.b32.xlu0 %v13772_v28, %s13031_s24 }
 0x725   : > { %v1769_v23 = vpop.xlane.xlu0 %1768 }
 0x726   : > { %12155 = vrcp.f32 %v1769_v23 }
 0x729   : > { %v1772_v24 = vpop.xlane.xlu1 %1771 }
 0x72a   : > { %12157 = vrcp.f32 %v1772_v24 }
 0x72d   : > { %v1775_v25 = vpop.xlane.xlu0 %1774  ;;  %v1976_v39 = vpop.permute.xlu1 %1975 }
 0x72e   : > { %12159 = vrcp.f32 %v1775_v25 }
 0x730   : > { %v12156_v29 = vpop.eup %12155 }
 0x731   : > { %v1791_v31 = vmul.f32 %v12156_v29, %v12144_v49  ;;  %v1986_v38 = vpop.permute.xlu0 %1985  ;;  %v1978_v40 = vpop.permute.xlu1 %1977 }
 0x733   : > { %10647 = vmatmul.mubr.msk.f32.vlgmr.msra.gmra.mrb[12].mxu0 %vm1730_vm4, %v1791_v31 }
 0x734   : > { %v12158_v10 = vpop.eup %12157  ;;  %11276 = vmatpush3.bf16.xpose.msk.msra.mxu0 %vm13742_vm3, %v11274_v32  ;;  %10649 = vmatprep.mubr.msk.f32.mxu0 %vm13029_vm1, %v15695_v17 }
 0x735   : > { %v1792_v15 = vmul.f32 %v12158_v10, %v12146_v55  ;;  %10674 = vmatprep.subr.mxu0 %v15695_v17  ;;  %v11737_v41 = vpop.permute.xlu1 %11736 }
 0x736   : > { %v11739_v57 = vunpack.i.h.bf16 %v11737_v41 }
 0x737   : > { %10650 = vmatmul.mubr.msk.f32.gmra.mrb[14].mxu0 %vm1730_vm4, %v1792_v15 }
 0x738   : > { %v12160_v34 = vpop.eup %12159  ;;  %10652 = vmatprep.mubr.msk.f32.mxu0 %vm13029_vm1, %v15695_v17 }
 0x739   : > { %v1793_v35 = vmul.f32 %v12160_v34, %v12148_v58  ;;  %v11738_v58 = vunpack.i.l.bf16 %v11737_v41 }
 0x73b   : > { %10653 = vmatmul.mubr.msk.f32.gmra.mrb[16].mxu0 %vm1730_vm4, %v1793_v35  ;;  %v11278_v1 = vpack.c.bf16 %v11739_v57, %v11738_v58 }
 0x73c   : > { %10675 = vmatpush3.xpose.msk.msra.mxu0 %vm1509_vm2, %v1986_v38  ;;  %10676 = vmatprep.mubr.msk.f32.mxu0 %vm13029_vm1, %v15695_v17 }
 0x73d   : > { %11281 = vmatprep.subr.bf16.mxu0 %v15693_v51 }
 0x73f   : > { %10677 = vmatmul.mubr.msk.f32.vlgmr.msra.gmra.mrb[18].mxu0 %vm1509_vm2, %v1976_v39 }
 0x740   : > { %10679 = vmatprep.mubr.msk.f32.mxu0 %vm13029_vm1, %v15695_v17 }
 0x743   : > { %10680 = vmatmul.mubr.msk.f32.gmra.mrb[20].mxu0 %vm1509_vm2, %v1978_v40 }
 0x744   : > { %10682 = vmatprep.mubr.msk.f32.mxu0 %vm13029_vm1, %v15695_v17 }
 0x762   : > { %v1781_v43 = vpop.xlane.xlu0 %1780 }
 0x766   : > { %v1778_v47 = vpop.xlane.xlu1 %1777  ;;  %v1784_v49 = vpop.xlane.xlu0 %1783 }
 0x767   : > { %12161 = vrcp.f32 %v1778_v47 }
 0x768   : > { %12163 = vrcp.f32 %v1781_v43 }
 0x769   : > { %12165 = vrcp.f32 %v1784_v49 }
 0x76a   : > { %v1980_v52 = vpop.permute.xlu1 %1979  ;;  %v2090_v61 = vpop.permute.xlu0 %2089 }
 0x76b   : > { %10683 = vmatmul.mubr.msk.f32.gmra.mrb[22].mxu0 %vm1509_vm2, %v1980_v52 }
 0x76c   : > { %10706 = vmatprep.mubr.msk.f32.mxu0 %vm13029_vm1, %v15695_v17 }
 0x76e   : > { %v2080_v55 = vpop.permute.xlu1 %2079  ;;  %v2082_v13 = vpop.permute.xlu0 %2081 }
 0x771   : > { %v12162_v56 = vpop.eup %12161 }
 0x772   : > { %v1794_v60 = vmul.f32 %v12162_v56, %v13856_v11  ;;  %v2084_v62 = vpop.permute.xlu1 %2083  ;;  %v12164_v63 = vpop.eup %12163 }
 0x773   : > { %v1795_v4 = vmul.f32 %v12164_v63, %v13854_v8  ;;  %v12166_v6 = vpop.eup %12165  ;;  %v2269_v8 = vpop.permute.xlu0 %2268 }
 0x774   : > { %10662 = vmatmul.mubr.msk.f32.vlgmr.msra.gmra.mrb[24].mxu1 %vm1730_vm4, %v1794_v60  ;;  %v1796_v19 = vmul.f32 %v12166_v6, %v13860_v18 }
 0x775   : > { %11280 = vmatpush3.bf16.xpose.msk.msra.mxu1 %vm13742_vm3, %v11278_v1  ;;  %10664 = vmatprep.mubr.msk.f32.mxu1 %vm13029_vm1, %v15695_v17 }
 0x776   : > { %v11742_v2 = vpop.permute.xlu1 %11741  ;;  %10689 = vmatprep.subr.mxu1 %v15695_v17 }
 0x777   : > { %v11744_v7 = vunpack.i.h.bf16 %v11742_v2  ;;  %v11743_v11 = vunpack.i.l.bf16 %v11742_v2 }
 0x778   : > { %10665 = vmatmul.mubr.msk.f32.gmra.mrb[26].mxu1 %vm1730_vm4, %v1795_v4 }
 0x779   : > { %v11282_v14 = vpack.c.bf16 %v11744_v7, %v11743_v11  ;;  %10667 = vmatprep.mubr.msk.f32.mxu1 %vm13029_vm1, %v15695_v17 }
 0x77b   : > { %11283 = vmatpush3.bf16.msra.mxu0 %v11282_v14 }
 0x77c   : > { %10668 = vmatmul.mubr.msk.f32.gmra.mrb[28].mxu1 %vm1730_vm4, %v1796_v19  ;;  %10704 = vmatprep.subr.mxu0 %v15695_v17 }
 0x77d   : > { %10690 = vmatpush3.xpose.msk.msra.mxu1 %vm1509_vm2, %v2090_v61  ;;  %10691 = vmatprep.mubr.msk.f32.mxu1 %vm13029_vm1, %v15695_v17 }
 0x77e   : > { %11284 = vmatprep.subr.bf16.mxu1 %v15693_v51 }
 0x77f   : > { %10705 = vmatpush3.msra.mxu0 %v2269_v8 }
 0x780   : > { %10692 = vmatmul.mubr.msk.f32.vlgmr.msra.gmra.mrb[30].mxu1 %vm1509_vm2, %v2080_v55  ;;  %11287 = vmatprep.subr.bf16.mxu0 %v15693_v51 }
 0x781   : > { %10694 = vmatprep.mubr.msk.f32.mxu1 %vm13029_vm1, %v15695_v17 }
 0x784   : > { %10695 = vmatmul.mubr.msk.f32.gmra.mrb[32].mxu1 %vm1509_vm2, %v2082_v13 }
 0x785   : > { %10697 = vmatprep.mubr.msk.f32.mxu1 %vm13029_vm1, %v15695_v17 }
 0x788   : > { %10698 = vmatmul.mubr.msk.f32.gmra.mrb[34].mxu1 %vm1509_vm2, %v2084_v62 }
 0x789   : > { %10721 = vmatprep.mubr.msk.f32.mxu1 %vm13029_vm1, %v15695_v17 }
 0x806   : > { %v13935_v18 = vpop.f32.mrb[12].mxu0 }
 0x807   : > { %15764 = vst [vmem:[#allocation53_spill] sm:$0xff] %v13935_v18  ;;  %v10648_v22 = vpop.f32.mrb[13].mxu0  ;;  %v14625_v18 = vld [vmem:[#allocation3 + $0x1] ss:$0 sm:$0xff] }
 0x80a   : > { %v13937_v23 = vpop.f32.mrb[14].mxu0 }
 0x80b   : > { %15765 = vst [vmem:[#allocation54_spill] sm:$0xff] %v13937_v23  ;;  %v10651_v24 = vpop.f32.mrb[15].mxu0 }
 0x80e   : > { %v13939_v25 = vpop.f32.mrb[16].mxu0 }
 0x80f   : > { %v10654_v26 = vpop.f32.mrb[17].mxu0 }
 0x812   : > { %v2065_v27 = vpop.f32.mrb[18].mxu0 }
 0x813   : > { %v2183_v29 = vmul.f32 0.25, %v2065_v27  ;;  %v10678_v31 = vpop.f32.mrb[19].mxu0 }
 0x815   : > { %v2189_v32 = vadd.f32 %v13825_v50, %v2183_v29 }
 0x816   : > { %v2070_v10 = vpop.f32.mrb[20].mxu0 }
 0x817   : > { %v2184_v15 = vmul.f32 0.25, %v2070_v10  ;;  %v10681_v34 = vpop.f32.mrb[21].mxu0  ;;  %v2195_v35 = vsel %vm1730_vm4, %v2189_v32, -inf }
 0x818   : > { %2196 = vmax.xlane.f32.xlu0 %v2195_v35 }
 0x819   : > { %v2190_v38 = vadd.f32 %v13825_v50, %v2184_v15 }
 0x81b   : > { %v2198_v39 = vsel %vm1730_vm4, %v2190_v38, -inf }
 0x81c   : > { %2199 = vmax.xlane.f32.xlu1 %v2198_v39 }
 0x83e   : > { %v2075_v40 = vpop.f32.mrb[22].mxu0 }
 0x83f   : > { %v2185_v41 = vmul.f32 0.25, %v2075_v40  ;;  %v10684_v43 = vpop.f32.mrb[23].mxu0 }
 0x841   : > { %v2191_v47 = vadd.f32 %v13825_v50, %v2185_v41 }
 0x843   : > { %v2201_v49 = vsel %vm1730_vm4, %v2191_v47, -inf }
 0x844   : > { %2202 = vmax.xlane.f32.xlu0 %v2201_v49 }
 0x847   : > { %v13947_v52 = vpop.f32.mrb[24].mxu1 }
 0x848   : > { %v10663_v55 = vpop.f32.mrb[25].mxu1 }
 0x84b   : > { %v13949_v57 = vpop.f32.mrb[26].mxu1 }
 0x84c   : > { %15766 = vst [vmem:[#allocation55_spill] sm:$0xff] %v13949_v57  ;;  %v10666_v58 = vpop.f32.mrb[27].mxu1 }
 0x84f   : > { %v13951_v56 = vpop.f32.mrb[28].mxu1 }
 0x850   : > { %15767 = vst [vmem:[#allocation56_spill] sm:$0xff] %v13951_v56  ;;  %v10669_v60 = vpop.f32.mrb[29].mxu1 }
 0x853   : > { %v2169_v61 = vpop.f32.mrb[30].mxu1 }
 0x854   : > { %v2186_v62 = vmul.f32 0.25, %v2169_v61  ;;  %v10693_v63 = vpop.f32.mrb[31].mxu1 }
 0x856   : > { %v2192_v1 = vadd.f32 %v13833_v9, %v2186_v62 }
 0x857   : > { %v2174_v2 = vpop.f32.mrb[32].mxu1 }
 0x858   : > { %v2187_v4 = vmul.f32 0.25, %v2174_v2  ;;  %v10696_v6 = vpop.f32.mrb[33].mxu1  ;;  %v2204_v7 = vsel %vm1730_vm4, %v2192_v1, -inf }
 0x859   : > { %2205 = vmax.xlane.f32.xlu0 %v2204_v7 }
 0x85a   : > { %v2193_v11 = vadd.f32 %v13833_v9, %v2187_v4 }
 0x85b   : > { %v2179_v13 = vpop.f32.mrb[34].mxu1 }
 0x85c   : > { %v2188_v14 = vmul.f32 0.25, %v2179_v13  ;;  %v10699_v19 = vpop.f32.mrb[35].mxu1  ;;  %v2207_v8 = vsel %vm1730_vm4, %v2193_v11, -inf }
 0x85d   : > { %2208 = vmax.xlane.f32.xlu0 %v2207_v8 }
 0x85e   : > { %v2194_v22 = vadd.f32 %v13833_v9, %v2188_v14 }
 0x860   : > { %v2210_v24 = vsel %vm1730_vm4, %v2194_v22, -inf }
 0x861   : > { %2211 = vmax.xlane.f32.xlu1 %v2210_v24 }
 0x872   : > { %11751 = vrot.lane.b32.xlu1 %v13820_v48, %s13031_s24 }
 0x873   : > { %11746 = vrot.lane.b32.xlu0 %v13747_v3, %s13032_s2 }
 0x8a5   : > { %v2197_v26 = vpop.xlane.xlu0 %2196 }
 0x8a6   : > { %v2213_v27 = vsub.f32 %v2189_v32, %v2197_v26 }
 0x8a8   : > { %v2219_v29 = vmul.f32 1.442695, %v2213_v27 }
 0x8a9   : > { %v2200_v31 = vpop.xlane.xlu1 %2199 }
 0x8aa   : > { %12167 = vpow2.f32 %v2219_v29  ;;  %v2214_v10 = vsub.f32 %v2190_v38, %v2200_v31 }
 0x8ac   : > { %v2221_v15 = vmul.f32 1.442695, %v2214_v10 }
 0x8ae   : > { %12169 = vpow2.f32 %v2221_v15 }
 0x8b4   : > { %v12168_v34 = vpop.eup %12167 }
 0x8b5   : > { %v2231_v35 = vsel %vm1730_vm4, %v12168_v34, 0.0 }
 0x8b6   : > { %2232 = vadd.xlane.f32.xlu0 %v2231_v35 }
 0x8b8   : > { %v13964_v39 = vpop.eup %12169 }
 0x8b9   : > { %v2234_v40 = vsel %vm1730_vm4, %v13964_v39, 0.0 }
 0x8ba   : > { %2235 = vadd.xlane.f32.xlu1 %v2234_v40 }
 0x8cb   : > { %2463 = vrot.lane.b32.xlu1 %v13766_v21, %s13032_s2 }
 0x8cf   : > { %2369 = vrot.lane.b32.xlu1 %v13797_v42, %s13031_s24 }
 0x8d1   : > { %v2203_v32 = vpop.xlane.xlu0 %2202 }
 0x8d2   : > { %v2215_v38 = vsub.f32 %v2191_v47, %v2203_v32 }
 0x8d3   : > { %2465 = vrot.lane.b32.xlu1 %v13774_v30, %s13032_s2 }
 0x8d4   : > { %v2223_v41 = vmul.f32 1.442695, %v2215_v38 }
 0x8d6   : > { %12171 = vpow2.f32 %v2223_v41 }
 0x8d7   : > { %11756 = vrot.lane.b32.xlu1 %v13778_v33, %s13032_s2 }
 0x8db   : > { %2467 = vrot.lane.b32.xlu1 %v13789_v36, %s13032_s2 }
 0x8e0   : > { %v12172_v43 = vpop.eup %12171 }
 0x8e1   : > { %v2237_v49 = vsel %vm1730_vm4, %v12172_v43, 0.0 }
 0x8e2   : > { %2238 = vadd.xlane.f32.xlu0 %v2237_v49 }
 0x8e6   : > { %v2206_v55 = vpop.xlane.xlu0 %2205 }
 0x8e7   : > { %v2216_v58 = vsub.f32 %v2192_v1, %v2206_v55 }
 0x8e9   : > { %v2225_v60 = vmul.f32 1.442695, %v2216_v58 }
 0x8ea   : > { %v2209_v61 = vpop.xlane.xlu0 %2208 }
 0x8eb   : > { %12173 = vpow2.f32 %v2225_v60  ;;  %v2217_v47 = vsub.f32 %v2193_v11, %v2209_v61 }
 0x8ed   : > { %v2227_v62 = vmul.f32 1.442695, %v2217_v47 }
 0x8ee   : > { %v2212_v63 = vpop.xlane.xlu1 %2211  ;;  %v11747_v27 = vpop.permute.xlu0 %11746 }
 0x8ef   : > { %12175 = vpow2.f32 %v2227_v62  ;;  %v2218_v19 = vsub.f32 %v2194_v22, %v2212_v63  ;;  %v11749_v10 = vunpack.i.h.bf16 %v11747_v27  ;;  %v11748_v15 = vunpack.i.l.bf16 %v11747_v27 }
 0x8f1   : > { %v2229_v8 = vmul.f32 1.442695, %v2218_v19  ;;  %v11288_v38 = vpack.c.bf16 %v11749_v10, %v11748_v15 }
 0x8f2   : > { %v11752_v2 = vpop.permute.xlu1 %11751 }
 0x8f3   : > { %v11754_v4 = vunpack.i.h.bf16 %v11752_v2  ;;  %v11753_v6 = vunpack.i.l.bf16 %v11752_v2  ;;  %12177 = vpow2.f32 %v2229_v8 }
 0x8f5   : > { %v13979_v7 = vpop.eup %12173  ;;  %v11285_v13 = vpack.c.bf16 %v11754_v4, %v11753_v6 }
 0x8f6   : > { %v2240_v14 = vsel %vm1730_vm4, %v13979_v7, 0.0 }
 0x8f7   : > { %11286 = vmatpush3.bf16.msra.mxu1 %v11285_v13  ;;  %2241 = vadd.xlane.f32.xlu0 %v2240_v14 }
 0x8f8   : > { %10719 = vmatprep.subr.mxu1 %v15695_v17 }
 0x8f9   : > { %v13984_v1 = vpop.eup %12175 }
 0x8fa   : > { %v2243_v11 = vsel %vm1730_vm4, %v13984_v1, 0.0 }
 0x8fd   : > { %v13996_v24 = vpop.eup %12177 }
 0x8fe   : > { %v2246_v26 = vsel %vm1730_vm4, %v13996_v24, 0.0 }
 0x8ff   : > { %2244 = vadd.xlane.f32.xlu1 %v2243_v11 }
 0x90d   : > { %2473 = vrot.lane.b32.xlu0 %v13757_v12, %s13032_s2 }
 0x910   : > { %2567 = vrot.lane.b32.xlu1 %v13801_v44, %s13032_s2 }
 0x914   : > { %2571 = vrot.lane.b32.xlu1 %v13810_v46, %s13032_s2 }
 0x918   : > { %11761 = vrot.lane.b32.xlu1 %v13878_v20, %s13032_s2 }
 0x92c   : > { %2247 = vadd.xlane.f32.xlu0 %v2246_v26 }
 0x942   : > { %2577 = vrot.lane.b32.xlu0 %v13791_v37, %s13032_s2 }
 0x943   : > { %v2233_v29 = vpop.xlane.xlu0 %2232 }
 0x944   : > { %12179 = vrcp.f32 %v2233_v29 }
 0x946   : > { %2569 = vrot.lane.b32.xlu0 %v13804_v45, %s13032_s2 }
 0x947   : > { %v2236_v22 = vpop.xlane.xlu1 %2235 }
 0x948   : > { %12181 = vrcp.f32 %v2236_v22 }
 0x94a   : > { %2753 = vrot.lane.b32.xlu0 %v13772_v28, %s13032_s2 }
 0x94b   : > { %v2464_v31 = vpop.permute.xlu1 %2463 }
 0x94e   : > { %v12180_v35 = vpop.eup %12179 }
 0x94f   : > { %v2255_v40 = vmul.f32 %v12180_v35, %v12168_v34  ;;  %v2370_v32 = vpop.permute.xlu1 %2369 }
 0x950   : > { %10720 = vmatpush3.msra.mxu1 %v2370_v32 }
 0x951   : > { %10707 = vmatmul.mubr.msk.f32.vlgmr.msra.gmra.mrb[24].mxu0 %vm1730_vm4, %v2255_v40  ;;  %11291 = vmatprep.subr.bf16.mxu1 %v15693_v51 }
 0x952   : > { %v12182_v41 = vpop.eup %12181  ;;  %11290 = vmatpush3.bf16.xpose.msk.msra.mxu0 %vm13742_vm3, %v11288_v38  ;;  %10709 = vmatprep.mubr.msk.f32.mxu0 %vm13029_vm1, %v15695_v17 }
 0x953   : > { %v2256_v49 = vmul.f32 %v12182_v41, %v13964_v39  ;;  %10734 = vmatprep.subr.mxu0 %v15695_v17  ;;  %v2466_v60 = vpop.permute.xlu1 %2465 }
 0x955   : > { %10710 = vmatmul.mubr.msk.f32.gmra.mrb[26].mxu0 %vm1730_vm4, %v2256_v49 }
 0x956   : > { %10712 = vmatprep.mubr.msk.f32.mxu0 %vm13029_vm1, %v15695_v17 }
 0x957   : > { %v11757_v61 = vpop.permute.xlu1 %11756 }
 0x958   : > { %v11759_v2 = vunpack.i.h.bf16 %v11757_v61 }
 0x95b   : > { %v2468_v39 = vpop.permute.xlu1 %2467 }
 0x96f   : > { %v2239_v34 = vpop.xlane.xlu0 %2238 }
 0x970   : > { %12183 = vrcp.f32 %v2239_v34 }
 0x97a   : > { %v12184_v55 = vpop.eup %12183 }
 0x97b   : > { %v2257_v58 = vmul.f32 %v12184_v55, %v12172_v43  ;;  %v11758_v43 = vunpack.i.l.bf16 %v11757_v61 }
 0x97d   : > { %10713 = vmatmul.mubr.msk.f32.gmra.mrb[28].mxu0 %vm1730_vm4, %v2257_v58  ;;  %v11292_v14 = vpack.c.bf16 %v11759_v2, %v11758_v43 }
 0x97e   : > { %10736 = vmatprep.mubr.msk.f32.mxu0 %vm13029_vm1, %v15695_v17 }
 0x984   : > { %v2242_v47 = vpop.xlane.xlu0 %2241 }
 0x985   : > { %12185 = vrcp.f32 %v2242_v47 }
 0x988   : > { %v2474_v62 = vpop.permute.xlu0 %2473 }
 0x989   : > { %10735 = vmatpush3.xpose.msk.msra.mxu0 %vm1509_vm2, %v2474_v62 }
 0x98a   : > { %11295 = vmatprep.subr.bf16.mxu0 %v15693_v51 }
 0x98c   : > { %v2245_v63 = vpop.xlane.xlu1 %2244  ;;  %10737 = vmatmul.mubr.msk.f32.vlgmr.msra.gmra.mrb[30].mxu0 %vm1509_vm2, %v2464_v31 }
 0x98d   : > { %12187 = vrcp.f32 %v2245_v63  ;;  %10739 = vmatprep.mubr.msk.f32.mxu0 %vm13029_vm1, %v15695_v17 }
 0x98f   : > { %v12186_v4 = vpop.eup %12185 }
 0x990   : > { %v2258_v6 = vmul.f32 %v12186_v4, %v13979_v7  ;;  %v2568_v13 = vpop.permute.xlu1 %2567  ;;  %10740 = vmatmul.mubr.msk.f32.gmra.mrb[32].mxu0 %vm1509_vm2, %v2466_v60 }
 0x991   : > { %10742 = vmatprep.mubr.msk.f32.mxu0 %vm13029_vm1, %v15695_v17 }
 0x992   : > { %10722 = vmatmul.mubr.msk.f32.vlgmr.msra.gmra.mrb[36].mxu1 %vm1730_vm4, %v2258_v6 }
 0x993   : > { %11294 = vmatpush3.bf16.xpose.msk.msra.mxu1 %vm13742_vm3, %v11292_v14  ;;  %10724 = vmatprep.mubr.msk.f32.mxu1 %vm13029_vm1, %v15695_v17 }
 0x994   : > { %v2572_v11 = vpop.permute.xlu1 %2571  ;;  %10743 = vmatmul.mubr.msk.f32.gmra.mrb[34].mxu0 %vm1509_vm2, %v2468_v39  ;;  %10749 = vmatprep.subr.mxu1 %v15695_v17 }
 0x995   : > { %10766 = vmatprep.mubr.msk.f32.mxu0 %vm13029_vm1, %v15695_v17 }
 0x997   : > { %v12188_v7 = vpop.eup %12187 }
 0x998   : > { %v11762_v19 = vpop.permute.xlu1 %11761  ;;  %v2259_v8 = vmul.f32 %v12188_v7, %v13984_v1 }
 0x999   : > { %v11764_v26 = vunpack.i.h.bf16 %v11762_v19  ;;  %v11763_v27 = vunpack.i.l.bf16 %v11762_v19 }
 0x99a   : > { %10725 = vmatmul.mubr.msk.f32.gmra.mrb[38].mxu1 %vm1730_vm4, %v2259_v8 }
 0x99b   : > { %v11296_v29 = vpack.c.bf16 %v11764_v26, %v11763_v27  ;;  %10727 = vmatprep.mubr.msk.f32.mxu1 %vm13029_vm1, %v15695_v17 }
 0x99d   : > { %11297 = vmatpush3.bf16.msra.mxu0 %v11296_v29 }
 0x99e   : > { %10764 = vmatprep.subr.mxu0 %v15695_v17 }
 0x9b9   : > { %v2248_v22 = vpop.xlane.xlu0 %2247 }
 0x9ba   : > { %12189 = vrcp.f32 %v2248_v22 }
 0x9bd   : > { %v2578_v31 = vpop.permute.xlu0 %2577 }
 0x9be   : > { %10750 = vmatpush3.xpose.msk.msra.mxu1 %vm1509_vm2, %v2578_v31 }
 0x9bf   : > { %11298 = vmatprep.subr.bf16.mxu1 %v15693_v51 }
 0x9c1   : > { %v2570_v10 = vpop.permute.xlu0 %2569 }
 0x9c4   : > { %v12190_v1 = vpop.eup %12189 }
 0x9c5   : > { %v2754_v15 = vpop.permute.xlu0 %2753  ;;  %v2260_v35 = vmul.f32 %v12190_v1, %v13996_v24 }
 0x9c6   : > { %10765 = vmatpush3.msra.mxu0 %v2754_v15 }
 0x9c7   : > { %10728 = vmatmul.mubr.msk.f32.gmra.mrb[40].mxu1 %vm1730_vm4, %v2260_v35  ;;  %11301 = vmatprep.subr.bf16.mxu0 %v15693_v51 }
 0x9c8   : > { %10751 = vmatprep.mubr.msk.f32.mxu1 %vm13029_vm1, %v15695_v17 }
 0x9cb   : > { %10752 = vmatmul.mubr.msk.f32.vlgmr.msra.gmra.mrb[42].mxu1 %vm1509_vm2, %v2568_v13 }
 0x9cc   : > { %10754 = vmatprep.mubr.msk.f32.mxu1 %vm13029_vm1, %v15695_v17 }
 0x9cf   : > { %10755 = vmatmul.mubr.msk.f32.gmra.mrb[44].mxu1 %vm1509_vm2, %v2570_v10 }
 0x9d0   : > { %10757 = vmatprep.mubr.msk.f32.mxu1 %vm13029_vm1, %v15695_v17 }
 0x9d3   : > { %10758 = vmatmul.mubr.msk.f32.gmra.mrb[46].mxu1 %vm1509_vm2, %v2572_v11 }
 0x9d4   : > { %10781 = vmatprep.mubr.msk.f32.mxu1 %vm13029_vm1, %v15695_v17 }
 0xa24   : > { %v14059_v24 = vpop.f32.mrb[24].mxu0 }
 0xa25   : > { %v10708_v40 = vpop.f32.mrb[25].mxu0 }
 0xa28   : > { %v14061_v32 = vpop.f32.mrb[26].mxu0 }
 0xa29   : > { %v10711_v41 = vpop.f32.mrb[27].mxu0 }
 0xa50   : > { %v14065_v49 = vpop.f32.mrb[28].mxu0 }
 0xa51   : > { %v10714_v34 = vpop.f32.mrb[29].mxu0 }
 0xa5f   : > { %v2553_v55 = vpop.f32.mrb[30].mxu0 }
 0xa60   : > { %v2671_v58 = vmul.f32 0.25, %v2553_v55  ;;  %v10738_v60 = vpop.f32.mrb[31].mxu0 }
 0xa62   : > { %v2677_v61 = vadd.f32 %v13825_v50, %v2671_v58 }
 0xa63   : > { %v2558_v47 = vpop.f32.mrb[32].mxu0 }
 0xa64   : > { %v2672_v39 = vmul.f32 0.25, %v2558_v47  ;;  %v10741_v62 = vpop.f32.mrb[33].mxu0  ;;  %v2683_v63 = vsel %vm1730_vm4, %v2677_v61, -inf }
 0xa65   : > { %v14069_v2 = vpop.f32.mrb[36].mxu1  ;;  %2684 = vmax.xlane.f32.xlu0 %v2683_v63 }
 0xa66   : > { %v10723_v4 = vpop.f32.mrb[37].mxu1  ;;  %v2678_v6 = vadd.f32 %v13825_v50, %v2672_v39 }
 0xa67   : > { %v2563_v13 = vpop.f32.mrb[34].mxu0 }
 0xa68   : > { %v2673_v14 = vmul.f32 0.25, %v2563_v13  ;;  %v10744_v11 = vpop.f32.mrb[35].mxu0  ;;  %v2686_v7 = vsel %vm1730_vm4, %v2678_v6, -inf }
 0xa69   : > { %2687 = vmax.xlane.f32.xlu1 %v2686_v7 }
 0xa6a   : > { %v2679_v19 = vadd.f32 %v13825_v50, %v2673_v14 }
 0xa6c   : > { %v2689_v8 = vsel %vm1730_vm4, %v2679_v19, -inf }
 0xa6d   : > { %v14077_v26 = vpop.f32.mrb[38].mxu1  ;;  %2690 = vmax.xlane.f32.xlu0 %v2689_v8 }
 0xa6e   : > { %v10726_v27 = vpop.f32.mrb[39].mxu1 }
 0xa9a   : > { %v14079_v29 = vpop.f32.mrb[40].mxu1 }
 0xa9b   : > { %v10729_v31 = vpop.f32.mrb[41].mxu1 }
 0xa9e   : > { %v2657_v10 = vpop.f32.mrb[42].mxu1 }
 0xa9f   : > { %v2674_v1 = vmul.f32 0.25, %v2657_v10  ;;  %v10753_v15 = vpop.f32.mrb[43].mxu1 }
 0xaa1   : > { %v2680_v35 = vadd.f32 %v13833_v9, %v2674_v1 }
 0xaa2   : > { %v2662_v40 = vpop.f32.mrb[44].mxu1 }
 0xaa3   : > { %v2675_v41 = vmul.f32 0.25, %v2662_v40  ;;  %v10756_v50 = vpop.f32.mrb[45].mxu1  ;;  %v2692_v34 = vsel %vm1730_vm4, %v2680_v35, -inf }
 0xaa4   : > { %2693 = vmax.xlane.f32.xlu0 %v2692_v34 }
 0xaa5   : > { %v2681_v55 = vadd.f32 %v13833_v9, %v2675_v41 }
 0xaa6   : > { %v2667_v58 = vpop.f32.mrb[46].mxu1 }
 0xaa7   : > { %v2676_v60 = vmul.f32 0.25, %v2667_v58  ;;  %v10759_v47 = vpop.f32.mrb[47].mxu1  ;;  %v2695_v39 = vsel %vm1730_vm4, %v2681_v55, -inf }
 0xaa8   : > { %2696 = vmax.xlane.f32.xlu0 %v2695_v39 }
 0xaa9   : > { %v2682_v62 = vadd.f32 %v13833_v9, %v2676_v60 }
 0xaab   : > { %v2698_v63 = vsel %vm1730_vm4, %v2682_v62, -inf }
 0xaac   : > { %2699 = vmax.xlane.f32.xlu1 %v2698_v63 }
 0xabd   : > { %11771 = vrot.lane.b32.xlu1 %v13820_v48, %s13032_s2 }
 0xabe   : > { %11766 = vrot.lane.b32.xlu0 %v13747_v3, %s13033_s10 }
 0xaf2   : > { %v2685_v4 = vpop.xlane.xlu0 %2684 }
 0xaf3   : > { %v2701_v13 = vsub.f32 %v2677_v61, %v2685_v4 }
 0xaf5   : > { %v2707_v14 = vmul.f32 1.442695, %v2701_v13 }
 0xaf6   : > { %v2688_v11 = vpop.xlane.xlu1 %2687 }
 0xaf7   : > { %12191 = vpow2.f32 %v2707_v14  ;;  %v2702_v7 = vsub.f32 %v2678_v6, %v2688_v11 }
 0xaf9   : > { %v2709_v8 = vmul.f32 1.442695, %v2702_v7 }
 0xafa   : > { %v2691_v27 = vpop.xlane.xlu0 %2690 }
 0xafb   : > { %12193 = vpow2.f32 %v2709_v8  ;;  %v2703_v9 = vsub.f32 %v2679_v19, %v2691_v27 }
 0xafd   : > { %v2711_v31 = vmul.f32 1.442695, %v2703_v9 }
 0xaff   : > { %12195 = vpow2.f32 %v2711_v31 }
 0xb01   : > { %v12192_v10 = vpop.eup %12191 }
 0xb02   : > { %v2719_v1 = vsel %vm1730_vm4, %v12192_v10, 0.0 }
 0xb03   : > { %2720 = vadd.xlane.f32.xlu0 %v2719_v1 }
 0xb05   : > { %v14094_v15 = vpop.eup %12193 }
 0xb06   : > { %v2722_v40 = vsel %vm1730_vm4, %v14094_v15, 0.0 }
 0xb07   : > { %2723 = vadd.xlane.f32.xlu1 %v2722_v40 }
 0xb09   : > { %v14098_v61 = vpop.eup %12195 }
 0xb0a   : > { %v2725_v6 = vsel %vm1730_vm4, %v14098_v61, 0.0 }
 0xb0b   : > { %2726 = vadd.xlane.f32.xlu0 %v2725_v6 }
 0xb18   : > { %2945 = vrot.lane.b32.xlu1 %v13766_v21, %s13033_s10 }
 0xb1c   : > { %2851 = vrot.lane.b32.xlu1 %v13797_v42, %s13032_s2 }
 0xb20   : > { %2947 = vrot.lane.b32.xlu1 %v13774_v30, %s13033_s10 }
 0xb24   : > { %11776 = vrot.lane.b32.xlu1 %v13778_v33, %s13033_s10 }
 0xb28   : > { %2949 = vrot.lane.b32.xlu1 %v13789_v36, %s13033_s10 }
 0xb31   : > { %v2694_v19 = vpop.xlane.xlu0 %2693 }
 0xb32   : > { %v2704_v41 = vsub.f32 %v2680_v35, %v2694_v19 }
 0xb34   : > { %v2713_v50 = vmul.f32 1.442695, %v2704_v41 }
 0xb35   : > { %v2697_v34 = vpop.xlane.xlu0 %2696 }
 0xb36   : > { %12197 = vpow2.f32 %v2713_v50  ;;  %v2705_v58 = vsub.f32 %v2681_v55, %v2697_v34 }
 0xb38   : > { %v2715_v47 = vmul.f32 1.442695, %v2705_v58 }
 0xb39   : > { %v2700_v60 = vpop.xlane.xlu1 %2699  ;;  %v11767_v31 = vpop.permute.xlu0 %11766 }
 0xb3a   : > { %12199 = vpow2.f32 %v2715_v47  ;;  %v2706_v7 = vsub.f32 %v2682_v62, %v2700_v60  ;;  %v11769_v19 = vunpack.i.h.bf16 %v11767_v31  ;;  %v11768_v41 = vunpack.i.l.bf16 %v11767_v31 }
 0xb3c   : > { %v2717_v8 = vmul.f32 1.442695, %v2706_v7  ;;  %v11302_v60 = vpack.c.bf16 %v11769_v19, %v11768_v41 }
 0xb3d   : > { %v11772_v39 = vpop.permute.xlu1 %11771 }
 0xb3e   : > { %v11774_v63 = vunpack.i.h.bf16 %v11772_v39  ;;  %v11773_v4 = vunpack.i.l.bf16 %v11772_v39  ;;  %12201 = vpow2.f32 %v2717_v8 }
 0xb40   : > { %v14112_v13 = vpop.eup %12197  ;;  %v11299_v14 = vpack.c.bf16 %v11774_v63, %v11773_v4 }
 0xb41   : > { %v2728_v11 = vsel %vm1730_vm4, %v14112_v13, 0.0 }
 0xb42   : > { %11300 = vmatpush3.bf16.msra.mxu1 %v11299_v14  ;;  %2729 = vadd.xlane.f32.xlu0 %v2728_v11 }
 0xb43   : > { %10779 = vmatprep.subr.mxu1 %v15695_v17 }
 0xb44   : > { %v14117_v35 = vpop.eup %12199 }
 0xb45   : > { %v2731_v55 = vsel %vm1730_vm4, %v14117_v35, 0.0 }
 0xb48   : > { %v14129_v27 = vpop.eup %12201 }
 0xb49   : > { %v2734_v9 = vsel %vm1730_vm4, %v14129_v27, 0.0 }
 0xb4c   : > { %2732 = vadd.xlane.f32.xlu1 %v2731_v55 }
 0xb58   : > { %2955 = vrot.lane.b32.xlu0 %v13757_v12, %s13033_s10 }
 0xb5d   : > { %3049 = vrot.lane.b32.xlu1 %v13801_v44, %s13033_s10 }
 0xb61   : > { %3053 = vrot.lane.b32.xlu1 %v13810_v46, %s13033_s10 }
 0xb65   : > { %11781 = vrot.lane.b32.xlu1 %v13878_v20, %s13033_s10 }
 0xb77   : > { %2735 = vadd.xlane.f32.xlu0 %v2734_v9 }
 0xb8d   : > { %3059 = vrot.lane.b32.xlu0 %v13791_v37, %s13033_s10 }
 0xb90   : > { %v2721_v1 = vpop.xlane.xlu0 %2720 }
 0xb91   : > { %12203 = vrcp.f32 %v2721_v1  ;;  %3051 = vrot.lane.b32.xlu0 %v13804_v45, %s13033_s10 }
 0xb94   : > { %v2724_v62 = vpop.xlane.xlu1 %2723 }
 0xb95   : > { %12205 = vrcp.f32 %v2724_v62  ;;  %3235 = vrot.lane.b32.xlu0 %v13772_v28, %s13033_s10 }
 0xb98   : > { %v2946_v40 = vpop.permute.xlu1 %2945  ;;  %v2727_v6 = vpop.xlane.xlu0 %2726 }
 0xb99   : > { %12207 = vrcp.f32 %v2727_v6 }
 0xb9b   : > { %v12204_v50 = vpop.eup %12203 }
 0xb9c   : > { %v2743_v34 = vmul.f32 %v12204_v50, %v12192_v10  ;;  %v2852_v58 = vpop.permute.xlu1 %2851 }
 0xb9d   : > { %10780 = vmatpush3.msra.mxu1 %v2852_v58 }
 0xb9e   : > { %10767 = vmatmul.mubr.msk.f32.vlgmr.msra.gmra.mrb[36].mxu0 %vm1730_vm4, %v2743_v34  ;;  %11305 = vmatprep.subr.bf16.mxu1 %v15693_v51 }
 0xb9f   : > { %v12206_v47 = vpop.eup %12205  ;;  %11304 = vmatpush3.bf16.xpose.msk.msra.mxu0 %vm13742_vm3, %v11302_v60  ;;  %10769 = vmatprep.mubr.msk.f32.mxu0 %vm13029_vm1, %v15695_v17 }
 0xba0   : > { %v2744_v39 = vmul.f32 %v12206_v47, %v14094_v15  ;;  %10794 = vmatprep.subr.mxu0 %v15695_v17  ;;  %v2948_v4 = vpop.permute.xlu1 %2947 }
 0xba2   : > { %10770 = vmatmul.mubr.msk.f32.gmra.mrb[38].mxu0 %vm1730_vm4, %v2744_v39 }
 0xba3   : > { %v12208_v10 = vpop.eup %12207  ;;  %10772 = vmatprep.mubr.msk.f32.mxu0 %vm13029_vm1, %v15695_v17 }
 0xba4   : > { %v2745_v63 = vmul.f32 %v12208_v10, %v14098_v61  ;;  %v11777_v14 = vpop.permute.xlu1 %11776 }
 0xba5   : > { %v11779_v7 = vunpack.i.h.bf16 %v11777_v14  ;;  %v11778_v8 = vunpack.i.l.bf16 %v11777_v14 }
 0xba6   : > { %10773 = vmatmul.mubr.msk.f32.gmra.mrb[40].mxu0 %vm1730_vm4, %v2745_v63 }
 0xba7   : > { %10796 = vmatprep.mubr.msk.f32.mxu0 %vm13029_vm1, %v15695_v17  ;;  %v11306_v1 = vpack.c.bf16 %v11779_v7, %v11778_v8 }
 0xba8   : > { %v2950_v55 = vpop.permute.xlu1 %2949 }
 0xbcf   : > { %v2730_v11 = vpop.xlane.xlu0 %2729 }
 0xbd0   : > { %12209 = vrcp.f32 %v2730_v11 }
 0xbd3   : > { %v2956_v15 = vpop.permute.xlu0 %2955 }
 0xbd4   : > { %10795 = vmatpush3.xpose.msk.msra.mxu0 %vm1509_vm2, %v2956_v15 }
 0xbd5   : > { %11309 = vmatprep.subr.bf16.mxu0 %v15693_v51 }
 0xbd7   : > { %10797 = vmatmul.mubr.msk.f32.vlgmr.msra.gmra.mrb[42].mxu0 %vm1509_vm2, %v2946_v40 }
 0xbd8   : > { %10799 = vmatprep.mubr.msk.f32.mxu0 %vm13029_vm1, %v15695_v17 }
 0xbd9   : > { %v2733_v61 = vpop.xlane.xlu1 %2732 }
 0xbda   : > { %v12210_v9 = vpop.eup %12209  ;;  %12211 = vrcp.f32 %v2733_v61 }
 0xbdb   : > { %v2746_v31 = vmul.f32 %v12210_v9, %v14112_v13  ;;  %10800 = vmatmul.mubr.msk.f32.gmra.mrb[44].mxu0 %vm1509_vm2, %v2948_v4  ;;  %v14201_v9 = vld [vmem:[#allocation3] ss:$0 sm:$0xff] }
 0xbdc   : > { %10802 = vmatprep.mubr.msk.f32.mxu0 %vm13029_vm1, %v15695_v17 }
 0xbdd   : > { %v3050_v62 = vpop.permute.xlu1 %3049  ;;  %10782 = vmatmul.mubr.msk.f32.vlgmr.msra.gmra.mrb[48].mxu1 %vm1730_vm4, %v2746_v31 }
 0xbde   : > { %11308 = vmatpush3.bf16.xpose.msk.msra.mxu1 %vm13742_vm3, %v11306_v1  ;;  %10784 = vmatprep.mubr.msk.f32.mxu1 %vm13029_vm1, %v15695_v17 }
 0xbdf   : > { %10803 = vmatmul.mubr.msk.f32.gmra.mrb[46].mxu0 %vm1509_vm2, %v2950_v55  ;;  %10809 = vmatprep.subr.mxu1 %v15695_v17 }
 0xbe0   : > { %10826 = vmatprep.mubr.msk.f32.mxu0 %vm13029_vm1, %v15695_v17 }
 0xbe1   : > { %v3054_v13 = vpop.permute.xlu1 %3053 }
 0xbe4   : > { %v12212_v40 = vpop.eup %12211 }
 0xbe5   : > { %v11782_v6 = vpop.permute.xlu1 %11781  ;;  %v2747_v19 = vmul.f32 %v12212_v40, %v14117_v35 }
 0xbe6   : > { %v11784_v41 = vunpack.i.h.bf16 %v11782_v6  ;;  %v11783_v50 = vunpack.i.l.bf16 %v11782_v6 }
 0xbe7   : > { %10785 = vmatmul.mubr.msk.f32.gmra.mrb[50].mxu1 %vm1730_vm4, %v2747_v19 }
 0xbe8   : > { %v11310_v34 = vpack.c.bf16 %v11784_v41, %v11783_v50  ;;  %10787 = vmatprep.mubr.msk.f32.mxu1 %vm13029_vm1, %v15695_v17 }
 0xbea   : > { %11311 = vmatpush3.bf16.msra.mxu0 %v11310_v34 }
 0xbeb   : > { %10824 = vmatprep.subr.mxu0 %v15695_v17 }
 0xc04   : > { %v2736_v58 = vpop.xlane.xlu0 %2735 }
 0xc05   : > { %12213 = vrcp.f32 %v2736_v58 }
 0xc08   : > { %v3060_v60 = vpop.permute.xlu0 %3059 }
 0xc09   : > { %10810 = vmatpush3.xpose.msk.msra.mxu1 %vm1509_vm2, %v3060_v60 }
 0xc0a   : > { %11312 = vmatprep.subr.bf16.mxu1 %v15693_v51 }
 0xc0c   : > { %v3052_v47 = vpop.permute.xlu0 %3051 }
 0xc0f   : > { %v12214_v35 = vpop.eup %12213 }
 0xc10   : > { %v3236_v39 = vpop.permute.xlu0 %3235  ;;  %v2748_v10 = vmul.f32 %v12214_v35, %v14129_v27 }
 0xc11   : > { %10825 = vmatpush3.msra.mxu0 %v3236_v39 }
 0xc12   : > { %10788 = vmatmul.mubr.msk.f32.gmra.mrb[52].mxu1 %vm1730_vm4, %v2748_v10  ;;  %11315 = vmatprep.subr.bf16.mxu0 %v15693_v51 }
 0xc13   : > { %10811 = vmatprep.mubr.msk.f32.mxu1 %vm13029_vm1, %v15695_v17 }
 0xc16   : > { %10812 = vmatmul.mubr.msk.f32.vlgmr.msra.gmra.mrb[54].mxu1 %vm1509_vm2, %v3050_v62 }
 0xc17   : > { %10814 = vmatprep.mubr.msk.f32.mxu1 %vm13029_vm1, %v15695_v17 }
 0xc1a   : > { %10815 = vmatmul.mubr.msk.f32.gmra.mrb[56].mxu1 %vm1509_vm2, %v3052_v47 }
 0xc1b   : > { %10817 = vmatprep.mubr.msk.f32.mxu1 %vm13029_vm1, %v15695_v17 }
 0xc1e   : > { %10818 = vmatmul.mubr.msk.f32.gmra.mrb[58].mxu1 %vm1509_vm2, %v3054_v13 }
 0xc1f   : > { %10841 = vmatprep.mubr.msk.f32.mxu1 %vm13029_vm1, %v15695_v17 }
 0xc71   : > { %v14193_v27 = vpop.f32.mrb[36].mxu0 }
 0xc72   : > { %v10768_v63 = vpop.f32.mrb[37].mxu0 }
 0xc75   : > { %v14195_v4 = vpop.f32.mrb[38].mxu0 }
 0xc76   : > { %v10771_v11 = vpop.f32.mrb[39].mxu0 }
 0xc79   : > { %v14199_v15 = vpop.f32.mrb[40].mxu0 }
 0xc7a   : > { %v10774_v55 = vpop.f32.mrb[41].mxu0 }
 0xcaa   : > { %v3035_v7 = vpop.f32.mrb[42].mxu0 }
 0xcab   : > { %v3153_v8 = vmul.f32 0.25, %v3035_v7  ;;  %v10798_v61 = vpop.f32.mrb[43].mxu0 }
 0xcad   : > { %v3159_v31 = vadd.f32 %v14201_v9, %v3153_v8 }
 0xcae   : > { %v3040_v1 = vpop.f32.mrb[44].mxu0 }
 0xcaf   : > { %v3154_v62 = vmul.f32 0.25, %v3040_v1  ;;  %v10801_v13 = vpop.f32.mrb[45].mxu0  ;;  %v3165_v40 = vsel %vm1730_vm4, %v3159_v31, -inf }
 0xcb0   : > { %v14205_v6 = vpop.f32.mrb[48].mxu1  ;;  %3166 = vmax.xlane.f32.xlu0 %v3165_v40 }
 0xcb1   : > { %v10783_v41 = vpop.f32.mrb[49].mxu1  ;;  %v3160_v50 = vadd.f32 %v14201_v9, %v3154_v62  ;;  %v14219_v62 = vld [vmem:[#allocation3 + $0x1] ss:$0 sm:$0xff] }
 0xcb2   : > { %v3045_v34 = vpop.f32.mrb[46].mxu0 }
 0xcb3   : > { %v3155_v58 = vmul.f32 0.25, %v3045_v34  ;;  %v10804_v60 = vpop.f32.mrb[47].mxu0  ;;  %v3168_v47 = vsel %vm1730_vm4, %v3160_v50, -inf }
 0xcb4   : > { %3169 = vmax.xlane.f32.xlu1 %v3168_v47 }
 0xcb5   : > { %v3161_v35 = vadd.f32 %v14201_v9, %v3155_v58 }
 0xcb7   : > { %v3171_v39 = vsel %vm1730_vm4, %v3161_v35, -inf }
 0xcb8   : > { %3172 = vmax.xlane.f32.xlu0 %v3171_v39 }
 0xcba   : > { %v14213_v10 = vpop.f32.mrb[50].mxu1 }
 0xcbb   : > { %v10786_v63 = vpop.f32.mrb[51].mxu1 }
 0xce5   : > { %v14215_v11 = vpop.f32.mrb[52].mxu1 }
 0xce6   : > { %v10789_v7 = vpop.f32.mrb[53].mxu1 }
 0xce9   : > { %v3139_v8 = vpop.f32.mrb[54].mxu1 }
 0xcea   : > { %v3156_v61 = vmul.f32 0.25, %v3139_v8  ;;  %v10813_v1 = vpop.f32.mrb[55].mxu1 }
 0xcec   : > { %v3162_v13 = vadd.f32 %v14219_v62, %v3156_v61 }
 0xced   : > { %v3144_v40 = vpop.f32.mrb[56].mxu1 }
 0xcee   : > { %v3157_v41 = vmul.f32 0.25, %v3144_v40  ;;  %v10816_v34 = vpop.f32.mrb[57].mxu1  ;;  %v3174_v58 = vsel %vm1730_vm4, %v3162_v13, -inf }
 0xcef   : > { %3175 = vmax.xlane.f32.xlu0 %v3174_v58 }
 0xcf0   : > { %v3163_v60 = vadd.f32 %v14219_v62, %v3157_v41 }
 0xcf1   : > { %v3149_v47 = vpop.f32.mrb[58].mxu1 }
 0xcf2   : > { %v3158_v39 = vmul.f32 0.25, %v3149_v47  ;;  %v10819_v63 = vpop.f32.mrb[59].mxu1  ;;  %v3177_v7 = vsel %vm1730_vm4, %v3163_v60, -inf }
 0xcf3   : > { %3178 = vmax.xlane.f32.xlu0 %v3177_v7 }
 0xcf4   : > { %v3164_v8 = vadd.f32 %v14219_v62, %v3158_v39 }
 0xcf6   : > { %v3180_v1 = vsel %vm1730_vm4, %v3164_v8, -inf }
 0xcf7   : > { %3181 = vmax.xlane.f32.xlu1 %v3180_v1 }
 0xd08   : > { %11791 = vrot.lane.b32.xlu1 %v13820_v48, %s13033_s10 }
 0xd09   : > { %11786 = vrot.lane.b32.xlu0 %v13747_v3, %s13034_s1 }
 0xd3d   : > { %v3167_v61 = vpop.xlane.xlu0 %3166 }
 0xd3e   : > { %v3183_v40 = vsub.f32 %v3159_v31, %v3167_v61 }
 0xd40   : > { %v3189_v41 = vmul.f32 1.442695, %v3183_v40 }
 0xd41   : > { %v3170_v34 = vpop.xlane.xlu1 %3169 }
 0xd42   : > { %12215 = vpow2.f32 %v3189_v41  ;;  %v3184_v58 = vsub.f32 %v3160_v50, %v3170_v34 }
 0xd44   : > { %v3191_v47 = vmul.f32 1.442695, %v3184_v58 }
 0xd45   : > { %v3173_v63 = vpop.xlane.xlu0 %3172 }
 0xd46   : > { %12217 = vpow2.f32 %v3191_v47  ;;  %v3185_v39 = vsub.f32 %v3161_v35, %v3173_v63 }
 0xd48   : > { %v3193_v7 = vmul.f32 1.442695, %v3185_v39 }
 0xd4a   : > { %12219 = vpow2.f32 %v3193_v7 }
 0xd4c   : > { %v12216_v1 = vpop.eup %12215 }
 0xd4d   : > { %v3201_v22 = vsel %vm1730_vm4, %v12216_v1, 0.0 }
 0xd4e   : > { %3202 = vadd.xlane.f32.xlu0 %v3201_v22 }
 0xd50   : > { %v14232_v16 = vpop.eup %12217 }
 0xd51   : > { %v3204_v19 = vsel %vm1730_vm4, %v14232_v16, 0.0 }
 0xd52   : > { %3205 = vadd.xlane.f32.xlu1 %v3204_v19 }
 0xd54   : > { %v14236_v31 = vpop.eup %12219 }
 0xd55   : > { %v3207_v50 = vsel %vm1730_vm4, %v14236_v31, 0.0 }
 0xd56   : > { %3208 = vadd.xlane.f32.xlu0 %v3207_v50 }
 0xd63   : > { %3427 = vrot.lane.b32.xlu1 %v13766_v21, %s13034_s1 }
 0xd67   : > { %3333 = vrot.lane.b32.xlu1 %v13797_v42, %s13033_s10 }
 0xd6b   : > { %3429 = vrot.lane.b32.xlu1 %v13774_v30, %s13034_s1 }
 0xd6f   : > { %11796 = vrot.lane.b32.xlu1 %v13778_v33, %s13034_s1 }
 0xd73   : > { %3431 = vrot.lane.b32.xlu1 %v13789_v36, %s13034_s1 }
 0xd7c   : > { %v3176_v22 = vpop.xlane.xlu0 %3175 }
 0xd7d   : > { %v3186_v19 = vsub.f32 %v3162_v13, %v3176_v22 }
 0xd7f   : > { %v3195_v35 = vmul.f32 1.442695, %v3186_v19 }
 0xd80   : > { %v3179_v61 = vpop.xlane.xlu0 %3178 }
 0xd81   : > { %12221 = vpow2.f32 %v3195_v35  ;;  %v3187_v40 = vsub.f32 %v3163_v60, %v3179_v61 }
 0xd83   : > { %v3197_v34 = vmul.f32 1.442695, %v3187_v40 }
 0xd84   : > { %v3182_v41 = vpop.xlane.xlu1 %3181  ;;  %v11787_v40 = vpop.permute.xlu0 %11786 }
 0xd85   : > { %12223 = vpow2.f32 %v3197_v34  ;;  %v3188_v22 = vsub.f32 %v3164_v8, %v3182_v41 }
 0xd87   : > { %v3199_v19 = vmul.f32 1.442695, %v3188_v22 }
 0xd88   : > { %v11792_v58 = vpop.permute.xlu1 %11791 }
 0xd89   : > { %v11794_v47 = vunpack.i.h.bf16 %v11792_v58  ;;  %v11793_v63 = vunpack.i.l.bf16 %v11792_v58  ;;  %12225 = vpow2.f32 %v3199_v19 }
 0xd8b   : > { %v14250_v39 = vpop.eup %12221  ;;  %v11313_v7 = vpack.c.bf16 %v11794_v47, %v11793_v63  ;;  %v11789_v47 = vunpack.i.h.bf16 %v11787_v40  ;;  %v11788_v63 = vunpack.i.l.bf16 %v11787_v40 }
 0xd8c   : > { %v3210_v50 = vsel %vm1730_vm4, %v14250_v39, 0.0 }
 0xd8d   : > { %11314 = vmatpush3.bf16.msra.mxu1 %v11313_v7  ;;  %3211 = vadd.xlane.f32.xlu0 %v3210_v50  ;;  %v11316_v22 = vpack.c.bf16 %v11789_v47, %v11788_v63 }
 0xd8e   : > { %10839 = vmatprep.subr.mxu1 %v15695_v17 }
 0xd8f   : > { %v14255_v13 = vpop.eup %12223 }
 0xd90   : > { %v3213_v60 = vsel %vm1730_vm4, %v14255_v13, 0.0 }
 0xd93   : > { %v14267_v35 = vpop.eup %12225 }
 0xd94   : > { %v3216_v61 = vsel %vm1730_vm4, %v14267_v35, 0.0 }
 0xd97   : > { %3214 = vadd.xlane.f32.xlu1 %v3213_v60 }
 0xda3   : > { %3437 = vrot.lane.b32.xlu0 %v13757_v12, %s13034_s1 }
 0xda8   : > { %3531 = vrot.lane.b32.xlu1 %v13801_v44, %s13034_s1 }
 0xdac   : > { %3535 = vrot.lane.b32.xlu1 %v13810_v46, %s13034_s1 }
 0xdb0   : > { %11801 = vrot.lane.b32.xlu1 %v13878_v20, %s13034_s1 }
 0xdc2   : > { %3217 = vadd.xlane.f32.xlu0 %v3216_v61 }
 0xdd8   : > { %3541 = vrot.lane.b32.xlu0 %v13791_v37, %s13034_s1 }
 0xddb   : > { %v3203_v34 = vpop.xlane.xlu0 %3202 }
 0xddc   : > { %12227 = vrcp.f32 %v3203_v34  ;;  %3533 = vrot.lane.b32.xlu0 %v13804_v45, %s13034_s1 }
 0xddf   : > { %v3206_v8 = vpop.xlane.xlu1 %3205 }
 0xde0   : > { %12229 = vrcp.f32 %v3206_v8  ;;  %3717 = vrot.lane.b32.xlu0 %v13772_v28, %s13034_s1 }
 0xde3   : > { %v3428_v41 = vpop.permute.xlu1 %3427  ;;  %v3209_v58 = vpop.xlane.xlu0 %3208 }
 0xde4   : > { %12231 = vrcp.f32 %v3209_v58 }
 0xde6   : > { %v12228_v7 = vpop.eup %12227 }
 0xde7   : > { %v3225_v50 = vmul.f32 %v12228_v7, %v12216_v1  ;;  %v3334_v60 = vpop.permute.xlu1 %3333 }
 0xde8   : > { %10840 = vmatpush3.msra.mxu1 %v3334_v60 }
 0xde9   : > { %10827 = vmatmul.mubr.msk.f32.vlgmr.msra.gmra.mrb[48].mxu0 %vm1730_vm4, %v3225_v50  ;;  %11319 = vmatprep.subr.bf16.mxu1 %v15693_v51 }
 0xdea   : > { %v12230_v19 = vpop.eup %12229  ;;  %11318 = vmatpush3.bf16.xpose.msk.msra.mxu0 %vm13742_vm3, %v11316_v22  ;;  %10829 = vmatprep.mubr.msk.f32.mxu0 %vm13029_vm1, %v15695_v17 }
 0xdeb   : > { %v3226_v61 = vmul.f32 %v12230_v19, %v14232_v16  ;;  %10854 = vmatprep.subr.mxu0 %v15695_v17  ;;  %v3430_v34 = vpop.permute.xlu1 %3429 }
 0xded   : > { %10830 = vmatmul.mubr.msk.f32.gmra.mrb[50].mxu0 %vm1730_vm4, %v3226_v61 }
 0xdee   : > { %v12232_v1 = vpop.eup %12231  ;;  %10832 = vmatprep.mubr.msk.f32.mxu0 %vm13029_vm1, %v15695_v17 }
 0xdef   : > { %v3227_v40 = vmul.f32 %v12232_v1, %v14236_v31  ;;  %v11797_v8 = vpop.permute.xlu1 %11796 }
 0xdf0   : > { %v11799_v63 = vunpack.i.h.bf16 %v11797_v8  ;;  %v11798_v7 = vunpack.i.l.bf16 %v11797_v8 }
 0xdf1   : > { %10833 = vmatmul.mubr.msk.f32.gmra.mrb[52].mxu0 %vm1730_vm4, %v3227_v40 }
 0xdf2   : > { %10856 = vmatprep.mubr.msk.f32.mxu0 %vm13029_vm1, %v15695_v17  ;;  %v11320_v22 = vpack.c.bf16 %v11799_v63, %v11798_v7 }
 0xdf3   : > { %v3432_v47 = vpop.permute.xlu1 %3431 }
 0xe1a   : > { %v3212_v58 = vpop.xlane.xlu0 %3211 }
 0xe1b   : > { %12233 = vrcp.f32 %v3212_v58 }
 0xe1e   : > { %v3438_v16 = vpop.permute.xlu0 %3437 }
 0xe1f   : > { %10855 = vmatpush3.xpose.msk.msra.mxu0 %vm1509_vm2, %v3438_v16 }
 0xe20   : > { %11323 = vmatprep.subr.bf16.mxu0 %v15693_v51 }
 0xe22   : > { %10857 = vmatmul.mubr.msk.f32.vlgmr.msra.gmra.mrb[54].mxu0 %vm1509_vm2, %v3428_v41 }
 0xe23   : > { %10859 = vmatprep.mubr.msk.f32.mxu0 %vm13029_vm1, %v15695_v17 }
 0xe24   : > { %v3215_v31 = vpop.xlane.xlu1 %3214 }
 0xe25   : > { %v12234_v50 = vpop.eup %12233  ;;  %12235 = vrcp.f32 %v3215_v31 }
 0xe26   : > { %v3228_v60 = vmul.f32 %v12234_v50, %v14250_v39  ;;  %10860 = vmatmul.mubr.msk.f32.gmra.mrb[56].mxu0 %vm1509_vm2, %v3430_v34 }
 0xe27   : > { %10862 = vmatprep.mubr.msk.f32.mxu0 %vm13029_vm1, %v15695_v17 }
 0xe28   : > { %v3532_v19 = vpop.permute.xlu1 %3531  ;;  %10842 = vmatmul.mubr.msk.f32.vlgmr.msra.gmra.mrb[60].mxu1 %vm1730_vm4, %v3228_v60 }
 0xe29   : > { %11322 = vmatpush3.bf16.xpose.msk.msra.mxu1 %vm13742_vm3, %v11320_v22  ;;  %10844 = vmatprep.mubr.msk.f32.mxu1 %vm13029_vm1, %v15695_v17 }
 0xe2a   : > { %10863 = vmatmul.mubr.msk.f32.gmra.mrb[58].mxu0 %vm1509_vm2, %v3432_v47  ;;  %10869 = vmatprep.subr.mxu1 %v15695_v17 }
 0xe2b   : > { %10886 = vmatprep.mubr.msk.f32.mxu0 %vm13029_vm1, %v15695_v17 }
 0xe2c   : > { %v3536_v39 = vpop.permute.xlu1 %3535 }
 0xe2f   : > { %v12236_v41 = vpop.eup %12235 }
 0xe30   : > { %v11802_v61 = vpop.permute.xlu1 %11801  ;;  %v3229_v1 = vmul.f32 %v12236_v41, %v14255_v13 }
 0xe31   : > { %v11804_v40 = vunpack.i.h.bf16 %v11802_v61  ;;  %v11803_v34 = vunpack.i.l.bf16 %v11802_v61 }
 0xe32   : > { %10845 = vmatmul.mubr.msk.f32.gmra.mrb[62].mxu1 %vm1730_vm4, %v3229_v1 }
 0xe33   : > { %v11324_v8 = vpack.c.bf16 %v11804_v40, %v11803_v34  ;;  %10847 = vmatprep.mubr.msk.f32.mxu1 %vm13029_vm1, %v15695_v17 }
 0xe35   : > { %11325 = vmatpush3.bf16.msra.mxu0 %v11324_v8 }
 0xe36   : > { %10884 = vmatprep.subr.mxu0 %v15695_v17 }
 0xe4f   : > { %v3218_v58 = vpop.xlane.xlu0 %3217 }
 0xe50   : > { %12237 = vrcp.f32 %v3218_v58 }
 0xe53   : > { %v3542_v16 = vpop.permute.xlu0 %3541 }
 0xe54   : > { %10870 = vmatpush3.xpose.msk.msra.mxu1 %vm1509_vm2, %v3542_v16 }
 0xe55   : > { %11326 = vmatprep.subr.bf16.mxu1 %v15693_v51 }
 0xe57   : > { %v3534_v47 = vpop.permute.xlu0 %3533 }
 0xe5a   : > { %v12238_v13 = vpop.eup %12237 }
 0xe5b   : > { %v3718_v63 = vpop.permute.xlu0 %3717  ;;  %v3230_v7 = vmul.f32 %v12238_v13, %v14267_v35 }
 0xe5c   : > { %10885 = vmatpush3.msra.mxu0 %v3718_v63 }
 0xe5d   : > { %10848 = vmatmul.mubr.msk.f32.gmra.mrb[64].mxu1 %vm1730_vm4, %v3230_v7  ;;  %11329 = vmatprep.subr.bf16.mxu0 %v15693_v51 }
 0xe5e   : > { %10871 = vmatprep.mubr.msk.f32.mxu1 %vm13029_vm1, %v15695_v17 }
 0xe61   : > { %10872 = vmatmul.mubr.msk.f32.vlgmr.msra.gmra.mrb[66].mxu1 %vm1509_vm2, %v3532_v19 }
 0xe62   : > { %10874 = vmatprep.mubr.msk.f32.mxu1 %vm13029_vm1, %v15695_v17 }
 0xe65   : > { %10875 = vmatmul.mubr.msk.f32.gmra.mrb[68].mxu1 %vm1509_vm2, %v3534_v47 }
 0xe66   : > { %10877 = vmatprep.mubr.msk.f32.mxu1 %vm13029_vm1, %v15695_v17 }
 0xe69   : > { %10878 = vmatmul.mubr.msk.f32.gmra.mrb[70].mxu1 %vm1509_vm2, %v3536_v39 }
 0xe6a   : > { %10901 = vmatprep.mubr.msk.f32.mxu1 %vm13029_vm1, %v15695_v17 }
 0xebc   : > { %v14331_v35 = vpop.f32.mrb[48].mxu0 }
 0xebd   : > { %v10828_v31 = vpop.f32.mrb[49].mxu0 }
 0xec0   : > { %v14333_v50 = vpop.f32.mrb[50].mxu0 }
 0xec1   : > { %v10831_v22 = vpop.f32.mrb[51].mxu0 }
 0xec4   : > { %v14337_v19 = vpop.f32.mrb[52].mxu0 }
 0xec5   : > { %v10834_v41 = vpop.f32.mrb[53].mxu0 }
 0xef5   : > { %v3517_v61 = vpop.f32.mrb[54].mxu0 }
 0xef6   : > { %v3635_v1 = vmul.f32 0.25, %v3517_v61  ;;  %v10858_v40 = vpop.f32.mrb[55].mxu0 }
 0xef8   : > { %v3641_v39 = vadd.f32 %v14201_v9, %v3635_v1 }
 0xef9   : > { %v3522_v34 = vpop.f32.mrb[56].mxu0 }
 0xefa   : > { %v3636_v8 = vmul.f32 0.25, %v3522_v34  ;;  %v10861_v58 = vpop.f32.mrb[57].mxu0  ;;  %v3647_v16 = vsel %vm1730_vm4, %v3641_v39, -inf }
 0xefb   : > { %v14341_v47 = vpop.f32.mrb[60].mxu1  ;;  %3648 = vmax.xlane.f32.xlu0 %v3647_v16 }
 0xefc   : > { %v3642_v13 = vadd.f32 %v14201_v9, %v3636_v8  ;;  %v10843_v7 = vpop.f32.mrb[61].mxu1 }
 0xefd   : > { %v3527_v31 = vpop.f32.mrb[58].mxu0 }
 0xefe   : > { %v3637_v22 = vmul.f32 0.25, %v3527_v31  ;;  %v10864_v41 = vpop.f32.mrb[59].mxu0  ;;  %v3650_v61 = vsel %vm1730_vm4, %v3642_v13, -inf }
 0xeff   : > { %3651 = vmax.xlane.f32.xlu1 %v3650_v61 }
 0xf00   : > { %v3643_v1 = vadd.f32 %v14201_v9, %v3637_v22 }
 0xf02   : > { %v3653_v40 = vsel %vm1730_vm4, %v3643_v1, -inf }
 0xf03   : > { %3654 = vmax.xlane.f32.xlu0 %v3653_v40 }
 0xf05   : > { %v14349_v34 = vpop.f32.mrb[62].mxu1 }
 0xf06   : > { %15768 = vst [vmem:[#allocation57_spill] sm:$0xff] %v14349_v34  ;;  %v10846_v58 = vpop.f32.mrb[63].mxu1 }
 0xf30   : > { %v14351_v16 = vpop.f32.mrb[64].mxu1 }
 0xf31   : > { %15769 = vst [vmem:[#allocation58_spill] sm:$0xff] %v14351_v16  ;;  %v10849_v7 = vpop.f32.mrb[65].mxu1 }
 0xf34   : > { %v3621_v63 = vpop.f32.mrb[66].mxu1 }
 0xf35   : > { %v3638_v31 = vmul.f32 0.25, %v3621_v63  ;;  %v10873_v41 = vpop.f32.mrb[67].mxu1 }
 0xf37   : > { %v3644_v55 = vadd.f32 %v14219_v62, %v3638_v31 }
 0xf38   : > { %v3626_v61 = vpop.f32.mrb[68].mxu1 }
 0xf39   : > { %v3639_v60 = vmul.f32 0.25, %v3626_v61  ;;  %v10876_v22 = vpop.f32.mrb[69].mxu1  ;;  %v3656_v43 = vsel %vm1730_vm4, %v3644_v55, -inf }
 0xf3a   : > { %3657 = vmax.xlane.f32.xlu0 %v3656_v43 }
 0xf3b   : > { %v3645_v40 = vadd.f32 %v14219_v62, %v3639_v60 }
 0xf3c   : > { %v3631_v58 = vpop.f32.mrb[70].mxu1 }
 0xf3d   : > { %v3640_v14 = vmul.f32 0.25, %v3631_v58  ;;  %v10879_v38 = vpop.f32.mrb[71].mxu1  ;;  %v3659_v51 = vsel %vm1730_vm4, %v3645_v40, -inf }
 0xf3e   : > { %3660 = vmax.xlane.f32.xlu0 %v3659_v51 }
 0xf3f   : > { %v3646_v7 = vadd.f32 %v14219_v62, %v3640_v14 }
 0xf41   : > { %v3662_v63 = vsel %vm1730_vm4, %v3646_v7, -inf }
 0xf42   : > { %3663 = vmax.xlane.f32.xlu1 %v3662_v63 }
 0xf53   : > { %11811 = vrot.lane.b32.xlu1 %v13820_v48, %s13034_s1 }
 0xf54   : > { %11806 = vrot.lane.b32.xlu0 %v13747_v3, %s13035_s15 }
 0xf88   : > { %v3649_v43 = vpop.xlane.xlu0 %3648 }
 0xf89   : > { %v3665_v60 = vsub.f32 %v3641_v39, %v3649_v43 }
 0xf8b   : > { %v3671_v31 = vmul.f32 1.442695, %v3665_v60 }
 0xf8c   : > { %v3652_v41 = vpop.xlane.xlu1 %3651 }
 0xf8d   : > { %12239 = vpow2.f32 %v3671_v31  ;;  %v3666_v38 = vsub.f32 %v3642_v13, %v3652_v41 }
 0xf8f   : > { %v3673_v61 = vmul.f32 1.442695, %v3666_v38 }
 0xf90   : > { %v3655_v51 = vpop.xlane.xlu0 %3654 }
 0xf91   : > { %12241 = vpow2.f32 %v3673_v61  ;;  %v3667_v14 = vsub.f32 %v3643_v1, %v3655_v51 }
 0xf93   : > { %v3675_v22 = vmul.f32 1.442695, %v3667_v14 }
 0xf95   : > { %12243 = vpow2.f32 %v3675_v22 }
 0xf97   : > { %v12240_v58 = vpop.eup %12239 }
 0xf98   : > { %v3683_v63 = vsel %vm1730_vm4, %v12240_v58, 0.0 }
 0xf99   : > { %3684 = vadd.xlane.f32.xlu0 %v3683_v63 }
 0xf9b   : > { %v14366_v8 = vpop.eup %12241 }
 0xf9c   : > { %v3686_v17 = vsel %vm1730_vm4, %v14366_v8, 0.0 }
 0xf9d   : > { %3687 = vadd.xlane.f32.xlu1 %v3686_v17 }
 0xf9f   : > { %v14370_v39 = vpop.eup %12243 }
 0xfa0   : > { %v3689_v13 = vsel %vm1730_vm4, %v14370_v39, 0.0 }
 0xfa1   : > { %3690 = vadd.xlane.f32.xlu0 %v3689_v13 }
 0xfae   : > { %3909 = vrot.lane.b32.xlu1 %v13766_v21, %s13035_s15 }
 0xfb2   : > { %3815 = vrot.lane.b32.xlu1 %v13797_v42, %s13034_s1 }
 0xfb6   : > { %3911 = vrot.lane.b32.xlu1 %v13774_v30, %s13035_s15 }
 0xfba   : > { %11816 = vrot.lane.b32.xlu1 %v13778_v33, %s13035_s15 }
 0xfbe   : > { %3913 = vrot.lane.b32.xlu1 %v13789_v36, %s13035_s15 }
 0xfc7   : > { %v3658_v17 = vpop.xlane.xlu0 %3657 }
 0xfc8   : > { %v3668_v1 = vsub.f32 %v3644_v55, %v3658_v17 }
 0xfca   : > { %v3677_v43 = vmul.f32 1.442695, %v3668_v1 }
 0xfcb   : > { %v3661_v60 = vpop.xlane.xlu0 %3660 }
 0xfcc   : > { %12245 = vpow2.f32 %v3677_v43  ;;  %v3669_v31 = vsub.f32 %v3645_v40, %v3661_v60 }
 0xfce   : > { %v3679_v38 = vmul.f32 1.442695, %v3669_v31 }
 0xfcf   : > { %v3664_v41 = vpop.xlane.xlu1 %3663  ;;  %v11807_v31 = vpop.permute.xlu0 %11806 }
 0xfd0   : > { %12247 = vpow2.f32 %v3679_v38  ;;  %v3670_v17 = vsub.f32 %v3646_v7, %v3664_v41 }
 0xfd2   : > { %v3681_v1 = vmul.f32 1.442695, %v3670_v17 }
 0xfd3   : > { %v11812_v61 = vpop.permute.xlu1 %11811 }
 0xfd4   : > { %v11814_v51 = vunpack.i.h.bf16 %v11812_v61  ;;  %v11813_v14 = vunpack.i.l.bf16 %v11812_v61  ;;  %12249 = vpow2.f32 %v3681_v1  ;;  %v15771_v1 = vmov 0.0|0.0  }
 0xfd6   : > { %v14384_v22 = vpop.eup %12245  ;;  %v11327_v63 = vpack.c.bf16 %v11814_v51, %v11813_v14  ;;  %v11809_v51 = vunpack.i.h.bf16 %v11807_v31  ;;  %v11808_v14 = vunpack.i.l.bf16 %v11807_v31 }
 0xfd7   : > { %v3692_v13 = vsel %vm1730_vm4, %v14384_v22, 0.0 }
 0xfd8   : > { %11328 = vmatpush3.bf16.msra.mxu1 %v11327_v63  ;;  %3693 = vadd.xlane.f32.xlu0 %v3692_v13  ;;  %v11330_v17 = vpack.c.bf16 %v11809_v51, %v11808_v14 }
 0xfd9   : > { %10899 = vmatprep.subr.mxu1 %v15770_v53 }
 0xfda   : > { %v14389_v55 = vpop.eup %12247 }
 0xfdb   : > { %v3695_v40 = vsel %vm1730_vm4, %v14389_v55, 0.0 }
 0xfde   : > { %v14401_v43 = vpop.eup %12249 }
 0xfdf   : > { %v3698_v60 = vsel %vm1730_vm4, %v14401_v43, 0.0 }
 0xfe2   : > { %3696 = vadd.xlane.f32.xlu1 %v3695_v40 }
 0xfee   : > { %3919 = vrot.lane.b32.xlu0 %v13757_v12, %s13035_s15 }
 0xff3   : > { %4013 = vrot.lane.b32.xlu1 %v13801_v44, %s13035_s15 }
 0xff7   : > { %4017 = vrot.lane.b32.xlu1 %v13810_v46, %s13035_s15 }
 0xffb   : > { %11821 = vrot.lane.b32.xlu1 %v13878_v20, %s13035_s15 }
0x100d   : > { %3699 = vadd.xlane.f32.xlu0 %v3698_v60 }
0x1023   : > { %4023 = vrot.lane.b32.xlu0 %v13791_v37, %s13035_s15 }
0x1026   : > { %v3685_v38 = vpop.xlane.xlu0 %3684 }
0x1027   : > { %12251 = vrcp.f32 %v3685_v38  ;;  %4015 = vrot.lane.b32.xlu0 %v13804_v45, %s13035_s15 }
0x102a   : > { %v3688_v7 = vpop.xlane.xlu1 %3687 }
0x102b   : > { %12253 = vrcp.f32 %v3688_v7  ;;  %4199 = vrot.lane.b32.xlu0 %v13772_v28, %s13035_s15 }
0x102e   : > { %v3910_v41 = vpop.permute.xlu1 %3909  ;;  %v3691_v61 = vpop.xlane.xlu0 %3690 }
0x102f   : > { %12255 = vrcp.f32 %v3691_v61 }
0x1031   : > { %v12252_v63 = vpop.eup %12251 }
0x1032   : > { %v3707_v13 = vmul.f32 %v12252_v63, %v12240_v58  ;;  %v3816_v40 = vpop.permute.xlu1 %3815 }
0x1033   : > { %10900 = vmatpush3.msra.mxu1 %v3816_v40 }
0x1034   : > { %10887 = vmatmul.mubr.msk.f32.vlgmr.msra.gmra.mrb[60].mxu0 %vm1730_vm4, %v3707_v13  ;;  %11333 = vmatprep.subr.bf16.mxu1 %v15771_v1 }
0x1035   : > { %v12254_v60 = vpop.eup %12253  ;;  %11332 = vmatpush3.bf16.xpose.msk.msra.mxu0 %vm13742_vm3, %v11330_v17  ;;  %10889 = vmatprep.mubr.msk.f32.mxu0 %vm13029_vm1, %v15770_v53 }
0x1036   : > { %v3708_v38 = vmul.f32 %v12254_v60, %v14366_v8  ;;  %10914 = vmatprep.subr.mxu0 %v15770_v53  ;;  %v3912_v7 = vpop.permute.xlu1 %3911 }
0x1038   : > { %10890 = vmatmul.mubr.msk.f32.gmra.mrb[62].mxu0 %vm1730_vm4, %v3708_v38 }
0x1039   : > { %v12256_v58 = vpop.eup %12255  ;;  %10892 = vmatprep.mubr.msk.f32.mxu0 %vm13029_vm1, %v15770_v53 }
0x103a   : > { %v3709_v31 = vmul.f32 %v12256_v58, %v14370_v39  ;;  %v11817_v61 = vpop.permute.xlu1 %11816 }
0x103b   : > { %v11819_v63 = vunpack.i.h.bf16 %v11817_v61  ;;  %v11818_v13 = vunpack.i.l.bf16 %v11817_v61 }
0x103c   : > { %10893 = vmatmul.mubr.msk.f32.gmra.mrb[64].mxu0 %vm1730_vm4, %v3709_v31 }
0x103d   : > { %10916 = vmatprep.mubr.msk.f32.mxu0 %vm13029_vm1, %v15770_v53  ;;  %v11334_v60 = vpack.c.bf16 %v11819_v63, %v11818_v13 }
0x103e   : > { %v3914_v14 = vpop.permute.xlu1 %3913 }
0x1065   : > { %v3694_v51 = vpop.xlane.xlu0 %3693 }
0x1066   : > { %12257 = vrcp.f32 %v3694_v51 }
0x1069   : > { %v3920_v8 = vpop.permute.xlu0 %3919 }
0x106a   : > { %10915 = vmatpush3.xpose.msk.msra.mxu0 %vm1509_vm2, %v3920_v8 }
0x106b   : > { %11337 = vmatprep.subr.bf16.mxu0 %v15771_v1 }
0x106d   : > { %10917 = vmatmul.mubr.msk.f32.vlgmr.msra.gmra.mrb[66].mxu0 %vm1509_vm2, %v3910_v41 }
0x106e   : > { %10919 = vmatprep.mubr.msk.f32.mxu0 %vm13029_vm1, %v15770_v53 }
0x106f   : > { %v3697_v39 = vpop.xlane.xlu1 %3696 }
0x1070   : > { %v12258_v40 = vpop.eup %12257  ;;  %12259 = vrcp.f32 %v3697_v39 }
0x1071   : > { %v3710_v17 = vmul.f32 %v12258_v40, %v14384_v22  ;;  %10920 = vmatmul.mubr.msk.f32.gmra.mrb[68].mxu0 %vm1509_vm2, %v3912_v7 }
0x1072   : > { %10922 = vmatprep.mubr.msk.f32.mxu0 %vm13029_vm1, %v15770_v53 }
0x1073   : > { %v4014_v38 = vpop.permute.xlu1 %4013  ;;  %10902 = vmatmul.mubr.msk.f32.vlgmr.msra.gmra.mrb[72].mxu1 %vm1730_vm4, %v3710_v17 }
0x1074   : > { %11336 = vmatpush3.bf16.xpose.msk.msra.mxu1 %vm13742_vm3, %v11334_v60  ;;  %10904 = vmatprep.mubr.msk.f32.mxu1 %vm13029_vm1, %v15770_v53 }
0x1075   : > { %10923 = vmatmul.mubr.msk.f32.gmra.mrb[70].mxu0 %vm1509_vm2, %v3914_v14  ;;  %10929 = vmatprep.subr.mxu1 %v15770_v53 }
0x1076   : > { %10946 = vmatprep.mubr.msk.f32.mxu0 %vm13029_vm1, %v15770_v53 }
0x1077   : > { %v4018_v22 = vpop.permute.xlu1 %4017 }
0x107a   : > { %v12260_v41 = vpop.eup %12259 }
0x107b   : > { %v11822_v58 = vpop.permute.xlu1 %11821  ;;  %v3711_v31 = vmul.f32 %v12260_v41, %v14389_v55 }
0x107c   : > { %v11824_v7 = vunpack.i.h.bf16 %v11822_v58  ;;  %v11823_v61 = vunpack.i.l.bf16 %v11822_v58 }
0x107d   : > { %10905 = vmatmul.mubr.msk.f32.gmra.mrb[74].mxu1 %vm1730_vm4, %v3711_v31 }
0x107e   : > { %v11338_v51 = vpack.c.bf16 %v11824_v7, %v11823_v61  ;;  %10907 = vmatprep.mubr.msk.f32.mxu1 %vm13029_vm1, %v15770_v53 }
0x1080   : > { %11339 = vmatpush3.bf16.msra.mxu0 %v11338_v51 }
0x1081   : > { %10944 = vmatprep.subr.mxu0 %v15770_v53 }
0x109a   : > { %v3700_v8 = vpop.xlane.xlu0 %3699 }
0x109b   : > { %12261 = vrcp.f32 %v3700_v8 }
0x109e   : > { %v4024_v14 = vpop.permute.xlu0 %4023 }
0x109f   : > { %10930 = vmatpush3.xpose.msk.msra.mxu1 %vm1509_vm2, %v4024_v14 }
0x10a0   : > { %11340 = vmatprep.subr.bf16.mxu1 %v15771_v1 }
0x10a2   : > { %v4016_v63 = vpop.permute.xlu0 %4015 }
0x10a5   : > { %v12262_v55 = vpop.eup %12261 }
0x10a6   : > { %v4200_v13 = vpop.permute.xlu0 %4199  ;;  %v3712_v39 = vmul.f32 %v12262_v55, %v14401_v43 }
0x10a7   : > { %10945 = vmatpush3.msra.mxu0 %v4200_v13 }
0x10a8   : > { %10908 = vmatmul.mubr.msk.f32.gmra.mrb[76].mxu1 %vm1730_vm4, %v3712_v39  ;;  %11343 = vmatprep.subr.bf16.mxu0 %v15771_v1 }
0x10a9   : > { %10931 = vmatprep.mubr.msk.f32.mxu1 %vm13029_vm1, %v15770_v53 }
0x10ac   : > { %10932 = vmatmul.mubr.msk.f32.vlgmr.msra.gmra.mrb[78].mxu1 %vm1509_vm2, %v4014_v38 }
0x10ad   : > { %10934 = vmatprep.mubr.msk.f32.mxu1 %vm13029_vm1, %v15770_v53 }
0x10b0   : > { %10935 = vmatmul.mubr.msk.f32.gmra.mrb[80].mxu1 %vm1509_vm2, %v4016_v63 }
0x10b1   : > { %10937 = vmatprep.mubr.msk.f32.mxu1 %vm13029_vm1, %v15770_v53 }
0x10b4   : > { %10938 = vmatmul.mubr.msk.f32.gmra.mrb[82].mxu1 %vm1509_vm2, %v4018_v22 }
0x10b5   : > { %10961 = vmatprep.mubr.msk.f32.mxu1 %vm13029_vm1, %v15770_v53 }
0x1107   : > { %v14465_v43 = vpop.f32.mrb[60].mxu0 }
0x1108   : > { %v10888_v40 = vpop.f32.mrb[61].mxu0 }
0x110b   : > { %v14467_v17 = vpop.f32.mrb[62].mxu0 }
0x110c   : > { %v10891_v38 = vpop.f32.mrb[63].mxu0 }
0x110f   : > { %v14471_v41 = vpop.f32.mrb[64].mxu0 }
0x1110   : > { %v10894_v58 = vpop.f32.mrb[65].mxu0 }
0x1140   : > { %v3999_v31 = vpop.f32.mrb[66].mxu0 }
0x1141   : > { %v4117_v7 = vmul.f32 0.25, %v3999_v31  ;;  %v10918_v61 = vpop.f32.mrb[67].mxu0 }
0x1143   : > { %v4123_v22 = vadd.f32 %v14201_v9, %v4117_v7 }
0x1144   : > { %v4004_v51 = vpop.f32.mrb[68].mxu0 }
0x1145   : > { %v4118_v8 = vmul.f32 0.25, %v4004_v51  ;;  %v10921_v14 = vpop.f32.mrb[69].mxu0  ;;  %v4129_v63 = vsel %vm1730_vm4, %v4123_v22, -inf }
0x1146   : > { %v14475_v55 = vpop.f32.mrb[72].mxu1  ;;  %4130 = vmax.xlane.f32.xlu0 %v4129_v63 }
0x1147   : > { %v4124_v13 = vadd.f32 %v14201_v9, %v4118_v8  ;;  %v10903_v40 = vpop.f32.mrb[73].mxu1 }
0x1148   : > { %v4009_v38 = vpop.f32.mrb[70].mxu0 }
0x1149   : > { %v4119_v58 = vmul.f32 0.25, %v4009_v38  ;;  %v10924_v31 = vpop.f32.mrb[71].mxu0  ;;  %v4132_v61 = vsel %vm1730_vm4, %v4124_v13, -inf }
0x114a   : > { %4133 = vmax.xlane.f32.xlu1 %v4132_v61 }
0x114b   : > { %v4125_v7 = vadd.f32 %v14201_v9, %v4119_v58 }
0x114d   : > { %v4135_v51 = vsel %vm1730_vm4, %v4125_v7, -inf }
0x114e   : > { %4136 = vmax.xlane.f32.xlu0 %v4135_v51 }
0x1150   : > { %v14483_v14 = vpop.f32.mrb[74].mxu1 }
0x1151   : > { %15772 = vst [vmem:[#allocation59_spill] sm:$0xff] %v14483_v14  ;;  %v10906_v63 = vpop.f32.mrb[75].mxu1 }
0x117b   : > { %v14485_v60 = vpop.f32.mrb[76].mxu1 }
0x117c   : > { %15773 = vst [vmem:[#allocation60_spill] sm:$0xff] %v14485_v60  ;;  %v10909_v40 = vpop.f32.mrb[77].mxu1 }
0x117f   : > { %v4103_v39 = vpop.f32.mrb[78].mxu1 }
0x1180   : > { %v4120_v38 = vmul.f32 0.25, %v4103_v39  ;;  %v10933_v31 = vpop.f32.mrb[79].mxu1 }
0x1182   : > { %v4126_v59 = vadd.f32 %v14219_v62, %v4120_v38 }
0x1183   : > { %v4108_v61 = vpop.f32.mrb[80].mxu1 }
0x1184   : > { %v4121_v54 = vmul.f32 0.25, %v4108_v61  ;;  %v10936_v9 = vpop.f32.mrb[81].mxu1  ;;  %v4138_v58 = vsel %vm1730_vm4, %v4126_v59, -inf }
0x1185   : > { %4139 = vmax.xlane.f32.xlu0 %v4138_v58 }
0x1186   : > { %v4127_v51 = vadd.f32 %v14219_v62, %v4121_v54 }
0x1187   : > { %v4113_v63 = vpop.f32.mrb[82].mxu1 }
0x1188   : > { %v4122_v5 = vmul.f32 0.25, %v4113_v63  ;;  %v10939_v57 = vpop.f32.mrb[83].mxu1  ;;  %v4141_v56 = vsel %vm1730_vm4, %v4127_v51, -inf }
0x1189   : > { %4142 = vmax.xlane.f32.xlu0 %v4141_v56 }
0x118a   : > { %v4128_v40 = vadd.f32 %v14219_v62, %v4122_v5 }
0x118c   : > { %v4144_v39 = vsel %vm1730_vm4, %v4128_v40, -inf }
0x118d   : > { %4145 = vmax.xlane.f32.xlu1 %v4144_v39 }
0x119e   : > { %11831 = vrot.lane.b32.xlu1 %v13820_v48, %s13035_s15 }
0x119f   : > { %11826 = vrot.lane.b32.xlu0 %v13747_v3, %s13036_s25 }
0x11d3   : > { %v4131_v38 = vpop.xlane.xlu0 %4130 }
0x11d4   : > { %v4147_v54 = vsub.f32 %v4123_v22, %v4131_v38 }
0x11d6   : > { %v4153_v31 = vmul.f32 1.442695, %v4147_v54 }
0x11d7   : > { %v4134_v61 = vpop.xlane.xlu1 %4133 }
0x11d8   : > { %12263 = vpow2.f32 %v4153_v31  ;;  %v4148_v57 = vsub.f32 %v4124_v13, %v4134_v61 }
0x11da   : > { %v4155_v9 = vmul.f32 1.442695, %v4148_v57 }
0x11db   : > { %v4137_v56 = vpop.xlane.xlu0 %4136 }
0x11dc   : > { %12265 = vpow2.f32 %v4155_v9  ;;  %v4149_v5 = vsub.f32 %v4125_v7, %v4137_v56 }
0x11de   : > { %v4157_v62 = vmul.f32 1.442695, %v4149_v5 }
0x11e0   : > { %12267 = vpow2.f32 %v4157_v62 }
0x11e2   : > { %v12264_v58 = vpop.eup %12263 }
0x11e3   : > { %v4165_v63 = vsel %vm1730_vm4, %v12264_v58, 0.0 }
0x11e4   : > { %4166 = vadd.xlane.f32.xlu0 %v4165_v63 }
0x11e6   : > { %v14500_v39 = vpop.eup %12265 }
0x11e7   : > { %v4168_v8 = vsel %vm1730_vm4, %v14500_v39, 0.0 }
0x11e8   : > { %4169 = vadd.xlane.f32.xlu1 %v4168_v8 }
0x11ea   : > { %v14504_v22 = vpop.eup %12267 }
0x11eb   : > { %v4171_v13 = vsel %vm1730_vm4, %v14504_v22, 0.0 }
0x11ec   : > { %4172 = vadd.xlane.f32.xlu0 %v4171_v13 }
0x11f9   : > { %4391 = vrot.lane.b32.xlu1 %v13766_v21, %s13036_s25 }
0x11fd   : > { %4297 = vrot.lane.b32.xlu1 %v13797_v42, %s13035_s15 }
0x1201   : > { %4393 = vrot.lane.b32.xlu1 %v13774_v30, %s13036_s25 }
0x1205   : > { %11836 = vrot.lane.b32.xlu1 %v13778_v33, %s13036_s25 }
0x1209   : > { %4395 = vrot.lane.b32.xlu1 %v13789_v36, %s13036_s25 }
0x1212   : > { %v4140_v7 = vpop.xlane.xlu0 %4139 }
0x1213   : > { %v4150_v8 = vsub.f32 %v4126_v59, %v4140_v7 }
0x1215   : > { %v4159_v38 = vmul.f32 1.442695, %v4150_v8 }
0x1216   : > { %v4143_v54 = vpop.xlane.xlu0 %4142 }
0x1217   : > { %12269 = vpow2.f32 %v4159_v38  ;;  %v4151_v31 = vsub.f32 %v4127_v51, %v4143_v54 }
0x1219   : > { %v4161_v57 = vmul.f32 1.442695, %v4151_v31 }
0x121a   : > { %v4146_v61 = vpop.xlane.xlu1 %4145  ;;  %v11827_v31 = vpop.permute.xlu0 %11826 }
0x121b   : > { %12271 = vpow2.f32 %v4161_v57  ;;  %v4152_v7 = vsub.f32 %v4128_v40, %v4146_v61 }
0x121d   : > { %v4163_v8 = vmul.f32 1.442695, %v4152_v7 }
0x121e   : > { %v11832_v9 = vpop.permute.xlu1 %11831 }
0x121f   : > { %v11834_v56 = vunpack.i.h.bf16 %v11832_v9  ;;  %v11833_v5 = vunpack.i.l.bf16 %v11832_v9  ;;  %12273 = vpow2.f32 %v4163_v8 }
0x1221   : > { %v14518_v62 = vpop.eup %12269  ;;  %v11341_v63 = vpack.c.bf16 %v11834_v56, %v11833_v5  ;;  %v11829_v56 = vunpack.i.h.bf16 %v11827_v31  ;;  %v11828_v5 = vunpack.i.l.bf16 %v11827_v31 }
0x1222   : > { %v4174_v13 = vsel %vm1730_vm4, %v14518_v62, 0.0 }
0x1223   : > { %11342 = vmatpush3.bf16.msra.mxu1 %v11341_v63  ;;  %4175 = vadd.xlane.f32.xlu0 %v4174_v13  ;;  %v11344_v7 = vpack.c.bf16 %v11829_v56, %v11828_v5 }
0x1224   : > { %10959 = vmatprep.subr.mxu1 %v15770_v53 }
0x1225   : > { %v14523_v59 = vpop.eup %12271 }
0x1226   : > { %v4177_v51 = vsel %vm1730_vm4, %v14523_v59, 0.0 }
0x1229   : > { %v14535_v38 = vpop.eup %12273 }
0x122a   : > { %v4180_v54 = vsel %vm1730_vm4, %v14535_v38, 0.0 }
0x122d   : > { %4178 = vadd.xlane.f32.xlu1 %v4177_v51 }
0x1239   : > { %4401 = vrot.lane.b32.xlu0 %v13757_v12, %s13036_s25 }
0x123e   : > { %4495 = vrot.lane.b32.xlu1 %v13801_v44, %s13036_s25 }
0x1242   : > { %4499 = vrot.lane.b32.xlu1 %v13810_v46, %s13036_s25 }
0x1246   : > { %11841 = vrot.lane.b32.xlu1 %v13878_v20, %s13036_s25 }
0x1258   : > { %4181 = vadd.xlane.f32.xlu0 %v4180_v54 }
0x126e   : > { %4505 = vrot.lane.b32.xlu0 %v13791_v37, %s13036_s25 }
0x1271   : > { %v4167_v57 = vpop.xlane.xlu0 %4166 }
0x1272   : > { %12275 = vrcp.f32 %v4167_v57  ;;  %4497 = vrot.lane.b32.xlu0 %v13804_v45, %s13036_s25 }
0x1275   : > { %v4170_v40 = vpop.xlane.xlu1 %4169 }
0x1276   : > { %12277 = vrcp.f32 %v4170_v40  ;;  %4681 = vrot.lane.b32.xlu0 %v13772_v28, %s13036_s25 }
0x1279   : > { %v4392_v61 = vpop.permute.xlu1 %4391  ;;  %v4173_v9 = vpop.xlane.xlu0 %4172 }
0x127a   : > { %12279 = vrcp.f32 %v4173_v9 }
0x127c   : > { %v12276_v63 = vpop.eup %12275 }
0x127d   : > { %v4189_v13 = vmul.f32 %v12276_v63, %v12264_v58  ;;  %v4298_v51 = vpop.permute.xlu1 %4297 }
0x127e   : > { %10960 = vmatpush3.msra.mxu1 %v4298_v51 }
0x127f   : > { %10947 = vmatmul.mubr.msk.f32.vlgmr.msra.gmra.mrb[72].mxu0 %vm1730_vm4, %v4189_v13  ;;  %11347 = vmatprep.subr.bf16.mxu1 %v15771_v1 }
0x1280   : > { %v12278_v8 = vpop.eup %12277  ;;  %11346 = vmatpush3.bf16.xpose.msk.msra.mxu0 %vm13742_vm3, %v11344_v7  ;;  %10949 = vmatprep.mubr.msk.f32.mxu0 %vm13029_vm1, %v15770_v53 }
0x1281   : > { %v4190_v54 = vmul.f32 %v12278_v8, %v14500_v39  ;;  %10974 = vmatprep.subr.mxu0 %v15770_v53  ;;  %v4394_v57 = vpop.permute.xlu1 %4393 }
0x1283   : > { %10950 = vmatmul.mubr.msk.f32.gmra.mrb[74].mxu0 %vm1730_vm4, %v4190_v54 }
0x1284   : > { %v12280_v58 = vpop.eup %12279  ;;  %10952 = vmatprep.mubr.msk.f32.mxu0 %vm13029_vm1, %v15770_v53 }
0x1285   : > { %v4191_v31 = vmul.f32 %v12280_v58, %v14504_v22  ;;  %v11837_v40 = vpop.permute.xlu1 %11836 }
0x1286   : > { %v11839_v5 = vunpack.i.h.bf16 %v11837_v40  ;;  %v11838_v63 = vunpack.i.l.bf16 %v11837_v40 }
0x1287   : > { %10953 = vmatmul.mubr.msk.f32.gmra.mrb[76].mxu0 %vm1730_vm4, %v4191_v31 }
0x1288   : > { %10976 = vmatprep.mubr.msk.f32.mxu0 %vm13029_vm1, %v15770_v53  ;;  %v11348_v7 = vpack.c.bf16 %v11839_v5, %v11838_v63 }
0x1289   : > { %v4396_v56 = vpop.permute.xlu1 %4395 }
0x12b0   : > { %v4176_v9 = vpop.xlane.xlu0 %4175 }
0x12b1   : > { %12281 = vrcp.f32 %v4176_v9 }
0x12b4   : > { %v4402_v39 = vpop.permute.xlu0 %4401 }
0x12b5   : > { %10975 = vmatpush3.xpose.msk.msra.mxu0 %vm1509_vm2, %v4402_v39 }
0x12b6   : > { %11351 = vmatprep.subr.bf16.mxu0 %v15771_v1 }
0x12b8   : > { %10977 = vmatmul.mubr.msk.f32.vlgmr.msra.gmra.mrb[78].mxu0 %vm1509_vm2, %v4392_v61 }
0x12b9   : > { %10979 = vmatprep.mubr.msk.f32.mxu0 %vm13029_vm1, %v15770_v53 }
0x12ba   : > { %v4179_v22 = vpop.xlane.xlu1 %4178 }
0x12bb   : > { %v12282_v13 = vpop.eup %12281  ;;  %12283 = vrcp.f32 %v4179_v22 }
0x12bc   : > { %v4192_v51 = vmul.f32 %v12282_v13, %v14518_v62  ;;  %10980 = vmatmul.mubr.msk.f32.gmra.mrb[80].mxu0 %vm1509_vm2, %v4394_v57 }
0x12bd   : > { %10982 = vmatprep.mubr.msk.f32.mxu0 %vm13029_vm1, %v15770_v53 }
0x12be   : > { %v4496_v8 = vpop.permute.xlu1 %4495  ;;  %10962 = vmatmul.mubr.msk.f32.vlgmr.msra.gmra.mrb[84].mxu1 %vm1730_vm4, %v4192_v51 }
0x12bf   : > { %11350 = vmatpush3.bf16.xpose.msk.msra.mxu1 %vm13742_vm3, %v11348_v7  ;;  %10964 = vmatprep.mubr.msk.f32.mxu1 %vm13029_vm1, %v15770_v53 }
0x12c0   : > { %10983 = vmatmul.mubr.msk.f32.gmra.mrb[82].mxu0 %vm1509_vm2, %v4396_v56  ;;  %10989 = vmatprep.subr.mxu1 %v15770_v53 }
0x12c1   : > { %11006 = vmatprep.mubr.msk.f32.mxu0 %vm13029_vm1, %v15770_v53 }
0x12c2   : > { %v4500_v62 = vpop.permute.xlu1 %4499 }
0x12c5   : > { %v12284_v61 = vpop.eup %12283 }
0x12c6   : > { %v11842_v54 = vpop.permute.xlu1 %11841  ;;  %v4193_v58 = vmul.f32 %v12284_v61, %v14523_v59 }
0x12c7   : > { %v11844_v31 = vunpack.i.h.bf16 %v11842_v54  ;;  %v11843_v57 = vunpack.i.l.bf16 %v11842_v54 }
0x12c8   : > { %10965 = vmatmul.mubr.msk.f32.gmra.mrb[86].mxu1 %vm1730_vm4, %v4193_v58 }
0x12c9   : > { %v11352_v40 = vpack.c.bf16 %v11844_v31, %v11843_v57  ;;  %10967 = vmatprep.mubr.msk.f32.mxu1 %vm13029_vm1, %v15770_v53  ;;  %v14607_v57 = vld [vmem:[#allocation3] ss:$0 sm:$0xff] }
0x12cb   : > { %11353 = vmatpush3.bf16.msra.mxu0 %v11352_v40 }
0x12cc   : > { %11004 = vmatprep.subr.mxu0 %v15770_v53 }
0x12e5   : > { %v4182_v9 = vpop.xlane.xlu0 %4181 }
0x12e6   : > { %12285 = vrcp.f32 %v4182_v9 }
0x12e9   : > { %v4506_v39 = vpop.permute.xlu0 %4505 }
0x12ea   : > { %10990 = vmatpush3.xpose.msk.msra.mxu1 %vm1509_vm2, %v4506_v39 }
0x12eb   : > { %11354 = vmatprep.subr.bf16.mxu1 %v15771_v1 }
0x12ed   : > { %v4498_v56 = vpop.permute.xlu0 %4497 }
0x12f0   : > { %v12286_v59 = vpop.eup %12285 }
0x12f1   : > { %v4682_v5 = vpop.permute.xlu0 %4681  ;;  %v4194_v63 = vmul.f32 %v12286_v59, %v14535_v38 }
0x12f2   : > { %11005 = vmatpush3.msra.mxu0 %v4682_v5 }
0x12f3   : > { %10968 = vmatmul.mubr.msk.f32.gmra.mrb[88].mxu1 %vm1730_vm4, %v4194_v63  ;;  %11357 = vmatprep.subr.bf16.mxu0 %v15771_v1 }
0x12f4   : > { %10991 = vmatprep.mubr.msk.f32.mxu1 %vm13029_vm1, %v15770_v53 }
0x12f7   : > { %10992 = vmatmul.mubr.msk.f32.vlgmr.msra.gmra.mrb[90].mxu1 %vm1509_vm2, %v4496_v8 }
0x12f8   : > { %10994 = vmatprep.mubr.msk.f32.mxu1 %vm13029_vm1, %v15770_v53 }
0x12fb   : > { %10995 = vmatmul.mubr.msk.f32.gmra.mrb[92].mxu1 %vm1509_vm2, %v4498_v56 }
0x12fc   : > { %10997 = vmatprep.mubr.msk.f32.mxu1 %vm13029_vm1, %v15770_v53 }
0x12ff   : > { %10998 = vmatmul.mubr.msk.f32.gmra.mrb[94].mxu1 %vm1509_vm2, %v4500_v62 }
0x1300   : > { %11021 = vmatprep.mubr.msk.f32.mxu1 %vm13029_vm1, %v15770_v53 }
0x1352   : > { %v14599_v38 = vpop.f32.mrb[72].mxu0 }
0x1353   : > { %v10948_v22 = vpop.f32.mrb[73].mxu0 }
0x1356   : > { %v14601_v13 = vpop.f32.mrb[74].mxu0 }
0x1357   : > { %v10951_v7 = vpop.f32.mrb[75].mxu0 }
0x135a   : > { %v14605_v8 = vpop.f32.mrb[76].mxu0 }
0x135b   : > { %v10954_v61 = vpop.f32.mrb[77].mxu0 }
0x138b   : > { %v4481_v54 = vpop.f32.mrb[78].mxu0 }
0x138c   : > { %v4599_v58 = vmul.f32 0.25, %v4481_v54  ;;  %v10978_v31 = vpop.f32.mrb[79].mxu0 }
0x138e   : > { %v4605_v62 = vadd.f32 %v14607_v57, %v4599_v58 }
0x138f   : > { %v4486_v40 = vpop.f32.mrb[80].mxu0 }
0x1390   : > { %v4600_v9 = vmul.f32 0.25, %v4486_v40  ;;  %v10981_v39 = vpop.f32.mrb[81].mxu0  ;;  %v4611_v56 = vsel %vm1730_vm4, %v4605_v62, -inf }
0x1391   : > { %v14611_v59 = vpop.f32.mrb[84].mxu1  ;;  %4612 = vmax.xlane.f32.xlu0 %v4611_v56 }
0x1392   : > { %v4606_v5 = vadd.f32 %v14607_v57, %v4600_v9  ;;  %v10963_v22 = vpop.f32.mrb[85].mxu1 }
0x1393   : > { %v4491_v7 = vpop.f32.mrb[82].mxu0 }
0x1394   : > { %v4601_v61 = vmul.f32 0.25, %v4491_v7  ;;  %v10984_v54 = vpop.f32.mrb[83].mxu0  ;;  %v4614_v31 = vsel %vm1730_vm4, %v4606_v5, -inf }
0x1395   : > { %4615 = vmax.xlane.f32.xlu1 %v4614_v31 }
0x1396   : > { %v4607_v58 = vadd.f32 %v14607_v57, %v4601_v61 }
0x1398   : > { %v4617_v40 = vsel %vm1730_vm4, %v4607_v58, -inf }
0x1399   : > { %4618 = vmax.xlane.f32.xlu0 %v4617_v40 }
0x139b   : > { %v14619_v39 = vpop.f32.mrb[86].mxu1 }
0x139c   : > { %15774 = vst [vmem:[#allocation61_spill] sm:$0xff] %v14619_v39  ;;  %v10966_v56 = vpop.f32.mrb[87].mxu1 }
0x13c6   : > { %v14621_v51 = vpop.f32.mrb[88].mxu1 }
0x13c7   : > { %v10969_v22 = vpop.f32.mrb[89].mxu1 }
0x13ca   : > { %v4585_v63 = vpop.f32.mrb[90].mxu1 }
0x13cb   : > { %v4602_v7 = vmul.f32 0.25, %v4585_v63  ;;  %v10993_v54 = vpop.f32.mrb[91].mxu1 }
0x13cd   : > { %v4608_v31 = vadd.f32 %v14625_v18, %v4602_v7 }
0x13ce   : > { %v4590_v61 = vpop.f32.mrb[92].mxu1 }
0x13cf   : > { %v4603_v23 = vmul.f32 0.25, %v4590_v61  ;;  %v10996_v14 = vpop.f32.mrb[93].mxu1  ;;  %v4620_v40 = vsel %vm1730_vm4, %v4608_v31, -inf }
0x13d0   : > { %4621 = vmax.xlane.f32.xlu0 %v4620_v40 }
0x13d1   : > { %v4609_v56 = vadd.f32 %v14625_v18, %v4603_v23 }
0x13d2   : > { %v4595_v60 = vpop.f32.mrb[94].mxu1 }
0x13d3   : > { %v4604_v34 = vmul.f32 0.25, %v4595_v60  ;;  %v10999_v16 = vpop.f32.mrb[95].mxu1  ;;  %v4623_v22 = vsel %vm1730_vm4, %v4609_v56, -inf }
0x13d4   : > { %4624 = vmax.xlane.f32.xlu0 %v4623_v22 }
0x13d5   : > { %v4610_v63 = vadd.f32 %v14625_v18, %v4604_v34 }
0x13d7   : > { %v4626_v54 = vsel %vm1730_vm4, %v4610_v63, -inf }
0x13d8   : > { %4627 = vmax.xlane.f32.xlu1 %v4626_v54 }
0x13e9   : > { %11851 = vrot.lane.b32.xlu1 %v13820_v48, %s13036_s25 }
0x13ea   : > { %11846 = vrot.lane.b32.xlu0 %v13747_v3, %s13037_s27 }
0x141e   : > { %v4613_v14 = vpop.xlane.xlu0 %4612 }
0x141f   : > { %v4629_v23 = vsub.f32 %v4605_v62, %v4613_v14 }
0x1421   : > { %v4635_v7 = vmul.f32 1.442695, %v4629_v23 }
0x1422   : > { %v4616_v60 = vpop.xlane.xlu1 %4615 }
0x1423   : > { %12287 = vpow2.f32 %v4635_v7  ;;  %v4630_v16 = vsub.f32 %v4606_v5, %v4616_v60 }
0x1425   : > { %v4637_v61 = vmul.f32 1.442695, %v4630_v16 }
0x1426   : > { %v4619_v40 = vpop.xlane.xlu0 %4618 }
0x1427   : > { %12289 = vpow2.f32 %v4637_v61  ;;  %v4631_v34 = vsub.f32 %v4607_v58, %v4619_v40 }
0x1429   : > { %v4639_v22 = vmul.f32 1.442695, %v4631_v34 }
0x142b   : > { %12291 = vpow2.f32 %v4639_v22 }
0x142d   : > { %v12288_v54 = vpop.eup %12287 }
0x142e   : > { %v4647_v9 = vsel %vm1730_vm4, %v12288_v54, 0.0 }
0x142f   : > { %4648 = vadd.xlane.f32.xlu0 %v4647_v9 }
0x1431   : > { %v14638_v39 = vpop.eup %12289 }
0x1432   : > { %v4650_v3 = vsel %vm1730_vm4, %v14638_v39, 0.0 }
0x1433   : > { %4651 = vadd.xlane.f32.xlu1 %v4650_v3 }
0x1435   : > { %v14642_v62 = vpop.eup %12291 }
0x1436   : > { %v4653_v5 = vsel %vm1730_vm4, %v14642_v62, 0.0 }
0x1437   : > { %4654 = vadd.xlane.f32.xlu0 %v4653_v5 }
0x1444   : > { %4873 = vrot.lane.b32.xlu1 %v13766_v21, %s13037_s27 }
0x1448   : > { %4779 = vrot.lane.b32.xlu1 %v13797_v42, %s13036_s25 }
0x144c   : > { %4875 = vrot.lane.b32.xlu1 %v13774_v30, %s13037_s27 }
0x1450   : > { %11856 = vrot.lane.b32.xlu1 %v13778_v33, %s13037_s27 }
0x1454   : > { %4987 = vrot.lane.b32.xlu1 %v13791_v37, %s13037_s27 }
0x145d   : > { %v4622_v58 = vpop.xlane.xlu0 %4621 }
0x145e   : > { %v4632_v9 = vsub.f32 %v4608_v31, %v4622_v58 }
0x1460   : > { %v4641_v14 = vmul.f32 1.442695, %v4632_v9 }
0x1461   : > { %v4625_v23 = vpop.xlane.xlu0 %4624 }
0x1462   : > { %12293 = vpow2.f32 %v4641_v14  ;;  %v4633_v7 = vsub.f32 %v4609_v56, %v4625_v23 }
0x1464   : > { %v4643_v21 = vmul.f32 1.442695, %v4633_v7 }
0x1465   : > { %v4628_v60 = vpop.xlane.xlu1 %4627  ;;  %v11847_v58 = vpop.permute.xlu0 %11846 }
0x1466   : > { %12295 = vpow2.f32 %v4643_v21  ;;  %v4634_v56 = vsub.f32 %v4610_v63, %v4628_v60  ;;  %v11849_v9 = vunpack.i.h.bf16 %v11847_v58  ;;  %v11848_v14 = vunpack.i.l.bf16 %v11847_v58 }
0x1468   : > { %v4645_v22 = vmul.f32 1.442695, %v4634_v56  ;;  %v11358_v21 = vpack.c.bf16 %v11849_v9, %v11848_v14 }
0x1469   : > { %v11852_v16 = vpop.permute.xlu1 %11851 }
0x146a   : > { %v11854_v61 = vunpack.i.h.bf16 %v11852_v16  ;;  %v11853_v40 = vunpack.i.l.bf16 %v11852_v16  ;;  %12297 = vpow2.f32 %v4645_v22 }
0x146c   : > { %v14656_v34 = vpop.eup %12293  ;;  %v11355_v30 = vpack.c.bf16 %v11854_v61, %v11853_v40 }
0x146d   : > { %v4656_v33 = vsel %vm1730_vm4, %v14656_v34, 0.0 }
0x146e   : > { %11356 = vmatpush3.bf16.msra.mxu1 %v11355_v30  ;;  %4657 = vadd.xlane.f32.xlu0 %v4656_v33 }
0x146f   : > { %11019 = vmatprep.subr.mxu1 %v15770_v53 }
0x1470   : > { %v14661_v37 = vpop.eup %12295 }
0x1471   : > { %v4659_v31 = vsel %vm1730_vm4, %v14661_v37, 0.0 }
0x1474   : > { %v14671_v3 = vpop.eup %12297 }
0x1475   : > { %v4662_v5 = vsel %vm1730_vm4, %v14671_v3, 0.0 }
0x1478   : > { %4660 = vadd.xlane.f32.xlu1 %v4659_v31 }
0x1484   : > { %4883 = vrot.lane.b32.xlu0 %v13757_v12, %s13037_s27 }
0x1489   : > { %4977 = vrot.lane.b32.xlu1 %v13801_v44, %s13037_s27 }
0x148d   : > { %4981 = vrot.lane.b32.xlu1 %v13810_v46, %s13037_s27 }
0x14a3   : > { %4663 = vadd.xlane.f32.xlu0 %v4662_v5 }
0x14b9   : > { %4877 = vrot.lane.b32.xlu0 %v13789_v36, %s13037_s27 }
0x14bc   : > { %v4649_v12 = vpop.xlane.xlu0 %4648 }
0x14bd   : > { %12299 = vrcp.f32 %v4649_v12  ;;  %4979 = vrot.lane.b32.xlu0 %v13804_v45, %s13037_s27 }
0x14c0   : > { %v4652_v44 = vpop.xlane.xlu1 %4651 }
0x14c1   : > { %12301 = vrcp.f32 %v4652_v44 }
0x14c4   : > { %v4874_v46 = vpop.permute.xlu1 %4873  ;;  %v4655_v63 = vpop.xlane.xlu0 %4654 }
0x14c5   : > { %12303 = vrcp.f32 %v4655_v63 }
0x14c7   : > { %v12300_v23 = vpop.eup %12299 }
0x14c8   : > { %v4671_v7 = vmul.f32 %v12300_v23, %v12288_v54  ;;  %v4780_v60 = vpop.permute.xlu1 %4779 }
0x14c9   : > { %11020 = vmatpush3.msra.mxu1 %v4780_v60 }
0x14ca   : > { %11007 = vmatmul.mubr.msk.f32.vlgmr.msra.gmra.mrb[84].mxu0 %vm1730_vm4, %v4671_v7  ;;  %11361 = vmatprep.subr.bf16.mxu1 %v15771_v1 }
0x14cb   : > { %v12302_v36 = vpop.eup %12301  ;;  %11360 = vmatpush3.bf16.xpose.msk.msra.mxu0 %vm13742_vm3, %v11358_v21  ;;  %11009 = vmatprep.mubr.msk.f32.mxu0 %vm13029_vm1, %v15770_v53 }
0x14cc   : > { %v4672_v45 = vmul.f32 %v12302_v36, %v14638_v39  ;;  %11034 = vmatprep.subr.mxu0 %v15770_v53  ;;  %v4876_v61 = vpop.permute.xlu1 %4875 }
0x14ce   : > { %11010 = vmatmul.mubr.msk.f32.gmra.mrb[86].mxu0 %vm1730_vm4, %v4672_v45 }
0x14cf   : > { %v12304_v54 = vpop.eup %12303  ;;  %11012 = vmatprep.mubr.msk.f32.mxu0 %vm13029_vm1, %v15770_v53 }
0x14d0   : > { %v4673_v16 = vmul.f32 %v12304_v54, %v14642_v62  ;;  %v11857_v40 = vpop.permute.xlu1 %11856 }
0x14d1   : > { %v11859_v31 = vunpack.i.h.bf16 %v11857_v40  ;;  %v11858_v56 = vunpack.i.l.bf16 %v11857_v40 }
0x14d2   : > { %11013 = vmatmul.mubr.msk.f32.gmra.mrb[88].mxu0 %vm1730_vm4, %v4673_v16 }
0x14d3   : > { %11036 = vmatprep.mubr.msk.f32.mxu0 %vm13029_vm1, %v15770_v53  ;;  %v11362_v58 = vpack.c.bf16 %v11859_v31, %v11858_v56 }
0x14d4   : > { %v4988_v33 = vpop.permute.xlu1 %4987 }
0x14fb   : > { %v4658_v30 = vpop.xlane.xlu0 %4657 }
0x14fc   : > { %12305 = vrcp.f32 %v4658_v30 }
0x14ff   : > { %v4884_v39 = vpop.permute.xlu0 %4883 }
0x1500   : > { %11035 = vmatpush3.xpose.msk.msra.mxu0 %vm1509_vm2, %v4884_v39 }
0x1501   : > { %11365 = vmatprep.subr.bf16.mxu0 %v15771_v1 }
0x1503   : > { %11037 = vmatmul.mubr.msk.f32.vlgmr.msra.gmra.mrb[90].mxu0 %vm1509_vm2, %v4874_v46 }
0x1504   : > { %11039 = vmatprep.mubr.msk.f32.mxu0 %vm13029_vm1, %v15770_v53 }
0x1505   : > { %v4661_v62 = vpop.xlane.xlu1 %4660 }
0x1506   : > { %v12306_v22 = vpop.eup %12305  ;;  %12307 = vrcp.f32 %v4661_v62 }
0x1507   : > { %v4674_v5 = vmul.f32 %v12306_v22, %v14656_v34  ;;  %11040 = vmatmul.mubr.msk.f32.gmra.mrb[92].mxu0 %vm1509_vm2, %v4876_v61 }
0x1508   : > { %11042 = vmatprep.mubr.msk.f32.mxu0 %vm13029_vm1, %v15770_v53 }
0x1509   : > { %11022 = vmatmul.mubr.msk.f32.vlgmr.msra.gmra.mrb[96].mxu1 %vm1730_vm4, %v4674_v5 }
0x150a   : > { %11364 = vmatpush3.bf16.xpose.msk.msra.mxu1 %vm13742_vm3, %v11362_v58  ;;  %11024 = vmatprep.mubr.msk.f32.mxu1 %vm13029_vm1, %v15770_v53 }
0x150b   : > { %11049 = vmatprep.subr.mxu1 %v15770_v53 }
0x1510   : > { %v12308_v12 = vpop.eup %12307 }
0x1511   : > { %v4675_v44 = vmul.f32 %v12308_v12, %v14661_v37 }
0x1512   : > { %11050 = vmatpush3.xpose.msk.msra.mxu1 %vm1509_vm2, %v4988_v33 }
0x1513   : > { %11025 = vmatmul.mubr.msk.f32.gmra.mrb[98].mxu1 %vm1730_vm4, %v4675_v44  ;;  %11368 = vmatprep.subr.bf16.mxu1 %v15771_v1  ;;  %v4978_v1 = vpop.permute.xlu1 %4977 }
0x1514   : > { %11027 = vmatprep.mubr.msk.f32.mxu1 %vm13029_vm1, %v15770_v53 }
0x1517   : > { %v4982_v9 = vpop.permute.xlu1 %4981 }
0x1530   : > { %v4664_v34 = vpop.xlane.xlu0 %4663 }
0x1531   : > { %12309 = vrcp.f32 %v4664_v34 }
0x1534   : > { %v4878_v0 = vpop.permute.xlu0 %4877 }
0x1535   : > { %11043 = vmatmul.mubr.msk.f32.gmra.mrb[94].mxu0 %vm1509_vm2, %v4878_v0 }
0x1536   : > { %11066 = vmatprep.mubr.msk.f32.mxu0 %vm13029_vm1, %v15770_v53 }
0x1538   : > { %v4980_v63 = vpop.permute.xlu0 %4979 }
0x153b   : > { %v12310_v46 = vpop.eup %12309 }
0x153c   : > { %v4676_v37 = vmul.f32 %v12310_v46, %v14671_v3 }
0x153e   : > { %11028 = vmatmul.mubr.msk.f32.gmra.mrb[100].mxu1 %vm1730_vm4, %v4676_v37 }
0x153f   : > { %11051 = vmatprep.mubr.msk.f32.mxu1 %vm13029_vm1, %v15770_v53 }
0x1542   : > { %11052 = vmatmul.mubr.msk.f32.vlgmr.msra.gmra.mrb[102].mxu1 %vm1509_vm2, %v4978_v1 }
0x1543   : > { %11054 = vmatprep.mubr.msk.f32.mxu1 %vm13029_vm1, %v15770_v53 }
0x1546   : > { %11055 = vmatmul.mubr.msk.f32.gmra.mrb[104].mxu1 %vm1509_vm2, %v4980_v63 }
0x1547   : > { %11057 = vmatprep.mubr.msk.f32.mxu1 %vm13029_vm1, %v15770_v53 }
0x154a   : > { %11058 = vmatmul.mubr.msk.f32.gmra.mrb[106].mxu1 %vm1509_vm2, %v4982_v9 }
0x154b   : > { %11081 = vmatprep.mubr.msk.f32.mxu1 %vm13029_vm1, %v15770_v53 }
0x159d   : > { %v14731_v3 = vpop.f32.mrb[84].mxu0 }
0x159e   : > { %v11008_v14 = vpop.f32.mrb[85].mxu0 }
0x15a1   : > { %v14733_v23 = vpop.f32.mrb[86].mxu0 }
0x15a2   : > { %v11895_v7 = vpack.i.bf16 %v14733_v23, %v14731_v3  ;;  %v11011_v60 = vpop.f32.mrb[87].mxu0 }
0x15a5   : > { %v14737_v21 = vpop.f32.mrb[88].mxu0 }
0x15a6   : > { %v11014_v36 = vpop.f32.mrb[89].mxu0 }
0x15d6   : > { %v4963_v45 = vpop.f32.mrb[90].mxu0 }
0x15d7   : > { %v5081_v54 = vmul.f32 0.25, %v4963_v45  ;;  %v11038_v16 = vpop.f32.mrb[91].mxu0 }
0x15d9   : > { %v5087_v61 = vadd.f32 %v14607_v57, %v5081_v54 }
0x15da   : > { %v4968_v40 = vpop.f32.mrb[92].mxu0 }
0x15db   : > { %v5082_v30 = vmul.f32 0.25, %v4968_v40  ;;  %v11041_v39 = vpop.f32.mrb[93].mxu0  ;;  %v5093_v33 = vsel %vm1730_vm4, %v5087_v61, -inf }
0x15dc   : > { %v14741_v31 = vpop.f32.mrb[96].mxu1  ;;  %5094 = vmax.xlane.f32.xlu0 %v5093_v33 }
0x15dd   : > { %v5088_v56 = vadd.f32 %v14607_v57, %v5082_v30  ;;  %v11930_v62 = vpack.i.bf16 %v14741_v31, %v14737_v21  ;;  %v11023_v22 = vpop.f32.mrb[97].mxu1 }
0x15df   : > { %v5096_v5 = vsel %vm1730_vm4, %v5088_v56, -inf }
0x15e0   : > { %5097 = vmax.xlane.f32.xlu1 %v5096_v5 }
0x15e6   : > { %v14747_v58 = vpop.f32.mrb[98].mxu1 }
0x15e7   : > { %v11026_v12 = vpop.f32.mrb[99].mxu1 }
0x1608   : > { %v4973_v44 = vpop.f32.mrb[94].mxu0 }
0x1609   : > { %v5083_v34 = vmul.f32 0.25, %v4973_v44  ;;  %v11044_v0 = vpop.f32.mrb[95].mxu0 }
0x160b   : > { %v5089_v46 = vadd.f32 %v14607_v57, %v5083_v34 }
0x160d   : > { %v5099_v37 = vsel %vm1730_vm4, %v5089_v46, -inf }
0x160e   : > { %5100 = vmax.xlane.f32.xlu0 %v5099_v37 }
0x1611   : > { %v14751_v1 = vpop.f32.mrb[100].mxu1 }
0x1612   : > { %v11965_v63 = vpack.i.bf16 %v14751_v1, %v14747_v58  ;;  %v11029_v9 = vpop.f32.mrb[101].mxu1 }
0x1615   : > { %v5067_v14 = vpop.f32.mrb[102].mxu1 }
0x1616   : > { %v5084_v60 = vmul.f32 0.25, %v5067_v14  ;;  %v11053_v36 = vpop.f32.mrb[103].mxu1 }
0x1618   : > { %v5090_v45 = vadd.f32 %v14625_v18, %v5084_v60 }
0x1619   : > { %v5072_v54 = vpop.f32.mrb[104].mxu1 }
0x161a   : > { %v5085_v16 = vmul.f32 0.25, %v5072_v54  ;;  %v11056_v40 = vpop.f32.mrb[105].mxu1  ;;  %v5102_v30 = vsel %vm1730_vm4, %v5090_v45, -inf }
0x161b   : > { %5103 = vmax.xlane.f32.xlu0 %v5102_v30 }
0x161c   : > { %v5091_v57 = vadd.f32 %v14625_v18, %v5085_v16 }
0x161d   : > { %v5077_v39 = vpop.f32.mrb[106].mxu1 }
0x161e   : > { %v5086_v33 = vmul.f32 0.25, %v5077_v39  ;;  %v11059_v22 = vpop.f32.mrb[107].mxu1  ;;  %v5105_v5 = vsel %vm1730_vm4, %v5091_v57, -inf }
0x161f   : > { %5106 = vmax.xlane.f32.xlu0 %v5105_v5 }
0x1620   : > { %v5092_v12 = vadd.f32 %v14625_v18, %v5086_v33 }
0x1622   : > { %v5108_v44 = vsel %vm1730_vm4, %v5092_v12, -inf }
0x1623   : > { %5109 = vmax.xlane.f32.xlu1 %v5108_v44 }
0x1669   : > { %v5095_v34 = vpop.xlane.xlu0 %5094 }
0x166a   : > { %v5111_v0 = vsub.f32 %v5087_v61, %v5095_v34 }
0x166c   : > { %v5117_v37 = vmul.f32 1.442695, %v5111_v0 }
0x166d   : > { %v5098_v9 = vpop.xlane.xlu1 %5097 }
0x166e   : > { %12311 = vpow2.f32 %v5117_v37  ;;  %v5112_v14 = vsub.f32 %v5088_v56, %v5098_v9 }
0x1670   : > { %v5119_v60 = vmul.f32 1.442695, %v5112_v14 }
0x1672   : > { %12313 = vpow2.f32 %v5119_v60 }
0x1678   : > { %v12312_v36 = vpop.eup %12311 }
0x1679   : > { %v5129_v54 = vsel %vm1730_vm4, %v12312_v36, 0.0 }
0x167a   : > { %5130 = vadd.xlane.f32.xlu0 %v5129_v54  ;;  %v15776_v54 = vpack.i.bf16 %v14195_v4, %v14193_v27  ;;  %v15784_v27 = vpack.i.bf16 %v14475_v55, %v14471_v41 }
0x167c   : > { %v14762_v16 = vpop.eup %12313 }
0x167d   : > { %v5132_v18 = vsel %vm1730_vm4, %v14762_v16, 0.0 }
0x167e   : > { %5133 = vadd.xlane.f32.xlu1 %v5132_v18  ;;  %v15777_v18 = vpack.i.bf16 %v14069_v2, %v14065_v49  ;;  %v15782_v49 = vpack.i.bf16 %v14205_v6, %v14199_v15  ;;  %v15783_v2 = vpack.i.bf16 %v14341_v47, %v14337_v19 }
0x168f   : > { %5163 = vrot.lane.b32.xlu1 %v13772_v28, %s13037_s27 }
0x1690   : > { %11861 = vrot.lane.b32.xlu0 %v13878_v20, %s13037_s27 }
0x169b   : > { %v5101_v61 = vpop.xlane.xlu0 %5100 }
0x169c   : > { %v5113_v56 = vsub.f32 %v5089_v46, %v5101_v61 }
0x169e   : > { %v5121_v40 = vmul.f32 1.442695, %v5113_v56 }
0x16a0   : > { %12315 = vpow2.f32 %v5121_v40 }
0x16a8   : > { %v5104_v30 = vpop.xlane.xlu0 %5103 }
0x16a9   : > { %v5114_v39 = vsub.f32 %v5090_v45, %v5104_v30 }
0x16aa   : > { %v14770_v33 = vpop.eup %12315 }
0x16ab   : > { %v5123_v22 = vmul.f32 1.442695, %v5114_v39  ;;  %v5135_v34 = vsel %vm1730_vm4, %v14770_v33, 0.0 }
0x16ac   : > { %v5107_v5 = vpop.xlane.xlu0 %5106 }
0x16ad   : > { %12317 = vpow2.f32 %v5123_v22  ;;  %v5115_v44 = vsub.f32 %v5091_v57, %v5107_v5 }
0x16af   : > { %v5125_v0 = vmul.f32 1.442695, %v5115_v44  ;;  %5136 = vadd.xlane.f32.xlu0 %v5135_v34 }
0x16b0   : > { %v5110_v28 = vpop.xlane.xlu1 %5109 }
0x16b1   : > { %12319 = vpow2.f32 %v5125_v0  ;;  %v5116_v20 = vsub.f32 %v5092_v12, %v5110_v28  ;;  %v15775_v12 = vpack.i.bf16 %v14061_v32, %v14059_v24  ;;  %v15780_v24 = vpack.i.bf16 %v14467_v17, %v14465_v43 }
0x16b2   : > { %v15781_v32 = vpack.i.bf16 %v14601_v13, %v14599_v38 }
0x16b3   : > { %v5127_v37 = vmul.f32 1.442695, %v5116_v20 }
0x16b5   : > { %12321 = vpow2.f32 %v5127_v37 }
0x16b7   : > { %v14774_v46 = vpop.eup %12317 }
0x16b8   : > { %v5138_v45 = vsel %vm1730_vm4, %v14774_v46, 0.0 }
0x16b9   : > { %5139 = vadd.xlane.f32.xlu1 %v5138_v45  ;;  %v15785_v45 = vmov 0  }
0x16bb   : > { %v14778_v9 = vpop.eup %12319 }
0x16bc   : > { %v5141_v57 = vsel %vm1730_vm4, %v14778_v9, 0.0 }
0x16bd   : > { %5142 = vadd.xlane.f32.xlu1 %v5141_v57 }
0x16bf   : > { %v14782_v14 = vpop.eup %12321 }
0x16c0   : > { %v5144_v60 = vsel %vm1730_vm4, %v14782_v14, 0.0 }
0x16c1   : > { %5145 = vadd.xlane.f32.xlu1 %v5144_v60 }
0x16c5   : > { %11866 = vrot.lane.b32.xlu0 %v13820_v48, %s13037_s27  ;;  %v15778_v48 = vpack.i.bf16 %v14333_v50, %v14331_v35 }
0x16c9   : > { %5261 = vrot.lane.b32.xlu0 %v13797_v42, %s13037_s27  ;;  %v15779_v42 = vpack.i.bf16 %v14215_v11, %v14213_v10 }
0x16cd   : > { %11871 = vrot.lane.b32.xlu0 %v15775_v12, %s13037_s27 }
0x16d1   : > { %11876 = vrot.lane.b32.xlu0 %v15776_v54, %s13036_s25 }
0x16d2   : > { %11901 = vrot.lane.b32.xlu1 %v15777_v18, %s13037_s27 }
0x16d5   : > { %11881 = vrot.lane.b32.xlu0 %v15778_v48, %s13035_s15 }
0x16d6   : > { %11941 = vrot.lane.b32.xlu1 %v15779_v42, %s13036_s25 }
0x16d9   : > { %11886 = vrot.lane.b32.xlu0 %v15780_v24, %s13034_s1  ;;  %v12007_v24 = vld [vmem:[%s5576_s19] sm:$0xff]  }
0x16dd   : > { %11891 = vrot.lane.b32.xlu0 %v15781_v32, %s13033_s10  ;;  %v12008_v32 = vld [vmem:[%s5576_s19 + $0x8] sm:$0xff]  }
0x16e1   : > { %11896 = vrot.lane.b32.xlu0 %v11895_v7, %s13032_s2 }
0x16e5   : > { %11906 = vrot.lane.b32.xlu0 %v15782_v49, %s13036_s25  ;;  %v12009_v49 = vld [vmem:[%s5576_s19 + $0x10] sm:$0xff]  }
0x16e9   : > { %11911 = vrot.lane.b32.xlu0 %v15783_v2, %s13035_s15  ;;  %v12012_v2 = vld [vmem:[%s5576_s19 + $0x28] sm:$0xff]  }
0x16ed   : > { %11916 = vrot.lane.b32.xlu0 %v15784_v27, %s13034_s1  ;;  %v12013_v27 = vld [vmem:[%s5576_s19 + $0x30] sm:$0xff]  }
0x1707   : > { %v5131_v4 = vpop.xlane.xlu0 %5130 }
0x1708   : > { %12323 = vrcp.f32 %v5131_v4  ;;  %v12014_v4 = vld [vmem:[%s5576_s19 + $0x38] sm:$0xff]  }
0x170b   : > { %v5134_v10 = vpop.xlane.xlu1 %5133  ;;  %v11862_v11 = vpop.permute.xlu0 %11861 }
0x170c   : > { %12325 = vrcp.f32 %v5134_v10  ;;  %v11864_v35 = vunpack.i.h.bf16 %v11862_v11  ;;  %v11863_v50 = vunpack.i.l.bf16 %v11862_v11 }
0x170e   : > { %v11366_v43 = vpack.c.bf16 %v11864_v35, %v11863_v50 }
0x170f   : > { %v5164_v19 = vpop.permute.xlu1 %5163 }
0x1710   : > { %11367 = vmatpush3.bf16.msra.mxu0 %v11366_v43 }
0x1711   : > { %11064 = vmatprep.subr.mxu0 %v15770_v53 }
0x1712   : > { %v12324_v15 = vpop.eup %12323 }
0x1713   : > { %v5153_v6 = vmul.f32 %v12324_v15, %v12312_v36  ;;  %v15786_v15 = vpack.i.bf16 %v14611_v59, %v14605_v8 }
0x1714   : > { %11065 = vmatpush3.msra.mxu0 %v5164_v19  ;;  %v15788_v19 = vld [vmem:[#allocation58_spill] sm:$0xff] }
0x1715   : > { %11067 = vmatmul.mubr.msk.f32.vlgmr.msra.gmra.mrb[96].mxu0 %vm1730_vm4, %v5153_v6  ;;  %11090 = vmatprep.subr.bf16.mxu0 %v15770_v53  ;;  %v15787_v6 = vpack.i.bf16 %v14079_v29, %v14077_v26  ;;  %v15793_v29 = vld [vmem:[#allocation60_spill] sm:$0xff] }
0x1716   : > { %v12326_v47 = vpop.eup %12325  ;;  %11069 = vmatprep.mubr.msk.f32.mxu0 %vm13029_vm1, %v15770_v53  ;;  %11091 = vmatpush3.bf16.msra.mxu0 %v12007_v24 }
0x1717   : > { %v5154_v17 = vmul.f32 %v12326_v47, %v14762_v16  ;;  %11092 = vmatprep.subr.bf16.mxu0 %v15770_v53  ;;  %v15789_v47 = vld [vmem:[#allocation57_spill] sm:$0xff] }
0x1719   : > { %11070 = vmatmul.mubr.msk.f32.gmra.mrb[98].mxu0 %vm1730_vm4, %v5154_v17  ;;  %v15790_v17 = vpack.i.bf16 %v15788_v19, %v15789_v47 }
0x171a   : > { %11072 = vmatprep.mubr.msk.f32.mxu0 %vm13029_vm1, %v15770_v53  ;;  %11093 = vmatpush3.bf16.msra.mxu0 %v12008_v32 }
0x171b   : > { %11094 = vmatprep.subr.bf16.mxu0 %v15770_v53 }
0x171e   : > { %11095 = vmatpush3.bf16.msra.mxu0 %v12009_v49 }
0x171f   : > { %11096 = vmatprep.subr.bf16.mxu0 %v15770_v53 }
0x173c   : > { %v5137_v41 = vpop.xlane.xlu0 %5136 }
0x173d   : > { %12327 = vrcp.f32 %v5137_v41  ;;  %v15791_v41 = vld [vmem:[#allocation61_spill] sm:$0xff] }
0x173e   : > { %v15792_v8 = vpack.i.bf16 %v14621_v51, %v15791_v41 }
0x1740   : > { %v11867_v55 = vpop.permute.xlu0 %11866 }
0x1741   : > { %v11869_v38 = vunpack.i.h.bf16 %v11867_v55  ;;  %v11868_v13 = vunpack.i.l.bf16 %v11867_v55 }
0x1743   : > { %v11369_v3 = vpack.c.bf16 %v11869_v38, %v11868_v13  ;;  %v15794_v13 = vld [vmem:[#allocation59_spill] sm:$0xff] }
0x1744   : > { %v5262_v23 = vpop.permute.xlu0 %5261 }
0x1745   : > { %11370 = vmatpush3.bf16.msra.mxu1 %v11369_v3  ;;  %v15795_v3 = vpack.i.bf16 %v15793_v29, %v15794_v13 }
0x1746   : > { %v5140_v7 = vpop.xlane.xlu1 %5139  ;;  %11079 = vmatprep.subr.mxu1 %v15770_v53 }
0x1747   : > { %v12328_v36 = vpop.eup %12327  ;;  %12329 = vrcp.f32 %v5140_v7 }
0x1748   : > { %v14844_v61 = vpop.permute.xlu0 %11871  ;;  %v5155_v16 = vmul.f32 %v12328_v36, %v14770_v33 }
0x1749   : > { %11080 = vmatpush3.msra.mxu1 %v5262_v23 }
0x174a   : > { %v5143_v56 = vpop.xlane.xlu1 %5142  ;;  %11073 = vmatmul.mubr.msk.f32.gmra.mrb[100].mxu0 %vm1730_vm4, %v5155_v16  ;;  %v11874_v16 = vunpack.i.h.bf16 %v14844_v61 }
0x174b   : > { %12331 = vrcp.f32 %v5143_v56  ;;  %11106 = vmatprep.mubr.msk.bf16.mxu0 %vm13029_vm1, %v15770_v53  ;;  %v11873_v56 = vunpack.i.l.bf16 %v14844_v61  ;;  %v15797_v61 = vld [vmem:[#allocation53_spill] sm:$0xff] }
0x174c   : > { %v14850_v40 = vpop.permute.xlu0 %11876 }
0x174e   : > { %v5146_v30 = vpop.xlane.xlu1 %5145 }
0x174f   : > { %12333 = vrcp.f32 %v5146_v30  ;;  %v11879_v30 = vunpack.i.h.bf16 %v14850_v40 }
0x1750   : > { %v14852_v39 = vpop.permute.xlu0 %11881 }
0x1751   : > { %v12330_v22 = vpop.eup %12329 }
0x1752   : > { %v5156_v5 = vmul.f32 %v12330_v22, %v14774_v46  ;;  %v11902_v37 = vpop.permute.xlu1 %11901  ;;  %v11878_v22 = vunpack.i.l.bf16 %v14850_v40 }
0x1753   : > { %v11904_v57 = vunpack.i.h.bf16 %v11902_v37 }
0x1754   : > { %v14855_v44 = vpop.permute.xlu0 %11886  ;;  %11082 = vmatmul.mubr.msk.f32.vlgmr.msra.gmra.mrb[108].mxu1 %vm1730_vm4, %v5156_v5  ;;  %v11884_v5 = vunpack.i.h.bf16 %v14852_v39 }
0x1755   : > { %v12332_v33 = vpop.eup %12331  ;;  %11084 = vmatprep.mubr.msk.f32.mxu1 %vm13029_vm1, %v15770_v53  ;;  %v5526_v18 = vsel %vm1509_vm2, %v13947_v52, %v11904_v57  ;;  %v12010_v52 = vld [vmem:[%s5576_s19 + $0x18] sm:$0xff]   ;;  %v11888_v58 = vunpack.i.l.bf16 %v14855_v44 }
0x1756   : > { %v5157_v34 = vmul.f32 %v12332_v33, %v14778_v9  ;;  %v11903_v9 = vunpack.i.l.bf16 %v11902_v37  ;;  %11097 = vmatpush3.bf16.msra.mxu0 %v12010_v52  ;;  %v11883_v33 = vunpack.i.l.bf16 %v14852_v39 }
0x1757   : > { %11098 = vmatprep.subr.bf16.mxu0 %v15770_v53 }
0x1758   : > { %v14861_v0 = vpop.permute.xlu0 %11891  ;;  %11085 = vmatmul.mubr.msk.f32.gmra.mrb[110].mxu1 %vm1730_vm4, %v5157_v34  ;;  %v5525_v48 = vsel %vm1509_vm2, %v13939_v25, %v11903_v9  ;;  %v12011_v25 = vld [vmem:[%s5576_s19 + $0x20] sm:$0xff]   ;;  %v11889_v34 = vunpack.i.h.bf16 %v14855_v44 }
0x1759   : > { %v12334_v28 = vpop.eup %12333  ;;  %11087 = vmatprep.mubr.msk.f32.mxu1 %vm13029_vm1, %v15770_v53  ;;  %v11894_v40 = vunpack.i.h.bf16 %v14861_v0  ;;  %v11893_v37 = vunpack.i.l.bf16 %v14861_v0 }
0x175a   : > { %v5158_v20 = vmul.f32 %v12334_v28, %v14782_v14  ;;  %11099 = vmatpush3.bf16.msra.mxu0 %v12011_v25 }
0x175b   : > { %11100 = vmatprep.subr.bf16.mxu0 %v15770_v53 }
0x175c   : > { %v14867_v46 = vpop.permute.xlu0 %11896  ;;  %11088 = vmatmul.mubr.msk.f32.gmra.mrb[112].mxu1 %vm1730_vm4, %v5158_v20  ;;  %v5523_v20 = vsel %vm1509_vm2, %v15797_v61, %v11873_v56 }
0x175d   : > { %6686 = vmatprep.mubr.bf16.mxu1 %v15785_v45  ;;  %v5530_v57 = vsel %vm5529_vm5, %v5523_v20, %v11878_v22  ;;  %v11899_v9 = vunpack.i.h.bf16 %v14867_v46  ;;  %v11898_v44 = vunpack.i.l.bf16 %v14867_v46 }
0x175e   : > { %11101 = vmatpush3.bf16.msra.mxu0 %v12012_v2 }
0x175f   : > { %11102 = vmatprep.subr.bf16.mxu0 %v15770_v53 }
0x1760   : > { %v11907_v60 = vpop.permute.xlu0 %11906 }
0x1761   : > { %v11909_v12 = vunpack.i.h.bf16 %v11907_v60  ;;  %v11908_v54 = vunpack.i.l.bf16 %v11907_v60  ;;  %v5537_v60 = vsel %vm5536_vm6, %v5530_v57, %v11883_v33 }
0x1762   : > { %11103 = vmatpush3.bf16.msra.mxu0 %v12013_v27 }
0x1763   : > { %v14876_v14 = vsel %vm5529_vm5, %v5526_v18, %v11909_v12  ;;  %v14879_v42 = vsel %vm5529_vm5, %v5525_v48, %v11908_v54  ;;  %11104 = vmatprep.subr.bf16.mxu0 %v15770_v53  ;;  %v5544_v54 = vsel %vm5543_vm7, %v5537_v60, %v11888_v58 }
0x1764   : > { %v11912_v51 = vpop.permute.xlu0 %11911  ;;  %v5551_v0 = vsel %vm5550_vm8, %v5544_v54, %v11893_v37 }
0x1765   : > { %v5558_v52 = vsel %vm5557_vm9, %v5551_v0, %v11898_v44 }
0x1766   : > { %11105 = vmatpush3.bf16.msra.mxu0 %v12014_v4 }
0x1768   : > { %v11917_v1 = vpop.permute.xlu0 %11916 }
0x17e8   : > { %v5243_v10 = vpop.f32.mrb[96].mxu0 }
0x17e9   : > { %v11068_v11 = vpop.f32.mrb[97].mxu0 }
0x17ec   : > { %v5248_v35 = vpop.f32.mrb[98].mxu0 }
0x17ed   : > { %v11920_v50 = vpack.i.bf16 %v5248_v35, %v5243_v10  ;;  %v11071_v43 = vpop.f32.mrb[99].mxu0  ;;  %v11914_v35 = vunpack.i.h.bf16 %v11912_v51 }
0x17ee   : > { %v11919_v43 = vunpack.i.h.bf16 %v11917_v1 }
0x17ef   : > { %11921 = vrot.lane.b32.xlu0 %v11920_v50, %s13031_s24  ;;  %v11913_v50 = vunpack.i.l.bf16 %v11912_v51  ;;  %v15799_v51 = vld [vmem:[#allocation55_spill] sm:$0xff] }
0x17f3   : > { %11926 = vrot.lane.b32.xlu0 %v15786_v15, %s13033_s10  ;;  %v11918_v15 = vunpack.i.l.bf16 %v11917_v1 }
0x17f7   : > { %11931 = vrot.lane.b32.xlu0 %v11930_v62, %s13032_s2 }
0x17fb   : > { %11936 = vrot.lane.b32.xlu0 %v15787_v6, %s13037_s27  ;;  %v11942_v6 = vpop.permute.xlu1 %11941 }
0x17fc   : > { %v11944_v22 = vunpack.i.h.bf16 %v11942_v6 }
0x17ff   : > { %11946 = vrot.lane.b32.xlu0 %v15790_v17, %s13035_s15 }
0x1803   : > { %11961 = vrot.lane.b32.xlu0 %v15792_v8, %s13033_s10  ;;  %v5539_v8 = vsel %vm5536_vm6, %v14879_v42, %v11913_v50 }
0x181d   : > { %v5253_v59 = vpop.f32.mrb[100].mxu0 }
0x181e   : > { %v11074_v55 = vpop.f32.mrb[101].mxu0 }
0x1827   : > { %v5341_v38 = vpop.f32.mrb[108].mxu1 }
0x1828   : > { %v11950_v21 = vpack.i.bf16 %v5341_v38, %v5253_v59  ;;  %v11083_v31 = vpop.f32.mrb[109].mxu1  ;;  %v5540_v59 = vsel %vm5536_vm6, %v14876_v14, %v11914_v35 }
0x1829   : > { %v5546_v31 = vsel %vm5543_vm7, %v5539_v8, %v11918_v15  ;;  %v12363_v15 = vld [vmem:[#allocation2] sm:$0xff] }
0x182a   : > { %11951 = vrot.lane.b32.xlu1 %v11950_v21, %s13031_s24 }
0x182b   : > { %v5346_v62 = vpop.f32.mrb[110].mxu1 }
0x182c   : > { %v11086_v26 = vpop.f32.mrb[111].mxu1 }
0x182e   : > { %11956 = vrot.lane.b32.xlu1 %v15795_v3, %s13034_s1 }
0x182f   : > { %v5351_v23 = vpop.f32.mrb[112].mxu1 }
0x1830   : > { %v11970_v7 = vpack.i.bf16 %v5351_v23, %v5346_v62  ;;  %v11089_v36 = vpop.f32.mrb[113].mxu1  ;;  %v5547_v62 = vsel %vm5543_vm7, %v5540_v59, %v11919_v43 }
0x1831   : > { %v15798_v36 = vld [vmem:[#allocation56_spill] sm:$0xff] }
0x1832   : > { %11971 = vrot.lane.b32.xlu0 %v11970_v7, %s13031_s24  ;;  %11966 = vrot.lane.b32.xlu1 %v11965_v63, %s13032_s2  ;;  %v15796_v63 = vld [vmem:[#allocation54_spill] sm:$0xff]  ;;  %s9677_s24 = sshll.u32 %s15757_s5, 4 }
0x1833   : > { %v5524_v28 = vsel %vm1509_vm2, %v15796_v63, %v11874_v16  ;;  %s15309_s2 = scalar_lea.vmem [#allocation20], %s9677_s24 }
0x1834   : > { %v5531_v39 = vsel %vm5529_vm5, %v5524_v28, %v11879_v30 }
0x1835   : > { %v5538_v12 = vsel %vm5536_vm6, %v5531_v39, %v11884_v5  ;;  %v11943_v5 = vunpack.i.l.bf16 %v11942_v6 }
0x1836   : > { %v5545_v18 = vsel %vm5543_vm7, %v5538_v12, %v11889_v34 }
0x1837   : > { %v5552_v24 = vsel %vm5550_vm8, %v5545_v18, %v11894_v40 }
0x1838   : > { %v5559_v46 = vsel %vm5557_vm9, %v5552_v24, %v11899_v9 }
0x1861   : > { %v11922_v48 = vpop.permute.xlu0 %11921 }
0x1862   : > { %v11924_v32 = vunpack.i.h.bf16 %v11922_v48  ;;  %v11923_v49 = vunpack.i.l.bf16 %v11922_v48 }
0x1864   : > { %v5566_v25 = vsel %vm5564_vm10, %v5559_v46, %v11924_v32  ;;  %v5565_v2 = vsel %vm5564_vm10, %v5558_v52, %v11923_v49 }
0x1865   : > { %v5571_v27 = vpack.c.bf16 %v5566_v25, %v5565_v2  ;;  %v11927_v4 = vpop.permute.xlu0 %11926 }
0x1866   : > { %v11929_v19 = vunpack.i.h.bf16 %v11927_v4  ;;  %v11928_v47 = vunpack.i.l.bf16 %v11927_v4  ;;  %v15800_v4 = vld [vmem:[#allocation52_spill] sm:$0xff] }
0x1867   : > { %11107 = vmatmul.mubr.bf16.vlgmr.msra.gmra.mrb[104].mxu0 %v5571_v27  ;;  %v14985_v27 = vld [vmem:[%s14982_s3] sm:$0x3f] }
0x1868   : > { %11110 = vmatprep.mubr.msk.bf16.mxu0 %vm13029_vm1, %v15770_v53  ;;  %v5554_v26 = vsel %vm5550_vm8, %v5547_v62, %v11929_v19  ;;  %v5553_v29 = vsel %vm5550_vm8, %v5546_v31, %v11928_v47 }
0x1869   : > { %v11932_v10 = vpop.permute.xlu0 %11931 }
0x186a   : > { %v11934_v17 = vunpack.i.h.bf16 %v11932_v10  ;;  %v11933_v41 = vunpack.i.l.bf16 %v11932_v10  ;;  %v5596_v10 = vrot.slane %v14985_v27, %v15800_v4 }
0x186c   : > { %v5560_v3 = vsel %vm5557_vm9, %v5553_v29, %v11933_v41  ;;  %v5561_v23 = vsel %vm5557_vm9, %v5554_v26, %v11934_v17  ;;  %v12364_v17 = vld [vmem:[#allocation2 + $0x8] sm:$0xff]  ;;  %v12366_v29 = vld [vmem:[#allocation2 + $0x18] sm:$0xff] }
0x186d   : > { %v11937_v11 = vpop.permute.xlu0 %11936 }
0x186e   : > { %v11939_v55 = vunpack.i.h.bf16 %v11937_v11  ;;  %v11938_v38 = vunpack.i.l.bf16 %v11937_v11 }
0x1870   : > { %v5528_v14 = vsel %vm1509_vm2, %v15798_v36, %v11939_v55  ;;  %v5527_v16 = vsel %vm1509_vm2, %v15799_v51, %v11938_v38  ;;  %v12367_v36 = vld [vmem:[#allocation2 + $0x20] sm:$0xff] }
0x1871   : > { %v11947_v21 = vpop.permute.xlu0 %11946  ;;  %v5534_v28 = vsel %vm5529_vm5, %v5527_v16, %v11943_v5  ;;  %v5535_v61 = vsel %vm5529_vm5, %v5528_v14, %v11944_v22  ;;  %v5801_v22 = vld [vmem:[%s15002_s8] sm:$0xff] }
0x1872   : > { %v11949_v56 = vunpack.i.h.bf16 %v11947_v21  ;;  %v11948_v30 = vunpack.i.l.bf16 %v11947_v21  ;;  %v12365_v21 = vld [vmem:[#allocation2 + $0x10] sm:$0xff]  ;;  %v5809_v5 = vld [vmem:[%s15002_s8 + $0x40] sm:$0xff] }
0x1874   : > { %v5541_v37 = vsel %vm5536_vm6, %v5534_v28, %v11948_v30  ;;  %v5542_v57 = vsel %vm5536_vm6, %v5535_v61, %v11949_v56  ;;  %v12368_v56 = vld [vmem:[#allocation2 + $0x28] sm:$0xff]  ;;  %v5825_v28 = vld [vmem:[%s15002_s8 + $0xc0] sm:$0xff] }
0x1875   : > { %v11962_v58 = vpop.permute.xlu0 %11961 }
0x1876   : > { %v11964_v44 = vunpack.i.h.bf16 %v11962_v58  ;;  %v11963_v60 = vunpack.i.l.bf16 %v11962_v58  ;;  %v9690_v58 = vcombine.high %v5801_v22, %v5809_v5 }
0x1878   : > { %6654 = vmatprep.subr.bf16.mxu1 %v9690_v58 }
0x189c   : > { %v11952_v13 = vpop.permute.xlu1 %11951 }
0x189d   : > { %v11954_v42 = vunpack.i.h.bf16 %v11952_v13  ;;  %v11953_v7 = vunpack.i.l.bf16 %v11952_v13 }
0x189f   : > { %v5567_v33 = vsel %vm5564_vm10, %v5560_v3, %v11953_v7  ;;  %v5568_v34 = vsel %vm5564_vm10, %v5561_v23, %v11954_v42 }
0x18a0   : > { %v11957_v1 = vpop.permute.xlu1 %11956  ;;  %v5572_v63 = vpack.c.bf16 %v5568_v34, %v5567_v33  ;;  %v5802_v33 = vld [vmem:[%s15002_s8 + $0x8] sm:$0xff]  ;;  %v9689_v34 = vcombine.low %v5801_v22, %v5809_v5  ;;  %v5905_v22 = vld [vmem:[%s15002_s8 + $0x340] sm:$0xff] }
0x18a1   : > { %v11959_v20 = vunpack.i.h.bf16 %v11957_v1  ;;  %v11958_v40 = vunpack.i.l.bf16 %v11957_v1  ;;  %v5810_v1 = vld [vmem:[%s15002_s8 + $0x48] sm:$0xff] }
0x18a2   : > { %11111 = vmatmul.mubr.bf16.gmra.mrb[108].mxu0 %v5572_v63  ;;  %v5817_v63 = vld [vmem:[%s15002_s8 + $0x80] sm:$0xff]  ;;  %v9691_v61 = vcombine.low %v5802_v33, %v5810_v1  ;;  %6655 = vmatpush1.bf16.msra.mxu1 %v9689_v34  ;;  %v5898_v5 = vld [vmem:[%s15002_s8 + $0x308] sm:$0xff] }
0x18a3   : > { %v5549_v39 = vsel %vm5543_vm7, %v5542_v57, %v11959_v20  ;;  %v5548_v9 = vsel %vm5543_vm7, %v5541_v37, %v11958_v40  ;;  %11114 = vmatprep.mubr.msk.bf16.mxu0 %vm13029_vm1, %v15770_v53  ;;  %v9692_v20 = vcombine.high %v5802_v33, %v5810_v1  ;;  %v9706_v40 = vcombine.high %v5817_v63, %v5825_v28  ;;  %v5818_v37 = vld [vmem:[%s15002_s8 + $0x88] sm:$0xff] }
0x18a4   : > { %v11972_v12 = vpop.permute.xlu0 %11971  ;;  %v11967_v54 = vpop.permute.xlu1 %11966  ;;  %v5555_v32 = vsel %vm5550_vm8, %v5548_v9, %v11963_v60  ;;  %v5556_v49 = vsel %vm5550_vm8, %v5549_v39, %v11964_v44  ;;  %v5826_v57 = vld [vmem:[%s15002_s8 + $0xc8] sm:$0xff]  ;;  %v9705_v9 = vcombine.low %v5817_v63, %v5825_v28  ;;  %v5913_v28 = vld [vmem:[%s15002_s8 + $0x380] sm:$0xff] }
0x18a5   : > { %v11974_v18 = vunpack.i.h.bf16 %v11972_v12  ;;  %v11973_v48 = vunpack.i.l.bf16 %v11972_v12  ;;  %v11969_v0 = vunpack.i.h.bf16 %v11967_v54  ;;  %v11968_v24 = vunpack.i.l.bf16 %v11967_v54  ;;  %6717 = vmatprep.subr.bf16.mxu0 %v9692_v20  ;;  %6656 = vmatprep.subr.bf16.mxu1 %v9706_v40  ;;  %v5906_v34 = vld [vmem:[%s15002_s8 + $0x348] sm:$0xff] }
0x18a6   : > { %v9708_v39 = vcombine.high %v5818_v37, %v5826_v57  ;;  %6718 = vmatpush1.bf16.msra.mxu0 %v9691_v61  ;;  %v9707_v44 = vcombine.low %v5818_v37, %v5826_v57  ;;  %6657 = vmatpush1.bf16.msra.mxu1 %v9705_v9  ;;  %v9787_v1 = vcombine.low %v5898_v5, %v5906_v34  ;;  %v5921_v61 = vld [vmem:[%s15002_s8 + $0x3c0] sm:$0xff]  ;;  %v5914_v20 = vld [vmem:[%s15002_s8 + $0x388] sm:$0xff] }
0x18a7   : > { %v5562_v52 = vsel %vm5557_vm9, %v5555_v32, %v11968_v24  ;;  %v5563_v46 = vsel %vm5557_vm9, %v5556_v49, %v11969_v0  ;;  %v5833_v49 = vld [vmem:[%s15002_s8 + $0x100] sm:$0xff]  ;;  %v9788_v63 = vcombine.high %v5898_v5, %v5906_v34  ;;  %v9802_v40 = vcombine.high %v5913_v28, %v5921_v61  ;;  %v5922_v37 = vld [vmem:[%s15002_s8 + $0x3c8] sm:$0xff]  ;;  %v5843_v34 = vld [vmem:[%s15002_s8 + $0x150] sm:$0xff] }
0x18a8   : > { %v5569_v25 = vsel %vm5564_vm10, %v5562_v52, %v11973_v48  ;;  %v5570_v53 = vsel %vm5564_vm10, %v5563_v46, %v11974_v18  ;;  %6719 = vmatprep.subr.bf16.mxu0 %v9708_v39  ;;  %v5841_v52 = vld [vmem:[%s15002_s8 + $0x140] sm:$0xff]  ;;  %v5834_v46 = vld [vmem:[%s15002_s8 + $0x108] sm:$0xff]  ;;  %v9801_v57 = vcombine.low %v5913_v28, %v5921_v61  ;;  %v9803_v39 = vcombine.low %v5914_v20, %v5922_v37 }
0x18a9   : > { %v5573_v2 = vpack.c.bf16 %v5570_v53, %v5569_v25  ;;  %v9722_v25 = vcombine.high %v5833_v49, %v5841_v52  ;;  %v5842_v53 = vld [vmem:[%s15002_s8 + $0x148] sm:$0xff]  ;;  %v9804_v9 = vcombine.high %v5914_v20, %v5922_v37  ;;  %v5859_v37 = vld [vmem:[%s15002_s8 + $0x1d0] sm:$0xff] }
0x18aa   : > { %6720 = vmatpush1.bf16.msra.mxu0 %v9707_v44 }
0x18ab   : > { %11115 = vmatmul.mubr.bf16.gmra.mrb[112].mxu0 %v5573_v2  ;;  %v9721_v2 = vcombine.low %v5833_v49, %v5841_v52  ;;  %6658 = vmatprep.subr.bf16.mxu1 %v9722_v25 }
0x18ac   : > { %6749 = vmatprep.mubr.bf16.mxu0 %v15785_v45 }
0x18ad   : > { %6659 = vmatpush1.bf16.msra.mxu1 %v9721_v2 }
0x193a   : > { %v5679_v11 = vpop.f32.mrb[104].mxu0 }
0x193b   : > { %v5680_v35 = vadd.f32 %v5679_v11, %v5596_v10  ;;  %v11108_v50 = vpop.f32.mrb[105].mxu0  ;;  %v9724_v11 = vcombine.high %v5834_v46, %v5842_v53 }
0x193c   : > { %v5682_v43 = vpop.f32.mrb[106].mxu0  ;;  %v5857_v50 = vld [vmem:[%s15002_s8 + $0x1c0] sm:$0xff] }
0x193d   : > { %v5702_v6 = vadd.f32 %v12363_v15, %v5680_v35  ;;  %v5683_v19 = vadd.f32 %v5682_v43, %v5596_v10  ;;  %v11109_v47 = vpop.f32.mrb[107].mxu0  ;;  %6721 = vmatprep.subr.bf16.mxu0 %v9724_v11  ;;  %v5849_v35 = vld [vmem:[%s15002_s8 + $0x180] sm:$0xff]  ;;  %v5850_v43 = vld [vmem:[%s15002_s8 + $0x188] sm:$0xff]  ;;  %v5803_v11 = vld [vmem:[%s15002_s8 + $0x10] sm:$0xff] }
0x193e   : > { %v9738_v15 = vcombine.high %v5849_v35, %v5857_v50 }
0x193f   : > { %v5703_v41 = vadd.f32 %v12364_v17, %v5683_v19  ;;  %5708 = vadd.xlane.f32.xlu1 %v5702_v6  ;;  %v9737_v19 = vcombine.low %v5849_v35, %v5857_v50  ;;  %v5811_v35 = vld [vmem:[%s15002_s8 + $0x50] sm:$0xff]  ;;  %v5804_v50 = vld [vmem:[%s15002_s8 + $0x18] sm:$0xff] }
0x1940   : > { %6660 = vmatprep.subr.bf16.mxu1 %v9738_v15  ;;  %v5812_v15 = vld [vmem:[%s15002_s8 + $0x58] sm:$0xff] }
0x1941   : > { %5710 = vadd.xlane.f32.xlu0 %v5703_v41  ;;  %6661 = vmatpush1.bf16.msra.mxu1 %v9737_v19  ;;  %v9696_v19 = vcombine.high %v5804_v50, %v5812_v15 }
0x1975   : > { %v5687_v8 = vpop.f32.mrb[108].mxu0 }
0x1976   : > { %v5688_v59 = vadd.f32 %v5687_v8, %v5596_v10  ;;  %v11112_v55 = vpop.f32.mrb[109].mxu0  ;;  %v5873_v8 = vld [vmem:[%s15002_s8 + $0x240] sm:$0xff] }
0x1977   : > { %v5690_v38 = vpop.f32.mrb[110].mxu0 }
0x1978   : > { %v14989_v31 = vadd.f32 %v12365_v21, %v5688_v59  ;;  %v5691_v62 = vadd.f32 %v5690_v38, %v5596_v10  ;;  %v11113_v26 = vpop.f32.mrb[111].mxu0  ;;  %v5866_v59 = vld [vmem:[%s15002_s8 + $0x208] sm:$0xff] }
0x1979   : > { %v5874_v38 = vld [vmem:[%s15002_s8 + $0x248] sm:$0xff] }
0x197a   : > { %v14991_v13 = vadd.f32 %v12366_v29, %v5691_v62  ;;  %5712 = vadd.xlane.f32.xlu0 %v14989_v31  ;;  %v9755_v62 = vcombine.low %v5866_v59, %v5874_v38  ;;  %v9756_v26 = vcombine.high %v5866_v59, %v5874_v38  ;;  %v5881_v29 = vld [vmem:[%s15002_s8 + $0x280] sm:$0xff] }
0x197c   : > { %5714 = vadd.xlane.f32.xlu1 %v14991_v13 }
0x197e   : > { %v5695_v3 = vpop.f32.mrb[112].mxu0 }
0x197f   : > { %v5696_v23 = vadd.f32 %v5695_v3, %v5596_v10  ;;  %v11116_v42 = vpop.f32.mrb[113].mxu0  ;;  %v5889_v3 = vld [vmem:[%s15002_s8 + $0x2c0] sm:$0xff] }
0x1980   : > { %v5698_v7 = vpop.f32.mrb[114].mxu0  ;;  %v9770_v42 = vcombine.high %v5881_v29, %v5889_v3 }
0x1981   : > { %v14995_v14 = vadd.f32 %v12367_v36, %v5696_v23  ;;  %v5699_v51 = vadd.f32 %v5698_v7, %v5596_v10  ;;  %v11117_v16 = vpop.f32.mrb[115].mxu0  ;;  %v9723_v10 = vcombine.low %v5834_v46, %v5842_v53  ;;  %v5882_v23 = vld [vmem:[%s15002_s8 + $0x288] sm:$0xff]  ;;  %v9769_v36 = vcombine.low %v5881_v29, %v5889_v3 }
0x1982   : > { %v5890_v7 = vld [vmem:[%s15002_s8 + $0x2c8] sm:$0xff] }
0x1983   : > { %v14997_v30 = vadd.f32 %v12368_v56, %v5699_v51  ;;  %5716 = vadd.xlane.f32.xlu0 %v14995_v14  ;;  %6722 = vmatpush1.bf16.msra.mxu0 %v9723_v10  ;;  %v9771_v51 = vcombine.low %v5882_v23, %v5890_v7  ;;  %v9772_v16 = vcombine.high %v5882_v23, %v5890_v7  ;;  %v5897_v56 = vld [vmem:[%s15002_s8 + $0x300] sm:$0xff] }
0x1984   : > { %v9786_v33 = vcombine.high %v5897_v56, %v5905_v22  ;;  %v9785_v58 = vcombine.low %v5897_v56, %v5905_v22  ;;  %v15802_v29 = vld [vmem:[#allocation51_spill] sm:$0xff]  ;;  %v5828_v56 = vld [vmem:[%s15002_s8 + $0xd8] sm:$0xff] }
0x1985   : > { %5718 = vadd.xlane.f32.xlu1 %v14997_v30  ;;  %v15077_v3 = vrot.slane %v14985_v27, %v15802_v29 }
0x19cc   : > { %v5709_v60 = vpop.xlane.xlu1 %5708 }
0x19cd   : > { %v5721_v12 = vmul.f32 0.0078125, %v5709_v60 }
0x19ce   : > { %v5711_v54 = vpop.xlane.xlu0 %5710 }
0x19cf   : > { %v15014_v18 = vsub.f32 %v5702_v6, %v5721_v12  ;;  %v5722_v48 = vmul.f32 0.0078125, %v5711_v54  ;;  %v5858_v6 = vld [vmem:[%s15002_s8 + $0x1c8] sm:$0xff] }
0x19d0   : > { %v9739_v47 = vcombine.low %v5850_v43, %v5858_v6  ;;  %v9740_v17 = vcombine.high %v5850_v43, %v5858_v6  ;;  %v9694_v43 = vcombine.high %v5803_v11, %v5811_v35  ;;  %v9693_v6 = vcombine.low %v5803_v11, %v5811_v35  ;;  %v5891_v11 = vld [vmem:[%s15002_s8 + $0x2d0] sm:$0xff]  ;;  %v5884_v35 = vld [vmem:[%s15002_s8 + $0x298] sm:$0xff] }
0x19d1   : > { %v15016_v0 = vsub.f32 %v5703_v41, %v5722_v48  ;;  %v5733_v24 = vmul.f32 %v15014_v18, %v15014_v18  ;;  %v5865_v41 = vld [vmem:[%s15002_s8 + $0x200] sm:$0xff] }
0x19d2   : > { %6723 = vmatprep.subr.bf16.mxu0 %v9740_v17  ;;  %v9754_v55 = vcombine.high %v5865_v41, %v5873_v8  ;;  %v9753_v21 = vcombine.low %v5865_v41, %v5873_v8 }
0x19d3   : > { %5739 = vadd.xlane.f32.xlu0 %v5733_v24  ;;  %v5734_v32 = vmul.f32 %v15016_v0, %v15016_v0  ;;  %6724 = vmatpush1.bf16.msra.mxu0 %v9739_v47 }
0x19d4   : > { %6662 = vmatprep.subr.bf16.mxu1 %v9754_v55  ;;  %6725 = vmatprep.subr.bf16.mxu0 %v9756_v26  ;;  %v15801_v55 = vld [vmem:[#allocation50_spill] sm:$0xff] }
0x19d5   : > { %5741 = vadd.xlane.f32.xlu1 %v5734_v32  ;;  %6663 = vmatpush1.bf16.msra.mxu1 %v9753_v21  ;;  %v15072_v38 = vrot.slane %v14985_v27, %v15801_v55 }
0x19d6   : > { %6664 = vmatprep.subr.bf16.mxu1 %v9770_v42 }
0x19d7   : > { %6726 = vmatpush1.bf16.msra.mxu0 %v9755_v62 }
0x19d8   : > { %6727 = vmatprep.subr.bf16.mxu0 %v9772_v16  ;;  %v5820_v16 = vld [vmem:[%s15002_s8 + $0x98] sm:$0xff] }
0x19d9   : > { %6665 = vmatpush1.bf16.msra.mxu1 %v9769_v36  ;;  %v5819_v36 = vld [vmem:[%s15002_s8 + $0x90] sm:$0xff]  ;;  %v9711_v28 = vcombine.low %v5820_v16, %v5828_v56 }
0x19da   : > { %6666 = vmatprep.subr.bf16.mxu1 %v9786_v33  ;;  %v9712_v33 = vcombine.high %v5820_v16, %v5828_v56  ;;  %v15125_v56 = vld [vmem:[%s15002_s8 + $0x20] sm:$0xff] }
0x19db   : > { %6728 = vmatpush1.bf16.msra.mxu0 %v9771_v51  ;;  %v5827_v51 = vld [vmem:[%s15002_s8 + $0xd0] sm:$0xff] }
0x19dc   : > { %6729 = vmatprep.subr.bf16.mxu0 %v9788_v63  ;;  %v9710_v5 = vcombine.high %v5819_v36, %v5827_v51  ;;  %v9709_v63 = vcombine.low %v5819_v36, %v5827_v51 }
0x19dd   : > { %6667 = vmatpush1.bf16.msra.mxu1 %v9785_v58  ;;  %v5836_v58 = vld [vmem:[%s15002_s8 + $0x118] sm:$0xff] }
0x19de   : > { %6668 = vmatprep.subr.bf16.mxu1 %v9802_v40  ;;  %v5851_v40 = vld [vmem:[%s15002_s8 + $0x190] sm:$0xff] }
0x19df   : > { %6730 = vmatpush1.bf16.msra.mxu0 %v9787_v1  ;;  %v5844_v1 = vld [vmem:[%s15002_s8 + $0x158] sm:$0xff] }
0x19e0   : > { %6731 = vmatprep.subr.bf16.mxu0 %v9804_v9  ;;  %v9728_v20 = vcombine.high %v5836_v58, %v5844_v1 }
0x19e1   : > { %6669 = vmatpush1.bf16.msra.mxu1 %v9801_v57  ;;  %v5852_v57 = vld [vmem:[%s15002_s8 + $0x198] sm:$0xff] }
0x19e2   : > { %6780 = vmatprep.subr.bf16.mxu1 %v9694_v43 }
0x19e3   : > { %6732 = vmatpush1.bf16.msra.mxu0 %v9803_v39  ;;  %v5860_v39 = vld [vmem:[%s15002_s8 + $0x1d8] sm:$0xff] }
0x19e4   : > { %6843 = vmatprep.subr.bf16.mxu0 %v9696_v19  ;;  %v5899_v19 = vld [vmem:[%s15002_s8 + $0x310] sm:$0xff] }
0x1a07   : > { %v5713_v44 = vpop.xlane.xlu0 %5712 }
0x1a08   : > { %v5723_v60 = vmul.f32 0.0078125, %v5713_v44  ;;  %v9727_v44 = vcombine.low %v5836_v58, %v5844_v1 }
0x1a09   : > { %v5715_v12 = vpop.xlane.xlu1 %5714 }
0x1a0a   : > { %v15047_v54 = vsub.f32 %v14989_v31, %v5723_v60  ;;  %v5724_v48 = vmul.f32 0.0078125, %v5715_v12  ;;  %v9742_v60 = vcombine.high %v5851_v40, %v5859_v37  ;;  %v9744_v12 = vcombine.high %v5852_v57, %v5860_v39 }
0x1a0c   : > { %v15050_v24 = vsub.f32 %v14991_v13, %v5724_v48  ;;  %v5735_v32 = vmul.f32 %v15047_v54, %v15047_v54  ;;  %v5867_v48 = vld [vmem:[%s15002_s8 + $0x210] sm:$0xff] }
0x1a0e   : > { %5743 = vadd.xlane.f32.xlu0 %v5735_v32  ;;  %v5736_v49 = vmul.f32 %v15050_v24, %v15050_v24  ;;  %v5875_v32 = vld [vmem:[%s15002_s8 + $0x250] sm:$0xff] }
0x1a0f   : > { %v9757_v43 = vcombine.low %v5867_v48, %v5875_v32 }
0x1a10   : > { %v5717_v52 = vpop.xlane.xlu0 %5716  ;;  %5745 = vadd.xlane.f32.xlu1 %v5736_v49  ;;  %v5868_v49 = vld [vmem:[%s15002_s8 + $0x218] sm:$0xff] }
0x1a11   : > { %v5725_v46 = vmul.f32 0.0078125, %v5717_v52  ;;  %v5876_v52 = vld [vmem:[%s15002_s8 + $0x258] sm:$0xff] }
0x1a12   : > { %v5719_v31 = vpop.xlane.xlu1 %5718 }
0x1a13   : > { %v15057_v25 = vsub.f32 %v14995_v14, %v5725_v46  ;;  %v5726_v53 = vmul.f32 0.0078125, %v5719_v31  ;;  %v9695_v14 = vcombine.low %v5804_v50, %v5812_v15  ;;  %v9741_v46 = vcombine.low %v5851_v40, %v5859_v37  ;;  %v5892_v50 = vld [vmem:[%s15002_s8 + $0x2d8] sm:$0xff] }
0x1a14   : > { %v9743_v31 = vcombine.low %v5852_v57, %v5860_v39  ;;  %v9759_v15 = vcombine.low %v5868_v49, %v5876_v52 }
0x1a15   : > { %v15060_v13 = vsub.f32 %v14997_v30, %v5726_v53  ;;  %v5737_v2 = vmul.f32 %v15057_v25, %v15057_v25  ;;  %v9758_v53 = vcombine.high %v5867_v48, %v5875_v32 }
0x1a17   : > { %5747 = vadd.xlane.f32.xlu0 %v5737_v2  ;;  %v5738_v10 = vmul.f32 %v15060_v13, %v15060_v13  ;;  %v9760_v2 = vcombine.high %v5868_v49, %v5876_v52 }
0x1a19   : > { %5749 = vadd.xlane.f32.xlu1 %v5738_v10  ;;  %v5883_v10 = vld [vmem:[%s15002_s8 + $0x290] sm:$0xff] }
0x1a60   : > { %v5740_v30 = vpop.xlane.xlu0 %5739 }
0x1a61   : > { %v5751_v47 = vmul.f32 0.0078125, %v5740_v30  ;;  %v5907_v30 = vld [vmem:[%s15002_s8 + $0x350] sm:$0xff] }
0x1a62   : > { %v5742_v17 = vpop.xlane.xlu1 %5741 }
0x1a63   : > { %v5757_v41 = vadd.f32 1e-05, %v5751_v47  ;;  %v5752_v8 = vmul.f32 0.0078125, %v5742_v17  ;;  %v5900_v47 = vld [vmem:[%s15002_s8 + $0x318] sm:$0xff] }
0x1a64   : > { %v5908_v17 = vld [vmem:[%s15002_s8 + $0x358] sm:$0xff] }
0x1a65   : > { %12335 = vrsqrt.f32 %v5757_v41  ;;  %v5758_v59 = vadd.f32 1e-05, %v5752_v8  ;;  %v9773_v41 = vcombine.low %v5883_v10, %v5891_v11  ;;  %v9775_v8 = vcombine.low %v5884_v35, %v5892_v50 }
0x1a66   : > { %v9791_v36 = vcombine.low %v5900_v47, %v5908_v17 }
0x1a67   : > { %12337 = vrsqrt.f32 %v5758_v59  ;;  %v9790_v59 = vcombine.high %v5899_v19, %v5907_v30 }
0x1a6f   : > { %v12336_v21 = vpop.eup %12335 }
0x1a70   : > { %v5769_v62 = vmul.f32 %v12336_v21, %v15014_v18  ;;  %v9792_v21 = vcombine.high %v5900_v47, %v5908_v17 }
0x1a71   : > { %v12338_v26 = vpop.eup %12337 }
0x1a72   : > { %v5779_v23 = vmul.f32 %v15072_v38, %v5769_v62  ;;  %v5770_v42 = vmul.f32 %v12338_v26, %v15016_v0  ;;  %v5835_v0 = vld [vmem:[%s15002_s8 + $0x110] sm:$0xff] }
0x1a73   : > { %v9726_v61 = vcombine.high %v5835_v0, %v5843_v34  ;;  %v9725_v9 = vcombine.low %v5835_v0, %v5843_v34  ;;  %v5915_v62 = vld [vmem:[%s15002_s8 + $0x390] sm:$0xff]  ;;  %v15134_v0 = vld [vmem:[%s15002_s8 + $0x68] sm:$0xff] }
0x1a74   : > { %v5780_v7 = vmul.f32 %v15072_v38, %v5770_v42  ;;  %v15087_v18 = vadd.f32 %v15077_v3, %v5779_v23  ;;  %v5923_v26 = vld [vmem:[%s15002_s8 + $0x3d0] sm:$0xff]  ;;  %v5916_v23 = vld [vmem:[%s15002_s8 + $0x398] sm:$0xff] }
0x1a75   : > { %v5924_v42 = vld [vmem:[%s15002_s8 + $0x3d8] sm:$0xff]  ;;  %v9806_v51 = vcombine.high %v5915_v62, %v5923_v26  ;;  %v9805_v34 = vcombine.low %v5915_v62, %v5923_v26  ;;  %v5846_v62 = vld [vmem:[%s15002_s8 + $0x168] sm:$0xff] }
0x1a76   : > { %v15090_v22 = vadd.f32 %v15077_v3, %v5780_v7  ;;  %v9789_v7 = vcombine.low %v5899_v19, %v5907_v30  ;;  %v9808_v16 = vcombine.high %v5916_v23, %v5924_v42  ;;  %v9807_v58 = vcombine.low %v5916_v23, %v5924_v42  ;;  %v5822_v19 = vld [vmem:[%s15002_s8 + $0xa8] sm:$0xff] }
0x1a77   : > { %v5830_v30 = vld [vmem:[%s15002_s8 + $0xe8] sm:$0xff] }
0x1a78   : > { %v15094_v27 = vpack.c.bf16 %v15090_v22, %v15087_v18  ;;  %v9715_v23 = vcombine.low %v5822_v19, %v5830_v30 }
0x1a7a   : > { %6687 = vmatmul.mubr.bf16.vlgmr.msra.gmra.mrb[116].mxu1 %v15094_v27  ;;  %6750 = vmatmul.mubr.bf16.vlgmr.msra.gmra.mrb[116].mxu0 %v15094_v27 }
0x1a7b   : > { %6781 = vmatpush1.bf16.msra.mxu1 %v9693_v6  ;;  %6844 = vmatpush1.bf16.msra.mxu0 %v9695_v14  ;;  %v9774_v6 = vcombine.high %v5883_v10, %v5891_v11  ;;  %v9776_v14 = vcombine.high %v5884_v35, %v5892_v50 }
0x1a7c   : > { %6782 = vmatprep.subr.bf16.mxu1 %v9710_v5  ;;  %6845 = vmatprep.subr.bf16.mxu0 %v9712_v33  ;;  %v15128_v5 = vld [vmem:[%s15002_s8 + $0x60] sm:$0xff]  ;;  %v15131_v33 = vld [vmem:[%s15002_s8 + $0x28] sm:$0xff] }
0x1a7d   : > { %6696 = vmatprep.mubr.bf16.mxu1 %v15785_v45  ;;  %6759 = vmatprep.mubr.bf16.mxu0 %v15785_v45  ;;  %v9698_v1 = vcombine.high %v15125_v56, %v15128_v5  ;;  %v9699_v47 = vcombine.low %v15131_v33, %v15134_v0 }
0x1a7f   : > { %6783 = vmatpush1.bf16.msra.mxu1 %v9709_v63  ;;  %6846 = vmatpush1.bf16.msra.mxu0 %v9711_v28  ;;  %v9700_v63 = vcombine.high %v15131_v33, %v15134_v0 }
0x1a80   : > { %6784 = vmatprep.subr.bf16.mxu1 %v9726_v61  ;;  %6847 = vmatprep.subr.bf16.mxu0 %v9728_v20 }
0x1a83   : > { %6785 = vmatpush1.bf16.msra.mxu1 %v9725_v9  ;;  %6848 = vmatpush1.bf16.msra.mxu0 %v9727_v44 }
0x1a84   : > { %6786 = vmatprep.subr.bf16.mxu1 %v9742_v60  ;;  %6849 = vmatprep.subr.bf16.mxu0 %v9744_v12 }
0x1a87   : > { %6787 = vmatpush1.bf16.msra.mxu1 %v9741_v46  ;;  %6850 = vmatpush1.bf16.msra.mxu0 %v9743_v31 }
0x1a88   : > { %6788 = vmatprep.subr.bf16.mxu1 %v9758_v53  ;;  %6851 = vmatprep.subr.bf16.mxu0 %v9760_v2 }
0x1a8b   : > { %6789 = vmatpush1.bf16.msra.mxu1 %v9757_v43  ;;  %6852 = vmatpush1.bf16.msra.mxu0 %v9759_v15 }
0x1a8c   : > { %6790 = vmatprep.subr.bf16.mxu1 %v9774_v6  ;;  %6853 = vmatprep.subr.bf16.mxu0 %v9776_v14 }
0x1a8f   : > { %6791 = vmatpush1.bf16.msra.mxu1 %v9773_v41  ;;  %6854 = vmatpush1.bf16.msra.mxu0 %v9775_v8  ;;  %v9716_v41 = vcombine.high %v5822_v19, %v5830_v30  ;;  %v5837_v8 = vld [vmem:[%s15002_s8 + $0x120] sm:$0xff] }
0x1a90   : > { %6792 = vmatprep.subr.bf16.mxu1 %v9790_v59  ;;  %6855 = vmatprep.subr.bf16.mxu0 %v9792_v21  ;;  %v5845_v59 = vld [vmem:[%s15002_s8 + $0x160] sm:$0xff]  ;;  %v5838_v21 = vld [vmem:[%s15002_s8 + $0x128] sm:$0xff] }
0x1a91   : > { %v9730_v42 = vcombine.high %v5837_v8, %v5845_v59  ;;  %v9731_v33 = vcombine.low %v5838_v21, %v5846_v62 }
0x1a93   : > { %6793 = vmatpush1.bf16.msra.mxu1 %v9789_v7  ;;  %6856 = vmatpush1.bf16.msra.mxu0 %v9791_v36  ;;  %v9732_v7 = vcombine.high %v5838_v21, %v5846_v62  ;;  %v5853_v36 = vld [vmem:[%s15002_s8 + $0x1a0] sm:$0xff] }
0x1a94   : > { %6794 = vmatprep.subr.bf16.mxu1 %v9806_v51  ;;  %6857 = vmatprep.subr.bf16.mxu0 %v9808_v16  ;;  %v5861_v51 = vld [vmem:[%s15002_s8 + $0x1e0] sm:$0xff]  ;;  %v5854_v16 = vld [vmem:[%s15002_s8 + $0x1a8] sm:$0xff] }
0x1a95   : > { %v9746_v0 = vcombine.high %v5853_v36, %v5861_v51 }
0x1a97   : > { %6795 = vmatpush1.bf16.msra.mxu1 %v9805_v34  ;;  %6858 = vmatpush1.bf16.msra.mxu0 %v9807_v58  ;;  %v5869_v58 = vld [vmem:[%s15002_s8 + $0x220] sm:$0xff] }
0x1a98   : > { %6906 = vmatprep.subr.bf16.mxu1 %v9698_v1  ;;  %6969 = vmatprep.subr.bf16.mxu0 %v9700_v63  ;;  %v5877_v1 = vld [vmem:[%s15002_s8 + $0x260] sm:$0xff]  ;;  %v5870_v63 = vld [vmem:[%s15002_s8 + $0x228] sm:$0xff] }
0x1a9b   : > { %v5744_v28 = vpop.xlane.xlu0 %5743 }
0x1a9c   : > { %v5753_v61 = vmul.f32 0.0078125, %v5744_v28  ;;  %v5878_v28 = vld [vmem:[%s15002_s8 + $0x268] sm:$0xff] }
0x1a9d   : > { %v5746_v20 = vpop.xlane.xlu1 %5745 }
0x1a9e   : > { %v5759_v40 = vadd.f32 1e-05, %v5753_v61  ;;  %v5754_v37 = vmul.f32 0.0078125, %v5746_v20  ;;  %v9745_v61 = vcombine.low %v5853_v36, %v5861_v51  ;;  %v5832_v36 = vld [vmem:[%s15002_s8 + $0xf8] sm:$0xff] }
0x1aa0   : > { %12339 = vrsqrt.f32 %v5759_v40  ;;  %v5760_v57 = vadd.f32 1e-05, %v5754_v37  ;;  %v9762_v40 = vcombine.high %v5869_v58, %v5877_v1  ;;  %v9764_v37 = vcombine.high %v5870_v63, %v5878_v28 }
0x1aa2   : > { %12341 = vrsqrt.f32 %v5760_v57  ;;  %v5885_v57 = vld [vmem:[%s15002_s8 + $0x2a0] sm:$0xff] }
0x1aa4   : > { %v5748_v39 = vpop.xlane.xlu0 %5747 }
0x1aa5   : > { %v5755_v9 = vmul.f32 0.0078125, %v5748_v39  ;;  %v5893_v39 = vld [vmem:[%s15002_s8 + $0x2e0] sm:$0xff] }
0x1aa6   : > { %v5750_v44 = vpop.xlane.xlu1 %5749 }
0x1aa7   : > { %v5761_v60 = vadd.f32 1e-05, %v5755_v9  ;;  %v5756_v12 = vmul.f32 0.0078125, %v5750_v44  ;;  %v5886_v9 = vld [vmem:[%s15002_s8 + $0x2a8] sm:$0xff] }
0x1aa8   : > { %v5894_v44 = vld [vmem:[%s15002_s8 + $0x2e8] sm:$0xff] }
0x1aa9   : > { %12343 = vrsqrt.f32 %v5761_v60  ;;  %v5762_v48 = vadd.f32 1e-05, %v5756_v12  ;;  %v9761_v60 = vcombine.low %v5869_v58, %v5877_v1  ;;  %v9763_v12 = vcombine.low %v5870_v63, %v5878_v28  ;;  %v5848_v58 = vld [vmem:[%s15002_s8 + $0x178] sm:$0xff] }
0x1aaa   : > { %v12340_v32 = vpop.eup %12339 }
0x1aab   : > { %v5771_v49 = vmul.f32 %v12340_v32, %v15047_v54  ;;  %12345 = vrsqrt.f32 %v5762_v48  ;;  %v9778_v48 = vcombine.high %v5885_v57, %v5893_v39  ;;  %v9780_v32 = vcombine.high %v5886_v9, %v5894_v44 }
0x1aac   : > { %v12342_v52 = vpop.eup %12341 }
0x1aad   : > { %v5781_v46 = vmul.f32 %v15072_v38, %v5771_v49  ;;  %v5772_v31 = vmul.f32 %v12342_v52, %v15050_v24  ;;  %v5901_v49 = vld [vmem:[%s15002_s8 + $0x320] sm:$0xff] }
0x1aae   : > { %v5909_v52 = vld [vmem:[%s15002_s8 + $0x360] sm:$0xff] }
0x1aaf   : > { %v5782_v53 = vmul.f32 %v15072_v38, %v5772_v31  ;;  %v15145_v2 = vadd.f32 %v15077_v3, %v5781_v46  ;;  %v5902_v46 = vld [vmem:[%s15002_s8 + $0x328] sm:$0xff] }
0x1ab0   : > { %v5910_v31 = vld [vmem:[%s15002_s8 + $0x368] sm:$0xff] }
0x1ab1   : > { %v15148_v10 = vadd.f32 %v15077_v3, %v5782_v53  ;;  %v9777_v53 = vcombine.low %v5885_v57, %v5893_v39  ;;  %v9795_v19 = vcombine.low %v5902_v46, %v5910_v31  ;;  %v5864_v57 = vld [vmem:[%s15002_s8 + $0x1f8] sm:$0xff] }
0x1ab3   : > { %v12344_v11 = vpop.eup %12343  ;;  %v15152_v35 = vpack.c.bf16 %v15148_v10, %v15145_v2 }
0x1ab4   : > { %v5773_v54 = vmul.f32 %v12344_v11, %v15057_v25  ;;  %v9779_v11 = vcombine.low %v5886_v9, %v5894_v44 }
0x1ab5   : > { %v12346_v50 = vpop.eup %12345  ;;  %6697 = vmatmul.mubr.bf16.gmra.mrb[120].mxu1 %v15152_v35  ;;  %6760 = vmatmul.mubr.bf16.gmra.mrb[120].mxu0 %v15152_v35 }
0x1ab6   : > { %v5783_v24 = vmul.f32 %v15072_v38, %v5773_v54  ;;  %v5774_v43 = vmul.f32 %v12346_v50, %v15060_v13  ;;  %6706 = vmatprep.mubr.bf16.mxu1 %v15785_v45  ;;  %6769 = vmatprep.mubr.bf16.mxu0 %v15785_v45  ;;  %v5821_v13 = vld [vmem:[%s15002_s8 + $0xa0] sm:$0xff]  ;;  %v9794_v54 = vcombine.high %v5901_v49, %v5909_v52 }
0x1ab7   : > { %v9796_v50 = vcombine.high %v5902_v46, %v5910_v31 }
0x1ab8   : > { %v5784_v15 = vmul.f32 %v15072_v38, %v5774_v43  ;;  %v15163_v25 = vadd.f32 %v15077_v3, %v5783_v24  ;;  %v5829_v38 = vld [vmem:[%s15002_s8 + $0xe0] sm:$0xff] }
0x1ab9   : > { %v9714_v17 = vcombine.high %v5821_v13, %v5829_v38  ;;  %v9713_v26 = vcombine.low %v5821_v13, %v5829_v38  ;;  %v5917_v24 = vld [vmem:[%s15002_s8 + $0x3a0] sm:$0xff]  ;;  %v5926_v13 = vld [vmem:[%s15002_s8 + $0x3e8] sm:$0xff]  ;;  %v9793_v38 = vcombine.low %v5901_v49, %v5909_v52  ;;  %v5880_v49 = vld [vmem:[%s15002_s8 + $0x278] sm:$0xff] }
0x1aba   : > { %v15166_v6 = vadd.f32 %v15077_v3, %v5784_v15  ;;  %v9697_v3 = vcombine.low %v15125_v56, %v15128_v5  ;;  %v5862_v56 = vld [vmem:[%s15002_s8 + $0x1e8] sm:$0xff]  ;;  %v9729_v5 = vcombine.low %v5837_v8, %v5845_v59  ;;  %v5925_v43 = vld [vmem:[%s15002_s8 + $0x3e0] sm:$0xff]  ;;  %v5816_v8 = vld [vmem:[%s15002_s8 + $0x78] sm:$0xff] }
0x1abb   : > { %v9748_v34 = vcombine.high %v5854_v16, %v5862_v56  ;;  %v9747_v20 = vcombine.low %v5854_v16, %v5862_v56  ;;  %v5918_v15 = vld [vmem:[%s15002_s8 + $0x3a8] sm:$0xff]  ;;  %v9810_v30 = vcombine.high %v5917_v24, %v5925_v43  ;;  %v9809_v59 = vcombine.low %v5917_v24, %v5925_v43  ;;  %v5896_v24 = vld [vmem:[%s15002_s8 + $0x2f8] sm:$0xff] }
0x1abc   : > { %v15170_v14 = vpack.c.bf16 %v15166_v6, %v15163_v25  ;;  %v9811_v21 = vcombine.low %v5918_v15, %v5926_v13 }
0x1abe   : > { %6707 = vmatmul.mubr.bf16.gmra.mrb[124].mxu1 %v15170_v14  ;;  %6770 = vmatmul.mubr.bf16.gmra.mrb[124].mxu0 %v15170_v14 }
0x1abf   : > { %6812 = vmatprep.mubr.bf16.mxu1 %v15785_v45  ;;  %6875 = vmatprep.mubr.bf16.mxu0 %v15785_v45 }
0x1ac6   : > { %6813 = vmatmul.mubr.bf16.vlgmr.msra.gmra.mrb[128].mxu1 %v15094_v27  ;;  %6876 = vmatmul.mubr.bf16.vlgmr.msra.gmra.mrb[128].mxu0 %v15094_v27 }
0x1ac7   : > { %6907 = vmatpush1.bf16.msra.mxu1 %v9697_v3  ;;  %6970 = vmatpush1.bf16.msra.mxu0 %v9699_v47  ;;  %v9812_v3 = vcombine.high %v5918_v15, %v5926_v13  ;;  %v5807_v47 = vld [vmem:[%s15002_s8 + $0x30] sm:$0xff] }
0x1ac8   : > { %6908 = vmatprep.subr.bf16.mxu1 %v9714_v17  ;;  %6971 = vmatprep.subr.bf16.mxu0 %v9716_v41  ;;  %v5815_v17 = vld [vmem:[%s15002_s8 + $0x70] sm:$0xff]  ;;  %v5808_v41 = vld [vmem:[%s15002_s8 + $0x38] sm:$0xff] }
0x1ac9   : > { %6822 = vmatprep.mubr.bf16.mxu1 %v15785_v45  ;;  %6885 = vmatprep.mubr.bf16.mxu0 %v15785_v45  ;;  %v9702_v62 = vcombine.high %v5807_v47, %v5815_v17  ;;  %v9701_v51 = vcombine.low %v5807_v47, %v5815_v17  ;;  %v9703_v16 = vcombine.low %v5808_v41, %v5816_v8  ;;  %v5912_v47 = vld [vmem:[%s15002_s8 + $0x378] sm:$0xff] }
0x1acb   : > { %6909 = vmatpush1.bf16.msra.mxu1 %v9713_v26  ;;  %6972 = vmatpush1.bf16.msra.mxu0 %v9715_v23  ;;  %v9704_v26 = vcombine.high %v5808_v41, %v5816_v8  ;;  %v5823_v23 = vld [vmem:[%s15002_s8 + $0xb0] sm:$0xff] }
0x1acc   : > { %6910 = vmatprep.subr.bf16.mxu1 %v9730_v42  ;;  %6973 = vmatprep.subr.bf16.mxu0 %v9732_v7  ;;  %v5831_v42 = vld [vmem:[%s15002_s8 + $0xf0] sm:$0xff]  ;;  %v5824_v7 = vld [vmem:[%s15002_s8 + $0xb8] sm:$0xff] }
0x1acd   : > { %v9718_v56 = vcombine.high %v5823_v23, %v5831_v42  ;;  %v9717_v1 = vcombine.low %v5823_v23, %v5831_v42  ;;  %v9719_v63 = vcombine.low %v5824_v7, %v5832_v36  ;;  %v5928_v23 = vld [vmem:[%s15002_s8 + $0x3f8] sm:$0xff] }
0x1ace   : > { %6823 = vmatmul.mubr.bf16.gmra.mrb[132].mxu1 %v15152_v35  ;;  %6886 = vmatmul.mubr.bf16.gmra.mrb[132].mxu0 %v15152_v35 }
0x1acf   : > { %6911 = vmatpush1.bf16.msra.mxu1 %v9729_v5  ;;  %6974 = vmatpush1.bf16.msra.mxu0 %v9731_v33  ;;  %v9720_v5 = vcombine.high %v5824_v7, %v5832_v36  ;;  %v5839_v33 = vld [vmem:[%s15002_s8 + $0x130] sm:$0xff] }
0x1ad0   : > { %6912 = vmatprep.subr.bf16.mxu1 %v9746_v0  ;;  %6975 = vmatprep.subr.bf16.mxu0 %v9748_v34  ;;  %v5847_v0 = vld [vmem:[%s15002_s8 + $0x170] sm:$0xff]  ;;  %v5840_v34 = vld [vmem:[%s15002_s8 + $0x138] sm:$0xff] }
0x1ad1   : > { %6832 = vmatprep.mubr.bf16.mxu1 %v15785_v45  ;;  %6895 = vmatprep.mubr.bf16.mxu0 %v15785_v45  ;;  %v9734_v28 = vcombine.high %v5839_v33, %v5847_v0  ;;  %v9733_v39 = vcombine.low %v5839_v33, %v5847_v0  ;;  %v9735_v9 = vcombine.low %v5840_v34, %v5848_v58  ;;  %v12016_v33 = vld [vmem:[%s15012_s13 + $0xc0] sm:$0xff]  }
0x1ad2   : > { %v12017_v0 = vld [vmem:[%s15012_s13] sm:$0xff]  }
0x1ad3   : > { %6913 = vmatpush1.bf16.msra.mxu1 %v9745_v61  ;;  %6976 = vmatpush1.bf16.msra.mxu0 %v9747_v20  ;;  %v9736_v61 = vcombine.high %v5840_v34, %v5848_v58  ;;  %v5855_v20 = vld [vmem:[%s15002_s8 + $0x1b0] sm:$0xff]  ;;  %v12018_v34 = vld [vmem:[%s15012_s13 + $0x80] sm:$0xff]   ;;  %v12019_v58 = vld [vmem:[%s15012_s13 + $0x48] sm:$0xff]  }
0x1ad4   : > { %6914 = vmatprep.subr.bf16.mxu1 %v9762_v40  ;;  %6977 = vmatprep.subr.bf16.mxu0 %v9764_v37  ;;  %v5863_v40 = vld [vmem:[%s15002_s8 + $0x1f0] sm:$0xff]  ;;  %v5856_v37 = vld [vmem:[%s15002_s8 + $0x1b8] sm:$0xff] }
0x1ad5   : > { %v9750_v44 = vcombine.high %v5855_v20, %v5863_v40  ;;  %v9749_v52 = vcombine.low %v5855_v20, %v5863_v40  ;;  %v9751_v46 = vcombine.low %v5856_v37, %v5864_v57  ;;  %v12024_v20 = vld [vmem:[%s15012_s13 + $0xd0] sm:$0xff]  }
0x1ad6   : > { %6833 = vmatmul.mubr.bf16.gmra.mrb[136].mxu1 %v15170_v14  ;;  %6896 = vmatmul.mubr.bf16.gmra.mrb[136].mxu0 %v15170_v14  ;;  %v12025_v40 = vld [vmem:[%s15012_s13 + $0x10] sm:$0xff]  }
0x1ad7   : > { %6915 = vmatpush1.bf16.msra.mxu1 %v9761_v60  ;;  %6978 = vmatpush1.bf16.msra.mxu0 %v9763_v12  ;;  %v9752_v60 = vcombine.high %v5856_v37, %v5864_v57  ;;  %v5871_v12 = vld [vmem:[%s15002_s8 + $0x230] sm:$0xff]  ;;  %v12027_v37 = vld [vmem:[%s15012_s13 + $0x58] sm:$0xff]  }
0x1ad8   : > { %6916 = vmatprep.subr.bf16.mxu1 %v9778_v48  ;;  %6979 = vmatprep.subr.bf16.mxu0 %v9780_v32  ;;  %v5879_v48 = vld [vmem:[%s15002_s8 + $0x270] sm:$0xff]  ;;  %v5872_v32 = vld [vmem:[%s15002_s8 + $0x238] sm:$0xff] }
0x1ad9   : > { %6938 = vmatprep.mubr.bf16.mxu1 %v15785_v45  ;;  %7001 = vmatprep.mubr.bf16.mxu0 %v15785_v45  ;;  %v9766_v31 = vcombine.high %v5871_v12, %v5879_v48  ;;  %v9765_v43 = vcombine.low %v5871_v12, %v5879_v48  ;;  %v9767_v15 = vcombine.low %v5872_v32, %v5880_v49  ;;  %v12028_v57 = vld [vmem:[%s15012_s13 + $0xd8] sm:$0xff]   ;;  %v12034_v12 = vld [vmem:[%s15012_s13 + $0xa0] sm:$0xff]   ;;  %v12036_v48 = vld [vmem:[%s15012_s13 + $0xe8] sm:$0xff]  }
0x1adb   : > { %6917 = vmatpush1.bf16.msra.mxu1 %v9777_v53  ;;  %6980 = vmatpush1.bf16.msra.mxu0 %v9779_v11  ;;  %v9768_v53 = vcombine.high %v5872_v32, %v5880_v49  ;;  %v5887_v11 = vld [vmem:[%s15002_s8 + $0x2b0] sm:$0xff]  ;;  %v12037_v32 = vld [vmem:[%s15012_s13 + $0x28] sm:$0xff]  }
0x1adc   : > { %6918 = vmatprep.subr.bf16.mxu1 %v9794_v54  ;;  %6981 = vmatprep.subr.bf16.mxu0 %v9796_v50  ;;  %v5895_v54 = vld [vmem:[%s15002_s8 + $0x2f0] sm:$0xff]  ;;  %v5888_v50 = vld [vmem:[%s15002_s8 + $0x2b8] sm:$0xff]  ;;  %v12038_v49 = vld [vmem:[%s15012_s13 + $0xa8] sm:$0xff]  }
0x1add   : > { %v9782_v13 = vcombine.high %v5887_v11, %v5895_v54  ;;  %v9781_v17 = vcombine.low %v5887_v11, %v5895_v54  ;;  %v9783_v41 = vcombine.low %v5888_v50, %v5896_v24  ;;  %v12044_v11 = vld [vmem:[%s15012_s13 + $0xf8] sm:$0xff]  }
0x1ade   : > { %v12045_v54 = vld [vmem:[%s15012_s13 + $0x38] sm:$0xff]  }
0x1adf   : > { %6919 = vmatpush1.bf16.msra.mxu1 %v9793_v38  ;;  %6982 = vmatpush1.bf16.msra.mxu0 %v9795_v19  ;;  %v9784_v38 = vcombine.high %v5888_v50, %v5896_v24  ;;  %v5903_v19 = vld [vmem:[%s15002_s8 + $0x330] sm:$0xff]  ;;  %v12046_v50 = vld [vmem:[%s15012_s13 + $0xb8] sm:$0xff]   ;;  %v12047_v24 = vld [vmem:[%s15012_s13 + $0x140] sm:$0xff]  }
0x1ae0   : > { %6920 = vmatprep.subr.bf16.mxu1 %v9810_v30  ;;  %6983 = vmatprep.subr.bf16.mxu0 %v9812_v3  ;;  %v5911_v30 = vld [vmem:[%s15002_s8 + $0x370] sm:$0xff]  ;;  %v5904_v3 = vld [vmem:[%s15002_s8 + $0x338] sm:$0xff] }
0x1ae1   : > { %v9798_v8 = vcombine.high %v5903_v19, %v5911_v30  ;;  %v9797_v42 = vcombine.low %v5903_v19, %v5911_v30  ;;  %v9799_v7 = vcombine.low %v5904_v3, %v5912_v47 }
0x1ae3   : > { %6921 = vmatpush1.bf16.msra.mxu1 %v9809_v59  ;;  %6984 = vmatpush1.bf16.msra.mxu0 %v9811_v21  ;;  %v9800_v59 = vcombine.high %v5904_v3, %v5912_v47  ;;  %v5919_v21 = vld [vmem:[%s15002_s8 + $0x3b0] sm:$0xff] }
0x1ae4   : > { %7032 = vmatprep.subr.bf16.mxu1 %v9702_v62  ;;  %7095 = vmatprep.subr.bf16.mxu0 %v9704_v26  ;;  %v5927_v62 = vld [vmem:[%s15002_s8 + $0x3f0] sm:$0xff]  ;;  %v5920_v26 = vld [vmem:[%s15002_s8 + $0x3b8] sm:$0xff] }
0x1ae5   : > { %v9814_v36 = vcombine.high %v5919_v21, %v5927_v62 }
0x1ae6   : > { %6939 = vmatmul.mubr.bf16.vlgmr.msra.gmra.mrb[140].mxu1 %v15094_v27  ;;  %7002 = vmatmul.mubr.bf16.vlgmr.msra.gmra.mrb[140].mxu0 %v15094_v27 }
0x1ae7   : > { %7033 = vmatpush1.bf16.msra.mxu1 %v9701_v51  ;;  %7096 = vmatpush1.bf16.msra.mxu0 %v9703_v16  ;;  %v9816_v51 = vcombine.high %v5920_v26, %v5928_v23  ;;  %v9813_v16 = vcombine.low %v5919_v21, %v5927_v62 }
0x1ae8   : > { %7034 = vmatprep.subr.bf16.mxu1 %v9718_v56  ;;  %7097 = vmatprep.subr.bf16.mxu0 %v9720_v5  ;;  %v9815_v56 = vcombine.low %v5920_v26, %v5928_v23  ;;  %v12015_v5 = vld [vmem:[%s15012_s13 + $0x40] sm:$0xff]  }
0x1ae9   : > { %6948 = vmatprep.mubr.bf16.mxu1 %v15785_v45  ;;  %7011 = vmatprep.mubr.bf16.mxu0 %v15785_v45 }
0x1aeb   : > { %7035 = vmatpush1.bf16.msra.mxu1 %v9717_v1  ;;  %7098 = vmatpush1.bf16.msra.mxu0 %v9719_v63  ;;  %v12020_v1 = vld [vmem:[%s15012_s13 + $0xc8] sm:$0xff]  }
0x1aec   : > { %7036 = vmatprep.subr.bf16.mxu1 %v9734_v28  ;;  %7099 = vmatprep.subr.bf16.mxu0 %v9736_v61  ;;  %v12021_v63 = vld [vmem:[%s15012_s13 + $0x8] sm:$0xff]   ;;  %v12023_v61 = vld [vmem:[%s15012_s13 + $0x50] sm:$0xff]  }
0x1aed   : > { %v12022_v28 = vld [vmem:[%s15012_s13 + $0x88] sm:$0xff]  }
0x1aee   : > { %6949 = vmatmul.mubr.bf16.gmra.mrb[144].mxu1 %v15152_v35  ;;  %7012 = vmatmul.mubr.bf16.gmra.mrb[144].mxu0 %v15152_v35 }
0x1aef   : > { %7037 = vmatpush1.bf16.msra.mxu1 %v9733_v39  ;;  %7100 = vmatpush1.bf16.msra.mxu0 %v9735_v9  ;;  %v12029_v39 = vld [vmem:[%s15012_s13 + $0x18] sm:$0xff]  }
0x1af0   : > { %7038 = vmatprep.subr.bf16.mxu1 %v9750_v44  ;;  %7101 = vmatprep.subr.bf16.mxu0 %v9752_v60  ;;  %v12030_v9 = vld [vmem:[%s15012_s13 + $0x98] sm:$0xff]   ;;  %v12031_v44 = vld [vmem:[%s15012_s13 + $0x60] sm:$0xff]  }
0x1af1   : > { %6958 = vmatprep.mubr.bf16.mxu1 %v15785_v45  ;;  %7021 = vmatprep.mubr.bf16.mxu0 %v15785_v45  ;;  %v12032_v60 = vld [vmem:[%s15012_s13 + $0xe0] sm:$0xff]  }
0x1af3   : > { %7039 = vmatpush1.bf16.msra.mxu1 %v9749_v52  ;;  %7102 = vmatpush1.bf16.msra.mxu0 %v9751_v46  ;;  %v12039_v52 = vld [vmem:[%s15012_s13 + $0x70] sm:$0xff]  }
0x1af4   : > { %7040 = vmatprep.subr.bf16.mxu1 %v9766_v31  ;;  %7103 = vmatprep.subr.bf16.mxu0 %v9768_v53  ;;  %v12040_v46 = vld [vmem:[%s15012_s13 + $0xf0] sm:$0xff]  }
0x1af5   : > { %v12041_v31 = vld [vmem:[%s15012_s13 + $0x30] sm:$0xff]  }
0x1af6   : > { %6959 = vmatmul.mubr.bf16.gmra.mrb[148].mxu1 %v15170_v14  ;;  %7022 = vmatmul.mubr.bf16.gmra.mrb[148].mxu0 %v15170_v14  ;;  %v12042_v53 = vld [vmem:[%s15012_s13 + $0xb0] sm:$0xff]  }
0x1af7   : > { %7041 = vmatpush1.bf16.msra.mxu1 %v9765_v43  ;;  %7104 = vmatpush1.bf16.msra.mxu0 %v9767_v15  ;;  %v12048_v43 = vld [vmem:[%s15012_s13 + $0x1c0] sm:$0xff]  }
0x1af8   : > { %7042 = vmatprep.subr.bf16.mxu1 %v9782_v13  ;;  %7105 = vmatprep.subr.bf16.mxu0 %v9784_v38  ;;  %v15312_v15 = vld [vmem:[%s15309_s2] sm:$0xff]  ;;  %v15803_v13 = vld [vmem:[#allocation49_spill] sm:$0xff] }
0x1af9   : > { %7064 = vmatprep.mubr.bf16.mxu1 %v15785_v45  ;;  %7127 = vmatprep.mubr.bf16.mxu0 %v15785_v45  ;;  %v15315_v38 = vsub.s32 3, %v15803_v13  ;;  %v15319_v19 = vrot.slane %v15312_v15, %v15800_v4  ;;  %v15323_v30 = vrot.slane %v15312_v15, %v15802_v29  ;;  %v15327_v3 = vrot.slane %v15312_v15, %v15801_v55 }
0x1afb   : > { %7043 = vmatpush1.bf16.msra.mxu1 %v9781_v17  ;;  %7106 = vmatpush1.bf16.msra.mxu0 %v9783_v41  ;;  %v15331_v47 = vrot.slane %v15312_v15, %v15315_v38 }
0x1afc   : > { %7044 = vmatprep.subr.bf16.mxu1 %v9798_v8  ;;  %7107 = vmatprep.subr.bf16.mxu0 %v9800_v59 }
0x1aff   : > { %7045 = vmatpush1.bf16.msra.mxu1 %v9797_v42  ;;  %7108 = vmatpush1.bf16.msra.mxu0 %v9799_v7 }
0x1b00   : > { %7046 = vmatprep.subr.bf16.mxu1 %v9814_v36  ;;  %7109 = vmatprep.subr.bf16.mxu0 %v9816_v51 }
0x1b03   : > { %7047 = vmatpush1.bf16.msra.mxu1 %v9813_v16  ;;  %7110 = vmatpush1.bf16.msra.mxu0 %v9815_v56 }
0x1b04   : > { %10202 = vmatprep.subr.bf16.mxu1 %v12015_v5  ;;  %10236 = vmatprep.subr.bf16.mxu0 %v12016_v33 }
0x1b06   : > { %7065 = vmatmul.mubr.bf16.vlgmr.msra.gmra.mrb[152].mxu1 %v15094_v27  ;;  %7128 = vmatmul.mubr.bf16.vlgmr.msra.gmra.mrb[152].mxu0 %v15094_v27  ;;  %v12026_v27 = vld [vmem:[%s15012_s13 + $0x90] sm:$0xff]  }
0x1b07   : > { %7074 = vmatprep.mubr.bf16.mxu1 %v15785_v45  ;;  %7137 = vmatprep.mubr.bf16.mxu0 %v15785_v45 }
0x1b08   : > { %10203 = vmatpush3.bf16.msra.mxu1 %v12017_v0  ;;  %10237 = vmatpush3.bf16.msra.mxu0 %v12018_v34 }
0x1b09   : > { %10204 = vmatprep.subr.bf16.mxu1 %v12019_v58  ;;  %10238 = vmatprep.subr.bf16.mxu0 %v12020_v1 }
0x1b0c   : > { %10205 = vmatpush3.bf16.msra.mxu1 %v12021_v63  ;;  %10239 = vmatpush3.bf16.msra.mxu0 %v12022_v28 }
0x1b0d   : > { %10206 = vmatprep.subr.bf16.mxu1 %v12023_v61  ;;  %10240 = vmatprep.subr.bf16.mxu0 %v12024_v20 }
0x1b0e   : > { %7075 = vmatmul.mubr.bf16.gmra.mrb[156].mxu1 %v15152_v35  ;;  %7138 = vmatmul.mubr.bf16.gmra.mrb[156].mxu0 %v15152_v35  ;;  %v12033_v35 = vld [vmem:[%s15012_s13 + $0x20] sm:$0xff]  }
0x1b0f   : > { %7084 = vmatprep.mubr.bf16.mxu1 %v15785_v45  ;;  %7147 = vmatprep.mubr.bf16.mxu0 %v15785_v45  ;;  %v12035_v45 = vld [vmem:[%s15012_s13 + $0x68] sm:$0xff]  }
0x1b10   : > { %10207 = vmatpush3.bf16.msra.mxu1 %v12025_v40  ;;  %10241 = vmatpush3.bf16.msra.mxu0 %v12026_v27 }
0x1b11   : > { %10208 = vmatprep.subr.bf16.mxu1 %v12027_v37  ;;  %10242 = vmatprep.subr.bf16.mxu0 %v12028_v57 }
0x1b14   : > { %10209 = vmatpush3.bf16.msra.mxu1 %v12029_v39  ;;  %10243 = vmatpush3.bf16.msra.mxu0 %v12030_v9  ;;  %v12049_v39 = vld [vmem:[%s15012_s13 + $0x100] sm:$0xff]  }
0x1b15   : > { %10210 = vmatprep.subr.bf16.mxu1 %v12031_v44  ;;  %10244 = vmatprep.subr.bf16.mxu0 %v12032_v60  ;;  %v12050_v9 = vld [vmem:[%s15012_s13 + $0x180] sm:$0xff]   ;;  %v12051_v44 = vld [vmem:[%s15012_s13 + $0x148] sm:$0xff]  }
0x1b16   : > { %7085 = vmatmul.mubr.bf16.gmra.mrb[160].mxu1 %v15170_v14  ;;  %7148 = vmatmul.mubr.bf16.gmra.mrb[160].mxu0 %v15170_v14  ;;  %v12043_v14 = vld [vmem:[%s15012_s13 + $0x78] sm:$0xff]   ;;  %v12052_v60 = vld [vmem:[%s15012_s13 + $0x1c8] sm:$0xff]  }
0x1b18   : > { %10211 = vmatpush3.bf16.msra.mxu1 %v12033_v35  ;;  %10245 = vmatpush3.bf16.msra.mxu0 %v12034_v12  ;;  %v12053_v35 = vld [vmem:[%s15012_s13 + $0x108] sm:$0xff]  }
0x1b19   : > { %10212 = vmatprep.subr.bf16.mxu1 %v12035_v45  ;;  %10246 = vmatprep.subr.bf16.mxu0 %v12036_v48  ;;  %v12054_v12 = vld [vmem:[%s15012_s13 + $0x188] sm:$0xff]   ;;  %v12055_v45 = vld [vmem:[%s15012_s13 + $0x150] sm:$0xff]  }
0x1b1a   : > { %v12056_v48 = vld [vmem:[%s15012_s13 + $0x1d0] sm:$0xff]  }
0x1b1c   : > { %10213 = vmatpush3.bf16.msra.mxu1 %v12037_v32  ;;  %10247 = vmatpush3.bf16.msra.mxu0 %v12038_v49  ;;  %v12057_v32 = vld [vmem:[%s15012_s13 + $0x110] sm:$0xff]  }
0x1b1d   : > { %10214 = vmatprep.subr.bf16.mxu1 %v12039_v52  ;;  %10248 = vmatprep.subr.bf16.mxu0 %v12040_v46  ;;  %v12058_v49 = vld [vmem:[%s15012_s13 + $0x190] sm:$0xff]   ;;  %v12059_v52 = vld [vmem:[%s15012_s13 + $0x158] sm:$0xff]  }
0x1b1e   : > { %v12060_v46 = vld [vmem:[%s15012_s13 + $0x1d8] sm:$0xff]  }
0x1b20   : > { %10215 = vmatpush3.bf16.msra.mxu1 %v12041_v31  ;;  %10249 = vmatpush3.bf16.msra.mxu0 %v12042_v53  ;;  %v12061_v31 = vld [vmem:[%s15012_s13 + $0x118] sm:$0xff]  }
0x1b21   : > { %10216 = vmatprep.subr.bf16.mxu1 %v12043_v14  ;;  %10250 = vmatprep.subr.bf16.mxu0 %v12044_v11  ;;  %v12062_v53 = vld [vmem:[%s15012_s13 + $0x198] sm:$0xff]   ;;  %v12063_v14 = vld [vmem:[%s15012_s13 + $0x160] sm:$0xff]  }
0x1b22   : > { %v12064_v11 = vld [vmem:[%s15012_s13 + $0x1e0] sm:$0xff]  }
0x1b24   : > { %10217 = vmatpush3.bf16.msra.mxu1 %v12045_v54  ;;  %10251 = vmatpush3.bf16.msra.mxu0 %v12046_v50  ;;  %v12065_v54 = vld [vmem:[%s15012_s13 + $0x120] sm:$0xff]  }
0x1b25   : > { %10270 = vmatprep.subr.bf16.mxu1 %v12047_v24  ;;  %10304 = vmatprep.subr.bf16.mxu0 %v12048_v43  ;;  %v12066_v50 = vld [vmem:[%s15012_s13 + $0x1a0] sm:$0xff]   ;;  %v12067_v24 = vld [vmem:[%s15012_s13 + $0x168] sm:$0xff]  }
0x1b26   : > { %v12068_v43 = vld [vmem:[%s15012_s13 + $0x1e8] sm:$0xff]  }
0x1b4d   : > { %v6688_v17 = vpop.f32.mrb[116].mxu1  ;;  %v6751_v41 = vpop.f32.mrb[116].mxu0 }
0x1b4e   : > { %v6689_v8 = vadd.f32 %v6688_v17, %v15319_v19  ;;  %v6752_v59 = vadd.f32 %v6751_v41, %v15323_v30  ;;  %v6690_v21 = vpop.f32.mrb[117].mxu1  ;;  %v6753_v62 = vpop.f32.mrb[117].mxu0  ;;  %v12069_v17 = vld [vmem:[%s15012_s13 + $0x128] sm:$0xff]  }
0x1b4f   : > { %v6691_v26 = vadd.f32 %v6690_v21, %v15327_v3  ;;  %v6754_v23 = vadd.f32 %v6753_v62, %v15331_v47  ;;  %v6692_v42 = vpop.f32.mrb[118].mxu1  ;;  %v6755_v7 = vpop.f32.mrb[118].mxu0  ;;  %v12070_v41 = vld [vmem:[%s15012_s13 + $0x1a8] sm:$0xff]   ;;  %v12073_v21 = vld [vmem:[%s15012_s13 + $0x130] sm:$0xff]  }
0x1b50   : > { %v6693_v36 = vadd.f32 %v6692_v42, %v15319_v19  ;;  %v6756_v51 = vadd.f32 %v6755_v7, %v15323_v30  ;;  %v6694_v16 = vpop.f32.mrb[119].mxu1  ;;  %v6757_v56 = vpop.f32.mrb[119].mxu0  ;;  %v7158_v0 = vmax.f32 %v6689_v8, 0.0  ;;  %v7160_v34 = vmax.f32 %v6752_v59, 0.0  ;;  %v12071_v8 = vld [vmem:[%s15012_s13 + $0x170] sm:$0xff]   ;;  %v12077_v42 = vld [vmem:[%s15012_s13 + $0x138] sm:$0xff]  }
0x1b51   : > { %v6695_v5 = vadd.f32 %v6694_v16, %v15327_v3  ;;  %v6758_v33 = vadd.f32 %v6757_v56, %v15331_v47  ;;  %v7159_v63 = vmax.f32 %v6691_v26, 0.0  ;;  %v7161_v28 = vmax.f32 %v6754_v23, 0.0  ;;  %v12072_v59 = vld [vmem:[%s15012_s13 + $0x1f0] sm:$0xff]   ;;  %v12075_v26 = vld [vmem:[%s15012_s13 + $0x178] sm:$0xff]  }
0x1b52   : > { %v7174_v58 = vmax.f32 %v6693_v36, 0.0  ;;  %v7176_v1 = vmax.f32 %v6756_v51, 0.0  ;;  %v12074_v62 = vld [vmem:[%s15012_s13 + $0x1b0] sm:$0xff]   ;;  %v12076_v23 = vld [vmem:[%s15012_s13 + $0x1f8] sm:$0xff]   ;;  %v12079_v36 = vld [vmem:[%s15012_s13 + $0x240] sm:$0xff]  }
0x1b53   : > { %v7175_v61 = vmax.f32 %v6695_v5, 0.0  ;;  %v7177_v20 = vmax.f32 %v6758_v33, 0.0  ;;  %v12078_v7 = vld [vmem:[%s15012_s13 + $0x1b8] sm:$0xff]   ;;  %v12080_v51 = vld [vmem:[%s15012_s13 + $0x2c0] sm:$0xff]  }
0x1b54   : > { %v7254_v40 = vpack.c.bf16 %v7174_v58, %v7158_v0  ;;  %v7256_v27 = vpack.c.bf16 %v7176_v1, %v7160_v34 }
0x1b55   : > { %v7255_v37 = vpack.c.bf16 %v7175_v61, %v7159_v63  ;;  %v7257_v57 = vpack.c.bf16 %v7177_v20, %v7161_v28 }
0x1b57   : > { %8364 = vmatprep.mubr.bf16.mxu1 %v7255_v37  ;;  %8421 = vmatprep.mubr.bf16.mxu0 %v7257_v57 }
0x1b58   : > { %8365 = vmatmul.mubr.bf16.vlgmr.msra.gmra.mrb[164].mxu1 %v7254_v40  ;;  %8422 = vmatmul.mubr.bf16.vlgmr.msra.gmra.mrb[164].mxu0 %v7256_v27 }
0x1b59   : > { %10271 = vmatpush3.bf16.msra.mxu1 %v12049_v39  ;;  %10305 = vmatpush3.bf16.msra.mxu0 %v12050_v9 }
0x1b5a   : > { %10272 = vmatprep.subr.bf16.mxu1 %v12051_v44  ;;  %10306 = vmatprep.subr.bf16.mxu0 %v12052_v60 }
0x1b5d   : > { %10273 = vmatpush3.bf16.msra.mxu1 %v12053_v35  ;;  %10307 = vmatpush3.bf16.msra.mxu0 %v12054_v12 }
0x1b5e   : > { %10274 = vmatprep.subr.bf16.mxu1 %v12055_v45  ;;  %10308 = vmatprep.subr.bf16.mxu0 %v12056_v48 }
0x1b61   : > { %10275 = vmatpush3.bf16.msra.mxu1 %v12057_v32  ;;  %10309 = vmatpush3.bf16.msra.mxu0 %v12058_v49 }
0x1b62   : > { %10276 = vmatprep.subr.bf16.mxu1 %v12059_v52  ;;  %10310 = vmatprep.subr.bf16.mxu0 %v12060_v46 }
0x1b65   : > { %10277 = vmatpush3.bf16.msra.mxu1 %v12061_v31  ;;  %10311 = vmatpush3.bf16.msra.mxu0 %v12062_v53  ;;  %v15382_v31 = vsub.s32 4, %v15803_v13  ;;  %v5960_v53 = vsub.s32 6, %v15803_v13 }
0x1b66   : > { %10278 = vmatprep.subr.bf16.mxu1 %v12063_v14  ;;  %10312 = vmatprep.subr.bf16.mxu0 %v12064_v11 }
0x1b69   : > { %10279 = vmatpush3.bf16.msra.mxu1 %v12065_v54  ;;  %10313 = vmatpush3.bf16.msra.mxu0 %v12066_v50  ;;  %v15386_v54 = vsub.s32 5, %v15803_v13  ;;  %v5964_v50 = vsub.s32 7, %v15803_v13  ;;  %v12139_v13 = vld [vmem:[%s15012_s13 + $0x378] sm:$0xff]  }
0x1b6a   : > { %10280 = vmatprep.subr.bf16.mxu1 %v12067_v24  ;;  %10314 = vmatprep.subr.bf16.mxu0 %v12068_v43 }
0x1b6d   : > { %10281 = vmatpush3.bf16.msra.mxu1 %v12069_v17  ;;  %10315 = vmatpush3.bf16.msra.mxu0 %v12070_v41 }
0x1b6e   : > { %10282 = vmatprep.subr.bf16.mxu1 %v12071_v8  ;;  %10316 = vmatprep.subr.bf16.mxu0 %v12072_v59 }
0x1b71   : > { %10283 = vmatpush3.bf16.msra.mxu1 %v12073_v21  ;;  %10317 = vmatpush3.bf16.msra.mxu0 %v12074_v62 }
0x1b72   : > { %10284 = vmatprep.subr.bf16.mxu1 %v12075_v26  ;;  %10318 = vmatprep.subr.bf16.mxu0 %v12076_v23 }
0x1b75   : > { %10285 = vmatpush3.bf16.msra.mxu1 %v12077_v42  ;;  %10319 = vmatpush3.bf16.msra.mxu0 %v12078_v7 }
0x1b76   : > { %10338 = vmatprep.subr.bf16.mxu1 %v12079_v36  ;;  %10372 = vmatprep.subr.bf16.mxu0 %v12080_v51  ;;  %v15397_v36 = vrot.slane %v15312_v15, %v15382_v31  ;;  %v15402_v51 = vrot.slane %v15312_v15, %v5960_v53 }
0x1b88   : > { %v6698_v16 = vpop.f32.mrb[120].mxu1  ;;  %v6761_v56 = vpop.f32.mrb[120].mxu0 }
0x1b89   : > { %v6699_v5 = vadd.f32 %v6698_v16, %v15319_v19  ;;  %v6762_v33 = vadd.f32 %v6761_v56, %v15323_v30  ;;  %v6700_v0 = vpop.f32.mrb[121].mxu1  ;;  %v6763_v34 = vpop.f32.mrb[121].mxu0 }
0x1b8a   : > { %v6701_v58 = vadd.f32 %v6700_v0, %v15327_v3  ;;  %v6764_v1 = vadd.f32 %v6763_v34, %v15331_v47  ;;  %v6702_v63 = vpop.f32.mrb[122].mxu1  ;;  %v6765_v28 = vpop.f32.mrb[122].mxu0 }
0x1b8b   : > { %v6703_v61 = vadd.f32 %v6702_v63, %v15319_v19  ;;  %v6766_v20 = vadd.f32 %v6765_v28, %v15323_v30  ;;  %v6704_v40 = vpop.f32.mrb[123].mxu1  ;;  %v6767_v27 = vpop.f32.mrb[123].mxu0  ;;  %v7190_v39 = vmax.f32 %v6699_v5, 0.0  ;;  %v7192_v9 = vmax.f32 %v6762_v33, 0.0 }
0x1b8c   : > { %v6705_v37 = vadd.f32 %v6704_v40, %v15327_v3  ;;  %v6768_v57 = vadd.f32 %v6767_v27, %v15331_v47  ;;  %v7191_v35 = vmax.f32 %v6701_v58, 0.0  ;;  %v7193_v12 = vmax.f32 %v6764_v1, 0.0 }
0x1b8d   : > { %v7206_v44 = vmax.f32 %v6703_v61, 0.0  ;;  %v7208_v60 = vmax.f32 %v6766_v20, 0.0 }
0x1b8e   : > { %v7207_v45 = vmax.f32 %v6705_v37, 0.0  ;;  %v7209_v48 = vmax.f32 %v6768_v57, 0.0 }
0x1b8f   : > { %v7270_v32 = vpack.c.bf16 %v7206_v44, %v7190_v39  ;;  %v7272_v49 = vpack.c.bf16 %v7208_v60, %v7192_v9 }
0x1b90   : > { %v7271_v52 = vpack.c.bf16 %v7207_v45, %v7191_v35  ;;  %v7273_v46 = vpack.c.bf16 %v7209_v48, %v7193_v12 }
0x1b91   : > { %v6708_v14 = vpop.f32.mrb[124].mxu1  ;;  %v6771_v11 = vpop.f32.mrb[124].mxu0 }
0x1b92   : > { %v6709_v24 = vadd.f32 %v6708_v14, %v15319_v19  ;;  %v6772_v43 = vadd.f32 %v6771_v11, %v15323_v30  ;;  %v6710_v17 = vpop.f32.mrb[125].mxu1  ;;  %v6773_v41 = vpop.f32.mrb[125].mxu0  ;;  %8372 = vmatprep.mubr.bf16.mxu1 %v7271_v52  ;;  %8429 = vmatprep.mubr.bf16.mxu0 %v7273_v46 }
0x1b93   : > { %v6711_v8 = vadd.f32 %v6710_v17, %v15327_v3  ;;  %v6774_v59 = vadd.f32 %v6773_v41, %v15331_v47  ;;  %v6712_v21 = vpop.f32.mrb[126].mxu1  ;;  %v6775_v62 = vpop.f32.mrb[126].mxu0  ;;  %8373 = vmatmul.mubr.bf16.gmra.mrb[168].mxu1 %v7270_v32  ;;  %8430 = vmatmul.mubr.bf16.gmra.mrb[168].mxu0 %v7272_v49 }
0x1b94   : > { %v6713_v26 = vadd.f32 %v6712_v21, %v15319_v19  ;;  %v6776_v23 = vadd.f32 %v6775_v62, %v15323_v30  ;;  %v6714_v42 = vpop.f32.mrb[127].mxu1  ;;  %v6777_v7 = vpop.f32.mrb[127].mxu0  ;;  %v15408_v19 = vrot.slane %v15312_v15, %v15386_v54  ;;  %v15413_v30 = vrot.slane %v15312_v15, %v5964_v50 }
0x1b95   : > { %v6715_v16 = vadd.f32 %v6714_v42, %v15327_v3  ;;  %v6778_v56 = vadd.f32 %v6777_v7, %v15331_v47  ;;  %v7222_v5 = vmax.f32 %v6709_v24, 0.0  ;;  %v7224_v33 = vmax.f32 %v6772_v43, 0.0  ;;  %v12081_v7 = vld [vmem:[%s15012_s13 + $0x200] sm:$0xff]  }
0x1b96   : > { %v7238_v0 = vmax.f32 %v6713_v26, 0.0  ;;  %v7240_v34 = vmax.f32 %v6776_v23, 0.0  ;;  %v7223_v58 = vmax.f32 %v6711_v8, 0.0  ;;  %v7225_v1 = vmax.f32 %v6774_v59, 0.0 }
0x1b97   : > { %v7239_v63 = vmax.f32 %v6715_v16, 0.0  ;;  %v7241_v28 = vmax.f32 %v6778_v56, 0.0  ;;  %v12082_v16 = vld [vmem:[%s15012_s13 + $0x280] sm:$0xff]  }
0x1b98   : > { %v7286_v3 = vpack.c.bf16 %v7238_v0, %v7222_v5  ;;  %v7288_v61 = vpack.c.bf16 %v7240_v34, %v7224_v33  ;;  %v12083_v34 = vld [vmem:[%s15012_s13 + $0x248] sm:$0xff]  }
0x1b99   : > { %v7287_v47 = vpack.c.bf16 %v7239_v63, %v7223_v58  ;;  %v7289_v20 = vpack.c.bf16 %v7241_v28, %v7225_v1  ;;  %v6814_v40 = vpop.f32.mrb[128].mxu1  ;;  %v6877_v27 = vpop.f32.mrb[128].mxu0  ;;  %v12084_v58 = vld [vmem:[%s15012_s13 + $0x2c8] sm:$0xff]  }
0x1b9a   : > { %v6815_v37 = vadd.f32 %v6814_v40, %v15397_v36  ;;  %v6878_v57 = vadd.f32 %v6877_v27, %v15402_v51  ;;  %v6816_v15 = vpop.f32.mrb[129].mxu1  ;;  %v6879_v39 = vpop.f32.mrb[129].mxu0 }
0x1b9b   : > { %v6817_v9 = vadd.f32 %v6816_v15, %v15408_v19  ;;  %v6880_v44 = vadd.f32 %v6879_v39, %v15413_v30  ;;  %v6818_v60 = vpop.f32.mrb[130].mxu1  ;;  %v6881_v35 = vpop.f32.mrb[130].mxu0  ;;  %8380 = vmatprep.mubr.bf16.mxu1 %v7287_v47  ;;  %8437 = vmatprep.mubr.bf16.mxu0 %v7289_v20  ;;  %v12086_v15 = vld [vmem:[%s15012_s13 + $0x288] sm:$0xff]  }
0x1b9c   : > { %v6819_v12 = vadd.f32 %v6818_v60, %v15397_v36  ;;  %v6882_v45 = vadd.f32 %v6881_v35, %v15402_v51  ;;  %v6820_v48 = vpop.f32.mrb[131].mxu1  ;;  %v6883_v32 = vpop.f32.mrb[131].mxu0  ;;  %8381 = vmatmul.mubr.bf16.gmra.mrb[172].mxu1 %v7286_v3  ;;  %8438 = vmatmul.mubr.bf16.gmra.mrb[172].mxu0 %v7288_v61  ;;  %v7162_v46 = vmax.f32 %v6815_v37, 0.0  ;;  %v7164_v14 = vmax.f32 %v6878_v57, 0.0  ;;  %v12085_v57 = vld [vmem:[%s15012_s13 + $0x208] sm:$0xff]   ;;  %v12087_v35 = vld [vmem:[%s15012_s13 + $0x250] sm:$0xff]  }
0x1b9d   : > { %v6821_v49 = vadd.f32 %v6820_v48, %v15408_v19  ;;  %v6884_v52 = vadd.f32 %v6883_v32, %v15413_v30  ;;  %v7163_v43 = vmax.f32 %v6817_v9, 0.0  ;;  %v7165_v17 = vmax.f32 %v6880_v44, 0.0 }
0x1b9e   : > { %v7178_v11 = vmax.f32 %v6819_v12, 0.0  ;;  %v7180_v24 = vmax.f32 %v6882_v45, 0.0  ;;  %v12088_v12 = vld [vmem:[%s15012_s13 + $0x2d0] sm:$0xff]  }
0x1b9f   : > { %v7179_v41 = vmax.f32 %v6821_v49, 0.0  ;;  %v7181_v8 = vmax.f32 %v6884_v52, 0.0 }
0x1ba0   : > { %v7258_v59 = vpack.c.bf16 %v7178_v11, %v7162_v46  ;;  %v7260_v21 = vpack.c.bf16 %v7180_v24, %v7164_v14 }
0x1ba1   : > { %v7259_v62 = vpack.c.bf16 %v7179_v41, %v7163_v43  ;;  %v7261_v26 = vpack.c.bf16 %v7181_v8, %v7165_v17  ;;  %v6824_v23 = vpop.f32.mrb[132].mxu1  ;;  %v6887_v42 = vpop.f32.mrb[132].mxu0  ;;  %v12089_v17 = vld [vmem:[%s15012_s13 + $0x210] sm:$0xff]  }
0x1ba2   : > { %v6825_v56 = vadd.f32 %v6824_v23, %v15397_v36  ;;  %v6888_v5 = vadd.f32 %v6887_v42, %v15402_v51  ;;  %v6826_v33 = vpop.f32.mrb[133].mxu1  ;;  %v6889_v0 = vpop.f32.mrb[133].mxu0  ;;  %v12090_v41 = vld [vmem:[%s15012_s13 + $0x290] sm:$0xff]   ;;  %v12092_v23 = vld [vmem:[%s15012_s13 + $0x2d8] sm:$0xff]  }
0x1ba3   : > { %v6827_v1 = vadd.f32 %v6826_v33, %v15408_v19  ;;  %v6890_v63 = vadd.f32 %v6889_v0, %v15413_v30  ;;  %v6828_v28 = vpop.f32.mrb[134].mxu1  ;;  %v6891_v3 = vpop.f32.mrb[134].mxu0  ;;  %8478 = vmatprep.mubr.bf16.mxu1 %v7259_v62  ;;  %8535 = vmatprep.mubr.bf16.mxu0 %v7261_v26  ;;  %v12091_v26 = vld [vmem:[%s15012_s13 + $0x258] sm:$0xff]  }
0x1ba4   : > { %v6829_v61 = vadd.f32 %v6828_v28, %v15397_v36  ;;  %v6892_v47 = vadd.f32 %v6891_v3, %v15402_v51  ;;  %v6830_v20 = vpop.f32.mrb[135].mxu1  ;;  %v6893_v40 = vpop.f32.mrb[135].mxu0  ;;  %8479 = vmatmul.mubr.bf16.vlgmr.msra.gmra.mrb[176].mxu1 %v7258_v59  ;;  %8536 = vmatmul.mubr.bf16.vlgmr.msra.gmra.mrb[176].mxu0 %v7260_v21  ;;  %v7194_v39 = vmax.f32 %v6825_v56, 0.0  ;;  %v7196_v9 = vmax.f32 %v6888_v5, 0.0  ;;  %v12094_v28 = vld [vmem:[%s15012_s13 + $0x298] sm:$0xff]  }
0x1ba5   : > { %v6831_v27 = vadd.f32 %v6830_v20, %v15408_v19  ;;  %v6894_v37 = vadd.f32 %v6893_v40, %v15413_v30  ;;  %10339 = vmatpush3.bf16.msra.mxu1 %v12081_v7  ;;  %10373 = vmatpush3.bf16.msra.mxu0 %v12082_v16  ;;  %v7195_v45 = vmax.f32 %v6827_v1, 0.0  ;;  %v7197_v48 = vmax.f32 %v6890_v63, 0.0  ;;  %v12093_v63 = vld [vmem:[%s15012_s13 + $0x218] sm:$0xff]   ;;  %v12096_v20 = vld [vmem:[%s15012_s13 + $0x2e0] sm:$0xff]  }
0x1ba6   : > { %v7210_v44 = vmax.f32 %v6829_v61, 0.0  ;;  %v7212_v60 = vmax.f32 %v6892_v47, 0.0  ;;  %10340 = vmatprep.subr.bf16.mxu1 %v12083_v34  ;;  %10374 = vmatprep.subr.bf16.mxu0 %v12084_v58 }
0x1ba7   : > { %v7211_v32 = vmax.f32 %v6831_v27, 0.0  ;;  %v7213_v49 = vmax.f32 %v6894_v37, 0.0 }
0x1ba8   : > { %v7274_v52 = vpack.c.bf16 %v7210_v44, %v7194_v39  ;;  %v7276_v46 = vpack.c.bf16 %v7212_v60, %v7196_v9  ;;  %v12097_v9 = vld [vmem:[%s15012_s13 + $0x220] sm:$0xff]   ;;  %v12099_v60 = vld [vmem:[%s15012_s13 + $0x268] sm:$0xff]  }
0x1ba9   : > { %v7275_v14 = vpack.c.bf16 %v7211_v32, %v7195_v45  ;;  %v7277_v11 = vpack.c.bf16 %v7213_v49, %v7197_v48  ;;  %10341 = vmatpush3.bf16.msra.mxu1 %v12085_v57  ;;  %10375 = vmatpush3.bf16.msra.mxu0 %v12086_v15  ;;  %v6834_v24 = vpop.f32.mrb[136].mxu1  ;;  %v6897_v43 = vpop.f32.mrb[136].mxu0  ;;  %v12098_v44 = vld [vmem:[%s15012_s13 + $0x2a0] sm:$0xff]   ;;  %v12101_v45 = vld [vmem:[%s15012_s13 + $0x228] sm:$0xff]  }
0x1baa   : > { %v6835_v8 = vadd.f32 %v6834_v24, %v15397_v36  ;;  %v6898_v59 = vadd.f32 %v6897_v43, %v15402_v51  ;;  %v6836_v21 = vpop.f32.mrb[137].mxu1  ;;  %v6899_v62 = vpop.f32.mrb[137].mxu0  ;;  %10342 = vmatprep.subr.bf16.mxu1 %v12087_v35  ;;  %10376 = vmatprep.subr.bf16.mxu0 %v12088_v12  ;;  %v12100_v35 = vld [vmem:[%s15012_s13 + $0x2e8] sm:$0xff]  }
0x1bab   : > { %v6837_v42 = vadd.f32 %v6836_v21, %v15408_v19  ;;  %v6900_v7 = vadd.f32 %v6899_v62, %v15413_v30  ;;  %v6838_v16 = vpop.f32.mrb[138].mxu1  ;;  %v6901_v56 = vpop.f32.mrb[138].mxu0  ;;  %8486 = vmatprep.mubr.bf16.mxu1 %v7275_v14  ;;  %8543 = vmatprep.mubr.bf16.mxu0 %v7277_v11  ;;  %v15460_v12 = vld [vmem:[%s15309_s2 + $0x8] sm:$0xff]  ;;  %v12108_v21 = vld [vmem:[%s15012_s13 + $0x2f8] sm:$0xff]  }
0x1bac   : > { %v6839_v5 = vadd.f32 %v6838_v16, %v15397_v36  ;;  %v6902_v33 = vadd.f32 %v6901_v56, %v15402_v51  ;;  %v6840_v0 = vpop.f32.mrb[139].mxu1  ;;  %v6903_v34 = vpop.f32.mrb[139].mxu0  ;;  %8487 = vmatmul.mubr.bf16.gmra.mrb[180].mxu1 %v7274_v52  ;;  %8544 = vmatmul.mubr.bf16.gmra.mrb[180].mxu0 %v7276_v46  ;;  %v7226_v3 = vmax.f32 %v6835_v8, 0.0  ;;  %v7228_v61 = vmax.f32 %v6898_v59, 0.0  ;;  %v12095_v51 = vld [vmem:[%s15012_s13 + $0x260] sm:$0xff]   ;;  %v12102_v48 = vld [vmem:[%s15012_s13 + $0x2a8] sm:$0xff]  }
0x1bad   : > { %v6841_v58 = vadd.f32 %v6840_v0, %v15408_v19  ;;  %v6904_v1 = vadd.f32 %v6903_v34, %v15413_v30  ;;  %10343 = vmatpush3.bf16.msra.mxu1 %v12089_v17  ;;  %10377 = vmatpush3.bf16.msra.mxu0 %v12090_v41  ;;  %v7227_v40 = vmax.f32 %v6837_v42, 0.0  ;;  %v7229_v19 = vmax.f32 %v6900_v7, 0.0  ;;  %v12103_v52 = vld [vmem:[%s15012_s13 + $0x270] sm:$0xff]   ;;  %v12109_v34 = vld [vmem:[%s15012_s13 + $0x238] sm:$0xff]  }
0x1bae   : > { %v7242_v47 = vmax.f32 %v6839_v5, 0.0  ;;  %v7244_v36 = vmax.f32 %v6902_v33, 0.0  ;;  %10344 = vmatprep.subr.bf16.mxu1 %v12091_v26  ;;  %10378 = vmatprep.subr.bf16.mxu0 %v12092_v23  ;;  %v15466_v32 = vrot.slane %v15460_v12, %v15800_v4  ;;  %v15470_v49 = vrot.slane %v15460_v12, %v15802_v29  ;;  %v12104_v46 = vld [vmem:[%s15012_s13 + $0x2f0] sm:$0xff]  }
0x1baf   : > { %v7243_v27 = vmax.f32 %v6841_v58, 0.0  ;;  %v7245_v30 = vmax.f32 %v6904_v1, 0.0  ;;  %v15476_v14 = vrot.slane %v15460_v12, %v15801_v55  ;;  %v15480_v11 = vrot.slane %v15460_v12, %v15315_v38  ;;  %v12105_v4 = vld [vmem:[%s15012_s13 + $0x230] sm:$0xff]   ;;  %v12107_v55 = vld [vmem:[%s15012_s13 + $0x278] sm:$0xff]  }
0x1bb0   : > { %v7290_v37 = vpack.c.bf16 %v7242_v47, %v7226_v3  ;;  %v7292_v57 = vpack.c.bf16 %v7244_v36, %v7228_v61  ;;  %v12106_v17 = vld [vmem:[%s15012_s13 + $0x2b0] sm:$0xff]   ;;  %v12110_v58 = vld [vmem:[%s15012_s13 + $0x2b8] sm:$0xff]   ;;  %v12111_v61 = vld [vmem:[%s15012_s13 + $0x340] sm:$0xff]  }
0x1bb1   : > { %v7291_v15 = vpack.c.bf16 %v7243_v27, %v7227_v40  ;;  %v7293_v39 = vpack.c.bf16 %v7245_v30, %v7229_v19  ;;  %10345 = vmatpush3.bf16.msra.mxu1 %v12093_v63  ;;  %10379 = vmatpush3.bf16.msra.mxu0 %v12094_v28  ;;  %v12112_v47 = vld [vmem:[%s15012_s13 + $0x3c0] sm:$0xff]  }
0x1bb2   : > { %10346 = vmatprep.subr.bf16.mxu1 %v12095_v51  ;;  %10380 = vmatprep.subr.bf16.mxu0 %v12096_v20 }
0x1bb3   : > { %8494 = vmatprep.mubr.bf16.mxu1 %v7291_v15  ;;  %8551 = vmatprep.mubr.bf16.mxu0 %v7293_v39  ;;  %v12113_v39 = vld [vmem:[%s15012_s13 + $0x300] sm:$0xff]  }
0x1bb4   : > { %8495 = vmatmul.mubr.bf16.gmra.mrb[184].mxu1 %v7290_v37  ;;  %8552 = vmatmul.mubr.bf16.gmra.mrb[184].mxu0 %v7292_v57 }
0x1bb5   : > { %10347 = vmatpush3.bf16.msra.mxu1 %v12097_v9  ;;  %10381 = vmatpush3.bf16.msra.mxu0 %v12098_v44  ;;  %v12114_v9 = vld [vmem:[%s15012_s13 + $0x380] sm:$0xff]  }
0x1bb6   : > { %10348 = vmatprep.subr.bf16.mxu1 %v12099_v60  ;;  %10382 = vmatprep.subr.bf16.mxu0 %v12100_v35 }
0x1bb9   : > { %v6940_v24 = vpop.f32.mrb[140].mxu1  ;;  %v7003_v43 = vpop.f32.mrb[140].mxu0  ;;  %10349 = vmatpush3.bf16.msra.mxu1 %v12101_v45  ;;  %10383 = vmatpush3.bf16.msra.mxu0 %v12102_v48  ;;  %v12115_v48 = vld [vmem:[%s15012_s13 + $0x348] sm:$0xff]  }
0x1bba   : > { %v6941_v29 = vadd.f32 %v6940_v24, %v15466_v32  ;;  %v7004_v41 = vadd.f32 %v7003_v43, %v15470_v49  ;;  %v6942_v8 = vpop.f32.mrb[141].mxu1  ;;  %v7005_v59 = vpop.f32.mrb[141].mxu0  ;;  %10350 = vmatprep.subr.bf16.mxu1 %v12103_v52  ;;  %10384 = vmatprep.subr.bf16.mxu0 %v12104_v46  ;;  %v12116_v52 = vld [vmem:[%s15012_s13 + $0x3c8] sm:$0xff]  }
0x1bbb   : > { %v6943_v62 = vadd.f32 %v6942_v8, %v15476_v14  ;;  %v7006_v26 = vadd.f32 %v7005_v59, %v15480_v11  ;;  %v6944_v23 = vpop.f32.mrb[142].mxu1  ;;  %v7007_v42 = vpop.f32.mrb[142].mxu0 }
0x1bbc   : > { %v6945_v7 = vadd.f32 %v6944_v23, %v15466_v32  ;;  %v7008_v16 = vadd.f32 %v7007_v42, %v15470_v49  ;;  %v6946_v56 = vpop.f32.mrb[143].mxu1  ;;  %v7009_v5 = vpop.f32.mrb[143].mxu0  ;;  %v7166_v1 = vmax.f32 %v6941_v29, 0.0  ;;  %v7168_v63 = vmax.f32 %v7004_v41, 0.0 }
0x1bbd   : > { %v6947_v33 = vadd.f32 %v6946_v56, %v15476_v14  ;;  %v7010_v0 = vadd.f32 %v7009_v5, %v15480_v11  ;;  %10351 = vmatpush3.bf16.msra.mxu1 %v12105_v4  ;;  %10385 = vmatpush3.bf16.msra.mxu0 %v12106_v17  ;;  %v7167_v36 = vmax.f32 %v6943_v62, 0.0  ;;  %v7169_v51 = vmax.f32 %v7006_v26, 0.0  ;;  %v12118_v62 = vld [vmem:[%s15012_s13 + $0x388] sm:$0xff]   ;;  %v12120_v56 = vld [vmem:[%s15012_s13 + $0x3d0] sm:$0xff]  }
0x1bbe   : > { %v7182_v28 = vmax.f32 %v6945_v7, 0.0  ;;  %v7184_v3 = vmax.f32 %v7008_v16, 0.0  ;;  %10352 = vmatprep.subr.bf16.mxu1 %v12107_v55  ;;  %10386 = vmatprep.subr.bf16.mxu0 %v12108_v21  ;;  %v12117_v21 = vld [vmem:[%s15012_s13 + $0x308] sm:$0xff]   ;;  %v12119_v16 = vld [vmem:[%s15012_s13 + $0x350] sm:$0xff]  }
0x1bbf   : > { %v7183_v20 = vmax.f32 %v6947_v33, 0.0  ;;  %v7185_v40 = vmax.f32 %v7010_v0, 0.0 }
0x1bc0   : > { %v7262_v19 = vpack.c.bf16 %v7182_v28, %v7166_v1  ;;  %v7264_v27 = vpack.c.bf16 %v7184_v3, %v7168_v63 }
0x1bc1   : > { %v7263_v30 = vpack.c.bf16 %v7183_v20, %v7167_v36  ;;  %v7265_v37 = vpack.c.bf16 %v7185_v40, %v7169_v51  ;;  %v6950_v57 = vpop.f32.mrb[144].mxu1  ;;  %v7013_v15 = vpop.f32.mrb[144].mxu0  ;;  %10353 = vmatpush3.bf16.msra.mxu1 %v12109_v34  ;;  %10387 = vmatpush3.bf16.msra.mxu0 %v12110_v58  ;;  %v12122_v36 = vld [vmem:[%s15012_s13 + $0x390] sm:$0xff]  }
0x1bc2   : > { %v6951_v44 = vadd.f32 %v6950_v57, %v15466_v32  ;;  %v7014_v60 = vadd.f32 %v7013_v15, %v15470_v49  ;;  %v6952_v35 = vpop.f32.mrb[145].mxu1  ;;  %v7015_v45 = vpop.f32.mrb[145].mxu0  ;;  %10406 = vmatprep.subr.bf16.mxu1 %v12111_v61  ;;  %10440 = vmatprep.subr.bf16.mxu0 %v12112_v47  ;;  %v12121_v47 = vld [vmem:[%s15012_s13 + $0x310] sm:$0xff]  }
0x1bc3   : > { %v6953_v46 = vadd.f32 %v6952_v35, %v15476_v14  ;;  %v7016_v24 = vadd.f32 %v7015_v45, %v15480_v11  ;;  %v6954_v43 = vpop.f32.mrb[146].mxu1  ;;  %v7017_v4 = vpop.f32.mrb[146].mxu0  ;;  %8592 = vmatprep.mubr.bf16.mxu1 %v7263_v30  ;;  %8649 = vmatprep.mubr.bf16.mxu0 %v7265_v37  ;;  %v12124_v30 = vld [vmem:[%s15012_s13 + $0x3d8] sm:$0xff]  }
0x1bc4   : > { %v6955_v17 = vadd.f32 %v6954_v43, %v15466_v32  ;;  %v7018_v29 = vadd.f32 %v7017_v4, %v15470_v49  ;;  %v6956_v41 = vpop.f32.mrb[147].mxu1  ;;  %v7019_v8 = vpop.f32.mrb[147].mxu0  ;;  %8593 = vmatmul.mubr.bf16.vlgmr.msra.gmra.mrb[188].mxu1 %v7262_v19  ;;  %8650 = vmatmul.mubr.bf16.vlgmr.msra.gmra.mrb[188].mxu0 %v7264_v27  ;;  %v7198_v26 = vmax.f32 %v6951_v44, 0.0  ;;  %v7200_v23 = vmax.f32 %v7014_v60, 0.0  ;;  %v12123_v27 = vld [vmem:[%s15012_s13 + $0x358] sm:$0xff]  }
0x1bc5   : > { %v6957_v59 = vadd.f32 %v6956_v41, %v15476_v14  ;;  %v7020_v55 = vadd.f32 %v7019_v8, %v15480_v11  ;;  %10407 = vmatpush3.bf16.msra.mxu1 %v12113_v39  ;;  %10441 = vmatpush3.bf16.msra.mxu0 %v12114_v9  ;;  %v7199_v5 = vmax.f32 %v6953_v46, 0.0  ;;  %v7201_v33 = vmax.f32 %v7016_v24, 0.0  ;;  %v12126_v46 = vld [vmem:[%s15012_s13 + $0x398] sm:$0xff]  }
0x1bc6   : > { %v7214_v42 = vmax.f32 %v6955_v17, 0.0  ;;  %v7216_v7 = vmax.f32 %v7018_v29, 0.0  ;;  %10408 = vmatprep.subr.bf16.mxu1 %v12115_v48  ;;  %10442 = vmatprep.subr.bf16.mxu0 %v12116_v52  ;;  %v12125_v52 = vld [vmem:[%s15012_s13 + $0x318] sm:$0xff]   ;;  %v12128_v17 = vld [vmem:[%s15012_s13 + $0x3e0] sm:$0xff]  }
0x1bc7   : > { %v7215_v0 = vmax.f32 %v6957_v59, 0.0  ;;  %v7217_v34 = vmax.f32 %v7020_v55, 0.0 }
0x1bc8   : > { %v7278_v58 = vpack.c.bf16 %v7214_v42, %v7198_v26  ;;  %v7280_v1 = vpack.c.bf16 %v7216_v7, %v7200_v23  ;;  %v12130_v26 = vld [vmem:[%s15012_s13 + $0x3a0] sm:$0xff]   ;;  %v12131_v23 = vld [vmem:[%s15012_s13 + $0x368] sm:$0xff]  }
0x1bc9   : > { %v7279_v63 = vpack.c.bf16 %v7215_v0, %v7199_v5  ;;  %v7281_v28 = vpack.c.bf16 %v7217_v34, %v7201_v33  ;;  %v6960_v3 = vpop.f32.mrb[148].mxu1  ;;  %v7023_v61 = vpop.f32.mrb[148].mxu0  ;;  %10409 = vmatpush3.bf16.msra.mxu1 %v12117_v21  ;;  %10443 = vmatpush3.bf16.msra.mxu0 %v12118_v62  ;;  %v12129_v62 = vld [vmem:[%s15012_s13 + $0x320] sm:$0xff]   ;;  %v12132_v42 = vld [vmem:[%s15012_s13 + $0x3e8] sm:$0xff]   ;;  %v15543_v5 = vrot.slane %v15460_v12, %v5960_v53  ;;  %v12135_v33 = vld [vmem:[%s15012_s13 + $0x370] sm:$0xff]  }
0x1bca   : > { %v6961_v51 = vadd.f32 %v6960_v3, %v15466_v32  ;;  %v7024_v20 = vadd.f32 %v7023_v61, %v15470_v49  ;;  %v6962_v40 = vpop.f32.mrb[149].mxu1  ;;  %v7025_v19 = vpop.f32.mrb[149].mxu0  ;;  %10410 = vmatprep.subr.bf16.mxu1 %v12119_v16  ;;  %10444 = vmatprep.subr.bf16.mxu0 %v12120_v56  ;;  %v12133_v7 = vld [vmem:[%s15012_s13 + $0x328] sm:$0xff]   ;;  %v15538_v56 = vrot.slane %v15460_v12, %v15382_v31  ;;  %v12136_v0 = vld [vmem:[%s15012_s13 + $0x3f0] sm:$0xff]  }
0x1bcb   : > { %v6963_v37 = vadd.f32 %v6962_v40, %v15476_v14  ;;  %v7026_v57 = vadd.f32 %v7025_v19, %v15480_v11  ;;  %v6964_v15 = vpop.f32.mrb[150].mxu1  ;;  %v7027_v39 = vpop.f32.mrb[150].mxu0  ;;  %8600 = vmatprep.mubr.bf16.mxu1 %v7279_v63  ;;  %8657 = vmatprep.mubr.bf16.mxu0 %v7281_v28  ;;  %v12134_v16 = vld [vmem:[%s15012_s13 + $0x3a8] sm:$0xff]   ;;  %v15549_v34 = vrot.slane %v15460_v12, %v15386_v54  ;;  %v12137_v28 = vld [vmem:[%s15012_s13 + $0x330] sm:$0xff]  }
0x1bcc   : > { %v6965_v9 = vadd.f32 %v6964_v15, %v15466_v32  ;;  %v7028_v44 = vadd.f32 %v7027_v39, %v15470_v49  ;;  %v6966_v60 = vpop.f32.mrb[151].mxu1  ;;  %v7029_v35 = vpop.f32.mrb[151].mxu0  ;;  %8601 = vmatmul.mubr.bf16.gmra.mrb[192].mxu1 %v7278_v58  ;;  %8658 = vmatmul.mubr.bf16.gmra.mrb[192].mxu0 %v7280_v1  ;;  %v7230_v24 = vmax.f32 %v6961_v51, 0.0  ;;  %v7232_v43 = vmax.f32 %v7024_v20, 0.0  ;;  %v12127_v49 = vld [vmem:[%s15012_s13 + $0x360] sm:$0xff]   ;;  %v12138_v53 = vld [vmem:[%s15012_s13 + $0x3b0] sm:$0xff]  }
0x1bcd   : > { %v6967_v45 = vadd.f32 %v6966_v60, %v15476_v14  ;;  %v7030_v48 = vadd.f32 %v7029_v35, %v15480_v11  ;;  %10411 = vmatpush3.bf16.msra.mxu1 %v12121_v47  ;;  %10445 = vmatpush3.bf16.msra.mxu0 %v12122_v36  ;;  %v7231_v29 = vmax.f32 %v6963_v37, 0.0  ;;  %v7233_v14 = vmax.f32 %v7026_v57, 0.0  ;;  %v12140_v51 = vld [vmem:[%s15012_s13 + $0x3f8] sm:$0xff]  }
0x1bce   : > { %v7246_v4 = vmax.f32 %v6965_v9, 0.0  ;;  %v7248_v32 = vmax.f32 %v7028_v44, 0.0  ;;  %10412 = vmatprep.subr.bf16.mxu1 %v12123_v27  ;;  %10446 = vmatprep.subr.bf16.mxu0 %v12124_v30  ;;  %v15554_v58 = vrot.slane %v15460_v12, %v5964_v50  ;;  %v12141_v39 = vld [vmem:[%s15012_s13 + $0x338] sm:$0xff]  }
0x1bcf   : > { %v7247_v41 = vmax.f32 %v6967_v45, 0.0  ;;  %v7249_v11 = vmax.f32 %v7030_v48, 0.0  ;;  %v12142_v9 = vld [vmem:[%s15012_s13 + $0x3b8] sm:$0xff]  }
0x1bd0   : > { %v7294_v8 = vpack.c.bf16 %v7246_v4, %v7230_v24  ;;  %v7296_v59 = vpack.c.bf16 %v7248_v32, %v7232_v43 }
0x1bd1   : > { %v7295_v55 = vpack.c.bf16 %v7247_v41, %v7231_v29  ;;  %v7297_v21 = vpack.c.bf16 %v7249_v11, %v7233_v14  ;;  %10413 = vmatpush3.bf16.msra.mxu1 %v12125_v52  ;;  %10447 = vmatpush3.bf16.msra.mxu0 %v12126_v46 }
0x1bd2   : > { %10414 = vmatprep.subr.bf16.mxu1 %v12127_v49  ;;  %10448 = vmatprep.subr.bf16.mxu0 %v12128_v17 }
0x1bd3   : > { %8608 = vmatprep.mubr.bf16.mxu1 %v7295_v55  ;;  %8665 = vmatprep.mubr.bf16.mxu0 %v7297_v21 }
0x1bd4   : > { %8609 = vmatmul.mubr.bf16.gmra.mrb[196].mxu1 %v7294_v8  ;;  %8666 = vmatmul.mubr.bf16.gmra.mrb[196].mxu0 %v7296_v59 }
0x1bd5   : > { %10415 = vmatpush3.bf16.msra.mxu1 %v12129_v62  ;;  %10449 = vmatpush3.bf16.msra.mxu0 %v12130_v26 }
0x1bd6   : > { %10416 = vmatprep.subr.bf16.mxu1 %v12131_v23  ;;  %10450 = vmatprep.subr.bf16.mxu0 %v12132_v42 }
0x1bd9   : > { %v7066_v1 = vpop.f32.mrb[152].mxu1  ;;  %v7129_v63 = vpop.f32.mrb[152].mxu0  ;;  %10417 = vmatpush3.bf16.msra.mxu1 %v12133_v7  ;;  %10451 = vmatpush3.bf16.msra.mxu0 %v12134_v16 }
0x1bda   : > { %v7067_v3 = vadd.f32 %v7066_v1, %v15538_v56  ;;  %v7130_v61 = vadd.f32 %v7129_v63, %v15543_v5  ;;  %v7068_v47 = vpop.f32.mrb[153].mxu1  ;;  %v7131_v36 = vpop.f32.mrb[153].mxu0  ;;  %10418 = vmatprep.subr.bf16.mxu1 %v12135_v33  ;;  %10452 = vmatprep.subr.bf16.mxu0 %v12136_v0 }
0x1bdb   : > { %v7069_v50 = vadd.f32 %v7068_v47, %v15549_v34  ;;  %v7132_v12 = vadd.f32 %v7131_v36, %v15554_v58  ;;  %v7070_v20 = vpop.f32.mrb[154].mxu1  ;;  %v7133_v40 = vpop.f32.mrb[154].mxu0 }
0x1bdc   : > { %v7071_v19 = vadd.f32 %v7070_v20, %v15538_v56  ;;  %v7134_v27 = vadd.f32 %v7133_v40, %v15543_v5  ;;  %v7072_v30 = vpop.f32.mrb[155].mxu1  ;;  %v7135_v37 = vpop.f32.mrb[155].mxu0  ;;  %v7170_v44 = vmax.f32 %v7067_v3, 0.0  ;;  %v7172_v60 = vmax.f32 %v7130_v61, 0.0 }
0x1bdd   : > { %v7073_v57 = vadd.f32 %v7072_v30, %v15549_v34  ;;  %v7136_v15 = vadd.f32 %v7135_v37, %v15554_v58  ;;  %10419 = vmatpush3.bf16.msra.mxu1 %v12137_v28  ;;  %10453 = vmatpush3.bf16.msra.mxu0 %v12138_v53  ;;  %v7171_v48 = vmax.f32 %v7069_v50, 0.0  ;;  %v7173_v52 = vmax.f32 %v7132_v12, 0.0 }
0x1bde   : > { %v7186_v35 = vmax.f32 %v7071_v19, 0.0  ;;  %v7188_v45 = vmax.f32 %v7134_v27, 0.0  ;;  %10420 = vmatprep.subr.bf16.mxu1 %v12139_v13  ;;  %10454 = vmatprep.subr.bf16.mxu0 %v12140_v51 }
0x1bdf   : > { %v7187_v46 = vmax.f32 %v7073_v57, 0.0  ;;  %v7189_v24 = vmax.f32 %v7136_v15, 0.0 }
0x1be0   : > { %v7266_v43 = vpack.c.bf16 %v7186_v35, %v7170_v44  ;;  %v7268_v4 = vpack.c.bf16 %v7188_v45, %v7172_v60 }
0x1be1   : > { %v7267_v32 = vpack.c.bf16 %v7187_v46, %v7171_v48  ;;  %v7269_v49 = vpack.c.bf16 %v7189_v24, %v7173_v52  ;;  %v7076_v17 = vpop.f32.mrb[156].mxu1  ;;  %v7139_v29 = vpop.f32.mrb[156].mxu0  ;;  %10421 = vmatpush3.bf16.msra.mxu1 %v12141_v39  ;;  %10455 = vmatpush3.bf16.msra.mxu0 %v12142_v9 }
0x1be2   : > { %v7077_v14 = vadd.f32 %v7076_v17, %v15538_v56  ;;  %v7140_v41 = vadd.f32 %v7139_v29, %v15543_v5  ;;  %v7078_v11 = vpop.f32.mrb[157].mxu1  ;;  %v7141_v8 = vpop.f32.mrb[157].mxu0 }
0x1be3   : > { %v7079_v59 = vadd.f32 %v7078_v11, %v15549_v34  ;;  %v7142_v55 = vadd.f32 %v7141_v8, %v15554_v58  ;;  %v7080_v21 = vpop.f32.mrb[158].mxu1  ;;  %v7143_v62 = vpop.f32.mrb[158].mxu0  ;;  %8706 = vmatprep.mubr.bf16.mxu1 %v7267_v32  ;;  %8763 = vmatprep.mubr.bf16.mxu0 %v7269_v49 }
0x1be4   : > { %v7081_v26 = vadd.f32 %v7080_v21, %v15538_v56  ;;  %v7144_v23 = vadd.f32 %v7143_v62, %v15543_v5  ;;  %v7082_v42 = vpop.f32.mrb[159].mxu1  ;;  %v7145_v7 = vpop.f32.mrb[159].mxu0  ;;  %8707 = vmatmul.mubr.bf16.vlgmr.msra.gmra.mrb[200].mxu1 %v7266_v43  ;;  %8764 = vmatmul.mubr.bf16.vlgmr.msra.gmra.mrb[200].mxu0 %v7268_v4  ;;  %v7202_v0 = vmax.f32 %v7077_v14, 0.0  ;;  %v7204_v1 = vmax.f32 %v7140_v41, 0.0 }
0x1be5   : > { %v7083_v16 = vadd.f32 %v7082_v42, %v15549_v34  ;;  %v7146_v33 = vadd.f32 %v7145_v7, %v15554_v58  ;;  %v7203_v53 = vmax.f32 %v7079_v59, 0.0  ;;  %v7205_v3 = vmax.f32 %v7142_v55, 0.0 }
0x1be6   : > { %v7218_v63 = vmax.f32 %v7081_v26, 0.0  ;;  %v7220_v28 = vmax.f32 %v7144_v23, 0.0 }
0x1be7   : > { %v7219_v61 = vmax.f32 %v7083_v16, 0.0  ;;  %v7221_v47 = vmax.f32 %v7146_v33, 0.0 }
0x1be8   : > { %v7282_v36 = vpack.c.bf16 %v7218_v63, %v7202_v0  ;;  %v7284_v13 = vpack.c.bf16 %v7220_v28, %v7204_v1 }
0x1be9   : > { %v7283_v51 = vpack.c.bf16 %v7219_v61, %v7203_v53  ;;  %v7285_v50 = vpack.c.bf16 %v7221_v47, %v7205_v3  ;;  %v7086_v12 = vpop.f32.mrb[160].mxu1  ;;  %v7149_v20 = vpop.f32.mrb[160].mxu0 }
0x1bea   : > { %v7087_v40 = vadd.f32 %v7086_v12, %v15538_v56  ;;  %v7150_v19 = vadd.f32 %v7149_v20, %v15543_v5  ;;  %v7088_v27 = vpop.f32.mrb[161].mxu1  ;;  %v7151_v30 = vpop.f32.mrb[161].mxu0 }
0x1beb   : > { %v7089_v37 = vadd.f32 %v7088_v27, %v15549_v34  ;;  %v7152_v57 = vadd.f32 %v7151_v30, %v15554_v58  ;;  %v7090_v15 = vpop.f32.mrb[162].mxu1  ;;  %v7153_v39 = vpop.f32.mrb[162].mxu0  ;;  %8714 = vmatprep.mubr.bf16.mxu1 %v7283_v51  ;;  %8771 = vmatprep.mubr.bf16.mxu0 %v7285_v50 }
0x1bec   : > { %v7091_v9 = vadd.f32 %v7090_v15, %v15538_v56  ;;  %v7154_v44 = vadd.f32 %v7153_v39, %v15543_v5  ;;  %v7092_v60 = vpop.f32.mrb[163].mxu1  ;;  %v7155_v35 = vpop.f32.mrb[163].mxu0  ;;  %8715 = vmatmul.mubr.bf16.gmra.mrb[204].mxu1 %v7282_v36  ;;  %8772 = vmatmul.mubr.bf16.gmra.mrb[204].mxu0 %v7284_v13  ;;  %v7234_v52 = vmax.f32 %v7087_v40, 0.0  ;;  %v7236_v46 = vmax.f32 %v7150_v19, 0.0 }
0x1bed   : > { %v7093_v45 = vadd.f32 %v7092_v60, %v15549_v34  ;;  %v7156_v48 = vadd.f32 %v7155_v35, %v15554_v58  ;;  %v7235_v4 = vmax.f32 %v7089_v37, 0.0  ;;  %v7237_v32 = vmax.f32 %v7152_v57, 0.0  ;;  %v15587_v58 = vld [vmem:[%s14982_s3] sm:$0x3f] }
0x1bee   : > { %v7250_v24 = vmax.f32 %v7091_v9, 0.0  ;;  %v7252_v43 = vmax.f32 %v7154_v44, 0.0  ;;  %v7563_v11 = vrot.slane %v15587_v58, %v15315_v38 }
0x1bef   : > { %v7251_v49 = vmax.f32 %v7093_v45, 0.0  ;;  %v7253_v17 = vmax.f32 %v7156_v48, 0.0 }
0x1bf0   : > { %v7298_v56 = vpack.c.bf16 %v7250_v24, %v7234_v52  ;;  %v7300_v29 = vpack.c.bf16 %v7252_v43, %v7236_v46 }
0x1bf1   : > { %v7299_v5 = vpack.c.bf16 %v7251_v49, %v7235_v4  ;;  %v7301_v14 = vpack.c.bf16 %v7253_v17, %v7237_v32 }
0x1bf3   : > { %8722 = vmatprep.mubr.bf16.mxu1 %v7299_v5  ;;  %8779 = vmatprep.mubr.bf16.mxu0 %v7301_v14 }
0x1bf4   : > { %8723 = vmatmul.mubr.bf16.gmra.mrb[208].mxu1 %v7298_v56  ;;  %8780 = vmatmul.mubr.bf16.gmra.mrb[208].mxu0 %v7300_v29 }
0x1c2b   : > { %v10218_v34 = vpop.f32.mrb[164].mxu1  ;;  %v10252_v41 = vpop.f32.mrb[164].mxu0 }
0x1c2c   : > { %v10219_v8 = vpop.f32.mrb[165].mxu1  ;;  %v10253_v59 = vpop.f32.mrb[165].mxu0 }
0x1c2d   : > { %v10220_v55 = vadd.f32 %v10219_v8, %v10218_v34  ;;  %v10254_v21 = vadd.f32 %v10253_v59, %v10252_v41  ;;  %v10221_v62 = vpop.f32.mrb[166].mxu1  ;;  %v10255_v26 = vpop.f32.mrb[166].mxu0 }
0x1c2e   : > { %v10222_v23 = vpop.f32.mrb[167].mxu1  ;;  %v10256_v42 = vpop.f32.mrb[167].mxu0 }
0x1c2f   : > { %v8367_v7 = vadd.f32 %v10220_v55, %v7563_v11  ;;  %v10223_v16 = vadd.f32 %v10222_v23, %v10221_v62  ;;  %v10257_v33 = vadd.f32 %v10256_v42, %v10255_v26 }
0x1c31   : > { %v8424_v0 = vadd.f32 %v10254_v21, %v8367_v7  ;;  %v8370_v1 = vadd.f32 %v10223_v16, %v7563_v11 }
0x1c33   : > { %v8427_v63 = vadd.f32 %v10257_v33, %v8370_v1 }
0x1c66   : > { %v10224_v28 = vpop.f32.mrb[168].mxu1  ;;  %v10258_v53 = vpop.f32.mrb[168].mxu0 }
0x1c67   : > { %v10225_v3 = vpop.f32.mrb[169].mxu1  ;;  %v10259_v61 = vpop.f32.mrb[169].mxu0 }
0x1c68   : > { %v10226_v47 = vadd.f32 %v10225_v3, %v10224_v28  ;;  %v10260_v38 = vadd.f32 %v10259_v61, %v10258_v53  ;;  %v10227_v36 = vpop.f32.mrb[170].mxu1  ;;  %v10261_v13 = vpop.f32.mrb[170].mxu0 }
0x1c69   : > { %v10228_v51 = vpop.f32.mrb[171].mxu1  ;;  %v10262_v50 = vpop.f32.mrb[171].mxu0 }
0x1c6a   : > { %v8375_v12 = vadd.f32 %v10226_v47, %v7563_v11  ;;  %v10229_v20 = vadd.f32 %v10228_v51, %v10227_v36  ;;  %v10263_v40 = vadd.f32 %v10262_v50, %v10261_v13 }
0x1c6c   : > { %v8432_v19 = vadd.f32 %v10260_v38, %v8375_v12  ;;  %v8378_v27 = vadd.f32 %v10229_v20, %v7563_v11 }
0x1c6e   : > { %v8435_v30 = vadd.f32 %v10263_v40, %v8378_v27 }
0x1c6f   : > { %v10230_v37 = vpop.f32.mrb[172].mxu1  ;;  %v10264_v57 = vpop.f32.mrb[172].mxu0 }
0x1c70   : > { %v10231_v15 = vpop.f32.mrb[173].mxu1  ;;  %v10265_v39 = vpop.f32.mrb[173].mxu0 }
0x1c71   : > { %v10232_v9 = vadd.f32 %v10231_v15, %v10230_v37  ;;  %v10266_v44 = vadd.f32 %v10265_v39, %v10264_v57  ;;  %v10233_v60 = vpop.f32.mrb[174].mxu1  ;;  %v10267_v35 = vpop.f32.mrb[174].mxu0 }
0x1c72   : > { %v10234_v45 = vpop.f32.mrb[175].mxu1  ;;  %v10268_v48 = vpop.f32.mrb[175].mxu0 }
0x1c73   : > { %v8383_v52 = vadd.f32 %v10232_v9, %v7563_v11  ;;  %v10235_v46 = vadd.f32 %v10234_v45, %v10233_v60  ;;  %v10269_v24 = vadd.f32 %v10268_v48, %v10267_v35 }
0x1c75   : > { %v8440_v43 = vadd.f32 %v10266_v44, %v8383_v52  ;;  %v8386_v4 = vadd.f32 %v10235_v46, %v7563_v11 }
0x1c77   : > { %v8443_v32 = vadd.f32 %v10269_v24, %v8386_v4  ;;  %v10286_v49 = vpop.f32.mrb[176].mxu1  ;;  %v10320_v17 = vpop.f32.mrb[176].mxu0 }
0x1c78   : > { %v10287_v56 = vpop.f32.mrb[177].mxu1  ;;  %v10321_v29 = vpop.f32.mrb[177].mxu0 }
0x1c79   : > { %v10288_v5 = vadd.f32 %v10287_v56, %v10286_v49  ;;  %v10322_v14 = vadd.f32 %v10321_v29, %v10320_v17  ;;  %v10289_v34 = vpop.f32.mrb[178].mxu1  ;;  %v10323_v41 = vpop.f32.mrb[178].mxu0 }
0x1c7a   : > { %v10290_v8 = vpop.f32.mrb[179].mxu1  ;;  %v10324_v59 = vpop.f32.mrb[179].mxu0 }
0x1c7b   : > { %v8481_v55 = vadd.f32 %v10288_v5, %v8424_v0  ;;  %v10291_v21 = vadd.f32 %v10290_v8, %v10289_v34  ;;  %v10325_v62 = vadd.f32 %v10324_v59, %v10323_v41 }
0x1c7d   : > { %v8538_v26 = vadd.f32 %v10322_v14, %v8481_v55  ;;  %v8484_v23 = vadd.f32 %v10291_v21, %v8427_v63 }
0x1c7f   : > { %v8541_v42 = vadd.f32 %v10325_v62, %v8484_v23  ;;  %v10292_v7 = vpop.f32.mrb[180].mxu1  ;;  %v10326_v16 = vpop.f32.mrb[180].mxu0 }
0x1c80   : > { %v10293_v11 = vpop.f32.mrb[181].mxu1  ;;  %v10327_v33 = vpop.f32.mrb[181].mxu0 }
0x1c81   : > { %v10294_v1 = vadd.f32 %v10293_v11, %v10292_v7  ;;  %v10328_v28 = vadd.f32 %v10327_v33, %v10326_v16  ;;  %v10295_v53 = vpop.f32.mrb[182].mxu1  ;;  %v10329_v3 = vpop.f32.mrb[182].mxu0 }
0x1c82   : > { %v10296_v61 = vpop.f32.mrb[183].mxu1  ;;  %v10330_v47 = vpop.f32.mrb[183].mxu0 }
0x1c83   : > { %v8489_v38 = vadd.f32 %v10294_v1, %v8432_v19  ;;  %v10297_v36 = vadd.f32 %v10296_v61, %v10295_v53  ;;  %v10331_v13 = vadd.f32 %v10330_v47, %v10329_v3 }
0x1c85   : > { %v8546_v51 = vadd.f32 %v10328_v28, %v8489_v38  ;;  %v8492_v0 = vadd.f32 %v10297_v36, %v8435_v30 }
0x1c87   : > { %v8549_v50 = vadd.f32 %v10331_v13, %v8492_v0  ;;  %v10298_v12 = vpop.f32.mrb[184].mxu1  ;;  %v10332_v20 = vpop.f32.mrb[184].mxu0 }
0x1c88   : > { %v10299_v63 = vpop.f32.mrb[185].mxu1  ;;  %v10333_v40 = vpop.f32.mrb[185].mxu0 }
0x1c89   : > { %v10300_v27 = vadd.f32 %v10299_v63, %v10298_v12  ;;  %v10334_v37 = vadd.f32 %v10333_v40, %v10332_v20  ;;  %v10301_v57 = vpop.f32.mrb[186].mxu1  ;;  %v10335_v15 = vpop.f32.mrb[186].mxu0 }
0x1c8a   : > { %v10302_v39 = vpop.f32.mrb[187].mxu1  ;;  %v10336_v9 = vpop.f32.mrb[187].mxu0 }
0x1c8b   : > { %v8497_v44 = vadd.f32 %v10300_v27, %v8440_v43  ;;  %v10303_v60 = vadd.f32 %v10302_v39, %v10301_v57  ;;  %v10337_v35 = vadd.f32 %v10336_v9, %v10335_v15 }
0x1c8d   : > { %v8554_v45 = vadd.f32 %v10334_v37, %v8497_v44  ;;  %v8500_v19 = vadd.f32 %v10303_v60, %v8443_v32 }
0x1c8f   : > { %v8557_v48 = vadd.f32 %v10337_v35, %v8500_v19 }
0x1c97   : > { %v10354_v52 = vpop.f32.mrb[188].mxu1  ;;  %v10388_v46 = vpop.f32.mrb[188].mxu0 }
0x1c98   : > { %v10355_v30 = vpop.f32.mrb[189].mxu1  ;;  %v10389_v24 = vpop.f32.mrb[189].mxu0 }
0x1c99   : > { %v10356_v4 = vadd.f32 %v10355_v30, %v10354_v52  ;;  %v10390_v49 = vadd.f32 %v10389_v24, %v10388_v46  ;;  %v10357_v17 = vpop.f32.mrb[190].mxu1  ;;  %v10391_v56 = vpop.f32.mrb[190].mxu0 }
0x1c9a   : > { %v10358_v29 = vpop.f32.mrb[191].mxu1  ;;  %v10392_v5 = vpop.f32.mrb[191].mxu0 }
0x1c9b   : > { %v8595_v14 = vadd.f32 %v10356_v4, %v8538_v26  ;;  %v10359_v34 = vadd.f32 %v10358_v29, %v10357_v17  ;;  %v10393_v41 = vadd.f32 %v10392_v5, %v10391_v56 }
0x1c9d   : > { %v8652_v8 = vadd.f32 %v10390_v49, %v8595_v14  ;;  %v8598_v43 = vadd.f32 %v10359_v34, %v8541_v42 }
0x1c9f   : > { %v8655_v59 = vadd.f32 %v10393_v41, %v8598_v43  ;;  %v10360_v55 = vpop.f32.mrb[192].mxu1  ;;  %v10394_v21 = vpop.f32.mrb[192].mxu0 }
0x1ca0   : > { %v10361_v32 = vpop.f32.mrb[193].mxu1  ;;  %v10395_v62 = vpop.f32.mrb[193].mxu0 }
0x1ca1   : > { %v10362_v23 = vadd.f32 %v10361_v32, %v10360_v55  ;;  %v10396_v7 = vadd.f32 %v10395_v62, %v10394_v21  ;;  %v10363_v16 = vpop.f32.mrb[194].mxu1  ;;  %v10397_v11 = vpop.f32.mrb[194].mxu0 }
0x1ca2   : > { %v10364_v33 = vpop.f32.mrb[195].mxu1  ;;  %v10398_v1 = vpop.f32.mrb[195].mxu0 }
0x1ca3   : > { %v8603_v28 = vadd.f32 %v10362_v23, %v8546_v51  ;;  %v10365_v53 = vadd.f32 %v10364_v33, %v10363_v16  ;;  %v10399_v3 = vadd.f32 %v10398_v1, %v10397_v11 }
0x1ca5   : > { %v8660_v61 = vadd.f32 %v10396_v7, %v8603_v28  ;;  %v8606_v26 = vadd.f32 %v10365_v53, %v8549_v50 }
0x1ca7   : > { %v8663_v47 = vadd.f32 %v10399_v3, %v8606_v26  ;;  %v10366_v38 = vpop.f32.mrb[196].mxu1  ;;  %v10400_v36 = vpop.f32.mrb[196].mxu0 }
0x1ca8   : > { %v10367_v42 = vpop.f32.mrb[197].mxu1  ;;  %v10401_v13 = vpop.f32.mrb[197].mxu0 }
0x1ca9   : > { %v10368_v0 = vadd.f32 %v10367_v42, %v10366_v38  ;;  %v10402_v12 = vadd.f32 %v10401_v13, %v10400_v36  ;;  %v10369_v20 = vpop.f32.mrb[198].mxu1  ;;  %v10403_v63 = vpop.f32.mrb[198].mxu0 }
0x1caa   : > { %v10370_v40 = vpop.f32.mrb[199].mxu1  ;;  %v10404_v27 = vpop.f32.mrb[199].mxu0 }
0x1cab   : > { %v8611_v37 = vadd.f32 %v10368_v0, %v8554_v45  ;;  %v10371_v57 = vadd.f32 %v10370_v40, %v10369_v20  ;;  %v10405_v15 = vadd.f32 %v10404_v27, %v10403_v63 }
0x1cad   : > { %v8668_v39 = vadd.f32 %v10402_v12, %v8611_v37  ;;  %v8614_v51 = vadd.f32 %v10371_v57, %v8557_v48 }
0x1caf   : > { %v8671_v9 = vadd.f32 %v10405_v15, %v8614_v51 }
0x1cb7   : > { %v10422_v44 = vpop.f32.mrb[200].mxu1  ;;  %v10456_v60 = vpop.f32.mrb[200].mxu0 }
0x1cb8   : > { %v10423_v50 = vpop.f32.mrb[201].mxu1  ;;  %v10457_v35 = vpop.f32.mrb[201].mxu0 }
0x1cb9   : > { %v10424_v19 = vadd.f32 %v10423_v50, %v10422_v44  ;;  %v10458_v52 = vadd.f32 %v10457_v35, %v10456_v60  ;;  %v10425_v46 = vpop.f32.mrb[202].mxu1  ;;  %v10459_v30 = vpop.f32.mrb[202].mxu0 }
0x1cba   : > { %v10426_v24 = vpop.f32.mrb[203].mxu1  ;;  %v10460_v4 = vpop.f32.mrb[203].mxu0 }
0x1cbb   : > { %v8709_v49 = vadd.f32 %v10424_v19, %v8652_v8  ;;  %v10427_v17 = vadd.f32 %v10426_v24, %v10425_v46  ;;  %v10461_v56 = vadd.f32 %v10460_v4, %v10459_v30 }
0x1cbd   : > { %v8766_v29 = vadd.f32 %v10458_v52, %v8709_v49  ;;  %v8712_v45 = vadd.f32 %v10427_v17, %v8655_v59 }
0x1cbf   : > { %v8769_v5 = vadd.f32 %v10461_v56, %v8712_v45  ;;  %v10428_v14 = vpop.f32.mrb[204].mxu1  ;;  %v10462_v34 = vpop.f32.mrb[204].mxu0  ;;  %v8788_v48 = vadd.f32 %v8766_v29, %v15087_v18 }
0x1cc0   : > { %v10429_v41 = vpop.f32.mrb[205].mxu1  ;;  %v10463_v43 = vpop.f32.mrb[205].mxu0 }
0x1cc1   : > { %v10430_v55 = vadd.f32 %v10429_v41, %v10428_v14  ;;  %v10464_v21 = vadd.f32 %v10463_v43, %v10462_v34  ;;  %v10431_v32 = vpop.f32.mrb[206].mxu1  ;;  %v10465_v62 = vpop.f32.mrb[206].mxu0  ;;  %8794 = vadd.xlane.f32.xlu0 %v8788_v48  ;;  %v8789_v23 = vadd.f32 %v8769_v5, %v15090_v22 }
0x1cc2   : > { %v10432_v7 = vpop.f32.mrb[207].mxu1  ;;  %v10466_v8 = vpop.f32.mrb[207].mxu0 }
0x1cc3   : > { %v8717_v16 = vadd.f32 %v10430_v55, %v8660_v61  ;;  %v10433_v11 = vadd.f32 %v10432_v7, %v10431_v32  ;;  %v10467_v33 = vadd.f32 %v10466_v8, %v10465_v62  ;;  %8796 = vadd.xlane.f32.xlu1 %v8789_v23 }
0x1cc5   : > { %v8774_v59 = vadd.f32 %v10464_v21, %v8717_v16  ;;  %v8720_v1 = vadd.f32 %v10433_v11, %v8663_v47  ;;  %v8863_v11 = vrot.slane %v15587_v58, %v15382_v31 }
0x1cc7   : > { %v8777_v28 = vadd.f32 %v10467_v33, %v8720_v1  ;;  %v10434_v53 = vpop.f32.mrb[208].mxu1  ;;  %v10468_v18 = vpop.f32.mrb[208].mxu0  ;;  %v8790_v3 = vadd.f32 %v8774_v59, %v15145_v2  ;;  %v8873_v59 = vrot.slane %v15587_v58, %v15386_v54 }
0x1cc8   : > { %v10435_v26 = vpop.f32.mrb[209].mxu1  ;;  %v10469_v38 = vpop.f32.mrb[209].mxu0 }
0x1cc9   : > { %v10436_v36 = vadd.f32 %v10435_v26, %v10434_v53  ;;  %v10470_v42 = vadd.f32 %v10469_v38, %v10468_v18  ;;  %v10437_v13 = vpop.f32.mrb[210].mxu1  ;;  %v10471_v0 = vpop.f32.mrb[210].mxu0  ;;  %8798 = vadd.xlane.f32.xlu0 %v8790_v3  ;;  %v8791_v22 = vadd.f32 %v8777_v28, %v15148_v10 }
0x1cca   : > { %v10438_v61 = vpop.f32.mrb[211].mxu1  ;;  %v10472_v12 = vpop.f32.mrb[211].mxu0 }
0x1ccb   : > { %v8725_v20 = vadd.f32 %v10436_v36, %v8668_v39  ;;  %v10439_v63 = vadd.f32 %v10438_v61, %v10437_v13  ;;  %v10473_v40 = vadd.f32 %v10472_v12, %v10471_v0  ;;  %8800 = vadd.xlane.f32.xlu1 %v8791_v22 }
0x1ccd   : > { %v8782_v47 = vadd.f32 %v10470_v42, %v8725_v20  ;;  %v8728_v27 = vadd.f32 %v10439_v63, %v8671_v9 }
0x1ccf   : > { %v8785_v37 = vadd.f32 %v10473_v40, %v8728_v27  ;;  %v8792_v2 = vadd.f32 %v8782_v47, %v15163_v25 }
0x1cd1   : > { %8802 = vadd.xlane.f32.xlu0 %v8792_v2  ;;  %v8793_v57 = vadd.f32 %v8785_v37, %v15166_v6 }
0x1cd3   : > { %8804 = vadd.xlane.f32.xlu1 %v8793_v57 }
0x1d4e   : > { %v8795_v15 = vpop.xlane.xlu0 %8794 }
0x1d4f   : > { %v8806_v51 = vmul.f32 0.0078125, %v8795_v15 }
0x1d50   : > { %v8797_v44 = vpop.xlane.xlu1 %8796 }
0x1d51   : > { %v8812_v60 = vsub.f32 %v8788_v48, %v8806_v51  ;;  %v8807_v10 = vmul.f32 0.0078125, %v8797_v44 }
0x1d53   : > { %v8813_v50 = vsub.f32 %v8789_v23, %v8807_v10  ;;  %v8818_v35 = vmul.f32 %v8812_v60, %v8812_v60  ;;  %v8890_v10 = vld [vmem:[#allocation24] sm:$0xff] (!%p9946_p13) }
0x1d55   : > { %8824 = vadd.xlane.f32.xlu0 %v8818_v35  ;;  %v8819_v39 = vmul.f32 %v8813_v50, %v8813_v50  ;;  %v8892_v35 = vld [vmem:[#allocation24 + $0x10] sm:$0xff] (!%p9946_p13) }
0x1d56   : > { %v8799_v19 = vpop.xlane.xlu0 %8798 }
0x1d57   : > { %v8808_v52 = vmul.f32 0.0078125, %v8799_v19  ;;  %8826 = vadd.xlane.f32.xlu1 %v8819_v39  ;;  %v8893_v19 = vld [vmem:[#allocation24 + $0x18] sm:$0xff] (!%p9946_p13) }
0x1d58   : > { %v8801_v9 = vpop.xlane.xlu1 %8800 }
0x1d59   : > { %v8814_v46 = vsub.f32 %v8790_v3, %v8808_v52  ;;  %v8809_v30 = vmul.f32 0.0078125, %v8801_v9  ;;  %v11375_v52 = vpack.c.bf16 (!%p9946_p13), %v8893_v19, %v8892_v35  ;;  %v8894_v9 = vld [vmem:[#allocation24 + $0x20] sm:$0xff] (!%p9946_p13) }
0x1d5a   : > { %v9102_v35 = vld [vmem:[#allocation30 + $0x60] sm:$0xff] (!%p9946_p13) }
0x1d5b   : > { %v8815_v25 = vsub.f32 %v8791_v22, %v8809_v30  ;;  %v8820_v24 = vmul.f32 %v8814_v46, %v8814_v46 }
0x1d5d   : > { %8828 = vadd.xlane.f32.xlu0 %v8820_v24  ;;  %v8821_v6 = vmul.f32 %v8815_v25, %v8815_v25  ;;  %v8990_v24 = vld [vmem:[#allocation27] sm:$0xff] (!%p9946_p13) }
0x1d5e   : > { %v8803_v4 = vpop.xlane.xlu0 %8802 }
0x1d5f   : > { %v8810_v49 = vmul.f32 0.0078125, %v8803_v4  ;;  %8830 = vadd.xlane.f32.xlu1 %v8821_v6  ;;  %v8991_v6 = vld [vmem:[#allocation27 + $0x8] sm:$0xff] (!%p9946_p13)  ;;  %v8897_v4 = vld [vmem:[#allocation24 + $0x38] sm:$0xff] (!%p9946_p13) }
0x1d60   : > { %v8805_v17 = vpop.xlane.xlu1 %8804 }
0x1d61   : > { %v8816_v56 = vsub.f32 %v8792_v2, %v8810_v49  ;;  %v8811_v29 = vmul.f32 0.0078125, %v8805_v17  ;;  %v11403_v49 = vpack.c.bf16 (!%p9946_p13), %v8991_v6, %v8990_v24  ;;  %v8992_v17 = vld [vmem:[#allocation27 + $0x10] sm:$0xff] (!%p9946_p13) }
0x1d63   : > { %v8817_v45 = vsub.f32 %v8793_v57, %v8811_v29  ;;  %v8822_v5 = vmul.f32 %v8816_v56, %v8816_v56  ;;  %11404 = vmatprep.subr.bf16.mxu1 (!%p9946_p13), %v11403_v49 }
0x1d64   : > { %11406 = vmatpush3.bf16.msra.mxu1 (!%p9946_p13), %v11403_v49  ;;  %v9105_v49 = vld [vmem:[#allocation30 + $0x78] sm:$0xff] (!%p9946_p13) }
0x1d65   : > { %8832 = vadd.xlane.f32.xlu0 %v8822_v5  ;;  %v8823_v14 = vmul.f32 %v8817_v45, %v8817_v45  ;;  %v8995_v5 = vld [vmem:[#allocation27 + $0x28] sm:$0xff] (!%p9946_p13) }
0x1d67   : > { %8834 = vadd.xlane.f32.xlu1 %v8823_v14 }
0x1de2   : > { %v8825_v34 = vpop.xlane.xlu0 %8824 }
0x1de3   : > { %v8836_v48 = vmul.f32 0.0078125, %v8825_v34  ;;  %v8898_v34 = vld [vmem:[#allocation24 + $0x40] sm:$0xff] (!%p9946_p13) }
0x1de4   : > { %v8827_v41 = vpop.xlane.xlu1 %8826 }
0x1de5   : > { %v8842_v43 = vadd.f32 1e-05, %v8836_v48  ;;  %v8837_v55 = vmul.f32 0.0078125, %v8827_v41  ;;  %v8899_v48 = vld [vmem:[#allocation24 + $0x48] sm:$0xff] (!%p9946_p13) }
0x1de7   : > { %12347 = vrsqrt.f32 %v8842_v43  ;;  %v8843_v21 = vadd.f32 1e-05, %v8837_v55  ;;  %v8996_v43 = vld [vmem:[#allocation27 + $0x30] sm:$0xff] (!%p9946_p13)  ;;  %v8997_v55 = vld [vmem:[#allocation27 + $0x38] sm:$0xff] (!%p9946_p13) }
0x1de9   : > { %12349 = vrsqrt.f32 %v8843_v21  ;;  %v11387_v21 = vpack.c.bf16 (!%p9946_p13), %v8899_v48, %v8898_v34 }
0x1dea   : > { %v8829_v32 = vpop.xlane.xlu0 %8828 }
0x1deb   : > { %v8838_v62 = vmul.f32 0.0078125, %v8829_v32  ;;  %v8900_v32 = vld [vmem:[#allocation24 + $0x50] sm:$0xff] (!%p9946_p13) }
0x1dec   : > { %v8831_v23 = vpop.xlane.xlu1 %8830 }
0x1ded   : > { %v8844_v7 = vadd.f32 1e-05, %v8838_v62  ;;  %v8839_v8 = vmul.f32 0.0078125, %v8831_v23  ;;  %v8901_v62 = vld [vmem:[#allocation24 + $0x58] sm:$0xff] (!%p9946_p13)  ;;  %v11415_v23 = vpack.c.bf16 (!%p9946_p13), %v8997_v55, %v8996_v43 }
0x1def   : > { %12351 = vrsqrt.f32 %v8844_v7  ;;  %v8845_v16 = vadd.f32 1e-05, %v8839_v8  ;;  %v8998_v7 = vld [vmem:[#allocation27 + $0x40] sm:$0xff] (!%p9946_p13)  ;;  %v8999_v8 = vld [vmem:[#allocation27 + $0x48] sm:$0xff] (!%p9946_p13) }
0x1df1   : > { %v12348_v33 = vpop.eup %12347  ;;  %12353 = vrsqrt.f32 %v8845_v16  ;;  %v11391_v16 = vpack.c.bf16 (!%p9946_p13), %v8901_v62, %v8900_v32 }
0x1df2   : > { %v8854_v1 = vmul.f32 %v12348_v33, %v8812_v60  ;;  %v8833_v28 = vpop.xlane.xlu0 %8832  ;;  %v8903_v33 = vld [vmem:[#allocation24 + $0x68] sm:$0xff] (!%p9946_p13) }
0x1df3   : > { %v12350_v53 = vpop.eup %12349  ;;  %v8840_v18 = vmul.f32 0.0078125, %v8833_v28  ;;  %v9001_v28 = vld [vmem:[#allocation27 + $0x58] sm:$0xff] (!%p9946_p13) }
0x1df4   : > { %v8864_v3 = vmul.f32 %v8863_v11, %v8854_v1  ;;  %v8855_v26 = vmul.f32 %v12350_v53, %v8813_v50  ;;  %v8835_v38 = vpop.xlane.xlu1 %8834  ;;  %v8891_v50 = vld [vmem:[#allocation24 + $0x8] sm:$0xff] (!%p9946_p13)  ;;  %v9000_v1 = vld [vmem:[#allocation27 + $0x50] sm:$0xff] (!%p9946_p13) }
0x1df5   : > { %v8846_v36 = vadd.f32 1e-05, %v8840_v18  ;;  %v8841_v42 = vmul.f32 0.0078125, %v8835_v38  ;;  %v11371_v39 = vpack.c.bf16 (!%p9946_p13), %v8891_v50, %v8890_v10  ;;  %v8904_v18 = vld [vmem:[#allocation24 + $0x70] sm:$0xff] (!%p9946_p13)  ;;  %v9002_v38 = vld [vmem:[#allocation27 + $0x60] sm:$0xff] (!%p9946_p13) }
0x1df6   : > { %v8874_v13 = vadd.f32 %v8873_v59, %v8864_v3  ;;  %v8865_v0 = vmul.f32 %v8863_v11, %v8855_v26  ;;  %v8905_v3 = vld [vmem:[#allocation24 + $0x78] sm:$0xff] (!%p9946_p13)  ;;  %v11423_v26 = vpack.c.bf16 (!%p9946_p13), %v9001_v28, %v9000_v1 }
0x1df7   : > { %12355 = vrsqrt.f32 %v8846_v36  ;;  %v8847_v22 = vadd.f32 1e-05, %v8841_v42  ;;  %11372 = vmatprep.subr.bf16.mxu0 (!%p9946_p13), %v11371_v39  ;;  %v9003_v36 = vld [vmem:[#allocation27 + $0x68] sm:$0xff] (!%p9946_p13)  ;;  %v11399_v42 = vpack.c.bf16 (!%p9946_p13), %v8905_v3, %v8904_v18  ;;  %v9101_v10 = vld [vmem:[#allocation30 + $0x58] sm:$0xff] (!%p9946_p13) }
0x1df8   : > { %8880 = vst [vmem:[#allocation2] sm:$0xff] %v8874_v13  ;;  %v8875_v31 = vadd.f32 %v8873_v59, %v8865_v0  ;;  %11374 = vmatpush3.bf16.msra.mxu0 (!%p9946_p13), %v11371_v39  ;;  %v11427_v13 = vpack.c.bf16 (!%p9946_p13), %v9003_v36, %v9002_v38  ;;  %v9004_v0 = vld [vmem:[#allocation27 + $0x70] sm:$0xff] (!%p9946_p13) }
0x1df9   : > { %v12352_v61 = vpop.eup %12351  ;;  %12357 = vrsqrt.f32 %v8847_v22  ;;  %11376 = vmatprep.subr.bf16.mxu0 (!%p9946_p13), %v11375_v52  ;;  %v9005_v22 = vld [vmem:[#allocation27 + $0x78] sm:$0xff] (!%p9946_p13)  ;;  %v9103_v39 = vld [vmem:[#allocation30 + $0x68] sm:$0xff] (!%p9946_p13) }
0x1dfa   : > { %8881 = vst [vmem:[#allocation2 + $0x8] sm:$0xff] %v8875_v31  ;;  %v8856_v12 = vmul.f32 %v12352_v61, %v8814_v46  ;;  %v8895_v46 = vld [vmem:[#allocation24 + $0x28] sm:$0xff] (!%p9946_p13)  ;;  %v11431_v31 = vpack.c.bf16 (!%p9946_p13), %v9005_v22, %v9004_v0  ;;  %v11459_v19 = vpack.c.bf16 (!%p9946_p13), %v9103_v39, %v9102_v35 }
0x1dfb   : > { %v12354_v54 = vpop.eup %12353  ;;  %v11379_v30 = vpack.c.bf16 (!%p9946_p13), %v8895_v46, %v8894_v9  ;;  %v9090_v61 = vld [vmem:[#allocation30] sm:$0xff] (!%p9946_p13) }
0x1dfc   : > { %v8866_v58 = vmul.f32 %v8863_v11, %v8856_v12  ;;  %v8857_v20 = vmul.f32 %v12354_v54, %v8815_v25  ;;  %v8896_v25 = vld [vmem:[#allocation24 + $0x30] sm:$0xff] (!%p9946_p13)  ;;  %11378 = vmatpush3.bf16.msra.mxu0 (!%p9946_p13), %v11375_v52  ;;  %v9947_v52 = vld [vmem:[#allocation26] ss:$0 sm:$0xff] (!%p9946_p13) }
0x1dfd   : > { %11380 = vmatprep.subr.bf16.mxu0 (!%p9946_p13), %v11379_v30  ;;  %v11383_v14 = vpack.c.bf16 (!%p9946_p13), %v8897_v4, %v8896_v25  ;;  %v9091_v12 = vld [vmem:[#allocation30 + $0x8] sm:$0xff] (!%p9946_p13)  ;;  %v9092_v54 = vld [vmem:[#allocation30 + $0x10] sm:$0xff] (!%p9946_p13) }
0x1dfe   : > { %v8876_v63 = vadd.f32 %v8873_v59, %v8866_v58  ;;  %v8867_v40 = vmul.f32 %v8863_v11, %v8857_v20  ;;  %v11435_v58 = vpack.c.bf16 (!%p9946_p13), %v9091_v12, %v9090_v61  ;;  %v9093_v20 = vld [vmem:[#allocation30 + $0x18] sm:$0xff] (!%p9946_p13)  ;;  %v9104_v4 = vld [vmem:[#allocation30 + $0x70] sm:$0xff] (!%p9946_p13) }
0x1e00   : > { %8882 = vst [vmem:[#allocation2 + $0x10] sm:$0xff] %v8876_v63  ;;  %v8877_v47 = vadd.f32 %v8873_v59, %v8867_v40  ;;  %11150 = vmatprep.mubr.f32.mxu0 (!%p9946_p13), %v8876_v63  ;;  %11382 = vmatpush3.bf16.msra.mxu0 (!%p9946_p13), %v11379_v30  ;;  %v11439_v63 = vpack.c.bf16 (!%p9946_p13), %v9093_v20, %v9092_v54  ;;  %v9094_v40 = vld [vmem:[#allocation30 + $0x20] sm:$0xff] (!%p9946_p13) }
0x1e01   : > { %v12356_v27 = vpop.eup %12355  ;;  %11384 = vmatprep.subr.bf16.mxu0 (!%p9946_p13), %v11383_v14 }
0x1e02   : > { %8883 = vst [vmem:[#allocation2 + $0x18] sm:$0xff] %v8877_v47  ;;  %v8858_v37 = vmul.f32 %v12356_v27, %v8816_v56  ;;  %v8993_v56 = vld [vmem:[#allocation27 + $0x18] sm:$0xff] (!%p9946_p13)  ;;  %v9095_v47 = vld [vmem:[#allocation30 + $0x28] sm:$0xff] (!%p9946_p13) }
0x1e03   : > { %v12358_v2 = vpop.eup %12357  ;;  %v11407_v29 = vpack.c.bf16 (!%p9946_p13), %v8993_v56, %v8992_v17  ;;  %v11443_v27 = vpack.c.bf16 (!%p9946_p13), %v9095_v47, %v9094_v40  ;;  %v11463_v17 = vpack.c.bf16 (!%p9946_p13), %v9105_v49, %v9104_v4  ;;  %v9948_v56 = vld [vmem:[#allocation29] ss:$0 sm:$0xff] (!%p9946_p13) }
0x1e04   : > { %v8868_v57 = vmul.f32 %v8863_v11, %v8858_v37  ;;  %v8859_v15 = vmul.f32 %v12358_v2, %v8817_v45  ;;  %8889 = sbr.rel (%p9946_p13) target bundleno = 8355 (0x20a3), region = 184  ;;  %v8994_v45 = vld [vmem:[#allocation27 + $0x20] sm:$0xff] (!%p9946_p13)  ;;  %11386 = vmatpush3.bf16.msra.mxu0 (!%p9946_p13), %v11383_v14  ;;  %v9096_v37 = vld [vmem:[#allocation30 + $0x30] sm:$0xff] (!%p9946_p13) }
0x1e05   : > { %11408 = vmatprep.subr.bf16.mxu1 (!%p9946_p13), %v11407_v29  ;;  %v11411_v41 = vpack.c.bf16 (!%p9946_p13), %v8995_v5, %v8994_v45  ;;  %11388 = vmatprep.subr.bf16.mxu0 (!%p9946_p13), %v11387_v21  ;;  %v9097_v2 = vld [vmem:[#allocation30 + $0x38] sm:$0xff] (!%p9946_p13) }
0x1e06   : > { %v8878_v51 = vadd.f32 %v8873_v59, %v8868_v57  ;;  %v8869_v44 = vmul.f32 %v8863_v11, %v8859_v15  ;;  %11410 = vmatpush3.bf16.msra.mxu1 (!%p9946_p13), %v11407_v29  ;;  %v8902_v11 = vld [vmem:[#allocation24 + $0x60] sm:$0xff] (!%p9946_p13)  ;;  %v11447_v57 = vpack.c.bf16 (!%p9946_p13), %v9097_v2, %v9096_v37 }
0x1e07   : > { %11412 = vmatprep.subr.bf16.mxu1 (!%p9946_p13), %v11411_v41  ;;  %v11395_v53 = vpack.c.bf16 (!%p9946_p13), %v8903_v33, %v8902_v11  ;;  %v9098_v15 = vld [vmem:[#allocation30 + $0x40] sm:$0xff] (!%p9946_p13) }
0x1e08   : > { %8884 = vst [vmem:[#allocation2 + $0x20] sm:$0xff] %v8878_v51  ;;  %v15601_v60 = vadd.f32 %v8873_v59, %v8869_v44  ;;  %v11419_v59 = vpack.c.bf16 (!%p9946_p13), %v8999_v8, %v8998_v7  ;;  %11390 = vmatpush3.bf16.msra.mxu0 (!%p9946_p13), %v11387_v21  ;;  %v9099_v51 = vld [vmem:[#allocation30 + $0x48] sm:$0xff] (!%p9946_p13) }
0x1e09   : > { %11392 = vmatprep.subr.bf16.mxu0 (!%p9946_p13), %v11391_v16  ;;  %v11451_v44 = vpack.c.bf16 (!%p9946_p13), %v9099_v51, %v9098_v15 }
0x1e0a   : > { %8885 = vst [vmem:[#allocation2 + $0x28] sm:$0xff] %v15601_v60  ;;  %11414 = vmatpush3.bf16.msra.mxu1 (!%p9946_p13), %v11411_v41  ;;  %v9949_v41 = vld [vmem:[#allocation32] ss:$0 sm:$0xff] (!%p9946_p13) }
0x1e0b   : > { %11416 = vmatprep.subr.bf16.mxu1 %v11415_v23 }
0x1e0c   : > { %11394 = vmatpush3.bf16.msra.mxu0 %v11391_v16 }
0x1e0d   : > { %11396 = vmatprep.subr.bf16.mxu0 %v11395_v53 }
0x1e0e   : > { %11418 = vmatpush3.bf16.msra.mxu1 %v11415_v23 }
0x1e0f   : > { %11420 = vmatprep.subr.bf16.mxu1 %v11419_v59 }
0x1e10   : > { %11398 = vmatpush3.bf16.msra.mxu0 %v11395_v53 }
0x1e11   : > { %11400 = vmatprep.subr.bf16.mxu0 %v11399_v42 }
0x1e12   : > { %11422 = vmatpush3.bf16.msra.mxu1 %v11419_v59 }
0x1e13   : > { %11424 = vmatprep.subr.bf16.mxu1 %v11423_v26 }
0x1e14   : > { %11402 = vmatpush3.bf16.msra.mxu0 %v11399_v42 }
0x1e15   : > { %11436 = vmatprep.subr.bf16.mxu0 %v11435_v58 }
0x1e16   : > { %11426 = vmatpush3.bf16.msra.mxu1 %v11423_v26 }
0x1e17   : > { %11428 = vmatprep.subr.bf16.mxu1 %v11427_v13  ;;  %11151 = vmatmul.mubr.f32.vlgmr.msra.gmra.mrb[0].mxu0 %v15601_v60  ;;  %v9100_v60 = vld [vmem:[#allocation30 + $0x50] sm:$0xff] }
0x1e18   : > { %11438 = vmatpush3.bf16.msra.mxu0 %v11435_v58  ;;  %v11455_v50 = vpack.c.bf16 %v9101_v10, %v9100_v60 }
0x1e19   : > { %11440 = vmatprep.subr.bf16.mxu0 %v11439_v63 }
0x1e1a   : > { %11430 = vmatpush3.bf16.msra.mxu1 %v11427_v13 }
0x1e1b   : > { %11432 = vmatprep.subr.bf16.mxu1 %v11431_v31 }
0x1e1c   : > { %11442 = vmatpush3.bf16.msra.mxu0 %v11439_v63 }
0x1e1d   : > { %11444 = vmatprep.subr.bf16.mxu0 %v11443_v27 }
0x1e1e   : > { %11434 = vmatpush3.bf16.msra.mxu1 %v11431_v31 }
0x1e20   : > { %11446 = vmatpush3.bf16.msra.mxu0 %v11443_v27 }
0x1e21   : > { %11448 = vmatprep.subr.bf16.mxu0 %v11447_v57 }
0x1e24   : > { %11450 = vmatpush3.bf16.msra.mxu0 %v11447_v57 }
0x1e25   : > { %11452 = vmatprep.subr.bf16.mxu0 %v11451_v44 }
0x1e28   : > { %11454 = vmatpush3.bf16.msra.mxu0 %v11451_v44 }
0x1e29   : > { %11456 = vmatprep.subr.bf16.mxu0 %v11455_v50 }
0x1e2c   : > { %11458 = vmatpush3.bf16.msra.mxu0 %v11455_v50 }
0x1e2d   : > { %11460 = vmatprep.subr.bf16.mxu0 %v11459_v19 }
0x1e30   : > { %11462 = vmatpush3.bf16.msra.mxu0 %v11459_v19 }
0x1e31   : > { %11464 = vmatprep.subr.bf16.mxu0 %v11463_v17 }
0x1e34   : > { %11466 = vmatpush3.bf16.msra.mxu0 %v11463_v17 }
0x1eea   : > { %v11152_v9 = vpop.f32.mrb[0].mxu0 }
0x1eeb   : > { %v8985_v46 = vadd.f32 %v11152_v9, %v9947_v52  ;;  %v8979_v30 = vpop.f32.mrb[1].mxu0 }
0x1eec   : > { %v8980_v25 = vadd.f32 %v9947_v52, %v8979_v30 }
0x1eed   : > { %v8989_v6 = vmax.f32 %v8985_v46, 0.0 }
0x1eee   : > { %v8988_v24 = vmax.f32 %v8980_v25, 0.0 }
0x1ef0   : > { %11185 = vmatprep.mubr.f32.mxu1 %v8988_v24 }
0x1ef1   : > { %11186 = vmatmul.mubr.f32.vlgmr.msra.gmra.mrb[0].mxu1 %v8989_v6 }
0x1fc4   : > { %v11187_v29 = vpop.f32.mrb[0].mxu1 }
0x1fc5   : > { %v9085_v45 = vadd.f32 %v11187_v29, %v9948_v56  ;;  %v9079_v5 = vpop.f32.mrb[1].mxu1 }
0x1fc6   : > { %v9080_v14 = vadd.f32 %v9948_v56, %v9079_v5 }
0x1fc7   : > { %v9089_v48 = vmax.f32 %v9085_v45, 0.0 }
0x1fc8   : > { %v9088_v34 = vmax.f32 %v9080_v14, 0.0 }
0x1fca   : > { %11220 = vmatprep.mubr.f32.mxu0 %v9088_v34 }
0x1fcb   : > { %11221 = vmatmul.mubr.f32.vlgmr.msra.gmra.mrb[2].mxu0 %v9089_v48 }
0x209e   : > { %v11222_v43 = vpop.f32.mrb[2].mxu0 }
0x209f   : > { %v9185_v55 = vadd.f32 %v11222_v43, %v9949_v41  ;;  %v9179_v21 = vpop.f32.mrb[3].mxu0 }
0x20a0   : > { %v9180_v32 = vadd.f32 %v9949_v41, %v9179_v21 }
0x20a1   : > { %9189 = vst [vmem:[#allocation33 + $0x8] sm:$0xff] %v9185_v55 }
0x20a2   : > { %9188 = vst [vmem:[#allocation33] sm:$0xff] %v9180_v32 }
0x20a3 PF: > { %s15804_s5 = sld [smem:[#allocation46_spill]]  ;;  %s13038_s15 = smov [#allocation33]  }
0x20a4   : > { %s9199_s25 = sshll.u32 %s13038_s15, 4  ;;  %s9200_s25 = int_to_ptr.vmem [resolvable:$true] %s9199_s25 }
0x20a5   : > { %s12902_s27 = scalar_lea.vmem %s9200_s25, 256  ;;  %p12909_p8 = scmp.lt.s32.totalorder %s9200_s25, %s9200_s25 }
0x20a6   : > { %p12903_p1 = scmp.ne.s32.totalorder %s9200_s25, %s12902_s27  ;;  %p12910_p9 = scmp.lt.s32.totalorder %s12902_s27, %s12902_s27 }
0x20a8   : > { %p12911_p10 = por %p12910_p9, %p12909_p8 }
0x20a9   : > { %s15805_s10 = sadd.s32 4294967295, %s15804_s5  }
0x20aa   : > { %p15608_p0 = scmp.eq.s32.totalorder %s15805_s10, 5 }
0x20ac   : > { %p12904_p4 = pnand %p12903_p1, %p15608_p0 }
0x20ae   : > { %p12905_p6 = pneg %p12904_p4 }
0x20b0   : > { %p12912_p11 = pnand %p12911_p10, %p12905_p6 }
0x20b2   : > { %12915 = shalt.err (!%p12912_p11)
}
0x20b3   : > { %s15807_s21 = sld [smem:[#allocation76_spill]] }
0x20b9   : > { %s12916_s3 = scalar_lea.hbm %s15807_s21, 256 }
0x20ba   : > { %p12917_p12 = scmp.ne.s32.totalorder %s15807_s21, %s12916_s3  ;;  %p12922_p7 = scmp.lt.u32.totalorder %s12916_s3, %s15807_s21 }
0x20bc   : > { %p12918_p2 = pnand %p12917_p12, %p15608_p0 }
0x20be   : > { %p12919_p3 = pneg %p12918_p2 }
0x20c0   : > { %p12924_p5 = pnand %p12922_p7, %p12919_p3 }
0x20c2   : > { %12927 = shalt.err (!%p12924_p5)
}
0x20c3   : > { %s13039_s2 = smov 128   ;;  %s13040_s5 = smov 8  }
0x20c4   : > { %11560 = dma.vmem_to_hbm [thread:$0]  (%p15608_p0), %s9200_s25, 256, %s15807_s21, [#allocation5], %s13039_s2, %s13039_s2, %s13040_s5  }
0x20c5   : > { %12981 = dma.done.wait (%p15608_p0), [#allocation5], 256  }
0x20c6   : > { %12983 = vsyncadd (%p15608_p0), [#allocation5], 4294967040 }
0x20c7 PF: > { %s15808_s27 = sld [smem:[#allocation46_spill]]  ;;  %s15809_s1 = smov %s12990_s22 }
0x20c8   : > { %s15810_s22 = smov %s15812_s17 }
0x20cd   : > { %s41_s23 = sadd.s32 1, %s15808_s27  }
0x20ce   : > { %p38_p13 = scmp.ge.s32.totalorder %s41_s23, 8  }
0x20d0   :  { %40 = sbr.rel (!%p38_p13) target bundleno = 28 (0x1c), region = 221 }
0x20d7   :  { %9215 = vsyncpa [#allocation4], 1 }
0x20d8   :  { %9217 = vsyncpa [#allocation4 + $0x1], 1 }
0x20d9   :  { %9218 = vsyncpa [#allocation7], 1 }
0x20da   :  { %9219 = vsyncpa [#allocation10], 1 }
0x20db   :  { %9220 = vsyncpa [#allocation13], 1 }
0x20dc   :  { %9221 = vsyncpa [#allocation16], 1 }
0x20dd   :  { %9222 = vsyncpa [#allocation19], 1 }
0x20de   :  { %9223 = vsyncpa [#allocation22], 1 }
0x20df   :  { %9224 = vsyncpa [#allocation25], 1 }
0x20e0   :  { %9225 = vsyncpa [#allocation28], 1 }
0x20e1   :  { %9226 = vsyncpa [#allocation31], 1 }
0x20e2   :  { %9227 = vsyncpa [#allocation5], 1 }
0x20e3   :  { %9229 = vsyncpa [#allocation5 + $0x1], 1 }

</bundles_post_ra>
